<compile_context>
chip_gen: v5e
topology: v5e:2x2
jax: 0.10.0
libtpu: 0.0.40
codegen_flags: <defaults>
</compile_context>

<pallas_src>
import functools
import math

import numpy as np
import jax
import jax.numpy as jnp
from jax.experimental import pallas as pl
from jax.experimental.pallas import tpu as pltpu

RMS_EPS = 1e-6
NEG_MIN = float(jnp.finfo(jnp.float32).min)


# ------------------------------------------------------------------
# Kernel 1: per-(batch, head) edge-mask mix + RMSNorm + rotary attention
# + per-head output projection.  Grid = (B, N).  Writes node P + n of the
# aliased node buffer directly (no concat).
# ------------------------------------------------------------------
def attn_head_kernel(*refs, causal):
    if causal:
        (mask_ref,      # SMEM (P, N)        edge_mask_attentions (f32)
         nodes_ref,     # VMEM (1, P, S, E)  original nodes, bf16
         lnw_ref,       # VMEM (1, E)        input_layernorm weight (f32)
         wqkv_ref,      # VMEM (1, E, 3H)    fused [Wq|Wk|Wv] bf16 (Wq pre-scaled)
         cos_ref,       # VMEM (S, H)        f32
         sinr_ref,      # VMEM (S, H)        f32  sign-folded sin
         wo_ref,        # VMEM (1, H, E)     per-head o-proj, bf16
         out_ref,       # VMEM (1, 1, S, E)  node slot P + n, bf16
         cmask_ref,     # scratch VMEM (S, S) f32  cached additive causal mask
         ) = refs
        amask_ref = None
    else:
        (mask_ref, nodes_ref, lnw_ref, wqkv_ref, cos_ref, sinr_ref, wo_ref,
         amask_ref,     # VMEM (1, 1, S, S)  bf16 additive mask
         out_ref) = refs
        cmask_ref = None

    n = pl.program_id(1)
    P = nodes_ref.shape[1]
    S, E = nodes_ref.shape[2], nodes_ref.shape[3]
    H = wqkv_ref.shape[2] // 3

    if causal:
        # The iota/compare/select work is grid-invariant: build the additive mask
        # once per core.  Guard on the INNERMOST grid axis so every megacore shard
        # (which always starts its inner loop at n == 0) initializes the scratch.
        @pl.when(n == 0)
        def _():
            row = jax.lax.broadcasted_iota(jnp.int32, (S, S), 0)
            col = jax.lax.broadcasted_iota(jnp.int32, (S, S), 1)
            cmask_ref[...] = jnp.where(row >= col, 0.0, NEG_MIN).astype(jnp.float32)

    # edge-mask mix: input_states_by_head[n] = sum_p mask[p, n] * nodes[p]
    # TODO(synk): for large prev_nodes (>~32) hoist this onto the MXU
    # (mask^T @ nodes) and/or compute all N head mixes once per batch.
    acc = jnp.zeros((S, E), jnp.float32)
    for p in range(P):
        acc = acc + mask_ref[p, n] * nodes_ref[0, p].astype(jnp.float32)

    # input_layernorm (Llama RMSNorm): fp32 internals, bf16 output for the MXU.
    var = jnp.mean(acc * acc, axis=-1, keepdims=True)
    x = (acc * jax.lax.rsqrt(var + RMS_EPS) * lnw_ref[0]).astype(jnp.bfloat16)

    # Fused q/k/v projection: one (S,E) x (E,3H) MXU pass.  The 1/sqrt(head_dim)
    # attention scale is folded into Wq at pack time.
    qkv = jnp.dot(x, wqkv_ref[0], preferred_element_type=jnp.float32)     # (S, 3H)
    q = qkv[:, :H]
    k = qkv[:, H:2 * H]
    v = qkv[:, 2 * H:]

    # Rotary embedding without the rotate-half matmul:
    #   rotate_half(x) * sin == roll(x, H//2) * (sign * sin),
    #   sign = [-1]*(H/2) ++ [+1]*(H/2), folded into `sinr` on the host.
    cos = cos_ref[...]
    sinr = sinr_ref[...]
    q = q * cos + pltpu.roll(q, shift=H // 2, axis=1) * sinr
    k = k * cos + pltpu.roll(k, shift=H // 2, axis=1) * sinr

    # scores = q @ k^T (contract head dim of both operands; no materialized transpose).
    scores = jax.lax.dot_general(q.astype(jnp.bfloat16), k.astype(jnp.bfloat16),
                                 (((1,), (1,)), ((), ())),
                                 preferred_element_type=jnp.float32)       # (S, S)
    if causal:
        scores = jnp.maximum(scores + cmask_ref[...], NEG_MIN)
    else:
        scores = jnp.maximum(scores + amask_ref[0, 0].astype(jnp.float32), NEG_MIN)

    # Softmax with deferred normalization: normalize the (S,H) PV result instead of
    # the (S,S) probabilities, divide via the EUP approx reciprocal.
    # TODO(synk): on v6e/v7x the (S,S) exp can run in bf16 (~2x EUP); keep f32 on v5e.
    m = jnp.max(scores, axis=-1, keepdims=True)
    e = jnp.exp(scores - m)
    denom = jnp.sum(e, axis=-1, keepdims=True)
    attn = jnp.dot(e.astype(jnp.bfloat16), v.astype(jnp.bfloat16),
                   preferred_element_type=jnp.float32)                     # (S, H)
    attn = attn * pl.reciprocal(denom, approx=True)

    # per-head output projection, written straight into node slot P + n.
    out = jnp.dot(attn.astype(jnp.bfloat16), wo_ref[0],
                  preferred_element_type=jnp.float32)                      # (S, E)
    out_ref[0, 0] = out.astype(out_ref.dtype)


# ------------------------------------------------------------------
# Kernel 2: edge_mask_mlp mix over all nodes + post_attention RMSNorm.
# Emits the normalized MLP input xn once so the SwiGLU kernel below does not
# have to keep the (P+N) node blocks resident.  Grid = (B, S // ST).
# ------------------------------------------------------------------
def mlp_mix_kernel(mask_ref,    # SMEM (P+N,)  edge_mask_mlp (f32, flattened)
                   nodes_ref,   # VMEM (1, P+N, ST, E) bf16
                   lnw_ref,     # VMEM (1, E)  post_attention_layernorm weight (f32)
                   xn_ref):     # VMEM (1, ST, E) bf16  normalized MLP input
    PN = nodes_ref.shape[1]
    ST, E = nodes_ref.shape[2], nodes_ref.shape[3]

    # TODO(synk): switch to an MXU dot over the node axis once P+N grows large.
    acc = jnp.zeros((ST, E), jnp.float32)
    for p in range(PN):
        acc = acc + mask_ref[p] * nodes_ref[0, p].astype(jnp.float32)

    var = jnp.mean(acc * acc, axis=-1, keepdims=True)
    xn_ref[0] = (acc * jax.lax.rsqrt(var + RMS_EPS) * lnw_ref[0]).astype(xn_ref.dtype)


# ------------------------------------------------------------------
# Kernel 3: SwiGLU MLP, tiled over the sequence dim (parallel) and the
# intermediate dim (arbitrary, fp32 accumulator).  Grid = (B, S // ST, I // IT).
# Writes node P+N of the aliased node buffer.
# ------------------------------------------------------------------
def mlp_kernel(xn_ref,        # VMEM (1, ST, E) bf16      normalized MLP input tile
               wgu_ref,       # VMEM (1, E, 2*IT) bf16    fused [gate|up] tile
               wd_ref,        # VMEM (IT, E) bf16         down-proj tile
               nodes_any,     # ANY (aliased node buffer -- only written via out_ref)
               out_ref,       # VMEM (1, 1, ST, E) bf16   node slot P+N
               acc_ref):      # scratch VMEM (ST, E) f32  down-proj accumulator
    del nodes_any
    t = pl.program_id(2)
    IT = wd_ref.shape[0]

    @pl.when(t == 0)
    def _():
        acc_ref[...] = jnp.zeros_like(acc_ref)

    # Fused gate/up projection for this I-tile: one (ST,E) x (E,2*IT) MXU pass.
    x = xn_ref[0]
    gu = jnp.dot(x, wgu_ref[0], preferred_element_type=jnp.float32)        # (ST, 2*IT)
    g = gu[:, :IT]
    u = gu[:, IT:]
    act = (g * jax.nn.sigmoid(g)) * u                                       # SiLU(g) * up
    acc_ref[...] += jnp.dot(act.astype(jnp.bfloat16), wd_ref[...],
                            preferred_element_type=jnp.float32)

    @pl.when(t == pl.num_programs(2) - 1)
    def _():
        out_ref[0, 0] = acc_ref[...].astype(out_ref.dtype)


# ------------------------------------------------------------------
# Host-side weight packing: fuse Wq/Wk/Wv (with 1/sqrt(H) folded into Wq),
# fuse + tile gate/up, fold the rotate-half sign into sin, cast MXU operands
# to bf16.
# ------------------------------------------------------------------
def pack_params(raw, *, i_tile):
    N, E, H = raw["wq"].shape
    I = raw["wd"].shape[0]
    assert I % i_tile == 0
    T = I // i_tile
    bf16, f32 = jnp.bfloat16, jnp.float32

    wq_scaled = (raw["wq"].astype(f32) * (1.0 / math.sqrt(H))).astype(bf16)
    wqkv = jnp.concatenate(
        [wq_scaled, raw["wk"].astype(bf16), raw["wv"].astype(bf16)], axis=-1)
    wg_t = raw["wg"].astype(bf16).reshape(E, T, i_tile).transpose(1, 0, 2)
    wu_t = raw["wu"].astype(bf16).reshape(E, T, i_tile).transpose(1, 0, 2)
    wgu_tiles = jnp.concatenate([wg_t, wu_t], axis=-1)           # (T, E, 2*i_tile)
    sign = jnp.concatenate([-jnp.ones((H // 2,), f32), jnp.ones((H // 2,), f32)])
    return {
        "edge_mask_attentions": raw["edge_mask_attentions"].astype(f32),
        "edge_mask_mlp": raw["edge_mask_mlp"].astype(f32),
        "ln1_w": raw["ln1_w"].astype(f32),
        "ln2_w": raw["ln2_w"].astype(f32),
        "wqkv": wqkv,
        "wo": raw["wo"].astype(bf16),
        "wgu_tiles": wgu_tiles,
        "wd": raw["wd"].astype(bf16),
        "cos": raw["cos"].astype(f32),
        "sin_rot": raw["sin"].astype(f32) * sign,
    }


# ------------------------------------------------------------------
# Wrapper: node buffer built in place, no layer-boundary concatenate.
# ------------------------------------------------------------------
def llama_decoder_layer(hidden, packed, attention_mask=None):
    """hidden: (B, prev_nodes, S, E) bf16 -> (B, prev_nodes + n_heads + 1, S, E) bf16."""
    B, P, S, E = hidden.shape
    N, _, H3 = packed["wqkv"].shape
    H = H3 // 3
    T, _, two_it = packed["wgu_tiles"].shape
    i_tile = two_it // 2
    bf16 = jnp.bfloat16
    total_nodes = P + N + 1
    mlp_node = P + N
    causal = attention_mask is None
    ST = 128 if S % 128 == 0 else S          # sequence tile for the MLP kernels

    # Node buffer: original nodes ++ per-head attention nodes ++ MLP node.
    # TODO(synk): in a multi-layer stack, let the caller maintain this growing
    # buffer so the one-time copy-in below disappears.
    nodes = jnp.zeros((B, total_nodes, S, E), bf16).at[:, :P].set(hidden.astype(bf16))

    # --- attention heads: write nodes P..P+N-1 in place --------------------------
    attn_in_specs = [
        pl.BlockSpec(memory_space=pltpu.MemorySpace.SMEM),               # edge mask (P, N)
        pl.BlockSpec((1, P, S, E), lambda b, n: (b, 0, 0, 0)),           # original nodes
        pl.BlockSpec((1, E), lambda b, n: (0, 0)),                       # ln1 weight
        pl.BlockSpec((1, E, H3), lambda b, n: (n, 0, 0)),                # fused Wqkv
        pl.BlockSpec((S, H), lambda b, n: (0, 0)),                       # cos
        pl.BlockSpec((S, H), lambda b, n: (0, 0)),                       # sign-folded sin
        pl.BlockSpec((1, H, E), lambda b, n: (n, 0, 0)),                 # per-head Wo
    ]
    attn_args = [packed["edge_mask_attentions"], nodes, packed["ln1_w"],
                 packed["wqkv"], packed["cos"], packed["sin_rot"], packed["wo"]]
    attn_scratch = []
    if causal:
        attn_scratch = [pltpu.VMEM((S, S), jnp.float32)]                 # cached causal mask
    else:
        attn_in_specs.append(pl.BlockSpec((1, 1, S, S), lambda b, n: (b, 0, 0, 0)))
        attn_args.append(attention_mask.astype(bf16))

    nodes = pl.pallas_call(
        functools.partial(attn_head_kernel, causal=causal),
        out_shape=jax.ShapeDtypeStruct((B, total_nodes, S, E), bf16),
        grid=(B, N),
        in_specs=attn_in_specs,
        out_specs=pl.BlockSpec((1, 1, S, E), lambda b, n: (b, P + n, 0, 0)),
        scratch_shapes=attn_scratch,
        input_output_aliases={1: 0},          # nodes buffer updated in place
        compiler_params=pltpu.CompilerParams(
            dimension_semantics=("parallel", "parallel")),
    )(*attn_args)

    # --- MLP input: edge-mask mix over all nodes + RMSNorm, emitted once ----------
    xn = pl.pallas_call(
        mlp_mix_kernel,
        out_shape=jax.ShapeDtypeStruct((B, S, E), bf16),
        grid=(B, S // ST),
        in_specs=[
            pl.BlockSpec(memory_space=pltpu.MemorySpace.SMEM),           # edge_mask_mlp
            pl.BlockSpec((1, P + N, ST, E), lambda b, s: (b, 0, s, 0)),  # all nodes
            pl.BlockSpec((1, E), lambda b, s: (0, 0)),                   # ln2 weight
        ],
        out_specs=pl.BlockSpec((1, ST, E), lambda b, s: (b, s, 0)),
        compiler_params=pltpu.CompilerParams(
            dimension_semantics=("parallel", "parallel")),
    )(packed["edge_mask_mlp"], nodes, packed["ln2_w"])

    # --- SwiGLU MLP: S- and I-tiled, writes node P+N in place ---------------------
    nodes = pl.pallas_call(
        mlp_kernel,
        out_shape=jax.ShapeDtypeStruct((B, total_nodes, S, E), bf16),
        grid=(B, S // ST, T),
        in_specs=[
            pl.BlockSpec((1, ST, E), lambda b, s, t: (b, s, 0)),         # xn tile
            pl.BlockSpec((1, E, 2 * i_tile), lambda b, s, t: (t, 0, 0)), # fused gate/up tile
            pl.BlockSpec((i_tile, E), lambda b, s, t: (t, 0)),           # down-proj tile
            pl.BlockSpec(memory_space=pl.ANY),                           # aliased node buffer
        ],
        out_specs=pl.BlockSpec((1, 1, ST, E),
                               lambda b, s, t: (b, mlp_node, s, 0)),
        scratch_shapes=[pltpu.VMEM((ST, E), jnp.float32)],               # down-proj accumulator
        input_output_aliases={3: 0},
        compiler_params=pltpu.CompilerParams(
            dimension_semantics=("parallel", "parallel", "arbitrary")),
    )(xn, packed["wgu_tiles"], packed["wd"], nodes)

    return nodes


# ------------------------------------------------------------------
# Pure-JAX reference (same math / same bf16-model precision choices).
# Operands are rounded to bf16 exactly where the kernels feed the MXU, but the
# contractions run on f32 operands so the reference also executes on backends
# without a bf16 DotThunk (the interpret sandbox's CPU executor).
# ------------------------------------------------------------------
def _rmsnorm(x, w):
    var = jnp.mean(x * x, axis=-1, keepdims=True)
    return x * jax.lax.rsqrt(var + RMS_EPS) * w


def _f32(x):
    return x.astype(jnp.float32)


def reference_decoder_layer(hidden, raw, attention_mask=None):
    f32, bf16 = jnp.float32, jnp.bfloat16
    B, P, S, E = hidden.shape
    N, _, H = raw["wq"].shape

    x = jnp.einsum("pn,bpse->bnse", raw["edge_mask_attentions"], _f32(hidden))
    x = _rmsnorm(x, raw["ln1_w"]).astype(bf16)
    q = jnp.einsum("bnse,neh->bnsh", _f32(x), _f32(raw["wq"]))
    k = jnp.einsum("bnse,neh->bnsh", _f32(x), _f32(raw["wk"]))
    v = jnp.einsum("bnse,neh->bnsh", _f32(x), _f32(raw["wv"]))

    cos, sin = raw["cos"], raw["sin"]

    def rot_half(t):
        return jnp.concatenate([-t[..., H // 2:], t[..., :H // 2]], axis=-1)

    q = q * cos + rot_half(q) * sin
    k = k * cos + rot_half(k) * sin
    scores = jnp.einsum("bnsh,bnth->bnst",
                        _f32(q.astype(bf16)), _f32(k.astype(bf16))) / math.sqrt(H)
    if attention_mask is None:
        causal = jnp.where(jnp.arange(S)[:, None] >= jnp.arange(S)[None, :], 0.0, NEG_MIN)
        attention_mask = jnp.broadcast_to(causal, (B, 1, S, S)).astype(f32)
    scores = jnp.maximum(scores + attention_mask, NEG_MIN)
    probs = jax.nn.softmax(scores, axis=-1)
    attn = jnp.einsum("bnst,bnth->bnsh",
                      _f32(probs.astype(bf16)), _f32(v.astype(bf16)))
    attn_nodes = jnp.einsum("bnsh,nhe->bnse",
                            _f32(attn.astype(bf16)), _f32(raw["wo"])).astype(bf16)

    hidden_cat = jnp.concatenate([hidden, attn_nodes], axis=1)
    xm = jnp.einsum("p,bpse->bse", raw["edge_mask_mlp"], _f32(hidden_cat))[:, None]
    xm = _rmsnorm(xm, raw["ln2_w"]).astype(bf16)
    g = jnp.einsum("bxse,ei->bxsi", _f32(xm), _f32(raw["wg"]))
    u = jnp.einsum("bxse,ei->bxsi", _f32(xm), _f32(raw["wu"]))
    act = (g * jax.nn.sigmoid(g) * u).astype(bf16)
    mlp = jnp.einsum("bxsi,ie->bxse", _f32(act), _f32(raw["wd"])).astype(bf16)
    return jnp.concatenate([hidden_cat, mlp], axis=1)


if __name__ == "__main__":
    # Small but (8,128)-aligned Llama-like config.
    B, S = 2, 128
    N = 2                  # num_attention_heads
    H = 128                # head_dim
    E = N * H              # hidden_size = 256
    I = 512                # intermediate_size
    I_TILE = 256           # MLP intermediate tile
    prev_layers = 1
    P = (N + 1) * prev_layers + 1      # prev_nodes = 4
    P2 = P + N                         # nodes after attention = 6

    key = jax.random.PRNGKey(0)
    ks = jax.random.split(key, 8)
    f32, bf16 = jnp.float32, jnp.bfloat16

    hidden = jax.random.normal(ks[0], (B, P, S, E), f32).astype(bf16)

    # Per-head q/k/v weights (N, E, H) (== q_proj.weight.view(E, N, H), head-major),
    # per-head o-proj (N, H, E), MLP weights pre-transposed so kernels do x @ W.
    wq = (jax.random.normal(ks[1], (N, E, H), f32) * 0.05).astype(bf16)
    wk = (jax.random.normal(ks[2], (N, E, H), f32) * 0.05).astype(bf16)
    wv = (jax.random.normal(ks[3], (N, E, H), f32) * 0.05).astype(bf16)
    wo = (jax.random.normal(ks[4], (N, H, E), f32) * 0.05).astype(bf16)
    wg = (jax.random.normal(ks[5], (E, I), f32) * 0.05).astype(bf16)
    wu = (jax.random.normal(ks[6], (E, I), f32) * 0.05).astype(bf16)
    wd = (jax.random.normal(ks[7], (I, E), f32) * 0.05).astype(bf16)

    # Llama rotary tables (offset = 0).
    inv_freq = 1.0 / (10000.0 ** (jnp.arange(0, H, 2, dtype=f32) / H))
    t = jnp.arange(S, dtype=f32)
    freqs = jnp.outer(t, inv_freq)
    emb = jnp.concatenate([freqs, freqs], axis=-1)
    cos, sin = jnp.cos(emb), jnp.sin(emb)

    raw = {
        "edge_mask_attentions": jnp.ones((P, N), f32),     # as in the module __init__
        "edge_mask_mlp": jnp.ones((P2,), f32),             # (prev_nodes + n_heads, 1) flattened
        "ln1_w": jnp.ones((1, E), f32),
        "ln2_w": jnp.ones((1, E), f32),
        "wq": wq, "wk": wk, "wv": wv, "wo": wo,
        "wg": wg, "wu": wu, "wd": wd,
        "cos": cos, "sin": sin,
    }
    packed = pack_params(raw, i_tile=I_TILE)

    # attention_mask=None -> causal mask cached in VMEM scratch (no (B,1,S,S) DMA).
    layer = jax.jit(llama_decoder_layer)
    out = layer(hidden, packed)
    out = jax.block_until_ready(out)

    ref = reference_decoder_layer(hidden, raw, attention_mask=None)
    ref = jax.block_until_ready(ref)

    np.testing.assert_allclose(np.asarray(out.astype(jnp.float32)),
                               np.asarray(ref.astype(jnp.float32)),
                               rtol=2e-2, atol=2e-2)
    assert out.shape == (B, P2 + 1, S, E)
    assert out.dtype == bf16

    print("KERNEL_OK")
</pallas_src>

<mosaic_0001>
module attributes {stable_mosaic.version = 11 : i64} {
  func.func @mlp_mix_kernel(%arg0: i32, %arg1: i32, %arg2: memref<6xf32, #tpu.memory_space<smem>>, %arg3: memref<1x6x128x256xbf16, #tpu.memory_space<vmem>>, %arg4: memref<1x256xf32, #tpu.memory_space<vmem>>, %arg5: memref<1x128x256xbf16, #tpu.memory_space<vmem>>) attributes {dimension_semantics = [#tpu.dimension_semantics<parallel>, #tpu.dimension_semantics<parallel>], iteration_bounds = array<i64: 2, 1>, scalar_prefetch = 0 : i64, scratch_operands = 0 : i64, tpu.core_type = #tpu.core_type<tc>, window_params = [{transform_indices = @transform_0, window_bounds = array<i64: 6>}, {transform_indices = @transform_1, window_bounds = array<i64: 1, 6, 128, 256>}, {pipeline_mode = #tpu.pipeline_mode<synchronous>, transform_indices = @transform_2, window_bounds = array<i64: 1, 256>}, {transform_indices = @transform_3, window_bounds = array<i64: 1, 128, 256>}]} {
    %cst = arith.constant 0.000000e+00 : f32
    %0 = vector.broadcast %cst : f32 to vector<128x256xf32>
    %c0 = arith.constant 0 : index
    %1 = memref.load %arg2[%c0] : memref<6xf32, #tpu.memory_space<smem>>
    %c0_0 = arith.constant 0 : index
    %c0_1 = arith.constant 0 : index
    %c0_2 = arith.constant 0 : index
    %c0_3 = arith.constant 0 : index
    %2 = vector.load %arg3[%c0_0, %c0_1, %c0_2, %c0_3] : memref<1x6x128x256xbf16, #tpu.memory_space<vmem>>, vector<1x1x128x256xbf16>
    %3 = vector.shape_cast %2 : vector<1x1x128x256xbf16> to vector<128x256xbf16>
    %4 = arith.extf %3 : vector<128x256xbf16> to vector<128x256xf32>
    %5 = vector.broadcast %1 : f32 to vector<128x256xf32>
    %6 = arith.mulf %5, %4 : vector<128x256xf32>
    %7 = arith.addf %0, %6 : vector<128x256xf32>
    %c1 = arith.constant 1 : index
    %8 = memref.load %arg2[%c1] : memref<6xf32, #tpu.memory_space<smem>>
    %c0_4 = arith.constant 0 : index
    %c1_5 = arith.constant 1 : index
    %c0_6 = arith.constant 0 : index
    %c0_7 = arith.constant 0 : index
    %9 = vector.load %arg3[%c0_4, %c1_5, %c0_6, %c0_7] : memref<1x6x128x256xbf16, #tpu.memory_space<vmem>>, vector<1x1x128x256xbf16>
    %10 = vector.shape_cast %9 : vector<1x1x128x256xbf16> to vector<128x256xbf16>
    %11 = arith.extf %10 : vector<128x256xbf16> to vector<128x256xf32>
    %12 = vector.broadcast %8 : f32 to vector<128x256xf32>
    %13 = arith.mulf %12, %11 : vector<128x256xf32>
    %14 = arith.addf %7, %13 : vector<128x256xf32>
    %c2 = arith.constant 2 : index
    %15 = memref.load %arg2[%c2] : memref<6xf32, #tpu.memory_space<smem>>
    %c0_8 = arith.constant 0 : index
    %c2_9 = arith.constant 2 : index
    %c0_10 = arith.constant 0 : index
    %c0_11 = arith.constant 0 : index
    %16 = vector.load %arg3[%c0_8, %c2_9, %c0_10, %c0_11] : memref<1x6x128x256xbf16, #tpu.memory_space<vmem>>, vector<1x1x128x256xbf16>
    %17 = vector.shape_cast %16 : vector<1x1x128x256xbf16> to vector<128x256xbf16>
    %18 = arith.extf %17 : vector<128x256xbf16> to vector<128x256xf32>
    %19 = vector.broadcast %15 : f32 to vector<128x256xf32>
    %20 = arith.mulf %19, %18 : vector<128x256xf32>
    %21 = arith.addf %14, %20 : vector<128x256xf32>
    %c3 = arith.constant 3 : index
    %22 = memref.load %arg2[%c3] : memref<6xf32, #tpu.memory_space<smem>>
    %c0_12 = arith.constant 0 : index
    %c3_13 = arith.constant 3 : index
    %c0_14 = arith.constant 0 : index
    %c0_15 = arith.constant 0 : index
    %23 = vector.load %arg3[%c0_12, %c3_13, %c0_14, %c0_15] : memref<1x6x128x256xbf16, #tpu.memory_space<vmem>>, vector<1x1x128x256xbf16>
    %24 = vector.shape_cast %23 : vector<1x1x128x256xbf16> to vector<128x256xbf16>
    %25 = arith.extf %24 : vector<128x256xbf16> to vector<128x256xf32>
    %26 = vector.broadcast %22 : f32 to vector<128x256xf32>
    %27 = arith.mulf %26, %25 : vector<128x256xf32>
    %28 = arith.addf %21, %27 : vector<128x256xf32>
    %c4 = arith.constant 4 : index
    %29 = memref.load %arg2[%c4] : memref<6xf32, #tpu.memory_space<smem>>
    %c0_16 = arith.constant 0 : index
    %c4_17 = arith.constant 4 : index
    %c0_18 = arith.constant 0 : index
    %c0_19 = arith.constant 0 : index
    %30 = vector.load %arg3[%c0_16, %c4_17, %c0_18, %c0_19] : memref<1x6x128x256xbf16, #tpu.memory_space<vmem>>, vector<1x1x128x256xbf16>
    %31 = vector.shape_cast %30 : vector<1x1x128x256xbf16> to vector<128x256xbf16>
    %32 = arith.extf %31 : vector<128x256xbf16> to vector<128x256xf32>
    %33 = vector.broadcast %29 : f32 to vector<128x256xf32>
    %34 = arith.mulf %33, %32 : vector<128x256xf32>
    %35 = arith.addf %28, %34 : vector<128x256xf32>
    %c5 = arith.constant 5 : index
    %36 = memref.load %arg2[%c5] : memref<6xf32, #tpu.memory_space<smem>>
    %c0_20 = arith.constant 0 : index
    %c5_21 = arith.constant 5 : index
    %c0_22 = arith.constant 0 : index
    %c0_23 = arith.constant 0 : index
    %37 = vector.load %arg3[%c0_20, %c5_21, %c0_22, %c0_23] : memref<1x6x128x256xbf16, #tpu.memory_space<vmem>>, vector<1x1x128x256xbf16>
    %38 = vector.shape_cast %37 : vector<1x1x128x256xbf16> to vector<128x256xbf16>
    %39 = arith.extf %38 : vector<128x256xbf16> to vector<128x256xf32>
    %40 = vector.broadcast %36 : f32 to vector<128x256xf32>
    %41 = arith.mulf %40, %39 : vector<128x256xf32>
    %42 = arith.addf %35, %41 : vector<128x256xf32>
    %43 = arith.mulf %42, %42 : vector<128x256xf32>
    %cst_24 = arith.constant dense<0.000000e+00> : vector<128xf32>
    %44 = vector.multi_reduction <add>, %43, %cst_24 [1] : vector<128x256xf32> to vector<128xf32>
    %45 = vector.shape_cast %44 : vector<128xf32> to vector<128x1xf32>
    %cst_25 = arith.constant 2.560000e+02 : f32
    %46 = vector.broadcast %cst_25 : f32 to vector<128x1xf32>
    %47 = arith.divf %45, %46 : vector<128x1xf32>
    %cst_26 = arith.constant 9.99999997E-7 : f32
    %48 = vector.broadcast %cst_26 : f32 to vector<128x1xf32>
    %49 = arith.addf %47, %48 : vector<128x1xf32>
    %50 = math.rsqrt %49 : vector<128x1xf32>
    %51 = vector.broadcast %50 : vector<128x1xf32> to vector<128x256xf32>
    %52 = arith.mulf %42, %51 : vector<128x256xf32>
    %c0_27 = arith.constant 0 : index
    %c0_28 = arith.constant 0 : index
    %53 = vector.load %arg4[%c0_27, %c0_28] : memref<1x256xf32, #tpu.memory_space<vmem>>, vector<1x256xf32>
    %54 = vector.shape_cast %53 : vector<1x256xf32> to vector<256xf32>
    %55 = vector.shape_cast %54 : vector<256xf32> to vector<1x256xf32>
    %56 = vector.broadcast %55 : vector<1x256xf32> to vector<128x256xf32>
    %57 = arith.mulf %52, %56 : vector<128x256xf32>
    %58 = arith.truncf %57 : vector<128x256xf32> to vector<128x256xbf16>
    %c0_29 = arith.constant 0 : index
    %c0_30 = arith.constant 0 : index
    %c0_31 = arith.constant 0 : index
    %59 = vector.load %arg5[%c0_29, %c0_30, %c0_31] : memref<1x128x256xbf16, #tpu.memory_space<vmem>>, vector<1x128x256xbf16>
    %60 = vector.shape_cast %59 : vector<1x128x256xbf16> to vector<128x256xbf16>
    %61 = vector.shape_cast %58 : vector<128x256xbf16> to vector<1x128x256xbf16>
    tpu.vector_store %arg5[%c0_29, %c0_30, %c0_31], %61 {strides = array<i32>} : memref<1x128x256xbf16, #tpu.memory_space<vmem>>, vector<1x128x256xbf16>,
    return
  }
  func.func @transform_0(%arg0: i32, %arg1: i32) -> i32 {
    %c0_i32 = arith.constant 0 : i32
    %c0_i32_0 = arith.constant 0 : i32
    return %c0_i32 : i32
  }
  func.func @transform_1(%arg0: i32, %arg1: i32) -> (i32, i32, i32, i32) {
    %c0_i32 = arith.constant 0 : i32
    %c0_i32_0 = arith.constant 0 : i32
    %c0_i32_1 = arith.constant 0 : i32
    return %arg0, %c0_i32, %arg1, %c0_i32_0 : i32, i32, i32, i32
  }
  func.func @transform_2(%arg0: i32, %arg1: i32) -> (i32, i32) {
    %c0_i32 = arith.constant 0 : i32
    %c0_i32_0 = arith.constant 0 : i32
    %c0_i32_1 = arith.constant 0 : i32
    return %c0_i32, %c0_i32_0 : i32, i32
  }
  func.func @transform_3(%arg0: i32, %arg1: i32) -> (i32, i32, i32) {
    %c0_i32 = arith.constant 0 : i32
    %c0_i32_0 = arith.constant 0 : i32
    return %arg0, %arg1, %c0_i32 : i32, i32, i32
  }
}

module attributes {stable_mosaic.version = 11 : i64} {
  func.func @attn_head_kernel(%arg0: i32, %arg1: i32, %arg2: memref<4x2xf32, #tpu.memory_space<smem>>, %arg3: memref<1x4x128x256xbf16, #tpu.memory_space<vmem>>, %arg4: memref<1x256xf32, #tpu.memory_space<vmem>>, %arg5: memref<1x256x384xbf16, #tpu.memory_space<vmem>>, %arg6: memref<128x128xf32, #tpu.memory_space<vmem>>, %arg7: memref<128x128xf32, #tpu.memory_space<vmem>>, %arg8: memref<1x128x256xbf16, #tpu.memory_space<vmem>>, %arg9: memref<1x1x128x256xbf16, #tpu.memory_space<vmem>>, %arg10: memref<128x128xf32, #tpu.memory_space<vmem>>) attributes {dimension_semantics = [#tpu.dimension_semantics<parallel>, #tpu.dimension_semantics<parallel>], iteration_bounds = array<i64: 2, 2>, scalar_prefetch = 0 : i64, scratch_operands = 1 : i64, tpu.core_type = #tpu.core_type<tc>, window_params = [{transform_indices = @transform_0, window_bounds = array<i64: 4, 2>}, {transform_indices = @transform_1, window_bounds = array<i64: 1, 4, 128, 256>}, {pipeline_mode = #tpu.pipeline_mode<synchronous>, transform_indices = @transform_2, window_bounds = array<i64: 1, 256>}, {transform_indices = @transform_3, window_bounds = array<i64: 1, 256, 384>}, {pipeline_mode = #tpu.pipeline_mode<synchronous>, transform_indices = @transform_4, window_bounds = array<i64: 128, 128>}, {pipeline_mode = #tpu.pipeline_mode<synchronous>, transform_indices = @transform_5, window_bounds = array<i64: 128, 128>}, {transform_indices = @transform_6, window_bounds = array<i64: 1, 128, 256>}, {transform_indices = @transform_7, window_bounds = array<i64: 1, 1, 128, 256>}]} {
    %c0_i32 = arith.constant 0 : i32
    %0 = arith.cmpi eq, %arg1, %c0_i32 : i32
    %1 = arith.extui %0 : i1 to i32
    %c0_i32_0 = arith.constant 0 : i32
    %2 = arith.cmpi ne, %1, %c0_i32_0 : i32
    scf.if %2 {
      %96 = tpu.iota {dimensions = array<i32: 0>} : vector<128x128xi32>
      %97 = tpu.iota {dimensions = array<i32: 1>} : vector<128x128xi32>
      %98 = arith.cmpi sge, %96, %97 : vector<128x128xi32>
      %cst_46 = arith.constant 0.000000e+00 : f32
      %cst_47 = arith.constant -3.40282347E+38 : f32
      %99 = vector.broadcast %cst_46 : f32 to vector<128x128xf32>
      %100 = vector.broadcast %cst_47 : f32 to vector<128x128xf32>
      %101 = arith.select %98, %99, %100 : vector<128x128xi1>, vector<128x128xf32>
      %c0_48 = arith.constant 0 : index
      %c0_49 = arith.constant 0 : index
      %102 = vector.load %arg10[%c0_48, %c0_49] : memref<128x128xf32, #tpu.memory_space<vmem>>, vector<128x128xf32>
      tpu.vector_store %arg10[%c0_48, %c0_49], %101 {strides = array<i32>} : memref<128x128xf32, #tpu.memory_space<vmem>>, vector<128x128xf32>,
    } else {
    }
    %cst = arith.constant 0.000000e+00 : f32
    %3 = vector.broadcast %cst : f32 to vector<128x256xf32>
    %c0 = arith.constant 0 : index
    %4 = arith.index_cast %arg1 : i32 to index
    %5 = memref.load %arg2[%c0, %4] : memref<4x2xf32, #tpu.memory_space<smem>>
    %c0_1 = arith.constant 0 : index
    %c0_2 = arith.constant 0 : index
    %c0_3 = arith.constant 0 : index
    %c0_4 = arith.constant 0 : index
    %6 = vector.load %arg3[%c0_1, %c0_2, %c0_3, %c0_4] : memref<1x4x128x256xbf16, #tpu.memory_space<vmem>>, vector<1x1x128x256xbf16>
    %7 = vector.shape_cast %6 : vector<1x1x128x256xbf16> to vector<128x256xbf16>
    %8 = arith.extf %7 : vector<128x256xbf16> to vector<128x256xf32>
    %9 = vector.broadcast %5 : f32 to vector<128x256xf32>
    %10 = arith.mulf %9, %8 : vector<128x256xf32>
    %11 = arith.addf %3, %10 : vector<128x256xf32>
    %c1 = arith.constant 1 : index
    %12 = arith.index_cast %arg1 : i32 to index
    %13 = memref.load %arg2[%c1, %12] : memref<4x2xf32, #tpu.memory_space<smem>>
    %c0_5 = arith.constant 0 : index
    %c1_6 = arith.constant 1 : index
    %c0_7 = arith.constant 0 : index
    %c0_8 = arith.constant 0 : index
    %14 = vector.load %arg3[%c0_5, %c1_6, %c0_7, %c0_8] : memref<1x4x128x256xbf16, #tpu.memory_space<vmem>>, vector<1x1x128x256xbf16>
    %15 = vector.shape_cast %14 : vector<1x1x128x256xbf16> to vector<128x256xbf16>
    %16 = arith.extf %15 : vector<128x256xbf16> to vector<128x256xf32>
    %17 = vector.broadcast %13 : f32 to vector<128x256xf32>
    %18 = arith.mulf %17, %16 : vector<128x256xf32>
    %19 = arith.addf %11, %18 : vector<128x256xf32>
    %c2 = arith.constant 2 : index
    %20 = arith.index_cast %arg1 : i32 to index
    %21 = memref.load %arg2[%c2, %20] : memref<4x2xf32, #tpu.memory_space<smem>>
    %c0_9 = arith.constant 0 : index
    %c2_10 = arith.constant 2 : index
    %c0_11 = arith.constant 0 : index
    %c0_12 = arith.constant 0 : index
    %22 = vector.load %arg3[%c0_9, %c2_10, %c0_11, %c0_12] : memref<1x4x128x256xbf16, #tpu.memory_space<vmem>>, vector<1x1x128x256xbf16>
    %23 = vector.shape_cast %22 : vector<1x1x128x256xbf16> to vector<128x256xbf16>
    %24 = arith.extf %23 : vector<128x256xbf16> to vector<128x256xf32>
    %25 = vector.broadcast %21 : f32 to vector<128x256xf32>
    %26 = arith.mulf %25, %24 : vector<128x256xf32>
    %27 = arith.addf %19, %26 : vector<128x256xf32>
    %c3 = arith.constant 3 : index
    %28 = arith.index_cast %arg1 : i32 to index
    %29 = memref.load %arg2[%c3, %28] : memref<4x2xf32, #tpu.memory_space<smem>>
    %c0_13 = arith.constant 0 : index
    %c3_14 = arith.constant 3 : index
    %c0_15 = arith.constant 0 : index
    %c0_16 = arith.constant 0 : index
    %30 = vector.load %arg3[%c0_13, %c3_14, %c0_15, %c0_16] : memref<1x4x128x256xbf16, #tpu.memory_space<vmem>>, vector<1x1x128x256xbf16>
    %31 = vector.shape_cast %30 : vector<1x1x128x256xbf16> to vector<128x256xbf16>
    %32 = arith.extf %31 : vector<128x256xbf16> to vector<128x256xf32>
    %33 = vector.broadcast %29 : f32 to vector<128x256xf32>
    %34 = arith.mulf %33, %32 : vector<128x256xf32>
    %35 = arith.addf %27, %34 : vector<128x256xf32>
    %36 = arith.mulf %35, %35 : vector<128x256xf32>
    %cst_17 = arith.constant dense<0.000000e+00> : vector<128xf32>
    %37 = vector.multi_reduction <add>, %36, %cst_17 [1] : vector<128x256xf32> to vector<128xf32>
    %38 = vector.shape_cast %37 : vector<128xf32> to vector<128x1xf32>
    %cst_18 = arith.constant 2.560000e+02 : f32
    %39 = vector.broadcast %cst_18 : f32 to vector<128x1xf32>
    %40 = arith.divf %38, %39 : vector<128x1xf32>
    %cst_19 = arith.constant 9.99999997E-7 : f32
    %41 = vector.broadcast %cst_19 : f32 to vector<128x1xf32>
    %42 = arith.addf %40, %41 : vector<128x1xf32>
    %43 = math.rsqrt %42 : vector<128x1xf32>
    %44 = vector.broadcast %43 : vector<128x1xf32> to vector<128x256xf32>
    %45 = arith.mulf %35, %44 : vector<128x256xf32>
    %c0_20 = arith.constant 0 : index
    %c0_21 = arith.constant 0 : index
    %46 = vector.load %arg4[%c0_20, %c0_21] : memref<1x256xf32, #tpu.memory_space<vmem>>, vector<1x256xf32>
    %47 = vector.shape_cast %46 : vector<1x256xf32> to vector<256xf32>
    %48 = vector.shape_cast %47 : vector<256xf32> to vector<1x256xf32>
    %49 = vector.broadcast %48 : vector<1x256xf32> to vector<128x256xf32>
    %50 = arith.mulf %45, %49 : vector<128x256xf32>
    %51 = arith.truncf %50 : vector<128x256xf32> to vector<128x256xbf16>
    %c0_22 = arith.constant 0 : index
    %c0_23 = arith.constant 0 : index
    %c0_24 = arith.constant 0 : index
    %52 = vector.load %arg5[%c0_22, %c0_23, %c0_24] : memref<1x256x384xbf16, #tpu.memory_space<vmem>>, vector<1x256x384xbf16>
    %53 = vector.shape_cast %52 : vector<1x256x384xbf16> to vector<256x384xbf16>
    %cst_25 = arith.constant dense<0.000000e+00> : vector<128x384xf32>
    %54 = tpu.matmul %51, %53, %cst_25 {dimension_numbers = #tpu.dot_dimension_numbers<[1], [0], [0], [1], [0, 0, 1, 1], [], []>} : vector<128x256xbf16>, vector<256x384xbf16>, vector<128x384xf32> -> vector<128x384xf32>
    %55 = vector.extract_strided_slice %54 {offsets = [0, 0], sizes = [128, 128], strides = [1, 1]} : vector<128x384xf32> to vector<128x128xf32>
    %56 = vector.extract_strided_slice %54 {offsets = [0, 128], sizes = [128, 128], strides = [1, 1]} : vector<128x384xf32> to vector<128x128xf32>
    %57 = vector.extract_strided_slice %54 {offsets = [0, 256], sizes = [128, 128], strides = [1, 1]} : vector<128x384xf32> to vector<128x128xf32>
    %c0_26 = arith.constant 0 : index
    %c0_27 = arith.constant 0 : index
    %58 = vector.load %arg6[%c0_26, %c0_27] : memref<128x128xf32, #tpu.memory_space<vmem>>, vector<128x128xf32>
    %c0_28 = arith.constant 0 : index
    %c0_29 = arith.constant 0 : index
    %59 = vector.load %arg7[%c0_28, %c0_29] : memref<128x128xf32, #tpu.memory_space<vmem>>, vector<128x128xf32>
    %60 = arith.mulf %55, %58 : vector<128x128xf32>
    %c64_i32 = arith.constant 64 : i32
    %61 = tpu.dynamic_rotate %55 by %c64_i32 dim 1 : vector<128x128xf32>, i32 -> vector<128x128xf32>
    %62 = arith.mulf %61, %59 : vector<128x128xf32>
    %63 = arith.addf %60, %62 : vector<128x128xf32>
    %64 = arith.mulf %56, %58 : vector<128x128xf32>
    %c64_i32_30 = arith.constant 64 : i32
    %65 = tpu.dynamic_rotate %56 by %c64_i32_30 dim 1 : vector<128x128xf32>, i32 -> vector<128x128xf32>
    %66 = arith.mulf %65, %59 : vector<128x128xf32>
    %67 = arith.addf %64, %66 : vector<128x128xf32>
    %68 = arith.truncf %63 : vector<128x128xf32> to vector<128x128xbf16>
    %69 = arith.truncf %67 : vector<128x128xf32> to vector<128x128xbf16>
    %cst_31 = arith.constant dense<0.000000e+00> : vector<128x128xf32>
    %70 = tpu.matmul %68, %69, %cst_31 {dimension_numbers = #tpu.dot_dimension_numbers<[1], [1], [0], [0], [0, 0, 1, 0], [], []>} : vector<128x128xbf16>, vector<128x128xbf16>, vector<128x128xf32> -> vector<128x128xf32>
    %c0_32 = arith.constant 0 : index
    %c0_33 = arith.constant 0 : index
    %71 = vector.load %arg10[%c0_32, %c0_33] : memref<128x128xf32, #tpu.memory_space<vmem>>, vector<128x128xf32>
    %72 = arith.addf %70, %71 : vector<128x128xf32>
    %cst_34 = arith.constant -3.40282347E+38 : f32
    %73 = vector.broadcast %cst_34 : f32 to vector<128x128xf32>
    %74 = arith.maximumf %72, %73 : vector<128x128xf32>
    %cst_35 = arith.constant dense<0xFF800000> : vector<128xf32>
    %75 = vector.multi_reduction <maximumf>, %74, %cst_35 [1] : vector<128x128xf32> to vector<128xf32>
    %76 = vector.shape_cast %75 : vector<128xf32> to vector<128x1xf32>
    %77 = vector.broadcast %76 : vector<128x1xf32> to vector<128x128xf32>
    %78 = arith.subf %74, %77 : vector<128x128xf32>
    %79 = math.exp %78 : vector<128x128xf32>
    %cst_36 = arith.constant dense<0.000000e+00> : vector<128xf32>
    %80 = vector.multi_reduction <add>, %79, %cst_36 [1] : vector<128x128xf32> to vector<128xf32>
    %81 = vector.shape_cast %80 : vector<128xf32> to vector<128x1xf32>
    %82 = arith.truncf %79 : vector<128x128xf32> to vector<128x128xbf16>
    %83 = arith.truncf %57 : vector<128x128xf32> to vector<128x128xbf16>
    %cst_37 = arith.constant dense<0.000000e+00> : vector<128x128xf32>
    %84 = tpu.matmul %82, %83, %cst_37 {dimension_numbers = #tpu.dot_dimension_numbers<[1], [0], [0], [1], [0, 0, 1, 1], [], []>} : vector<128x128xbf16>, vector<128x128xbf16>, vector<128x128xf32> -> vector<128x128xf32>
    %85 = tpu.reciprocal %81 {approx = true} : vector<128x1xf32> -> vector<128x1xf32>
    %86 = vector.broadcast %85 : vector<128x1xf32> to vector<128x128xf32>
    %87 = arith.mulf %84, %86 : vector<128x128xf32>
    %88 = arith.truncf %87 : vector<128x128xf32> to vector<128x128xbf16>
    %c0_38 = arith.constant 0 : index
    %c0_39 = arith.constant 0 : index
    %c0_40 = arith.constant 0 : index
    %89 = vector.load %arg8[%c0_38, %c0_39, %c0_40] : memref<1x128x256xbf16, #tpu.memory_space<vmem>>, vector<1x128x256xbf16>
    %90 = vector.shape_cast %89 : vector<1x128x256xbf16> to vector<128x256xbf16>
    %cst_41 = arith.constant dense<0.000000e+00> : vector<128x256xf32>
    %91 = tpu.matmul %88, %90, %cst_41 {dimension_numbers = #tpu.dot_dimension_numbers<[1], [0], [0], [1], [0, 0, 1, 1], [], []>} : vector<128x128xbf16>, vector<128x256xbf16>, vector<128x256xf32> -> vector<128x256xf32>
    %92 = arith.truncf %91 : vector<128x256xf32> to vector<128x256xbf16>
    %c0_42 = arith.constant 0 : index
    %c0_43 = arith.constant 0 : index
    %c0_44 = arith.constant 0 : index
    %c0_45 = arith.constant 0 : index
    %93 = vector.load %arg9[%c0_42, %c0_43, %c0_44, %c0_45] : memref<1x1x128x256xbf16, #tpu.memory_space<vmem>>, vector<1x1x128x256xbf16>
    %94 = vector.shape_cast %93 : vector<1x1x128x256xbf16> to vector<128x256xbf16>
    %95 = vector.shape_cast %92 : vector<128x256xbf16> to vector<1x1x128x256xbf16>
    tpu.vector_store %arg9[%c0_42, %c0_43, %c0_44, %c0_45], %95 {strides = array<i32>} : memref<1x1x128x256xbf16, #tpu.memory_space<vmem>>, vector<1x1x128x256xbf16>,
    return
  }
  func.func @transform_0(%arg0: i32, %arg1: i32) -> (i32, i32) {
    %c0_i32 = arith.constant 0 : i32
    %c0_i32_0 = arith.constant 0 : i32
    %c0_i32_1 = arith.constant 0 : i32
    return %c0_i32, %c0_i32_0 : i32, i32
  }
  func.func @transform_1(%arg0: i32, %arg1: i32) -> (i32, i32, i32, i32) {
    %c0_i32 = arith.constant 0 : i32
    %c0_i32_0 = arith.constant 0 : i32
    %c0_i32_1 = arith.constant 0 : i32
    %c0_i32_2 = arith.constant 0 : i32
    return %arg0, %c0_i32, %c0_i32_0, %c0_i32_1 : i32, i32, i32, i32
  }
  func.func @transform_2(%arg0: i32, %arg1: i32) -> (i32, i32) {
    %c0_i32 = arith.constant 0 : i32
    %c0_i32_0 = arith.constant 0 : i32
    %c0_i32_1 = arith.constant 0 : i32
    return %c0_i32, %c0_i32_0 : i32, i32
  }
  func.func @transform_3(%arg0: i32, %arg1: i32) -> (i32, i32, i32) {
    %c0_i32 = arith.constant 0 : i32
    %c0_i32_0 = arith.constant 0 : i32
    %c0_i32_1 = arith.constant 0 : i32
    return %arg1, %c0_i32, %c0_i32_0 : i32, i32, i32
  }
  func.func @transform_4(%arg0: i32, %arg1: i32) -> (i32, i32) {
    %c0_i32 = arith.constant 0 : i32
    %c0_i32_0 = arith.constant 0 : i32
    %c0_i32_1 = arith.constant 0 : i32
    return %c0_i32, %c0_i32_0 : i32, i32
  }
  func.func @transform_5(%arg0: i32, %arg1: i32) -> (i32, i32) {
    %c0_i32 = arith.constant 0 : i32
    %c0_i32_0 = arith.constant 0 : i32
    %c0_i32_1 = arith.constant 0 : i32
    return %c0_i32, %c0_i32_0 : i32, i32
  }
  func.func @transform_6(%arg0: i32, %arg1: i32) -> (i32, i32, i32) {
    %c0_i32 = arith.constant 0 : i32
    %c0_i32_0 = arith.constant 0 : i32
    %c0_i32_1 = arith.constant 0 : i32
    return %arg1, %c0_i32, %c0_i32_0 : i32, i32, i32
  }
  func.func @transform_7(%arg0: i32, %arg1: i32) -> (i32, i32, i32, i32) {
    %c4_i32 = arith.constant 4 : i32
    %0 = arith.addi %c4_i32, %arg1 : i32
    %c0_i32 = arith.constant 0 : i32
    %c0_i32_0 = arith.constant 0 : i32
    %c0_i32_1 = arith.constant 0 : i32
    return %arg0, %0, %c0_i32, %c0_i32_0 : i32, i32, i32, i32
  }
}

module attributes {stable_mosaic.version = 11 : i64} {
  func.func @mlp_kernel(%arg0: i32, %arg1: i32, %arg2: i32, %arg3: memref<1x128x256xbf16, #tpu.memory_space<vmem>>, %arg4: memref<1x256x512xbf16, #tpu.memory_space<vmem>>, %arg5: memref<256x256xbf16, #tpu.memory_space<vmem>>, %arg6: memref<2x7x128x256xbf16, #tpu.memory_space<any>>, %arg7: memref<1x1x128x256xbf16, #tpu.memory_space<vmem>>, %arg8: memref<128x256xf32, #tpu.memory_space<vmem>>) attributes {dimension_semantics = [#tpu.dimension_semantics<parallel>, #tpu.dimension_semantics<parallel>, #tpu.dimension_semantics<arbitrary>], iteration_bounds = array<i64: 2, 1, 2>, scalar_prefetch = 0 : i64, scratch_operands = 1 : i64, tpu.core_type = #tpu.core_type<tc>, window_params = [{transform_indices = @transform_0, window_bounds = array<i64: 1, 128, 256>}, {transform_indices = @transform_1, window_bounds = array<i64: 1, 256, 512>}, {transform_indices = @transform_2, window_bounds = array<i64: 256, 256>}, {}, {transform_indices = @transform_4, window_bounds = array<i64: 1, 1, 128, 256>}]} {
    %c0_i32 = arith.constant 0 : i32
    %0 = arith.cmpi eq, %arg2, %c0_i32 : i32
    %1 = arith.extui %0 : i1 to i32
    %c0_i32_0 = arith.constant 0 : i32
    %2 = arith.cmpi ne, %1, %c0_i32_0 : i32
    scf.if %2 {
      %cst_15 = arith.constant 0.000000e+00 : f32
      %26 = vector.broadcast %cst_15 : f32 to vector<128x256xf32>
      %c0_16 = arith.constant 0 : index
      %c0_17 = arith.constant 0 : index
      %27 = vector.load %arg8[%c0_16, %c0_17] : memref<128x256xf32, #tpu.memory_space<vmem>>, vector<128x256xf32>
      tpu.vector_store %arg8[%c0_16, %c0_17], %26 {strides = array<i32>} : memref<128x256xf32, #tpu.memory_space<vmem>>, vector<128x256xf32>,
    } else {
    }
    %c0 = arith.constant 0 : index
    %c0_1 = arith.constant 0 : index
    %c0_2 = arith.constant 0 : index
    %3 = vector.load %arg3[%c0, %c0_1, %c0_2] : memref<1x128x256xbf16, #tpu.memory_space<vmem>>, vector<1x128x256xbf16>
    %4 = vector.shape_cast %3 : vector<1x128x256xbf16> to vector<128x256xbf16>
    %c0_3 = arith.constant 0 : index
    %c0_4 = arith.constant 0 : index
    %c0_5 = arith.constant 0 : index
    %5 = vector.load %arg4[%c0_3, %c0_4, %c0_5] : memref<1x256x512xbf16, #tpu.memory_space<vmem>>, vector<1x256x512xbf16>
    %6 = vector.shape_cast %5 : vector<1x256x512xbf16> to vector<256x512xbf16>
    %cst = arith.constant dense<0.000000e+00> : vector<128x512xf32>
    %7 = tpu.matmul %4, %6, %cst {dimension_numbers = #tpu.dot_dimension_numbers<[1], [0], [0], [1], [0, 0, 1, 1], [], []>} : vector<128x256xbf16>, vector<256x512xbf16>, vector<128x512xf32> -> vector<128x512xf32>
    %8 = vector.extract_strided_slice %7 {offsets = [0, 0], sizes = [128, 256], strides = [1, 1]} : vector<128x512xf32> to vector<128x256xf32>
    %9 = vector.extract_strided_slice %7 {offsets = [0, 256], sizes = [128, 256], strides = [1, 1]} : vector<128x512xf32> to vector<128x256xf32>
    %10 = arith.negf %8 : vector<128x256xf32>
    %11 = math.exp %10 : vector<128x256xf32>
    %cst_6 = arith.constant 1.000000e+00 : f32
    %12 = vector.broadcast %cst_6 : f32 to vector<128x256xf32>
    %13 = arith.addf %12, %11 : vector<128x256xf32>
    %14 = arith.divf %12, %13 : vector<128x256xf32>
    %15 = arith.mulf %8, %14 : vector<128x256xf32>
    %16 = arith.mulf %15, %9 : vector<128x256xf32>
    %c0_7 = arith.constant 0 : index
    %c0_8 = arith.constant 0 : index
    %17 = vector.load %arg8[%c0_7, %c0_8] : memref<128x256xf32, #tpu.memory_space<vmem>>, vector<128x256xf32>
    %18 = arith.truncf %16 : vector<128x256xf32> to vector<128x256xbf16>
    %c0_9 = arith.constant 0 : index
    %c0_10 = arith.constant 0 : index
    %19 = vector.load %arg5[%c0_9, %c0_10] : memref<256x256xbf16, #tpu.memory_space<vmem>>, vector<256x256xbf16>
    %cst_11 = arith.constant dense<0.000000e+00> : vector<128x256xf32>
    %20 = tpu.matmul %18, %19, %cst_11 {dimension_numbers = #tpu.dot_dimension_numbers<[1], [0], [0], [1], [0, 0, 1, 1], [], []>} : vector<128x256xbf16>, vector<256x256xbf16>, vector<128x256xf32> -> vector<128x256xf32>
    %21 = arith.addf %17, %20 : vector<128x256xf32>
    %c0_12 = arith.constant 0 : index
    %c0_13 = arith.constant 0 : index
    %22 = vector.load %arg8[%c0_12, %c0_13] : memref<128x256xf32, #tpu.memory_space<vmem>>, vector<128x256xf32>
    tpu.vector_store %arg8[%c0_12, %c0_13], %21 {strides = array<i32>} : memref<128x256xf32, #tpu.memory_space<vmem>>, vector<128x256xf32>,
    %c1_i32 = arith.constant 1 : i32
    %23 = arith.cmpi eq, %arg2, %c1_i32 : i32
    %24 = arith.extui %23 : i1 to i32
    %c0_i32_14 = arith.constant 0 : i32
    %25 = arith.cmpi ne, %24, %c0_i32_14 : i32
    scf.if %25 {
      %c0_15 = arith.constant 0 : index
      %c0_16 = arith.constant 0 : index
      %26 = vector.load %arg8[%c0_15, %c0_16] : memref<128x256xf32, #tpu.memory_space<vmem>>, vector<128x256xf32>
      %27 = arith.truncf %26 : vector<128x256xf32> to vector<128x256xbf16>
      %c0_17 = arith.constant 0 : index
      %c0_18 = arith.constant 0 : index
      %c0_19 = arith.constant 0 : index
      %c0_20 = arith.constant 0 : index
      %28 = vector.load %arg7[%c0_17, %c0_18, %c0_19, %c0_20] : memref<1x1x128x256xbf16, #tpu.memory_space<vmem>>, vector<1x1x128x256xbf16>
      %29 = vector.shape_cast %28 : vector<1x1x128x256xbf16> to vector<128x256xbf16>
      %30 = vector.shape_cast %27 : vector<128x256xbf16> to vector<1x1x128x256xbf16>
      tpu.vector_store %arg7[%c0_17, %c0_18, %c0_19, %c0_20], %30 {strides = array<i32>} : memref<1x1x128x256xbf16, #tpu.memory_space<vmem>>, vector<1x1x128x256xbf16>,
    } else {
    }
    return
  }
  func.func @transform_0(%arg0: i32, %arg1: i32, %arg2: i32) -> (i32, i32, i32) {
    %c0_i32 = arith.constant 0 : i32
    %c0_i32_0 = arith.constant 0 : i32
    return %arg0, %arg1, %c0_i32 : i32, i32, i32
  }
  func.func @transform_1(%arg0: i32, %arg1: i32, %arg2: i32) -> (i32, i32, i32) {
    %c0_i32 = arith.constant 0 : i32
    %c0_i32_0 = arith.constant 0 : i32
    %c0_i32_1 = arith.constant 0 : i32
    return %arg2, %c0_i32, %c0_i32_0 : i32, i32, i32
  }
  func.func @transform_2(%arg0: i32, %arg1: i32, %arg2: i32) -> (i32, i32) {
    %c0_i32 = arith.constant 0 : i32
    %c0_i32_0 = arith.constant 0 : i32
    return %arg2, %c0_i32 : i32, i32
  }
  func.func @transform_4(%arg0: i32, %arg1: i32, %arg2: i32) -> (i32, i32, i32, i32) {
    %c6_i32 = arith.constant 6 : i32
    %c0_i32 = arith.constant 0 : i32
    %c0_i32_0 = arith.constant 0 : i32
    return %arg0, %c6_i32, %arg1, %c0_i32 : i32, i32, i32, i32
  }
}

</mosaic_0001>

<bundles_post_ra>
// kernel: llama_decoder_layer.4
= control target key start
LH: loop header
LB: loop body
LE: loop exit
PB: predicated region body
PF: predicated region fallthrough
CT: control target
= control target key end

     0   :  { %8 = vsyncpa [#allocation4], 0  ;;  %s2350_s0 = inlined_call_operand.vmem [shape: f32[6], index: 0, kind: input, shape index: {}]   ;;  %s2351_s1 = inlined_call_operand.vmem [shape: bf16[2,7,128,256], index: 1, kind: input, shape index: {}]   ;;  %s2352_s2 = inlined_call_operand.hbm [shape: f32[1,256], index: 2, kind: input, shape index: {}]   ;;  %s2353_s3 = inlined_call_operand.vmem [shape: bf16[2,128,256], index: 3, kind: output, shape index: {}]  }
   0x1   :  { %9 = vsyncpa [#allocation3], 0  ;;  %s1715_s12 = smov 0   ;;  %s1717_s13 = smov 0  }
   0x2   :  { %s1719_s14 = smov 0  }
   0x3 LB: > { %s1434_s15 = sadd.s32 4294967295, %s1690_s14   ;;  %s27_s16 = sadd.s32 1, %s1686_s13  ;;  %s1690_s14 = sphi %s1719_s14, %s15_s14   ;;  %s1686_s13 = sphi %s1717_s13, %s2357_s13   ;;  %s1682_s12 = sphi %s1715_s12, %s2356_s12  }
   0x4   : > { %p29_p0 = scmp.ge.s32.totalorder %s27_s16, 2  ;;  %p1436_p1 = scmp.ge.s32.totalorder %s1690_s14, 1 }
   0x5   : > { %p130_p2 = scmp.lt.s32.totalorder %s1690_s14, 3  ;;  %p1740_p4 = scmp.eq.s32.totalorder %s1434_s15, 0 }
   0x6   : > { %s2359_s16 = smov (%p29_p0, %s27_s16), 0  ;;  %s142_s21 = sshll.u32 %s2350_s0, 4  ;;  %s143_s21 = int_to_ptr.vmem [resolvable:$true] %s142_s21 }
   0x7   : > { %p1736_p3 = pnand %p1436_p1, %p130_p2  ;;  %s152_s24 = sshll.u32 %s2352_s2, 4  ;;  %s153_s24 = int_to_ptr.hbm [resolvable:$true] %s152_s24 }
   0x8   : > { %s1692_s25 = smov [#allocation5]   ;;  %s1693_s27 = smov [#allocation2]  }
   0x9   : > { %p1543_p5 = pneg %p1736_p3  ;;  %s154_s26 = sshll.u32 %s1692_s25, 4  ;;  %s155_s26 = int_to_ptr.vmem [resolvable:$true] %s154_s26 }
   0xa   : > { %181 = sbr.rel (%p1736_p3) target bundleno = 329 (0x149), region = 32 }
   0xb   : > { %p1544_p6 = pnand %p1740_p4, %p1543_p5 }
   0xd   : > { %1546 = dma.vmem_to_smem (!%p1544_p6), %s143_s21, 16, %s1693_s27, [#allocation4]  }
   0xe   : > { %1549 = dma.hbm_to_vmem [thread:$0]  (!%p1544_p6), %s153_s24, 32, %s155_s26, [#allocation3]  }
   0xf   : > { %1673 = dma.done.wait (%p1740_p4), [#allocation4], 16  }
  0x10   : > { %1675 = vsyncadd (%p1740_p4), [#allocation4], 4294967280 }
  0x11   : > { %1677 = dma.done.wait (%p1740_p4), [#allocation3], 32  }
  0x12   : > { %1679 = vsyncadd (%p1740_p4), [#allocation3], 4294967264 }
  0x13   : > { %193 = sfence }
  0x14   : > { %p223_p7 = scmp.lt.s32.totalorder %s1682_s12, 1  ;;  %s244_s28 = sld [smem:[#allocation2]] }
  0x15   : > { %s1446_s29 = sld [smem:[#allocation2 + $0x1]] }
  0x16   : > { %s2361_s12 = smov (!%p223_p7, %s1682_s12), 1  ;;  %s1463_s30 = sld [smem:[#allocation2 + $0x2]] }
  0x17   : > { %s1534_s4 = smul.u32 896, %s2361_s12  ;;  %s1480_s5 = sld [smem:[#allocation2 + $0x3]] }
  0x18   : > { %s1769_s6 = sld [smem:[#allocation2 + $0x4]]  ;;  %s1533_s11 = sshll.u32 %s2361_s12, 7 }
  0x19   : > { %s1774_s9 = scalar_lea.vmem %s2351_s1, %s1534_s4  ;;  %s1783_s10 = sld [smem:[#allocation2 + $0x5]] }
  0x1a   : > { %v1776_v0 = vstv %s244_s28  ;;  %v249_v1 = vld [vmem:[%s1774_s9 + $0x20] sm:$0xff]  ;;  %v247_v28 = vld [vmem:[%s1774_s9 + $0x10] sm:$0xff]  ;;  %s2251_s17 = scalar_lea.vmem %s2353_s3, %s1533_s11 }
  0x1b   : > { %v1451_v2 = vld [vmem:[%s1774_s9 + $0xa0] sm:$0xff]  ;;  %v1780_v3 = vstv %s1446_s29  ;;  %v269_v5 = vunpack.c.l.bf16 %v249_v1  ;;  %v270_v6 = vunpack.c.h.bf16 %v249_v1  ;;  %v1449_v37 = vld [vmem:[%s1774_s9 + $0x90] sm:$0xff]  ;;  %v265_v40 = vunpack.c.l.bf16 %v247_v28 }
  0x1c   : > { %v1468_v4 = vld [vmem:[%s1774_s9 + $0x120] sm:$0xff]  ;;  %v384_v7 = vunpack.c.l.bf16 %v1451_v2  ;;  %v385_v8 = vunpack.c.h.bf16 %v1451_v2  ;;  %v1786_v12 = vstv %s1463_s30  ;;  %v266_v41 = vunpack.c.h.bf16 %v247_v28  ;;  %v1466_v42 = vld [vmem:[%s1774_s9 + $0x110] sm:$0xff] }
  0x1d   : > { %v1485_v9 = vld [vmem:[%s1774_s9 + $0x1a0] sm:$0xff]  ;;  %v499_v10 = vunpack.c.l.bf16 %v1468_v4  ;;  %v500_v11 = vunpack.c.h.bf16 %v1468_v4  ;;  %v302_v15 = vmul.f32 %v1776_v0, %v269_v5  ;;  %v303_v16 = vmul.f32 %v1776_v0, %v270_v6  ;;  %v1483_v47 = vld [vmem:[%s1774_s9 + $0x190] sm:$0xff] }
  0x1e   : > { %v614_v13 = vunpack.c.l.bf16 %v1485_v9  ;;  %v1502_v14 = vld [vmem:[%s1774_s9 + $0x220] sm:$0xff]  ;;  %v417_v17 = vmul.f32 %v1780_v3, %v384_v7  ;;  %v418_v18 = vmul.f32 %v1780_v3, %v385_v8  ;;  %v615_v22 = vunpack.c.h.bf16 %v1485_v9  ;;  %v1500_v60 = vld [vmem:[%s1774_s9 + $0x210] sm:$0xff] }
  0x1f   : > { %v1519_v19 = vld [vmem:[%s1774_s9 + $0x2a0] sm:$0xff]  ;;  %v532_v20 = vmul.f32 %v1786_v12, %v499_v10  ;;  %v533_v21 = vmul.f32 %v1786_v12, %v500_v11  ;;  %v1796_v23 = vstv %s1480_s5  ;;  %v729_v27 = vunpack.c.l.bf16 %v1502_v14  ;;  %v1517_v2 = vld [vmem:[%s1774_s9 + $0x290] sm:$0xff] }
  0x20   : > { %v449_v24 = vadd.f32 %v417_v17, %v302_v15  ;;  %v450_v25 = vadd.f32 %v418_v18, %v303_v16  ;;  %v647_v26 = vmul.f32 %v1796_v23, %v614_v13  ;;  %v648_v29 = vmul.f32 %v1796_v23, %v615_v22  ;;  %v245_v8 = vld [vmem:[%s1774_s9] sm:$0xff] }
  0x21   : > { %v730_v30 = vunpack.c.h.bf16 %v1502_v14  ;;  %v1802_v31 = vstv %s1769_s6  ;;  %v844_v32 = vunpack.c.l.bf16 %v1519_v19  ;;  %v845_v36 = vunpack.c.h.bf16 %v1519_v19  ;;  %v1447_v18 = vld [vmem:[%s1774_s9 + $0x80] sm:$0xff] }
  0x22   : > { %v564_v33 = vadd.f32 %v532_v20, %v449_v24  ;;  %v565_v34 = vadd.f32 %v533_v21, %v450_v25  ;;  %v762_v35 = vmul.f32 %v1802_v31, %v729_v27  ;;  %v1808_v39 = vstv %s1783_s10  ;;  %v1464_v24 = vld [vmem:[%s1774_s9 + $0x100] sm:$0xff] }
  0x23   : > { %v763_v38 = vmul.f32 %v1802_v31, %v730_v30  ;;  %v877_v45 = vmul.f32 %v1808_v39, %v844_v32  ;;  %v878_v46 = vmul.f32 %v1808_v39, %v845_v36  ;;  %v298_v48 = vmul.f32 %v1776_v0, %v265_v40 }
  0x24   : > { %v679_v43 = vadd.f32 %v647_v26, %v564_v33  ;;  %v680_v44 = vadd.f32 %v648_v29, %v565_v34  ;;  %v299_v49 = vmul.f32 %v1776_v0, %v266_v41  ;;  %v380_v50 = vunpack.c.l.bf16 %v1449_v37  ;;  %v1481_v29 = vld [vmem:[%s1774_s9 + $0x180] sm:$0xff] }
  0x25   : > { %v381_v51 = vunpack.c.h.bf16 %v1449_v37  ;;  %v495_v54 = vunpack.c.l.bf16 %v1466_v42  ;;  %v496_v55 = vunpack.c.h.bf16 %v1466_v42  ;;  %v610_v58 = vunpack.c.l.bf16 %v1483_v47 }
  0x26   : > { %v794_v52 = vadd.f32 %v762_v35, %v679_v43  ;;  %v795_v53 = vadd.f32 %v763_v38, %v680_v44  ;;  %v413_v56 = vmul.f32 %v1780_v3, %v380_v50  ;;  %v611_v59 = vunpack.c.h.bf16 %v1483_v47  ;;  %v1498_v44 = vld [vmem:[%s1774_s9 + $0x200] sm:$0xff] }
  0x27   : > { %v414_v57 = vmul.f32 %v1780_v3, %v381_v51  ;;  %v528_v63 = vmul.f32 %v1786_v12, %v495_v54  ;;  %v529_v1 = vmul.f32 %v1786_v12, %v496_v55  ;;  %v643_v6 = vmul.f32 %v1796_v23, %v610_v58  ;;  %v250_v58 = vld [vmem:[%s1774_s9 + $0x28] sm:$0xff] }
  0x28   : > { %v1819_v61 = vadd.f32 %v877_v45, %v794_v52  ;;  %v1821_v62 = vadd.f32 %v878_v46, %v795_v53  ;;  %v445_v4 = vadd.f32 %v413_v56, %v298_v48  ;;  %v644_v7 = vmul.f32 %v1796_v23, %v611_v59 }
  0x29   : > { %v446_v5 = vadd.f32 %v414_v57, %v299_v49  ;;  %v725_v11 = vunpack.c.l.bf16 %v1500_v60  ;;  %v726_v13 = vunpack.c.h.bf16 %v1500_v60  ;;  %v840_v16 = vunpack.c.l.bf16 %v1517_v2  ;;  %v1515_v49 = vld [vmem:[%s1774_s9 + $0x280] sm:$0xff] }
  0x2a   : > { %v941_v9 = vmul.f32 %v1819_v61, %v1819_v61  ;;  %v942_v10 = vmul.f32 %v1821_v62, %v1821_v62  ;;  %v560_v14 = vadd.f32 %v528_v63, %v445_v4  ;;  %v841_v17 = vunpack.c.h.bf16 %v1517_v2  ;;  %v1452_v2 = vld [vmem:[%s1774_s9 + $0xa8] sm:$0xff] }
  0x2b   : > { %v561_v15 = vadd.f32 %v529_v1, %v446_v5  ;;  %v758_v20 = vmul.f32 %v1802_v31, %v725_v11  ;;  %v759_v21 = vmul.f32 %v1802_v31, %v726_v13  ;;  %v261_v22 = vunpack.c.l.bf16 %v245_v8 }
  0x2c   : > { %v977_v19 = vadd.f32 %v942_v10, %v941_v9  ;;  %v675_v25 = vadd.f32 %v643_v6, %v560_v14  ;;  %v873_v27 = vmul.f32 %v1808_v39, %v840_v16  ;;  %v874_v28 = vmul.f32 %v1808_v39, %v841_v17 }
  0x2d   : > { %v676_v26 = vadd.f32 %v644_v7, %v561_v15  ;;  %v262_v30 = vunpack.c.h.bf16 %v245_v8  ;;  %v294_v32 = vmul.f32 %v1776_v0, %v261_v22  ;;  %v376_v33 = vunpack.c.l.bf16 %v1447_v18  ;;  %v1469_v8 = vld [vmem:[%s1774_s9 + $0x128] sm:$0xff] }
  0x2e   : > { %978 = vadd.xlane.f32.xlu2 %v977_v19  ;;  %v377_v34 = vunpack.c.h.bf16 %v1447_v18  ;;  %v790_v35 = vadd.f32 %v758_v20, %v675_v25  ;;  %v491_v37 = vunpack.c.l.bf16 %v1464_v24  ;;  %v492_v38 = vunpack.c.h.bf16 %v1464_v24  ;;  %v1486_v18 = vld [vmem:[%s1774_s9 + $0x1a8] sm:$0xff] }
  0x2f   : > { %v791_v36 = vadd.f32 %v759_v21, %v676_v26  ;;  %v295_v40 = vmul.f32 %v1776_v0, %v262_v30  ;;  %v409_v41 = vmul.f32 %v1780_v3, %v376_v33  ;;  %v606_v43 = vunpack.c.l.bf16 %v1481_v29 }
  0x30   : > { %v410_v42 = vmul.f32 %v1780_v3, %v377_v34  ;;  %v1845_v45 = vadd.f32 %v873_v27, %v790_v35  ;;  %v524_v47 = vmul.f32 %v1786_v12, %v491_v37  ;;  %v525_v48 = vmul.f32 %v1786_v12, %v492_v38  ;;  %v1520_v38 = vld [vmem:[%s1774_s9 + $0x2a8] sm:$0xff] }
  0x31   : > { %v1847_v46 = vadd.f32 %v874_v28, %v791_v36  ;;  %v441_v50 = vadd.f32 %v409_v41, %v294_v32  ;;  %v607_v52 = vunpack.c.h.bf16 %v1481_v29  ;;  %v639_v53 = vmul.f32 %v1796_v23, %v606_v43  ;;  %v1503_v28 = vld [vmem:[%s1774_s9 + $0x228] sm:$0xff] }
  0x32   : > { %v442_v51 = vadd.f32 %v410_v42, %v295_v40  ;;  %v937_v54 = vmul.f32 %v1845_v45, %v1845_v45  ;;  %v721_v56 = vunpack.c.l.bf16 %v1498_v44  ;;  %v722_v57 = vunpack.c.h.bf16 %v1498_v44  ;;  %v248_v44 = vld [vmem:[%s1774_s9 + $0x18] sm:$0xff] }
  0x33   : > { %v938_v55 = vmul.f32 %v1847_v46, %v1847_v46  ;;  %v556_v59 = vadd.f32 %v524_v47, %v441_v50  ;;  %v640_v63 = vmul.f32 %v1796_v23, %v607_v52  ;;  %v836_v1 = vunpack.c.l.bf16 %v1515_v49 }
  0x34   : > { %v557_v60 = vadd.f32 %v525_v48, %v442_v51  ;;  %v754_v5 = vmul.f32 %v1802_v31, %v721_v56  ;;  %v755_v6 = vmul.f32 %v1802_v31, %v722_v57  ;;  %v837_v7 = vunpack.c.h.bf16 %v1515_v49  ;;  %v1450_v51 = vld [vmem:[%s1774_s9 + $0x98] sm:$0xff] }
  0x35   : > { %v971_v4 = vadd.f32 %v938_v55, %v937_v54  ;;  %v671_v9 = vadd.f32 %v639_v53, %v556_v59  ;;  %v869_v11 = vmul.f32 %v1808_v39, %v836_v1  ;;  %v271_v13 = vunpack.c.l.bf16 %v250_v58 }
  0x36   : > { %v672_v10 = vadd.f32 %v640_v63, %v557_v60  ;;  %v870_v14 = vmul.f32 %v1808_v39, %v837_v7  ;;  %v272_v15 = vunpack.c.h.bf16 %v250_v58  ;;  %v386_v16 = vunpack.c.l.bf16 %v1452_v2  ;;  %v1467_v60 = vld [vmem:[%s1774_s9 + $0x118] sm:$0xff] }
  0x37   : > { %972 = vadd.xlane.f32.xlu1 %v971_v4  ;;  %v387_v17 = vunpack.c.h.bf16 %v1452_v2  ;;  %v786_v19 = vadd.f32 %v754_v5, %v671_v9  ;;  %v304_v21 = vmul.f32 %v1776_v0, %v271_v13  ;;  %v501_v22 = vunpack.c.l.bf16 %v1469_v8  ;;  %v1484_v5 = vld [vmem:[%s1774_s9 + $0x198] sm:$0xff] }
  0x38   : > { %v787_v20 = vadd.f32 %v755_v6, %v672_v10  ;;  %v305_v24 = vmul.f32 %v1776_v0, %v272_v15  ;;  %v419_v25 = vmul.f32 %v1780_v3, %v386_v16  ;;  %v502_v27 = vunpack.c.h.bf16 %v1469_v8 }
  0x39   : > { %v420_v26 = vmul.f32 %v1780_v3, %v387_v17  ;;  %v1871_v29 = vadd.f32 %v869_v11, %v786_v19  ;;  %v534_v32 = vmul.f32 %v1786_v12, %v501_v22  ;;  %v616_v33 = vunpack.c.l.bf16 %v1486_v18  ;;  %v1501_v19 = vld [vmem:[%s1774_s9 + $0x218] sm:$0xff] }
  0x3a   : > { %v1873_v30 = vadd.f32 %v870_v14, %v787_v20  ;;  %v451_v34 = vadd.f32 %v419_v25, %v304_v21  ;;  %v535_v36 = vmul.f32 %v1786_v12, %v502_v27  ;;  %v617_v37 = vunpack.c.h.bf16 %v1486_v18  ;;  %v1518_v25 = vld [vmem:[%s1774_s9 + $0x298] sm:$0xff] }
  0x3b   : > { %v452_v35 = vadd.f32 %v420_v26, %v305_v24  ;;  %v933_v40 = vmul.f32 %v1871_v29, %v1871_v29  ;;  %v649_v42 = vmul.f32 %v1796_v23, %v616_v33  ;;  %v731_v43 = vunpack.c.l.bf16 %v1503_v28  ;;  %v246_v33 = vld [vmem:[%s1774_s9 + $0x8] sm:$0xff] }
  0x3c   : > { %v934_v41 = vmul.f32 %v1873_v30, %v1873_v30  ;;  %v566_v47 = vadd.f32 %v534_v32, %v451_v34  ;;  %v650_v49 = vmul.f32 %v1796_v23, %v617_v37  ;;  %v732_v50 = vunpack.c.h.bf16 %v1503_v28 }
  0x3d   : > { %v567_v48 = vadd.f32 %v535_v36, %v452_v35  ;;  %v764_v53 = vmul.f32 %v1802_v31, %v731_v43  ;;  %v846_v54 = vunpack.c.l.bf16 %v1520_v38  ;;  %v847_v55 = vunpack.c.h.bf16 %v1520_v38  ;;  %v1448_v43 = vld [vmem:[%s1774_s9 + $0x88] sm:$0xff] }
  0x3e   : > { %v965_v52 = vadd.f32 %v934_v41, %v933_v40  ;;  %v681_v56 = vadd.f32 %v649_v42, %v566_v47  ;;  %v765_v58 = vmul.f32 %v1802_v31, %v732_v50  ;;  %v267_v59 = vunpack.c.l.bf16 %v248_v44  ;;  %v1465_v50 = vld [vmem:[%s1774_s9 + $0x108] sm:$0xff] }
  0x3f   : > { %v682_v57 = vadd.f32 %v650_v49, %v567_v48  ;;  %v879_v63 = vmul.f32 %v1808_v39, %v846_v54  ;;  %v880_v1 = vmul.f32 %v1808_v39, %v847_v55  ;;  %v268_v2 = vunpack.c.h.bf16 %v248_v44  ;;  %v1482_v55 = vld [vmem:[%s1774_s9 + $0x188] sm:$0xff] }
  0x40   : > { %966 = vadd.xlane.f32.xlu0 %v965_v52  ;;  %v382_v4 = vunpack.c.l.bf16 %v1450_v51  ;;  %v796_v6 = vadd.f32 %v764_v53, %v681_v56  ;;  %v300_v8 = vmul.f32 %v1776_v0, %v267_v59  ;;  %v383_v9 = vunpack.c.h.bf16 %v1450_v51 }
  0x41   : > { %v797_v7 = vadd.f32 %v765_v58, %v682_v57  ;;  %v301_v10 = vmul.f32 %v1776_v0, %v268_v2  ;;  %v497_v13 = vunpack.c.l.bf16 %v1467_v60  ;;  %v498_v14 = vunpack.c.h.bf16 %v1467_v60 }
  0x42   : > { %v415_v11 = vmul.f32 %v1780_v3, %v382_v4  ;;  %v1895_v15 = vadd.f32 %v879_v63, %v796_v6  ;;  %v416_v17 = vmul.f32 %v1780_v3, %v383_v9  ;;  %v612_v18 = vunpack.c.l.bf16 %v1484_v5 }
  0x43   : > { %v1897_v16 = vadd.f32 %v880_v1, %v797_v7  ;;  %v530_v21 = vmul.f32 %v1786_v12, %v497_v13  ;;  %v531_v22 = vmul.f32 %v1786_v12, %v498_v14  ;;  %v613_v24 = vunpack.c.h.bf16 %v1484_v5  ;;  %v1516_v14 = vld [vmem:[%s1774_s9 + $0x288] sm:$0xff] }
  0x44   : > { %v447_v20 = vadd.f32 %v415_v11, %v300_v8  ;;  %v943_v26 = vmul.f32 %v1895_v15, %v1895_v15  ;;  %v448_v28 = vadd.f32 %v416_v17, %v301_v10  ;;  %v645_v32 = vmul.f32 %v1796_v23, %v612_v18  ;;  %v1499_v8 = vld [vmem:[%s1774_s9 + $0x208] sm:$0xff] }
  0x45   : > { %v944_v27 = vmul.f32 %v1897_v16, %v1897_v16  ;;  %v646_v35 = vmul.f32 %v1796_v23, %v613_v24  ;;  %v727_v36 = vunpack.c.l.bf16 %v1501_v19  ;;  %v728_v37 = vunpack.c.h.bf16 %v1501_v19 }
  0x46   : > { %v562_v34 = vadd.f32 %v530_v21, %v447_v20  ;;  %v563_v40 = vadd.f32 %v531_v22, %v448_v28  ;;  %v842_v41 = vunpack.c.l.bf16 %v1518_v25  ;;  %v843_v42 = vunpack.c.h.bf16 %v1518_v25  ;;  %v253_v21 = vld [vmem:[%s1774_s9 + $0x40] sm:$0xff] }
  0x47   : > { %v980_v38 = vadd.f32 %v944_v27, %v943_v26  ;;  %v760_v47 = vmul.f32 %v1802_v31, %v727_v36  ;;  %v761_v48 = vmul.f32 %v1802_v31, %v728_v37  ;;  %v263_v49 = vunpack.c.l.bf16 %v246_v33 }
  0x48   : > { %v677_v44 = vadd.f32 %v645_v32, %v562_v34  ;;  %v678_v51 = vadd.f32 %v646_v35, %v563_v40  ;;  %v875_v52 = vmul.f32 %v1808_v39, %v842_v41  ;;  %v876_v53 = vmul.f32 %v1808_v39, %v843_v42  ;;  %v1455_v34 = vld [vmem:[%s1774_s9 + $0xc0] sm:$0xff] }
  0x49   : > { %981 = vadd.xlane.f32.xlu2 %v980_v38  ;;  %v264_v54 = vunpack.c.h.bf16 %v246_v33  ;;  %v296_v57 = vmul.f32 %v1776_v0, %v263_v49  ;;  %v378_v58 = vunpack.c.l.bf16 %v1448_v43  ;;  %v379_v59 = vunpack.c.h.bf16 %v1448_v43  ;;  %v1472_v40 = vld [vmem:[%s1774_s9 + $0x140] sm:$0xff] }
  0x4a   : > { %v792_v56 = vadd.f32 %v760_v47, %v677_v44  ;;  %v793_v60 = vadd.f32 %v761_v48, %v678_v51  ;;  %v493_v1 = vunpack.c.l.bf16 %v1465_v50  ;;  %v494_v2 = vunpack.c.h.bf16 %v1465_v50  ;;  %v1489_v47 = vld [vmem:[%s1774_s9 + $0x1c0] sm:$0xff] }
  0x4b   : > { %v297_v63 = vmul.f32 %v1776_v0, %v264_v54  ;;  %v411_v5 = vmul.f32 %v1780_v3, %v378_v58  ;;  %v412_v6 = vmul.f32 %v1780_v3, %v379_v59  ;;  %v608_v7 = vunpack.c.l.bf16 %v1482_v55 }
  0x4c   : > { %v1920_v4 = vadd.f32 %v875_v52, %v792_v56  ;;  %v1925_v9 = vadd.f32 %v876_v53, %v793_v60  ;;  %v526_v10 = vmul.f32 %v1786_v12, %v493_v1  ;;  %v527_v11 = vmul.f32 %v1786_v12, %v494_v2  ;;  %v1506_v60 = vld [vmem:[%s1774_s9 + $0x240] sm:$0xff] }
  0x4d   : > { %v609_v13 = vunpack.c.h.bf16 %v1482_v55  ;;  %v443_v18 = vadd.f32 %v411_v5, %v296_v57  ;;  %v444_v19 = vadd.f32 %v412_v6, %v297_v63  ;;  %v641_v20 = vmul.f32 %v1796_v23, %v608_v7  ;;  %v1523_v6 = vld [vmem:[%s1774_s9 + $0x2c0] sm:$0xff] }
  0x4e   : > { %v939_v17 = vmul.f32 %v1920_v4, %v1920_v4  ;;  %v940_v22 = vmul.f32 %v1925_v9, %v1925_v9  ;;  %v723_v25 = vunpack.c.l.bf16 %v1499_v8  ;;  %v724_v26 = vunpack.c.h.bf16 %v1499_v8 }
  0x4f   : > { %v642_v24 = vmul.f32 %v1796_v23, %v609_v13  ;;  %v558_v27 = vadd.f32 %v526_v10, %v443_v18  ;;  %v559_v28 = vadd.f32 %v527_v11, %v444_v19  ;;  %v838_v32 = vunpack.c.l.bf16 %v1516_v14  ;;  %v252_v19 = vld [vmem:[%s1774_s9 + $0x38] sm:$0xff] }
  0x50   : > { %v839_v33 = vunpack.c.h.bf16 %v1516_v14  ;;  %v974_v35 = vadd.f32 %v940_v22, %v939_v17  ;;  %v756_v36 = vmul.f32 %v1802_v31, %v723_v25  ;;  %v757_v37 = vmul.f32 %v1802_v31, %v724_v26  ;;  %v1454_v25 = vld [vmem:[%s1774_s9 + $0xb8] sm:$0xff] }
  0x51   : > { %v277_v38 = vunpack.c.l.bf16 %v253_v21  ;;  %v673_v41 = vadd.f32 %v641_v20, %v558_v27  ;;  %v674_v42 = vadd.f32 %v642_v24, %v559_v28  ;;  %v871_v43 = vmul.f32 %v1808_v39, %v838_v32 }
  0x52   : > { %v872_v44 = vmul.f32 %v1808_v39, %v839_v33  ;;  %975 = vadd.xlane.f32.xlu1 %v974_v35  ;;  %v278_v48 = vunpack.c.h.bf16 %v253_v21  ;;  %v392_v50 = vunpack.c.l.bf16 %v1455_v34  ;;  %v393_v51 = vunpack.c.h.bf16 %v1455_v34  ;;  %v1471_v33 = vld [vmem:[%s1774_s9 + $0x138] sm:$0xff] }
  0x53   : > { %v310_v49 = vmul.f32 %v1776_v0, %v277_v38  ;;  %v788_v52 = vadd.f32 %v756_v36, %v673_v41  ;;  %v789_v53 = vadd.f32 %v757_v37, %v674_v42  ;;  %v507_v54 = vunpack.c.l.bf16 %v1472_v40 }
  0x54   : > { %v508_v55 = vunpack.c.h.bf16 %v1472_v40  ;;  %v311_v56 = vmul.f32 %v1776_v0, %v278_v48  ;;  %v425_v57 = vmul.f32 %v1780_v3, %v392_v50  ;;  %v426_v58 = vmul.f32 %v1780_v3, %v393_v51 }
  0x55   : > { %v622_v59 = vunpack.c.l.bf16 %v1489_v47  ;;  %v1949_v63 = vadd.f32 %v871_v43, %v788_v52  ;;  %v1951_v1 = vadd.f32 %v872_v44, %v789_v53  ;;  %v540_v2 = vmul.f32 %v1786_v12, %v507_v54  ;;  %v1488_v43 = vld [vmem:[%s1774_s9 + $0x1b8] sm:$0xff] }
  0x56   : > { %v541_v5 = vmul.f32 %v1786_v12, %v508_v55  ;;  %v457_v7 = vadd.f32 %v425_v57, %v310_v49  ;;  %v458_v8 = vadd.f32 %v426_v58, %v311_v56  ;;  %v623_v10 = vunpack.c.h.bf16 %v1489_v47  ;;  %v1505_v54 = vld [vmem:[%s1774_s9 + $0x238] sm:$0xff] }
  0x57   : > { %v655_v11 = vmul.f32 %v1796_v23, %v622_v59  ;;  %v935_v13 = vmul.f32 %v1949_v63, %v1949_v63  ;;  %v936_v14 = vmul.f32 %v1951_v1, %v1951_v1  ;;  %v737_v17 = vunpack.c.l.bf16 %v1506_v60 }
  0x58   : > { %v738_v18 = vunpack.c.h.bf16 %v1506_v60  ;;  %v572_v20 = vadd.f32 %v540_v2, %v457_v7  ;;  %v573_v21 = vadd.f32 %v541_v5, %v458_v8  ;;  %v656_v22 = vmul.f32 %v1796_v23, %v623_v10 }
  0x59   : > { %v852_v24 = vunpack.c.l.bf16 %v1523_v6  ;;  %v968_v26 = vadd.f32 %v936_v14, %v935_v13  ;;  %v770_v27 = vmul.f32 %v1802_v31, %v737_v17  ;;  %v853_v32 = vunpack.c.h.bf16 %v1523_v6  ;;  %v1522_v6 = vld [vmem:[%s1774_s9 + $0x2b8] sm:$0xff]  ;;  %v251_v13 = vld [vmem:[%s1774_s9 + $0x30] sm:$0xff] }
  0x5a   : > { %v771_v28 = vmul.f32 %v1802_v31, %v738_v18  ;;  %v687_v34 = vadd.f32 %v655_v11, %v572_v20  ;;  %v688_v35 = vadd.f32 %v656_v22, %v573_v21  ;;  %v275_v37 = vunpack.c.l.bf16 %v252_v19  ;;  %v1453_v20 = vld [vmem:[%s1774_s9 + $0xb0] sm:$0xff] }
  0x5b   : > { %v885_v36 = vmul.f32 %v1808_v39, %v852_v24  ;;  %969 = vadd.xlane.f32.xlu0 %v968_v26  ;;  %v886_v38 = vmul.f32 %v1808_v39, %v853_v32  ;;  %v276_v40 = vunpack.c.h.bf16 %v252_v19  ;;  %v390_v41 = vunpack.c.l.bf16 %v1454_v25 }
  0x5c   : > { %v391_v42 = vunpack.c.h.bf16 %v1454_v25  ;;  %v802_v44 = vadd.f32 %v770_v27, %v687_v34  ;;  %v803_v47 = vadd.f32 %v771_v28, %v688_v35  ;;  %v308_v48 = vmul.f32 %v1776_v0, %v275_v37 }
  0x5d   : > { %v505_v49 = vunpack.c.l.bf16 %v1471_v33  ;;  %v309_v50 = vmul.f32 %v1776_v0, %v276_v40  ;;  %v423_v51 = vmul.f32 %v1780_v3, %v390_v41  ;;  %v506_v53 = vunpack.c.h.bf16 %v1471_v33  ;;  %v1470_v33 = vld [vmem:[%s1774_s9 + $0x130] sm:$0xff] }
  0x5e   : > { %v424_v52 = vmul.f32 %v1780_v3, %v391_v42  ;;  %v1975_v55 = vadd.f32 %v885_v36, %v802_v44  ;;  %v1977_v56 = vadd.f32 %v886_v38, %v803_v47  ;;  %v620_v58 = vunpack.c.l.bf16 %v1488_v43  ;;  %v1487_v38 = vld [vmem:[%s1774_s9 + $0x1b0] sm:$0xff] }
  0x5f   : > { %v538_v57 = vmul.f32 %v1786_v12, %v505_v49  ;;  %v455_v59 = vadd.f32 %v423_v51, %v308_v48  ;;  %v539_v2 = vmul.f32 %v1786_v12, %v506_v53  ;;  %v621_v5 = vunpack.c.h.bf16 %v1488_v43 }
  0x60   : > { %v456_v60 = vadd.f32 %v424_v52, %v309_v50  ;;  %v949_v7 = vmul.f32 %v1975_v55, %v1975_v55  ;;  %v950_v8 = vmul.f32 %v1977_v56, %v1977_v56  ;;  %v653_v10 = vmul.f32 %v1796_v23, %v620_v58 }
  0x61   : > { %v735_v11 = vunpack.c.l.bf16 %v1505_v54  ;;  %v570_v14 = vadd.f32 %v538_v57, %v455_v59  ;;  %v654_v18 = vmul.f32 %v1796_v23, %v621_v5  ;;  %v736_v19 = vunpack.c.h.bf16 %v1505_v54  ;;  %v1504_v54 = vld [vmem:[%s1774_s9 + $0x230] sm:$0xff] }
  0x62   : > { %v571_v17 = vadd.f32 %v539_v2, %v456_v60  ;;  %v989_v21 = vadd.f32 %v950_v8, %v949_v7  ;;  %v850_v24 = vunpack.c.l.bf16 %v1522_v6  ;;  %v851_v25 = vunpack.c.h.bf16 %v1522_v6  ;;  %v1521_v2 = vld [vmem:[%s1774_s9 + $0x2b0] sm:$0xff] }
  0x63   : > { %v768_v22 = vmul.f32 %v1802_v31, %v735_v11  ;;  %v685_v26 = vadd.f32 %v653_v10, %v570_v14  ;;  %v769_v28 = vmul.f32 %v1802_v31, %v736_v19  ;;  %v273_v32 = vunpack.c.l.bf16 %v251_v13  ;;  %v256_v10 = vld [vmem:[%s1774_s9 + $0x58] sm:$0xff] }
  0x64   : > { %v686_v27 = vadd.f32 %v654_v18, %v571_v17  ;;  %990 = vadd.xlane.f32.xlu2 %v989_v21  ;;  %v883_v34 = vmul.f32 %v1808_v39, %v850_v24  ;;  %v884_v35 = vmul.f32 %v1808_v39, %v851_v25  ;;  %v274_v36 = vunpack.c.h.bf16 %v251_v13 }
  0x65   : > { %v388_v37 = vunpack.c.l.bf16 %v1453_v20  ;;  %v800_v40 = vadd.f32 %v768_v22, %v685_v26  ;;  %v306_v42 = vmul.f32 %v1776_v0, %v273_v32  ;;  %v389_v43 = vunpack.c.h.bf16 %v1453_v20  ;;  %v1458_v22 = vld [vmem:[%s1774_s9 + $0xd8] sm:$0xff] }
  0x66   : > { %v801_v41 = vadd.f32 %v769_v28, %v686_v27  ;;  %v307_v44 = vmul.f32 %v1776_v0, %v274_v36  ;;  %v503_v48 = vunpack.c.l.bf16 %v1470_v33  ;;  %v504_v49 = vunpack.c.h.bf16 %v1470_v33  ;;  %v1475_v28 = vld [vmem:[%s1774_s9 + $0x158] sm:$0xff] }
  0x67   : > { %v421_v47 = vmul.f32 %v1780_v3, %v388_v37  ;;  %v1999_v50 = vadd.f32 %v883_v34, %v800_v40  ;;  %v422_v52 = vmul.f32 %v1780_v3, %v389_v43  ;;  %v618_v53 = vunpack.c.l.bf16 %v1487_v38  ;;  %v1492_v36 = vld [vmem:[%s1774_s9 + $0x1d8] sm:$0xff] }
  0x68   : > { %v2001_v51 = vadd.f32 %v884_v35, %v801_v41  ;;  %v536_v58 = vmul.f32 %v1786_v12, %v503_v48  ;;  %v537_v59 = vmul.f32 %v1786_v12, %v504_v49  ;;  %v619_v60 = vunpack.c.h.bf16 %v1487_v38 }
  0x69   : > { %v453_v57 = vadd.f32 %v421_v47, %v306_v42  ;;  %v947_v5 = vmul.f32 %v1999_v50, %v1999_v50  ;;  %v454_v7 = vadd.f32 %v422_v52, %v307_v44  ;;  %v651_v8 = vmul.f32 %v1796_v23, %v618_v53 }
  0x6a   : > { %v948_v6 = vmul.f32 %v2001_v51, %v2001_v51  ;;  %v652_v13 = vmul.f32 %v1796_v23, %v619_v60  ;;  %v733_v14 = vunpack.c.l.bf16 %v1504_v54  ;;  %v734_v17 = vunpack.c.h.bf16 %v1504_v54  ;;  %v1509_v54 = vld [vmem:[%s1774_s9 + $0x258] sm:$0xff] }
  0x6b   : > { %v568_v11 = vadd.f32 %v536_v58, %v453_v57  ;;  %v569_v19 = vadd.f32 %v537_v59, %v454_v7  ;;  %v848_v20 = vunpack.c.l.bf16 %v1521_v2  ;;  %v849_v21 = vunpack.c.h.bf16 %v1521_v2  ;;  %v1526_v2 = vld [vmem:[%s1774_s9 + $0x2d8] sm:$0xff] }
  0x6c   : > { %v986_v18 = vadd.f32 %v948_v6, %v947_v5  ;;  %v766_v25 = vmul.f32 %v1802_v31, %v733_v14  ;;  %v767_v26 = vmul.f32 %v1802_v31, %v734_v17  ;;  %v283_v27 = vunpack.c.l.bf16 %v256_v10 }
  0x6d   : > { %v683_v24 = vadd.f32 %v651_v8, %v568_v11  ;;  %v684_v32 = vadd.f32 %v652_v13, %v569_v19  ;;  %v881_v33 = vmul.f32 %v1808_v39, %v848_v20  ;;  %v882_v34 = vmul.f32 %v1808_v39, %v849_v21 }
  0x6e   : > { %987 = vadd.xlane.f32.xlu1 %v986_v18  ;;  %v284_v35 = vunpack.c.h.bf16 %v256_v10  ;;  %v316_v38 = vmul.f32 %v1776_v0, %v283_v27  ;;  %v398_v40 = vunpack.c.l.bf16 %v1458_v22  ;;  %v399_v41 = vunpack.c.h.bf16 %v1458_v22  ;;  %v255_v10 = vld [vmem:[%s1774_s9 + $0x50] sm:$0xff] }
  0x6f   : > { %v798_v37 = vadd.f32 %v766_v25, %v683_v24  ;;  %v799_v42 = vadd.f32 %v767_v26, %v684_v32  ;;  %v513_v44 = vunpack.c.l.bf16 %v1475_v28  ;;  %v514_v47 = vunpack.c.h.bf16 %v1475_v28  ;;  %v1457_v22 = vld [vmem:[%s1774_s9 + $0xd0] sm:$0xff] }
  0x70   : > { %v317_v43 = vmul.f32 %v1776_v0, %v284_v35  ;;  %v431_v49 = vmul.f32 %v1780_v3, %v398_v40  ;;  %v432_v52 = vmul.f32 %v1780_v3, %v399_v41  ;;  %v628_v53 = vunpack.c.l.bf16 %v1492_v36  ;;  %v1474_v28 = vld [vmem:[%s1774_s9 + $0x150] sm:$0xff] }
  0x71   : > { %v2024_v48 = vadd.f32 %v881_v33, %v798_v37  ;;  %v2029_v57 = vadd.f32 %v882_v34, %v799_v42  ;;  %v546_v58 = vmul.f32 %v1786_v12, %v513_v44  ;;  %v547_v59 = vmul.f32 %v1786_v12, %v514_v47 }
  0x72   : > { %v629_v60 = vunpack.c.h.bf16 %v1492_v36  ;;  %v463_v6 = vadd.f32 %v431_v49, %v316_v38  ;;  %v464_v7 = vadd.f32 %v432_v52, %v317_v43  ;;  %v661_v8 = vmul.f32 %v1796_v23, %v628_v53  ;;  %v1491_v36 = vld [vmem:[%s1774_s9 + $0x1d0] sm:$0xff] }
  0x73   : > { %v945_v5 = vmul.f32 %v2024_v48, %v2024_v48  ;;  %v946_v11 = vmul.f32 %v2029_v57, %v2029_v57  ;;  %v743_v14 = vunpack.c.l.bf16 %v1509_v54  ;;  %v744_v17 = vunpack.c.h.bf16 %v1509_v54 }
  0x74   : > { %v662_v13 = vmul.f32 %v1796_v23, %v629_v60  ;;  %v578_v18 = vadd.f32 %v546_v58, %v463_v6  ;;  %v579_v19 = vadd.f32 %v547_v59, %v464_v7  ;;  %v858_v20 = vunpack.c.l.bf16 %v1526_v2  ;;  %v1508_v58 = vld [vmem:[%s1774_s9 + $0x250] sm:$0xff] }
  0x75   : > { %v859_v21 = vunpack.c.h.bf16 %v1526_v2  ;;  %v983_v24 = vadd.f32 %v946_v11, %v945_v5  ;;  %v776_v25 = vmul.f32 %v1802_v31, %v743_v14  ;;  %v777_v26 = vmul.f32 %v1802_v31, %v744_v17  ;;  %v1525_v6 = vld [vmem:[%s1774_s9 + $0x2d0] sm:$0xff] }
  0x76   : > { %v281_v27 = vunpack.c.l.bf16 %v255_v10  ;;  %v693_v32 = vadd.f32 %v661_v8, %v578_v18  ;;  %v694_v33 = vadd.f32 %v662_v13, %v579_v19  ;;  %v891_v34 = vmul.f32 %v1808_v39, %v858_v20  ;;  %v254_v19 = vld [vmem:[%s1774_s9 + $0x48] sm:$0xff] }
  0x77   : > { %v892_v35 = vmul.f32 %v1808_v39, %v859_v21  ;;  %984 = vadd.xlane.f32.xlu0 %v983_v24  ;;  %v282_v37 = vunpack.c.h.bf16 %v255_v10  ;;  %v396_v40 = vunpack.c.l.bf16 %v1457_v22  ;;  %v397_v41 = vunpack.c.h.bf16 %v1457_v22 }
  0x78   : > { %v314_v38 = vmul.f32 %v1776_v0, %v281_v27  ;;  %v808_v42 = vadd.f32 %v776_v25, %v693_v32  ;;  %v809_v43 = vadd.f32 %v777_v26, %v694_v33  ;;  %v511_v44 = vunpack.c.l.bf16 %v1474_v28  ;;  %v1456_v25 = vld [vmem:[%s1774_s9 + $0xc8] sm:$0xff] }
  0x79   : > { %v512_v47 = vunpack.c.h.bf16 %v1474_v28  ;;  %v315_v49 = vmul.f32 %v1776_v0, %v282_v37  ;;  %v429_v52 = vmul.f32 %v1780_v3, %v396_v40  ;;  %v430_v53 = vmul.f32 %v1780_v3, %v397_v41  ;;  %v1473_v33 = vld [vmem:[%s1774_s9 + $0x148] sm:$0xff] }
  0x7a   : > { %v626_v54 = vunpack.c.l.bf16 %v1491_v36  ;;  %v2053_v59 = vadd.f32 %v891_v34, %v808_v42  ;;  %v2055_v60 = vadd.f32 %v892_v35, %v809_v43  ;;  %v544_v2 = vmul.f32 %v1786_v12, %v511_v44  ;;  %v1490_v43 = vld [vmem:[%s1774_s9 + $0x1c8] sm:$0xff] }
  0x7b   : > { %v545_v5 = vmul.f32 %v1786_v12, %v512_v47  ;;  %v461_v7 = vadd.f32 %v429_v52, %v314_v38  ;;  %v462_v8 = vadd.f32 %v430_v53, %v315_v49  ;;  %v627_v10 = vunpack.c.h.bf16 %v1491_v36 }
  0x7c   : > { %v659_v11 = vmul.f32 %v1796_v23, %v626_v54  ;;  %v955_v13 = vmul.f32 %v2053_v59, %v2053_v59  ;;  %v956_v14 = vmul.f32 %v2055_v60, %v2055_v60  ;;  %v741_v17 = vunpack.c.l.bf16 %v1508_v58 }
  0x7d   : > { %v742_v18 = vunpack.c.h.bf16 %v1508_v58  ;;  %v576_v20 = vadd.f32 %v544_v2, %v461_v7  ;;  %v577_v21 = vadd.f32 %v545_v5, %v462_v8  ;;  %v660_v22 = vmul.f32 %v1796_v23, %v627_v10  ;;  %v1507_v5 = vld [vmem:[%s1774_s9 + $0x248] sm:$0xff] }
  0x7e   : > { %v856_v24 = vunpack.c.l.bf16 %v1525_v6  ;;  %v998_v26 = vadd.f32 %v956_v14, %v955_v13  ;;  %v774_v27 = vmul.f32 %v1802_v31, %v741_v17  ;;  %v857_v32 = vunpack.c.h.bf16 %v1525_v6 }
  0x7f   : > { %v775_v28 = vmul.f32 %v1802_v31, %v742_v18  ;;  %v691_v34 = vadd.f32 %v659_v11, %v576_v20  ;;  %v692_v35 = vadd.f32 %v660_v22, %v577_v21  ;;  %v279_v37 = vunpack.c.l.bf16 %v254_v19  ;;  %v1524_v18 = vld [vmem:[%s1774_s9 + $0x2c8] sm:$0xff] }
  0x80   : > { %v889_v36 = vmul.f32 %v1808_v39, %v856_v24  ;;  %999 = vadd.xlane.f32.xlu2 %v998_v26  ;;  %v890_v38 = vmul.f32 %v1808_v39, %v857_v32  ;;  %v280_v40 = vunpack.c.h.bf16 %v254_v19  ;;  %v394_v41 = vunpack.c.l.bf16 %v1456_v25  ;;  %v259_v24 = vld [vmem:[%s1774_s9 + $0x70] sm:$0xff] }
  0x81   : > { %v395_v42 = vunpack.c.h.bf16 %v1456_v25  ;;  %v806_v44 = vadd.f32 %v774_v27, %v691_v34  ;;  %v807_v47 = vadd.f32 %v775_v28, %v692_v35  ;;  %v312_v49 = vmul.f32 %v1776_v0, %v279_v37  ;;  %v1461_v32 = vld [vmem:[%s1774_s9 + $0xf0] sm:$0xff] }
  0x82   : > { %v509_v52 = vunpack.c.l.bf16 %v1473_v33  ;;  %v313_v53 = vmul.f32 %v1776_v0, %v280_v40  ;;  %v427_v54 = vmul.f32 %v1780_v3, %v394_v41  ;;  %v510_v2 = vunpack.c.h.bf16 %v1473_v33 }
  0x83   : > { %v428_v58 = vmul.f32 %v1780_v3, %v395_v42  ;;  %v2079_v6 = vadd.f32 %v889_v36, %v806_v44  ;;  %v2081_v7 = vadd.f32 %v890_v38, %v807_v47  ;;  %v624_v10 = vunpack.c.l.bf16 %v1490_v43  ;;  %v1478_v42 = vld [vmem:[%s1774_s9 + $0x170] sm:$0xff] }
  0x84   : > { %v542_v8 = vmul.f32 %v1786_v12, %v509_v52  ;;  %v459_v11 = vadd.f32 %v427_v54, %v312_v49  ;;  %v543_v14 = vmul.f32 %v1786_v12, %v510_v2  ;;  %v625_v17 = vunpack.c.h.bf16 %v1490_v43  ;;  %v1495_v52 = vld [vmem:[%s1774_s9 + $0x1f0] sm:$0xff] }
  0x85   : > { %v460_v13 = vadd.f32 %v428_v58, %v313_v53  ;;  %v953_v19 = vmul.f32 %v2079_v6, %v2079_v6  ;;  %v954_v20 = vmul.f32 %v2081_v7, %v2081_v7  ;;  %v657_v21 = vmul.f32 %v1796_v23, %v624_v10 }
  0x86   : > { %v739_v22 = vunpack.c.l.bf16 %v1507_v5  ;;  %v574_v25 = vadd.f32 %v542_v8, %v459_v11  ;;  %v658_v27 = vmul.f32 %v1796_v23, %v625_v17  ;;  %v740_v28 = vunpack.c.h.bf16 %v1507_v5 }
  0x87   : > { %v575_v26 = vadd.f32 %v543_v14, %v460_v13  ;;  %v995_v33 = vadd.f32 %v954_v20, %v953_v19  ;;  %v854_v35 = vunpack.c.l.bf16 %v1524_v18  ;;  %v855_v36 = vunpack.c.h.bf16 %v1524_v18  ;;  %v1512_v19 = vld [vmem:[%s1774_s9 + $0x270] sm:$0xff] }
  0x88   : > { %v772_v34 = vmul.f32 %v1802_v31, %v739_v22  ;;  %v689_v37 = vadd.f32 %v657_v21, %v574_v25  ;;  %v773_v40 = vmul.f32 %v1802_v31, %v740_v28  ;;  %v289_v41 = vunpack.c.l.bf16 %v259_v24  ;;  %v1529_v25 = vld [vmem:[%s1774_s9 + $0x2f0] sm:$0xff] }
  0x89   : > { %v690_v38 = vadd.f32 %v658_v27, %v575_v26  ;;  %996 = vadd.xlane.f32.xlu1 %v995_v33  ;;  %v887_v43 = vmul.f32 %v1808_v39, %v854_v35  ;;  %v888_v44 = vmul.f32 %v1808_v39, %v855_v36  ;;  %v290_v47 = vunpack.c.h.bf16 %v259_v24  ;;  %v258_v33 = vld [vmem:[%s1774_s9 + $0x68] sm:$0xff] }
  0x8a   : > { %v404_v49 = vunpack.c.l.bf16 %v1461_v32  ;;  %v804_v53 = vadd.f32 %v772_v34, %v689_v37  ;;  %v322_v58 = vmul.f32 %v1776_v0, %v289_v41  ;;  %v405_v2 = vunpack.c.h.bf16 %v1461_v32 }
  0x8b   : > { %v805_v54 = vadd.f32 %v773_v40, %v690_v38  ;;  %v323_v5 = vmul.f32 %v1776_v0, %v290_v47  ;;  %v519_v10 = vunpack.c.l.bf16 %v1478_v42  ;;  %v520_v11 = vunpack.c.h.bf16 %v1478_v42 }
  0x8c   : > { %v437_v8 = vmul.f32 %v1780_v3, %v404_v49  ;;  %v2103_v13 = vadd.f32 %v887_v43, %v804_v53  ;;  %v438_v17 = vmul.f32 %v1780_v3, %v405_v2  ;;  %v634_v18 = vunpack.c.l.bf16 %v1495_v52  ;;  %v1460_v43 = vld [vmem:[%s1774_s9 + $0xe8] sm:$0xff] }
  0x8d   : > { %v2105_v14 = vadd.f32 %v888_v44, %v805_v54  ;;  %v552_v21 = vmul.f32 %v1786_v12, %v519_v10  ;;  %v553_v22 = vmul.f32 %v1786_v12, %v520_v11  ;;  %v635_v24 = vunpack.c.h.bf16 %v1495_v52  ;;  %v1477_v53 = vld [vmem:[%s1774_s9 + $0x168] sm:$0xff] }
  0x8e   : > { %v469_v20 = vadd.f32 %v437_v8, %v322_v58  ;;  %v951_v26 = vmul.f32 %v2103_v13, %v2103_v13  ;;  %v470_v28 = vadd.f32 %v438_v17, %v323_v5  ;;  %v667_v32 = vmul.f32 %v1796_v23, %v634_v18  ;;  %v1494_v8 = vld [vmem:[%s1774_s9 + $0x1e8] sm:$0xff] }
  0x8f   : > { %v952_v27 = vmul.f32 %v2105_v14, %v2105_v14  ;;  %v668_v35 = vmul.f32 %v1796_v23, %v635_v24  ;;  %v749_v36 = vunpack.c.l.bf16 %v1512_v19  ;;  %v750_v37 = vunpack.c.h.bf16 %v1512_v19 }
  0x90   : > { %v584_v34 = vadd.f32 %v552_v21, %v469_v20  ;;  %v585_v40 = vadd.f32 %v553_v22, %v470_v28  ;;  %v864_v41 = vunpack.c.l.bf16 %v1529_v25  ;;  %v865_v42 = vunpack.c.h.bf16 %v1529_v25  ;;  %v1511_v28 = vld [vmem:[%s1774_s9 + $0x268] sm:$0xff] }
  0x91   : > { %v992_v38 = vadd.f32 %v952_v27, %v951_v26  ;;  %v782_v47 = vmul.f32 %v1802_v31, %v749_v36  ;;  %v783_v49 = vmul.f32 %v1802_v31, %v750_v37  ;;  %v287_v52 = vunpack.c.l.bf16 %v258_v33  ;;  %v1528_v36 = vld [vmem:[%s1774_s9 + $0x2e8] sm:$0xff] }
  0x92   : > { %v699_v44 = vadd.f32 %v667_v32, %v584_v34  ;;  %v700_v54 = vadd.f32 %v668_v35, %v585_v40  ;;  %v897_v58 = vmul.f32 %v1808_v39, %v864_v41  ;;  %v898_v2 = vmul.f32 %v1808_v39, %v865_v42  ;;  %v257_v42 = vld [vmem:[%s1774_s9 + $0x60] sm:$0xff] }
  0x93   : > { %993 = vadd.xlane.f32.xlu0 %v992_v38  ;;  %v288_v5 = vunpack.c.h.bf16 %v258_v33  ;;  %v320_v11 = vmul.f32 %v1776_v0, %v287_v52  ;;  %v402_v17 = vunpack.c.l.bf16 %v1460_v43  ;;  %v403_v18 = vunpack.c.h.bf16 %v1460_v43 }
  0x94   : > { %v814_v10 = vadd.f32 %v782_v47, %v699_v44  ;;  %v815_v19 = vadd.f32 %v783_v49, %v700_v54  ;;  %v517_v21 = vunpack.c.l.bf16 %v1477_v53  ;;  %v518_v22 = vunpack.c.h.bf16 %v1477_v53 }
  0x95   : > { %v321_v20 = vmul.f32 %v1776_v0, %v288_v5  ;;  %v435_v25 = vmul.f32 %v1780_v3, %v402_v17  ;;  %v436_v26 = vmul.f32 %v1780_v3, %v403_v18  ;;  %v632_v27 = vunpack.c.l.bf16 %v1494_v8  ;;  %v1476_v17 = vld [vmem:[%s1774_s9 + $0x160] sm:$0xff] }
  0x96   : > { %v2128_v24 = vadd.f32 %v897_v58, %v814_v10  ;;  %v2133_v32 = vadd.f32 %v898_v2, %v815_v19  ;;  %v550_v33 = vmul.f32 %v1786_v12, %v517_v21  ;;  %v551_v34 = vmul.f32 %v1786_v12, %v518_v22  ;;  %v1459_v2 = vld [vmem:[%s1774_s9 + $0xe0] sm:$0xff] }
  0x97   : > { %v633_v35 = vunpack.c.h.bf16 %v1494_v8  ;;  %v467_v38 = vadd.f32 %v435_v25, %v320_v11  ;;  %v468_v40 = vadd.f32 %v436_v26, %v321_v20  ;;  %v665_v41 = vmul.f32 %v1796_v23, %v632_v27  ;;  %v1493_v22 = vld [vmem:[%s1774_s9 + $0x1e0] sm:$0xff] }
  0x98   : > { %v961_v37 = vmul.f32 %v2128_v24, %v2128_v24  ;;  %v962_v43 = vmul.f32 %v2133_v32, %v2133_v32  ;;  %v747_v47 = vunpack.c.l.bf16 %v1511_v28  ;;  %v748_v49 = vunpack.c.h.bf16 %v1511_v28 }
  0x99   : > { %v666_v44 = vmul.f32 %v1796_v23, %v633_v35  ;;  %v582_v52 = vadd.f32 %v550_v33, %v467_v38  ;;  %v583_v53 = vadd.f32 %v551_v34, %v468_v40  ;;  %v862_v54 = vunpack.c.l.bf16 %v1528_v36 }
  0x9a   : > { %v863_v58 = vunpack.c.h.bf16 %v1528_v36  ;;  %v1007_v5 = vadd.f32 %v962_v43, %v961_v37  ;;  %v780_v8 = vmul.f32 %v1802_v31, %v747_v47  ;;  %v781_v10 = vmul.f32 %v1802_v31, %v748_v49  ;;  %v1510_v43 = vld [vmem:[%s1774_s9 + $0x260] sm:$0xff] }
  0x9b   : > { %v285_v11 = vunpack.c.l.bf16 %v257_v42  ;;  %v697_v18 = vadd.f32 %v665_v41, %v582_v52  ;;  %v698_v19 = vadd.f32 %v666_v44, %v583_v53  ;;  %v895_v20 = vmul.f32 %v1808_v39, %v862_v54  ;;  %v1527_v52 = vld [vmem:[%s1774_s9 + $0x2e0] sm:$0xff] }
  0x9c   : > { %v896_v21 = vmul.f32 %v1808_v39, %v863_v58  ;;  %1008 = vadd.xlane.f32.xlu2 %v1007_v5  ;;  %v286_v25 = vunpack.c.h.bf16 %v257_v42  ;;  %v400_v27 = vunpack.c.l.bf16 %v1459_v2  ;;  %v401_v28 = vunpack.c.h.bf16 %v1459_v2 }
  0x9d   : > { %v318_v26 = vmul.f32 %v1776_v0, %v285_v11  ;;  %v812_v33 = vadd.f32 %v780_v8, %v697_v18  ;;  %v813_v34 = vadd.f32 %v781_v10, %v698_v19  ;;  %v515_v35 = vunpack.c.l.bf16 %v1476_v17 }
  0x9e   : > { %v516_v36 = vunpack.c.h.bf16 %v1476_v17  ;;  %v319_v37 = vmul.f32 %v1776_v0, %v286_v25  ;;  %v433_v38 = vmul.f32 %v1780_v3, %v400_v27  ;;  %v434_v40 = vmul.f32 %v1780_v3, %v401_v28  ;;  %v260_v17 = vld [vmem:[%s1774_s9 + $0x78] sm:$0xff] }
  0x9f   : > { %v630_v41 = vunpack.c.l.bf16 %v1493_v22  ;;  %v2157_v44 = vadd.f32 %v895_v20, %v812_v33  ;;  %v2159_v42 = vadd.f32 %v896_v21, %v813_v34  ;;  %v548_v47 = vmul.f32 %v1786_v12, %v515_v35  ;;  %v1462_v25 = vld [vmem:[%s1774_s9 + $0xf8] sm:$0xff] }
  0xa0   : > { %v549_v49 = vmul.f32 %v1786_v12, %v516_v36  ;;  %v465_v53 = vadd.f32 %v433_v38, %v318_v26  ;;  %v466_v54 = vadd.f32 %v434_v40, %v319_v37  ;;  %v631_v58 = vunpack.c.h.bf16 %v1493_v22  ;;  %v1479_v33 = vld [vmem:[%s1774_s9 + $0x178] sm:$0xff] }
  0xa1   : > { %v663_v2 = vmul.f32 %v1796_v23, %v630_v41  ;;  %v959_v5 = vmul.f32 %v2157_v44, %v2157_v44  ;;  %v960_v8 = vmul.f32 %v2159_v42, %v2159_v42  ;;  %v745_v10 = vunpack.c.l.bf16 %v1510_v43 }
  0xa2   : > { %v746_v11 = vunpack.c.h.bf16 %v1510_v43  ;;  %v580_v18 = vadd.f32 %v548_v47, %v465_v53  ;;  %v581_v19 = vadd.f32 %v549_v49, %v466_v54  ;;  %v664_v20 = vmul.f32 %v1796_v23, %v631_v58  ;;  %v1496_v47 = vld [vmem:[%s1774_s9 + $0x1f8] sm:$0xff] }
  0xa3   : > { %v860_v21 = vunpack.c.l.bf16 %v1527_v52  ;;  %v1004_v22 = vadd.f32 %v960_v8, %v959_v5  ;;  %v778_v26 = vmul.f32 %v1802_v31, %v745_v10  ;;  %v861_v28 = vunpack.c.h.bf16 %v1527_v52  ;;  %v1513_v10 = vld [vmem:[%s1774_s9 + $0x278] sm:$0xff] }
  0xa4   : > { %v779_v27 = vmul.f32 %v1802_v31, %v746_v11  ;;  %v695_v34 = vadd.f32 %v663_v2, %v580_v18  ;;  %v696_v35 = vadd.f32 %v664_v20, %v581_v19  ;;  %v291_v37 = vunpack.c.l.bf16 %v260_v17 }
  0xa5   : > { %v893_v36 = vmul.f32 %v1808_v39, %v860_v21  ;;  %1005 = vadd.xlane.f32.xlu1 %v1004_v22  ;;  %v894_v38 = vmul.f32 %v1808_v39, %v861_v28  ;;  %v292_v40 = vunpack.c.h.bf16 %v260_v17  ;;  %v406_v41 = vunpack.c.l.bf16 %v1462_v25 }
  0xa6   : > { %v407_v43 = vunpack.c.h.bf16 %v1462_v25  ;;  %v810_v49 = vadd.f32 %v778_v26, %v695_v34  ;;  %v811_v53 = vadd.f32 %v779_v27, %v696_v35  ;;  %v324_v54 = vmul.f32 %v1776_v0, %v291_v37  ;;  %v1530_v26 = vld [vmem:[%s1774_s9 + $0x2f8] sm:$0xff] }
  0xa7   : > { %v521_v52 = vunpack.c.l.bf16 %v1479_v33  ;;  %v325_v58 = vmul.f32 %v1776_v0, %v292_v40  ;;  %v439_v2 = vmul.f32 %v1780_v3, %v406_v41  ;;  %v522_v8 = vunpack.c.h.bf16 %v1479_v33 }
  0xa8   : > { %v440_v5 = vmul.f32 %v1780_v3, %v407_v43  ;;  %v2183_v11 = vadd.f32 %v893_v36, %v810_v49  ;;  %v2185_v17 = vadd.f32 %v894_v38, %v811_v53  ;;  %v636_v19 = vunpack.c.l.bf16 %v1496_v47 }
  0xa9   : > { %v554_v18 = vmul.f32 %v1786_v12, %v521_v52  ;;  %v471_v20 = vadd.f32 %v439_v2, %v324_v54  ;;  %v555_v25 = vmul.f32 %v1786_v12, %v522_v8  ;;  %v637_v22 = vunpack.c.h.bf16 %v1496_v47 }
  0xaa   : > { %v472_v21 = vadd.f32 %v440_v5, %v325_v58  ;;  %v957_v0 = vmul.f32 %v2183_v11, %v2183_v11  ;;  %v958_v3 = vmul.f32 %v2185_v17, %v2185_v17  ;;  %v669_v27 = vmul.f32 %v1796_v23, %v636_v19  ;;  %v979_v5 = vpop.xlane.xlu2 %978 }
  0xab   : > { %v751_v28 = vunpack.c.l.bf16 %v1513_v10  ;;  %v586_v33 = vadd.f32 %v554_v18, %v471_v20  ;;  %v670_v35 = vmul.f32 %v1796_v23, %v637_v22  ;;  %v752_v36 = vunpack.c.h.bf16 %v1513_v10 }
  0xac   : > { %v587_v34 = vadd.f32 %v555_v25, %v472_v21  ;;  %v1001_v37 = vadd.f32 %v958_v3, %v957_v0  ;;  %v866_v12 = vunpack.c.l.bf16 %v1530_v26  ;;  %v867_v40 = vunpack.c.h.bf16 %v1530_v26  ;;  %v973_v25 = vpop.xlane.xlu1 %972 }
  0xad   : > { %v784_v38 = vmul.f32 %v1802_v31, %v751_v28  ;;  %v701_v41 = vadd.f32 %v669_v27, %v586_v33  ;;  %v785_v47 = vmul.f32 %v1802_v31, %v752_v36  ;;  %v1694_v54 = vmov 256.0  }
  0xae   : > { %v702_v43 = vadd.f32 %v670_v35, %v587_v34  ;;  %1002 = vadd.xlane.f32.xlu0 %v1001_v37  ;;  %v899_v49 = vmul.f32 %v1808_v39, %v866_v12  ;;  %v900_v53 = vmul.f32 %v1808_v39, %v867_v40  ;;  %1581 = vrcp.f32 %v1694_v54 }
  0xaf   : > { %v816_v52 = vadd.f32 %v784_v38, %v701_v41 }
  0xb0   : > { %v817_v58 = vadd.f32 %v785_v47, %v702_v43  ;;  %v1244_v47 = vld [vmem:[#allocation5] sm:$0x3] }
  0xb1   : > { %v2200_v23 = vadd.f32 %v899_v49, %v816_v52 }
  0xb2   : > { %v2202_v2 = vadd.f32 %v900_v53, %v817_v58 }
  0xb3   : > { %v963_v8 = vmul.f32 %v2200_v23, %v2200_v23  ;;  %v967_v22 = vpop.xlane.xlu0 %966 }
  0xb4   : > { %v964_v31 = vmul.f32 %v2202_v2, %v2202_v2  ;;  %v1582_v10 = vpop.eup %1581 }
  0xb5   : > { %v1014_v19 = vmul.f32 256.0, %v1582_v10  ;;  %vm1018_vm0 = vweird.f32 %v1582_v10 }
  0xb6   : > { %v1010_v18 = vadd.f32 %v964_v31, %v963_v8  ;;  %v2221_v8 = vperm.slane %v1244_v47, 0  ;;  %v2223_v31 = vperm.slane %v1244_v47, 1 }
  0xb7   : > { %v1015_v39 = vsub.f32 1.0, %v1014_v19 }
  0xb8   : > { %1011 = vadd.xlane.f32.xlu0 %v1010_v18 }
  0xb9   : > { %v1016_v20 = vmul.f32 %v1582_v10, %v1015_v39 }
  0xbb   : > { %v1017_v21 = vadd.f32 %v1582_v10, %v1016_v20 }
  0xbc   : > { %v982_v26 = vpop.xlane.xlu2 %981 }
  0xbd   : > { %v2208_v0 = vsel %vm1018_vm0, %v1582_v10, %v1017_v21 }
  0xbe   : > { %v1024_v3 = vmul.f32 %v2208_v0, %v979_v5  ;;  %v1022_v27 = vmul.f32 %v2208_v0, %v973_v25  ;;  %v1020_v28 = vmul.f32 %v2208_v0, %v967_v22  ;;  %v1025_v33 = vmul.f32 %v2208_v0, %v982_v26 }
  0xc0   : > { %v1040_v34 = vadd.f32 1e-06, %v1024_v3  ;;  %v1038_v35 = vadd.f32 1e-06, %v1022_v27  ;;  %v1036_v36 = vadd.f32 1e-06, %v1020_v28 }
  0xc1   : > { %v2214_v37 = vadd.f32 1e-06, %v1025_v33 }
  0xc2   : > { %1583 = vrsqrt.f32 %v1040_v34  ;;  %vm1098_vm1 = vweird.f32 %v1040_v34  ;;  %vm1078_vm2 = vweird.f32 %v1038_v35  ;;  %vm1058_vm3 = vweird.f32 %v1036_v36 }
  0xc3   : > { %1585 = vrsqrt.f32 %v1038_v35  ;;  %vm1108_vm4 = vweird.f32 %v2214_v37 }
  0xc4   : > { %1587 = vrsqrt.f32 %v1036_v36 }
  0xc5   : > { %1589 = vrsqrt.f32 %v2214_v37  ;;  %v976_v38 = vpop.xlane.xlu1 %975 }
  0xc6   : > { %v1023_v12 = vmul.f32 %v2208_v0, %v976_v38 }
  0xc8   : > { %v1584_v40 = vpop.eup %1583  ;;  %v2218_v41 = vadd.f32 1e-06, %v1023_v12 }
  0xc9   : > { %v1586_v43 = vpop.eup %1585  ;;  %v1093_v49 = vmul.f32 %v1584_v40, %v1040_v34  ;;  %vm1099_vm5 = vweird.f32 %v1584_v40 }
  0xca   : > { %v1588_v53 = vpop.eup %1587  ;;  %v1073_v54 = vmul.f32 %v1586_v43, %v1038_v35  ;;  %1591 = vrsqrt.f32 %v2218_v41  ;;  %vm1079_vm6 = vweird.f32 %v1586_v43  ;;  %vm1088_vm7 = vweird.f32 %v2218_v41  ;;  %vm1100_vm9 = vmor %vm1098_vm1, %vm1099_vm5 }
  0xcb   : > { %v1590_v52 = vpop.eup %1589  ;;  %v1094_v58 = vmul.f32 %v1584_v40, %v1093_v49  ;;  %v1053_v5 = vmul.f32 %v1588_v53, %v1036_v36  ;;  %vm1059_vm8 = vweird.f32 %v1588_v53  ;;  %vm1080_vm12 = vmor %vm1078_vm2, %vm1079_vm6 }
  0xcc   : > { %v1074_v10 = vmul.f32 %v1586_v43, %v1073_v54  ;;  %v1103_v18 = vmul.f32 %v1590_v52, %v2214_v37  ;;  %vm1109_vm10 = vweird.f32 %v1590_v52  ;;  %vm1060_vm13 = vmor %vm1058_vm3, %vm1059_vm8 }
  0xcd   : > { %v1095_v19 = vmul.f32 0.5, %v1094_v58  ;;  %v1054_v39 = vmul.f32 %v1588_v53, %v1053_v5  ;;  %vm1110_vm14 = vmor %vm1108_vm4, %vm1109_vm10 }
  0xce   : > { %v1075_v20 = vmul.f32 0.5, %v1074_v10  ;;  %v1104_v21 = vmul.f32 %v1590_v52, %v1103_v18  ;;  %v970_v25 = vpop.xlane.xlu0 %969 }
  0xcf   : > { %v1096_v22 = vsub.f32 1.5, %v1095_v19  ;;  %v1055_v26 = vmul.f32 0.5, %v1054_v39  ;;  %v1021_v3 = vmul.f32 %v2208_v0, %v970_v25 }
  0xd0   : > { %v1592_v27 = vpop.eup %1591  ;;  %v1076_v28 = vsub.f32 1.5, %v1075_v20  ;;  %v1105_v33 = vmul.f32 0.5, %v1104_v21 }
  0xd1   : > { %v1097_v38 = vmul.f32 %v1584_v40, %v1096_v22  ;;  %v1056_v12 = vsub.f32 1.5, %v1055_v26  ;;  %v1083_v47 = vmul.f32 %v1592_v27, %v2218_v41  ;;  %vm1089_vm11 = vweird.f32 %v1592_v27 }
  0xd2   : > { %v1077_v49 = vmul.f32 %v1586_v43, %v1076_v28  ;;  %v1106_v54 = vsub.f32 1.5, %v1105_v33  ;;  %v2232_v18 = vadd.f32 1e-06, %v1021_v3  ;;  %vm1090_vm15 = vmor %vm1088_vm7, %vm1089_vm11 }
  0xd3   : > { %v1101_v58 = vsel %vm1100_vm9, %v1584_v40, %v1097_v38  ;;  %v1057_v5 = vmul.f32 %v1588_v53, %v1056_v12  ;;  %v1084_v10 = vmul.f32 %v1592_v27, %v1083_v47 }
  0xd4   : > { %v1220_v19 = vmul.f32 %v1101_v58, %v1819_v61  ;;  %v1221_v39 = vmul.f32 %v1101_v58, %v1821_v62  ;;  %v1081_v20 = vsel %vm1080_vm12, %v1586_v43, %v1077_v49  ;;  %v1107_v34 = vmul.f32 %v1590_v52, %v1106_v54 }
  0xd5   : > { %v1216_v21 = vmul.f32 %v1081_v20, %v1845_v45  ;;  %v1217_v40 = vmul.f32 %v1081_v20, %v1847_v46  ;;  %v1061_v35 = vsel %vm1060_vm13, %v1588_v53, %v1057_v5  ;;  %v1085_v25 = vmul.f32 0.5, %v1084_v10 }
  0xd6   : > { %v1258_v22 = vmul.f32 %v2221_v8, %v1220_v19  ;;  %v1259_v26 = vmul.f32 %v2223_v31, %v1221_v39  ;;  %v1212_v3 = vmul.f32 %v1061_v35, %v1871_v29  ;;  %v1213_v61 = vmul.f32 %v1061_v35, %v1873_v30 }
  0xd7   : > { %v1254_v62 = vmul.f32 %v2221_v8, %v1216_v21  ;;  %v1255_v45 = vmul.f32 %v2223_v31, %v1217_v40  ;;  %v1111_v46 = vsel %vm1110_vm14, %v1590_v52, %v1107_v34  ;;  %v1086_v36 = vsub.f32 1.5, %v1085_v25  ;;  %v991_v29 = vpop.xlane.xlu2 %990 }
  0xd8   : > { %v1286_v43 = vpack.c.bf16 %v1259_v26, %v1258_v22  ;;  %v1250_v30 = vmul.f32 %v2221_v8, %v1212_v3  ;;  %v1251_v37 = vmul.f32 %v2223_v31, %v1213_v61  ;;  %v1222_v53 = vmul.f32 %v1111_v46, %v1895_v15 }
  0xd9   : > { %v1284_v28 = vpack.c.bf16 %v1255_v45, %v1254_v62  ;;  %v1223_v33 = vmul.f32 %v1111_v46, %v1897_v16  ;;  %v1087_v38 = vmul.f32 %v1592_v27, %v1086_v36  ;;  %1593 = vrsqrt.f32 %v2232_v18 }
  0xda   : > { %1302 = vst [vmem:[%s2251_s17 + $0x20] sm:$0xff] %v1286_v43  ;;  %v1282_v12 = vpack.c.bf16 %v1251_v37, %v1250_v30  ;;  %v1260_v52 = vmul.f32 %v2221_v8, %v1222_v53  ;;  %v1028_v47 = vmul.f32 %v2208_v0, %v991_v29  ;;  %vm1068_vm1 = vweird.f32 %v2232_v18 }
  0xdb   : > { %1300 = vst [vmem:[%s2251_s17 + $0x10] sm:$0xff] %v1284_v28  ;;  %v1261_v15 = vmul.f32 %v2223_v31, %v1223_v33  ;;  %v1091_v49 = vsel %vm1090_vm15, %v1592_v27, %v1087_v38 }
  0xdc   : > { %1298 = vst [vmem:[%s2251_s17] sm:$0xff] %v1282_v12  ;;  %v1218_v16 = vmul.f32 %v1091_v49, %v1920_v4  ;;  %v1219_v54 = vmul.f32 %v1091_v49, %v1925_v9  ;;  %v1044_v58 = vadd.f32 1e-06, %v1028_v47 }
  0xdd   : > { %v1287_v5 = vpack.c.bf16 %v1261_v15, %v1260_v52 }
  0xde   : > { %v1256_v10 = vmul.f32 %v2221_v8, %v1218_v16  ;;  %v1257_v19 = vmul.f32 %v2223_v31, %v1219_v54  ;;  %1595 = vrsqrt.f32 %v1044_v58  ;;  %vm1138_vm3 = vweird.f32 %v1044_v58 }
  0xdf   : > { %v1594_v41 = vpop.eup %1593  ;;  %1303 = vst [vmem:[%s2251_s17 + $0x28] sm:$0xff] %v1287_v5 }
  0xe0   : > { %v1285_v39 = vpack.c.bf16 %v1257_v19, %v1256_v10  ;;  %v1063_v20 = vmul.f32 %v1594_v41, %v2232_v18  ;;  %vm1069_vm0 = vweird.f32 %v1594_v41 }
  0xe1   : > { %v988_v34 = vpop.xlane.xlu1 %987  ;;  %vm1070_vm2 = vmor %vm1068_vm1, %vm1069_vm0 }
  0xe2   : > { %v1027_v27 = vmul.f32 %v2208_v0, %v988_v34  ;;  %1301 = vst [vmem:[%s2251_s17 + $0x18] sm:$0xff] %v1285_v39  ;;  %v1064_v21 = vmul.f32 %v1594_v41, %v1063_v20 }
  0xe4   : > { %v1043_v4 = vadd.f32 1e-06, %v1027_v27  ;;  %v1596_v40 = vpop.eup %1595  ;;  %v1065_v9 = vmul.f32 0.5, %v1064_v21 }
  0xe5   : > { %v1133_v35 = vmul.f32 %v1596_v40, %v1044_v58  ;;  %vm1139_vm4 = vweird.f32 %v1596_v40 }
  0xe6   : > { %1597 = vrsqrt.f32 %v1043_v4  ;;  %v1066_v25 = vsub.f32 1.5, %v1065_v9  ;;  %vm1140_vm5 = vmor %vm1138_vm3, %vm1139_vm4  ;;  %vm1128_vm6 = vweird.f32 %v1043_v4 }
  0xe7   : > { %v1134_v22 = vmul.f32 %v1596_v40, %v1133_v35 }
  0xe8   : > { %v1067_v26 = vmul.f32 %v1594_v41, %v1066_v25 }
  0xe9   : > { %v1135_v3 = vmul.f32 0.5, %v1134_v22 }
  0xea   : > { %v1071_v61 = vsel %vm1070_vm2, %v1594_v41, %v1067_v26  ;;  %v985_v62 = vpop.xlane.xlu0 %984 }
  0xeb   : > { %v1214_v46 = vmul.f32 %v1071_v61, %v1949_v63  ;;  %v1215_v36 = vmul.f32 %v1071_v61, %v1951_v1  ;;  %v1136_v29 = vsub.f32 1.5, %v1135_v3  ;;  %v1026_v43 = vmul.f32 %v2208_v0, %v985_v62 }
  0xec   : > { %v1598_v45 = vpop.eup %1597 }
  0xed   : > { %v1123_v30 = vmul.f32 %v1598_v45, %v1043_v4  ;;  %v1252_v37 = vmul.f32 %v2221_v8, %v1214_v46  ;;  %v1253_v18 = vmul.f32 %v2223_v31, %v1215_v36  ;;  %v1137_v53 = vmul.f32 %v1596_v40, %v1136_v29 }
  0xee   : > { %v1042_v28 = vadd.f32 1e-06, %v1026_v43  ;;  %vm1129_vm7 = vweird.f32 %v1598_v45 }
  0xef   : > { %v1124_v33 = vmul.f32 %v1598_v45, %v1123_v30  ;;  %v1283_v38 = vpack.c.bf16 %v1253_v18, %v1252_v37  ;;  %v1141_v12 = vsel %vm1140_vm5, %v1596_v40, %v1137_v53  ;;  %vm1130_vm8 = vmor %vm1128_vm6, %vm1129_vm7 }
  0xf0   : > { %1599 = vrsqrt.f32 %v1042_v28  ;;  %v1228_v63 = vmul.f32 %v1141_v12, %v1975_v55  ;;  %v1229_v1 = vmul.f32 %v1141_v12, %v1977_v56  ;;  %vm1118_vm10 = vweird.f32 %v1042_v28 }
  0xf1   : > { %v1125_v52 = vmul.f32 0.5, %v1124_v33  ;;  %1299 = vst [vmem:[%s2251_s17 + $0x8] sm:$0xff] %v1283_v38 }
  0xf2   : > { %v1266_v47 = vmul.f32 %v2221_v8, %v1228_v63  ;;  %v1267_v15 = vmul.f32 %v2223_v31, %v1229_v1 }
  0xf3   : > { %v1126_v49 = vsub.f32 1.5, %v1125_v52  ;;  %v1000_v16 = vpop.xlane.xlu2 %999 }
  0xf4   : > { %v1290_v54 = vpack.c.bf16 %v1267_v15, %v1266_v47  ;;  %v1031_v5 = vmul.f32 %v2208_v0, %v1000_v16 }
  0xf5   : > { %v1127_v58 = vmul.f32 %v1598_v45, %v1126_v49 }
  0xf6   : > { %v1600_v10 = vpop.eup %1599  ;;  %1306 = vst [vmem:[%s2251_s17 + $0x40] sm:$0xff] %v1290_v54  ;;  %v1047_v19 = vadd.f32 1e-06, %v1031_v5 }
  0xf7   : > { %v1131_v55 = vsel %vm1130_vm8, %v1598_v45, %v1127_v58  ;;  %v1113_v56 = vmul.f32 %v1600_v10, %v1042_v28  ;;  %vm1119_vm9 = vweird.f32 %v1600_v10 }
  0xf8   : > { %v1226_v41 = vmul.f32 %v1131_v55, %v1999_v50  ;;  %v1227_v39 = vmul.f32 %v1131_v55, %v2001_v51  ;;  %1601 = vrsqrt.f32 %v1047_v19  ;;  %vm1120_vm11 = vmor %vm1118_vm10, %vm1119_vm9  ;;  %vm1168_vm12 = vweird.f32 %v1047_v19 }
  0xf9   : > { %v1114_v20 = vmul.f32 %v1600_v10, %v1113_v56 }
  0xfa   : > { %v1264_v34 = vmul.f32 %v2221_v8, %v1226_v41  ;;  %v1265_v27 = vmul.f32 %v2223_v31, %v1227_v39 }
  0xfb   : > { %v1115_v21 = vmul.f32 0.5, %v1114_v20 }
  0xfc   : > { %v1289_v4 = vpack.c.bf16 %v1265_v27, %v1264_v34  ;;  %v997_v9 = vpop.xlane.xlu1 %996 }
  0xfd   : > { %v1116_v40 = vsub.f32 1.5, %v1115_v21  ;;  %v1030_v35 = vmul.f32 %v2208_v0, %v997_v9 }
  0xfe   : > { %1305 = vst [vmem:[%s2251_s17 + $0x38] sm:$0xff] %v1289_v4  ;;  %v1602_v25 = vpop.eup %1601 }
  0xff   : > { %v1117_v22 = vmul.f32 %v1600_v10, %v1116_v40  ;;  %v1163_v50 = vmul.f32 %v1602_v25, %v1047_v19  ;;  %v1046_v51 = vadd.f32 1e-06, %v1030_v35  ;;  %vm1169_vm13 = vweird.f32 %v1602_v25 }
 0x100   : > { %vm1170_vm14 = vmor %vm1168_vm12, %vm1169_vm13 }
 0x101   : > { %v1121_v26 = vsel %vm1120_vm11, %v1600_v10, %v1117_v22  ;;  %v1164_v62 = vmul.f32 %v1602_v25, %v1163_v50  ;;  %1603 = vrsqrt.f32 %v1046_v51  ;;  %vm1158_vm15 = vweird.f32 %v1046_v51 }
 0x102   : > { %v1224_v3 = vmul.f32 %v1121_v26, %v2024_v48  ;;  %v1225_v61 = vmul.f32 %v1121_v26, %v2029_v57 }
 0x103   : > { %v1165_v36 = vmul.f32 0.5, %v1164_v62 }
 0x104   : > { %v1262_v45 = vmul.f32 %v2221_v8, %v1224_v3  ;;  %v1263_v46 = vmul.f32 %v2223_v31, %v1225_v61 }
 0x105   : > { %v1166_v43 = vsub.f32 1.5, %v1165_v36 }
 0x106   : > { %v1288_v29 = vpack.c.bf16 %v1263_v46, %v1262_v45  ;;  %v994_v30 = vpop.xlane.xlu0 %993 }
 0x107   : > { %v1029_v37 = vmul.f32 %v2208_v0, %v994_v30  ;;  %v1604_v18 = vpop.eup %1603  ;;  %v1167_v53 = vmul.f32 %v1602_v25, %v1166_v43 }
 0x108   : > { %1304 = vst [vmem:[%s2251_s17 + $0x30] sm:$0xff] %v1288_v29  ;;  %v1153_v48 = vmul.f32 %v1604_v18, %v1046_v51  ;;  %vm1159_vm0 = vweird.f32 %v1604_v18 }
 0x109   : > { %v1045_v57 = vadd.f32 1e-06, %v1029_v37  ;;  %v1171_v28 = vsel %vm1170_vm14, %v1602_v25, %v1167_v53  ;;  %vm1160_vm1 = vmor %vm1158_vm15, %vm1159_vm0 }
 0x10a   : > { %v1234_v33 = vmul.f32 %v1171_v28, %v2053_v59  ;;  %v1235_v38 = vmul.f32 %v1171_v28, %v2055_v60  ;;  %v1154_v12 = vmul.f32 %v1604_v18, %v1153_v48 }
 0x10b   : > { %1605 = vrsqrt.f32 %v1045_v57  ;;  %vm1148_vm3 = vweird.f32 %v1045_v57 }
 0x10c   : > { %v1272_v63 = vmul.f32 %v2221_v8, %v1234_v33  ;;  %v1273_v1 = vmul.f32 %v2223_v31, %v1235_v38  ;;  %v1155_v52 = vmul.f32 0.5, %v1154_v12 }
 0x10e   : > { %v1293_v47 = vpack.c.bf16 %v1273_v1, %v1272_v63  ;;  %v1156_v15 = vsub.f32 1.5, %v1155_v52 }
 0x10f   : > { %v1009_v49 = vpop.xlane.xlu2 %1008 }
 0x110   : > { %1309 = vst [vmem:[%s2251_s17 + $0x58] sm:$0xff] %v1293_v47  ;;  %v1157_v54 = vmul.f32 %v1604_v18, %v1156_v15  ;;  %v1034_v58 = vmul.f32 %v2208_v0, %v1009_v49 }
 0x111   : > { %v1606_v16 = vpop.eup %1605 }
 0x112   : > { %v1143_v59 = vmul.f32 %v1606_v16, %v1045_v57  ;;  %v1161_v60 = vsel %vm1160_vm1, %v1604_v18, %v1157_v54  ;;  %v1050_v5 = vadd.f32 1e-06, %v1034_v58  ;;  %vm1149_vm2 = vweird.f32 %v1606_v16 }
 0x113   : > { %v1232_v10 = vmul.f32 %v1161_v60, %v2079_v6  ;;  %v1233_v55 = vmul.f32 %v1161_v60, %v2081_v7  ;;  %vm1150_vm4 = vmor %vm1148_vm3, %vm1149_vm2 }
 0x114   : > { %v1144_v56 = vmul.f32 %v1606_v16, %v1143_v59  ;;  %1607 = vrsqrt.f32 %v1050_v5  ;;  %vm1198_vm5 = vweird.f32 %v1050_v5 }
 0x115   : > { %v1270_v19 = vmul.f32 %v2221_v8, %v1232_v10  ;;  %v1271_v41 = vmul.f32 %v2223_v31, %v1233_v55 }
 0x116   : > { %v1145_v39 = vmul.f32 0.5, %v1144_v56 }
 0x117   : > { %v1292_v20 = vpack.c.bf16 %v1271_v41, %v1270_v19 }
 0x118   : > { %v1146_v34 = vsub.f32 1.5, %v1145_v39  ;;  %v1006_v27 = vpop.xlane.xlu1 %1005 }
 0x119   : > { %1308 = vst [vmem:[%s2251_s17 + $0x50] sm:$0xff] %v1292_v20  ;;  %v1033_v4 = vmul.f32 %v2208_v0, %v1006_v27 }
 0x11a   : > { %v1147_v21 = vmul.f32 %v1606_v16, %v1146_v34  ;;  %v1608_v40 = vpop.eup %1607 }
 0x11b   : > { %v1193_v7 = vmul.f32 %v1608_v40, %v1050_v5  ;;  %v1049_v9 = vadd.f32 1e-06, %v1033_v4  ;;  %vm1199_vm6 = vweird.f32 %v1608_v40 }
 0x11c   : > { %v1151_v6 = vsel %vm1150_vm4, %v1606_v16, %v1147_v21  ;;  %vm1200_vm7 = vmor %vm1198_vm5, %vm1199_vm6 }
 0x11d   : > { %v1230_v35 = vmul.f32 %v1151_v6, %v2103_v13  ;;  %v1231_v25 = vmul.f32 %v1151_v6, %v2105_v14  ;;  %v1194_v22 = vmul.f32 %v1608_v40, %v1193_v7  ;;  %1609 = vrsqrt.f32 %v1049_v9 }
 0x11e   : > { %vm1188_vm8 = vweird.f32 %v1049_v9 }
 0x11f   : > { %v1268_v50 = vmul.f32 %v2221_v8, %v1230_v35  ;;  %v1269_v51 = vmul.f32 %v2223_v31, %v1231_v25  ;;  %v1195_v26 = vmul.f32 0.5, %v1194_v22 }
 0x121   : > { %v1291_v3 = vpack.c.bf16 %v1269_v51, %v1268_v50  ;;  %v1196_v61 = vsub.f32 1.5, %v1195_v26  ;;  %v1003_v62 = vpop.xlane.xlu0 %1002 }
 0x122   : > { %v1032_v45 = vmul.f32 %v2208_v0, %v1003_v62 }
 0x123   : > { %1307 = vst [vmem:[%s2251_s17 + $0x48] sm:$0xff] %v1291_v3  ;;  %v1610_v46 = vpop.eup %1609  ;;  %v1197_v36 = vmul.f32 %v1608_v40, %v1196_v61 }
 0x124   : > { %v1183_v13 = vmul.f32 %v1610_v46, %v1049_v9  ;;  %v1048_v14 = vadd.f32 1e-06, %v1032_v45  ;;  %vm1189_vm9 = vweird.f32 %v1610_v46 }
 0x125   : > { %v1201_v29 = vsel %vm1200_vm7, %v1608_v40, %v1197_v36  ;;  %vm1190_vm10 = vmor %vm1188_vm8, %vm1189_vm9 }
 0x126   : > { %v1240_v43 = vmul.f32 %v1201_v29, %v2128_v24  ;;  %v1241_v30 = vmul.f32 %v1201_v29, %v2133_v32  ;;  %v1184_v37 = vmul.f32 %v1610_v46, %v1183_v13  ;;  %1611 = vrsqrt.f32 %v1048_v14 }
 0x127   : > { %vm1178_vm12 = vweird.f32 %v1048_v14 }
 0x128   : > { %v1278_v18 = vmul.f32 %v2221_v8, %v1240_v43  ;;  %v1279_v53 = vmul.f32 %v2223_v31, %v1241_v30  ;;  %v1185_v48 = vmul.f32 0.5, %v1184_v37 }
 0x12a   : > { %v1296_v57 = vpack.c.bf16 %v1279_v53, %v1278_v18  ;;  %v1186_v28 = vsub.f32 1.5, %v1185_v48 }
 0x12b   : > { %v1012_v33 = vpop.xlane.xlu0 %1011 }
 0x12c   : > { %v1035_v38 = vmul.f32 %v2208_v0, %v1012_v33  ;;  %v1612_v12 = vpop.eup %1611  ;;  %1312 = vst [vmem:[%s2251_s17 + $0x70] sm:$0xff] %v1296_v57  ;;  %v1187_v63 = vmul.f32 %v1610_v46, %v1186_v28 }
 0x12d   : > { %v1173_v24 = vmul.f32 %v1612_v12, %v1048_v14  ;;  %vm1179_vm11 = vweird.f32 %v1612_v12 }
 0x12e   : > { %v1051_v32 = vadd.f32 1e-06, %v1035_v38  ;;  %v1191_v1 = vsel %vm1190_vm10, %v1610_v46, %v1187_v63  ;;  %vm1180_vm13 = vmor %vm1178_vm12, %vm1179_vm11 }
 0x12f   : > { %v1238_v52 = vmul.f32 %v1191_v1, %v2157_v44  ;;  %v1239_v47 = vmul.f32 %v1191_v1, %v2159_v42  ;;  %v1174_v15 = vmul.f32 %v1612_v12, %v1173_v24 }
 0x130   : > { %1613 = vrsqrt.f32 %v1051_v32  ;;  %vm1208_vm15 = vweird.f32 %v1051_v32 }
 0x131   : > { %v1276_v49 = vmul.f32 %v2221_v8, %v1238_v52  ;;  %v1277_v16 = vmul.f32 %v2223_v31, %v1239_v47  ;;  %v1175_v54 = vmul.f32 0.5, %v1174_v15 }
 0x133   : > { %v1295_v0 = vpack.c.bf16 %v1277_v16, %v1276_v49  ;;  %v1176_v58 = vsub.f32 1.5, %v1175_v54 }
 0x135   : > { %1311 = vst [vmem:[%s2251_s17 + $0x68] sm:$0xff] %v1295_v0  ;;  %v1177_v60 = vmul.f32 %v1612_v12, %v1176_v58 }
 0x136   : > { %v1614_v59 = vpop.eup %1613 }
 0x137   : > { %v1203_v5 = vmul.f32 %v1614_v59, %v1051_v32  ;;  %v1181_v44 = vsel %vm1180_vm13, %v1612_v12, %v1177_v60  ;;  %vm1209_vm14 = vweird.f32 %v1614_v59 }
 0x138   : > { %v1236_v42 = vmul.f32 %v1181_v44, %v2183_v11  ;;  %v1237_v10 = vmul.f32 %v1181_v44, %v2185_v17  ;;  %vm1210_vm0 = vmor %vm1208_vm15, %vm1209_vm14 }
 0x139   : > { %v1204_v55 = vmul.f32 %v1614_v59, %v1203_v5 }
 0x13a   : > { %v1274_v56 = vmul.f32 %v2221_v8, %v1236_v42  ;;  %v1275_v19 = vmul.f32 %v2223_v31, %v1237_v10 }
 0x13b   : > { %v1205_v41 = vmul.f32 0.5, %v1204_v55 }
 0x13c   : > { %v1294_v39 = vpack.c.bf16 %v1275_v19, %v1274_v56 }
 0x13d   : > { %v1206_v20 = vsub.f32 1.5, %v1205_v41 }
 0x13e   : > { %1310 = vst [vmem:[%s2251_s17 + $0x60] sm:$0xff] %v1294_v39 }
 0x13f   : > { %v1207_v34 = vmul.f32 %v1614_v59, %v1206_v20 }
 0x141   : > { %v1211_v27 = vsel %vm1210_vm0, %v1614_v59, %v1207_v34 }
 0x142   : > { %v1242_v21 = vmul.f32 %v1211_v27, %v2200_v23  ;;  %v1243_v11 = vmul.f32 %v1211_v27, %v2202_v2 }
 0x144   : > { %v1280_v17 = vmul.f32 %v2221_v8, %v1242_v21  ;;  %v1281_v4 = vmul.f32 %v2223_v31, %v1243_v11 }
 0x146   : > { %v1297_v40 = vpack.c.bf16 %v1281_v4, %v1280_v17 }
 0x148   : > { %1313 = vst [vmem:[%s2251_s17 + $0x78] sm:$0xff] %v1297_v40 }
 0x149 PF: > { %s15_s14 = sadd.s32 1, %s1690_s14   ;;  %s2356_s12 = smov %s1686_s13 }
 0x14a   : > { %p12_p8 = scmp.ge.s32.totalorder %s15_s14, 4   ;;  %s2357_s13 = smov %s2359_s16 }
 0x14c   :  { %14 = sbr.rel (!%p12_p8) target bundleno = 3 (0x3), region = 77 }
 0x151   :  { %1346 = vsyncpa [#allocation3], 1 }
 0x152   :  { %1348 = vsyncpa [#allocation3 + $0x1], 1 }
 0x153   :  { %1349 = vsyncpa [#allocation4], 1 }
 0x154   :  { %1351 = vsyncpa [#allocation4 + $0x1], 1 }

// kernel: llama_decoder_layer.5
= control target key start
LH: loop header
LB: loop body
LE: loop exit
PB: predicated region body
PF: predicated region fallthrough
CT: control target
= control target key end

     0   :  { %9 = vsyncpa [#allocation4], 0  ;;  %s5154_s0 = inlined_call_operand.vmem [shape: bf16[2,128,256], index: 0, kind: input, shape index: {}]   ;;  %s5155_s1 = inlined_call_operand.vmem [shape: bf16[2,256,512], index: 1, kind: input, shape index: {}]   ;;  %s5156_s2 = inlined_call_operand.vmem [shape: bf16[512,256], index: 2, kind: input, shape index: {}]   ;;  %s5157_s3 = inlined_call_operand.hbm [shape: bf16[2,7,128,256], index: 3, kind: input, shape index: {}, may-alias: {3,4}]   ;;  %s5158_s4 = inlined_call_operand.hbm [shape: bf16[2,7,128,256], index: 4, kind: output, shape index: {}, may-alias: {3,4}]  }
   0x1   :  { %11 = vsyncpa [#allocation4 + $0x1], 0  ;;  %s3477_s15 = smov 0   ;;  %s3479_s16 = smov 0  }
   0x2   :  { %s3481_s17 = smov 0   ;;  %s3483_s18 = smov 0  }
   0x3   :  { %s3485_s19 = smov 0   ;;  %s3487_s20 = smov 0  }
   0x4   :  { %s3489_s21 = smov 0   ;;  %s3491_s3 = smov 0  }
   0x5 LB: > { %s2537_s22 = sadd.s32 4294967295, %s3447_s3   ;;  %s2538_s23 = sadd.s32 4294967294, %s3447_s3   ;;  %s3447_s3 = sphi %s3491_s3, %s17_s3   ;;  %s3443_s21 = sphi %s3489_s21, %s5338_s21   ;;  %s3439_s20 = sphi %s3487_s20, %s5337_s20   ;;  %s3435_s19 = sphi %s3485_s19, %s5336_s19   ;;  %s3431_s18 = sphi %s3483_s18, %s5335_s18   ;;  %s3427_s17 = sphi %s3481_s17, %s5334_s17   ;;  %s3423_s16 = sphi %s3479_s16, %s5333_s16   ;;  %s3419_s15 = sphi %s3477_s15, %s5332_s15  }
   0x6   : > { %s29_s24 = sadd.s32 1, %s3439_s20  ;;  %s36_s25 = sadd.s32 1, %s3443_s21 }
   0x7   : > { %p30_p0 = scmp.ge.s32.totalorder %s29_s24, 2  ;;  %p135_p1 = scmp.ne.s32.totalorder %s3427_s17, %s3423_s16 }
   0x8   : > { %p136_p2 = scmp.eq.s32.totalorder %s2537_s22, 3  ;;  %p141_p4 = scmp.ne.s32.totalorder %s3423_s16, %s3419_s15 }
   0x9   : > { %s5340_s24 = smov (%p30_p0, %s29_s24), 0  ;;  %s5342_s25 = smov (!%p30_p0, %s36_s25), %s3443_s21 }
   0xa   : > { %5174 = sst [smem:[#allocation6_spill]] %s5340_s24  ;;  %p3526_p3 = por %p136_p2, %p135_p1 }
   0xb   : > { %p38_p5 = scmp.ge.s32.totalorder %s5342_s25, 2  ;;  %p142_p6 = scmp.eq.s32.totalorder %s2538_s23, 3 }
   0xc   : > { %p2541_p7 = scmp.ge.s32.totalorder %s3447_s3, 1  ;;  %p192_p8 = scmp.lt.s32.totalorder %s3447_s3, 5 }
   0xd   : > { %s5344_s25 = smov (%p38_p5, %s5342_s25), 0  ;;  %p3536_p9 = por %p142_p6, %p141_p4 }
   0xe   : > { %5176 = sst [smem:[#allocation7_spill]] %s5344_s25  ;;  %p193_p10 = pnand %p2541_p7, %p192_p8 }
   0xf   : > { %s120_s28 = ssub.s32 %s3443_s21, %s5344_s25  ;;  %s125_s29 = sadd.s32 1, %s3427_s17 }
  0x10   : > { %p123_p11 = scmp.eq.s32.totalorder %s120_s28, 0  ;;  %196 = sbr.rel (%p193_p10) target bundleno = 685 (0x2ad), region = 32 }
  0x12   : > { %s3544_s30 = scalar_select %p123_p11, %s3427_s17, %s125_s29  }
  0x15   : > { %s5159_s5 = sand.u32 1, %s3423_s16   ;;  %p233_p12 = scmp.lt.s32.totalorder %s3435_s19, 1 }
  0x16   : > { %s2542_s6 = sshll.u32 %s5159_s5, 7  ;;  %p243_p13 = scmp.lt.s32.totalorder %s3431_s18, 1 }
  0x17   : > { %s2547_s7 = sshll.u32 %s3431_s18, 5  ;;  %p2550_p1 = scmp.ne.s32.totalorder %s3431_s18, 0 }
  0x18   : > { %s234_s8 = scalar_select %p233_p12, %s3435_s19, 1 }
  0x19   : > { %s244_s9 = scalar_select %p243_p13, %s3431_s18, 1 }
  0x1a   : > { %s3036_s10 = sshll.u32 %s234_s8, 7  ;;  %p249_p0 = scmp.lt.s32.totalorder %s2547_s7, 63 }
  0x1b   : > { %s3557_s13 = scalar_lea.vmem %s5154_s0, %s3036_s10  ;;  %s3037_s14 = sshll.u32 %s244_s9, 9 }
  0x1c   : > { %s3562_s28 = scalar_lea.vmem %s5155_s1, %s3037_s14  ;;  %s5346_s7 = smov (!%p249_p0, %s2547_s7), 63 }
  0x1d   : > { %s3038_s29 = sshll.u32 %s5346_s7, 3  ;;  %s3569_s8 = scalar_lea.vmem [#allocation3], %s2542_s6 }
  0x1e   : > { %s3567_s24 = scalar_lea.vmem %s5156_s2, %s3038_s29  ;;  %259 = sbr.rel (%p2550_p1) target bundleno = 68 (0x44), region = 36 }
  0x23   : > { %v3449_v0 = vmov 0.0  }
  0x24   : > { %260 = vst [vmem:[#allocation2 + $0xb0] sm:$0xff] %v3449_v0 }
  0x25   : > { %261 = vst [vmem:[#allocation2] sm:$0xff] %v3449_v0 }
  0x26   : > { %262 = vst [vmem:[#allocation2 + $0xd8] sm:$0xff] %v3449_v0 }
  0x27   : > { %263 = vst [vmem:[#allocation2 + $0x18] sm:$0xff] %v3449_v0 }
  0x28   : > { %264 = vst [vmem:[#allocation2 + $0x50] sm:$0xff] %v3449_v0 }
  0x29   : > { %265 = vst [vmem:[#allocation2 + $0x68] sm:$0xff] %v3449_v0 }
  0x2a   : > { %266 = vst [vmem:[#allocation2 + $0x30] sm:$0xff] %v3449_v0 }
  0x2b   : > { %267 = vst [vmem:[#allocation2 + $0x48] sm:$0xff] %v3449_v0 }
  0x2c   : > { %268 = vst [vmem:[#allocation2 + $0x80] sm:$0xff] %v3449_v0 }
  0x2d   : > { %269 = vst [vmem:[#allocation2 + $0x88] sm:$0xff] %v3449_v0 }
  0x2e   : > { %270 = vst [vmem:[#allocation2 + $0xe8] sm:$0xff] %v3449_v0 }
  0x2f   : > { %271 = vst [vmem:[#allocation2 + $0xb8] sm:$0xff] %v3449_v0 }
  0x30   : > { %272 = vst [vmem:[#allocation2 + $0x60] sm:$0xff] %v3449_v0 }
  0x31   : > { %273 = vst [vmem:[#allocation2 + $0xf0] sm:$0xff] %v3449_v0 }
  0x32   : > { %274 = vst [vmem:[#allocation2 + $0x8] sm:$0xff] %v3449_v0 }
  0x33   : > { %275 = vst [vmem:[#allocation2 + $0x78] sm:$0xff] %v3449_v0 }
  0x34   : > { %276 = vst [vmem:[#allocation2 + $0x38] sm:$0xff] %v3449_v0 }
  0x35   : > { %277 = vst [vmem:[#allocation2 + $0x58] sm:$0xff] %v3449_v0 }
  0x36   : > { %278 = vst [vmem:[#allocation2 + $0x40] sm:$0xff] %v3449_v0 }
  0x37   : > { %279 = vst [vmem:[#allocation2 + $0xc8] sm:$0xff] %v3449_v0 }
  0x38   : > { %280 = vst [vmem:[#allocation2 + $0xe0] sm:$0xff] %v3449_v0 }
  0x39   : > { %281 = vst [vmem:[#allocation2 + $0x90] sm:$0xff] %v3449_v0 }
  0x3a   : > { %282 = vst [vmem:[#allocation2 + $0x70] sm:$0xff] %v3449_v0 }
  0x3b   : > { %283 = vst [vmem:[#allocation2 + $0xc0] sm:$0xff] %v3449_v0 }
  0x3c   : > { %284 = vst [vmem:[#allocation2 + $0xa8] sm:$0xff] %v3449_v0 }
  0x3d   : > { %285 = vst [vmem:[#allocation2 + $0xd0] sm:$0xff] %v3449_v0 }
  0x3e   : > { %286 = vst [vmem:[#allocation2 + $0x10] sm:$0xff] %v3449_v0 }
  0x3f   : > { %287 = vst [vmem:[#allocation2 + $0x28] sm:$0xff] %v3449_v0 }
  0x40   : > { %288 = vst [vmem:[#allocation2 + $0xa0] sm:$0xff] %v3449_v0 }
  0x41   : > { %289 = vst [vmem:[#allocation2 + $0xf8] sm:$0xff] %v3449_v0 }
  0x42   : > { %290 = vst [vmem:[#allocation2 + $0x20] sm:$0xff] %v3449_v0 }
  0x43   : > { %291 = vst [vmem:[#allocation2 + $0x98] sm:$0xff] %v3449_v0 }
  0x44 PF: > { %v2729_v1 = vld [vmem:[%s3562_s28 + $0xe0] sm:$0xf]  ;;  %v3085_v2 = vld [vmem:[%s3562_s28 + $0xec] sm:$0xf0]  ;;  %v3083_v6 = vld [vmem:[%s3562_s28 + $0xe4] sm:$0xf] }
  0x45   : > { %v2857_v3 = vld [vmem:[%s3562_s28 + $0x1e0] sm:$0xf]  ;;  %v2730_v4 = vor.u32 %v3085_v2, %v2729_v1  ;;  %v3117_v5 = vld [vmem:[%s3562_s28 + $0x1ec] sm:$0xf0]  ;;  %v2731_v7 = vld [vmem:[%s3562_s28 + $0xf0] sm:$0xf0] }
  0x46   : > { %v2858_v8 = vor.u32 %v3117_v5, %v2857_v3  ;;  %v2734_v9 = vor.u32 %v3083_v6, %v2731_v7  ;;  %v3115_v10 = vld [vmem:[%s3562_s28 + $0x1e4] sm:$0xf]  ;;  %v2859_v11 = vld [vmem:[%s3562_s28 + $0x1f0] sm:$0xf0]  ;;  %v2713_v12 = vld [vmem:[%s3562_s28 + $0xc0] sm:$0xf] }
  0x47   : > { %772 = vmatpush.bf16.msra.mxu0 %v2730_v4  ;;  %v2862_v13 = vor.u32 %v3115_v10, %v2859_v11  ;;  %v3081_v14 = vld [vmem:[%s3562_s28 + $0xcc] sm:$0xf0]  ;;  %v2841_v15 = vld [vmem:[%s3562_s28 + $0x1c0] sm:$0xf]  ;;  %v3079_v19 = vld [vmem:[%s3562_s28 + $0xc4] sm:$0xf] }
  0x48   : > { %v3113_v16 = vld [vmem:[%s3562_s28 + $0x1cc] sm:$0xf0]  ;;  %821 = vmatpush.bf16.msra.mxu1 %v2858_v8  ;;  %870 = vmatpush.bf16.msra.mxu2 %v2734_v9  ;;  %v2714_v17 = vor.u32 %v3081_v14, %v2713_v12  ;;  %v2715_v20 = vld [vmem:[%s3562_s28 + $0xd0] sm:$0xf0]  ;;  %v3111_v21 = vld [vmem:[%s3562_s28 + $0x1c4] sm:$0xf] }
  0x49   : > { %v2842_v18 = vor.u32 %v3113_v16, %v2841_v15  ;;  %919 = vmatpush.bf16.msra.mxu3 %v2862_v13  ;;  %v2718_v22 = vor.u32 %v3079_v19, %v2715_v20  ;;  %v2843_v23 = vld [vmem:[%s3562_s28 + $0x1d0] sm:$0xf0]  ;;  %v2697_v24 = vld [vmem:[%s3562_s28 + $0xa0] sm:$0xf]  ;;  %v3077_v25 = vld [vmem:[%s3562_s28 + $0xac] sm:$0xf0] }
  0x4a   : > { %v2846_v26 = vor.u32 %v3111_v21, %v2843_v23  ;;  %v2825_v27 = vld [vmem:[%s3562_s28 + $0x1a0] sm:$0xf]  ;;  %v3109_v28 = vld [vmem:[%s3562_s28 + $0x1ac] sm:$0xf0]  ;;  %v3075_v29 = vld [vmem:[%s3562_s28 + $0xa4] sm:$0xf]  ;;  %v2698_v30 = vor.u32 %v3077_v25, %v2697_v24 }
  0x4b   : > { %773 = vmatpush.bf16.msra.mxu0 %v2714_v17  ;;  %v2699_v31 = vld [vmem:[%s3562_s28 + $0xb0] sm:$0xf0]  ;;  %v3107_v32 = vld [vmem:[%s3562_s28 + $0x1a4] sm:$0xf]  ;;  %v2826_v34 = vor.u32 %v3109_v28, %v2825_v27  ;;  %v2681_v36 = vld [vmem:[%s3562_s28 + $0x80] sm:$0xf] }
  0x4c   : > { %v2827_v33 = vld [vmem:[%s3562_s28 + $0x1b0] sm:$0xf0]  ;;  %822 = vmatpush.bf16.msra.mxu1 %v2842_v18  ;;  %871 = vmatpush.bf16.msra.mxu2 %v2718_v22  ;;  %v2702_v35 = vor.u32 %v3075_v29, %v2699_v31  ;;  %v3073_v37 = vld [vmem:[%s3562_s28 + $0x8c] sm:$0xf0]  ;;  %v2809_v38 = vld [vmem:[%s3562_s28 + $0x180] sm:$0xf] }
  0x4d   : > { %920 = vmatpush.bf16.msra.mxu3 %v2846_v26  ;;  %v2830_v39 = vor.u32 %v3107_v32, %v2827_v33  ;;  %v3105_v40 = vld [vmem:[%s3562_s28 + $0x18c] sm:$0xf0]  ;;  %v3071_v41 = vld [vmem:[%s3562_s28 + $0x84] sm:$0xf]  ;;  %v2683_v42 = vld [vmem:[%s3562_s28 + $0x90] sm:$0xf0]  ;;  %v2682_v45 = vor.u32 %v3073_v37, %v2681_v36 }
  0x4e   : > { %v3103_v43 = vld [vmem:[%s3562_s28 + $0x184] sm:$0xf]  ;;  %v2811_v44 = vld [vmem:[%s3562_s28 + $0x190] sm:$0xf0]  ;;  %v2810_v46 = vor.u32 %v3105_v40, %v2809_v38  ;;  %v2686_v47 = vor.u32 %v3071_v41, %v2683_v42  ;;  %v2665_v48 = vld [vmem:[%s3562_s28 + $0x60] sm:$0xf] }
  0x4f   : > { %774 = vmatpush.bf16.msra.mxu0 %v2698_v30  ;;  %v3069_v49 = vld [vmem:[%s3562_s28 + $0x6c] sm:$0xf0]  ;;  %v2793_v50 = vld [vmem:[%s3562_s28 + $0x160] sm:$0xf]  ;;  %v2814_v51 = vor.u32 %v3103_v43, %v2811_v44  ;;  %v3067_v53 = vld [vmem:[%s3562_s28 + $0x64] sm:$0xf] }
  0x50   : > { %823 = vmatpush.bf16.msra.mxu1 %v2826_v34  ;;  %872 = vmatpush.bf16.msra.mxu2 %v2702_v35  ;;  %v3101_v52 = vld [vmem:[%s3562_s28 + $0x16c] sm:$0xf0]  ;;  %v2667_v54 = vld [vmem:[%s3562_s28 + $0x70] sm:$0xf0]  ;;  %v3099_v55 = vld [vmem:[%s3562_s28 + $0x164] sm:$0xf]  ;;  %v2666_v57 = vor.u32 %v3069_v49, %v2665_v48 }
  0x51   : > { %921 = vmatpush.bf16.msra.mxu3 %v2830_v39  ;;  %v2795_v56 = vld [vmem:[%s3562_s28 + $0x170] sm:$0xf0]  ;;  %v2794_v58 = vor.u32 %v3101_v52, %v2793_v50  ;;  %v2670_v59 = vor.u32 %v3067_v53, %v2667_v54  ;;  %v2649_v60 = vld [vmem:[%s3562_s28 + $0x40] sm:$0xf]  ;;  %v3065_v61 = vld [vmem:[%s3562_s28 + $0x4c] sm:$0xf0] }
  0x52   : > { %v2777_v62 = vld [vmem:[%s3562_s28 + $0x140] sm:$0xf]  ;;  %v2798_v63 = vor.u32 %v3099_v55, %v2795_v56  ;;  %v3097_v0 = vld [vmem:[%s3562_s28 + $0x14c] sm:$0xf0]  ;;  %v3063_v1 = vld [vmem:[%s3562_s28 + $0x44] sm:$0xf]  ;;  %v2650_v5 = vor.u32 %v3065_v61, %v2649_v60 }
  0x53   : > { %775 = vmatpush.bf16.msra.mxu0 %v2682_v45  ;;  %v2651_v2 = vld [vmem:[%s3562_s28 + $0x50] sm:$0xf0]  ;;  %v3095_v3 = vld [vmem:[%s3562_s28 + $0x144] sm:$0xf]  ;;  %v2778_v6 = vor.u32 %v3097_v0, %v2777_v62  ;;  %v2633_v8 = vld [vmem:[%s3562_s28 + $0x20] sm:$0xf] }
  0x54   : > { %824 = vmatpush.bf16.msra.mxu1 %v2810_v46  ;;  %873 = vmatpush.bf16.msra.mxu2 %v2686_v47  ;;  %v2779_v4 = vld [vmem:[%s3562_s28 + $0x150] sm:$0xf0]  ;;  %v2654_v7 = vor.u32 %v3063_v1, %v2651_v2  ;;  %v3061_v9 = vld [vmem:[%s3562_s28 + $0x2c] sm:$0xf0]  ;;  %v2761_v10 = vld [vmem:[%s3562_s28 + $0x120] sm:$0xf] }
  0x55   : > { %922 = vmatpush.bf16.msra.mxu3 %v2814_v51  ;;  %v2782_v11 = vor.u32 %v3095_v3, %v2779_v4  ;;  %v3093_v12 = vld [vmem:[%s3562_s28 + $0x12c] sm:$0xf0]  ;;  %v3059_v13 = vld [vmem:[%s3562_s28 + $0x24] sm:$0xf]  ;;  %v2635_v14 = vld [vmem:[%s3562_s28 + $0x30] sm:$0xf0]  ;;  %v2634_v17 = vor.u32 %v3061_v9, %v2633_v8 }
  0x56   : > { %v3091_v15 = vld [vmem:[%s3562_s28 + $0x124] sm:$0xf]  ;;  %v2763_v16 = vld [vmem:[%s3562_s28 + $0x130] sm:$0xf0]  ;;  %v2617_v18 = vld [vmem:[%s3562_s28] sm:$0xf]  ;;  %v2762_v20 = vor.u32 %v3093_v12, %v2761_v10  ;;  %v2638_v21 = vor.u32 %v3059_v13, %v2635_v14 }
  0x57   : > { %776 = vmatpush.bf16.msra.mxu0 %v2666_v57  ;;  %v3057_v19 = vld [vmem:[%s3562_s28 + $0xc] sm:$0xf0]  ;;  %v2745_v22 = vld [vmem:[%s3562_s28 + $0x100] sm:$0xf]  ;;  %v3055_v24 = vld [vmem:[%s3562_s28 + $0x4] sm:$0xf]  ;;  %v2766_v25 = vor.u32 %v3091_v15, %v2763_v16 }
  0x58   : > { %825 = vmatpush.bf16.msra.mxu1 %v2794_v58  ;;  %874 = vmatpush.bf16.msra.mxu2 %v2670_v59  ;;  %v3089_v23 = vld [vmem:[%s3562_s28 + $0x10c] sm:$0xf0]  ;;  %v2619_v26 = vld [vmem:[%s3562_s28 + $0x10] sm:$0xf0]  ;;  %v3087_v27 = vld [vmem:[%s3562_s28 + $0x104] sm:$0xf]  ;;  %v2618_v32 = vor.u32 %v3057_v19, %v2617_v18 }
  0x59   : > { %923 = vmatpush.bf16.msra.mxu3 %v2798_v63  ;;  %v2747_v28 = vld [vmem:[%s3562_s28 + $0x110] sm:$0xf0]  ;;  %v2553_v29 = vld [vmem:[%s3557_s13] sm:$0xf]  ;;  %v3084_v30 = vld [vmem:[%s3562_s28 + $0xec] sm:$0xf]  ;;  %v2746_v36 = vor.u32 %v3089_v23, %v2745_v22  ;;  %v2622_v37 = vor.u32 %v3055_v24, %v2619_v26 }
  0x5a   : > { %v2739_v31 = vld [vmem:[%s3562_s28 + $0xf8] sm:$0xf0]  ;;  %v3040_v33 = vld [vmem:[%s3557_s13 + $0x4] sm:$0xf0]  ;;  %v3116_v34 = vld [vmem:[%s3562_s28 + $0x1ec] sm:$0xf]  ;;  %v2750_v40 = vor.u32 %v3087_v27, %v2747_v28 }
  0x5b   : > { %777 = vmatpush.bf16.msra.mxu0 %v2650_v5  ;;  %v2867_v35 = vld [vmem:[%s3562_s28 + $0x1f8] sm:$0xf0]  ;;  %v3039_v38 = vld [vmem:[%s3557_s13 + $0x4] sm:$0xf]  ;;  %v2555_v39 = vld [vmem:[%s3557_s13 + $0x8] sm:$0xf0]  ;;  %v2742_v41 = vor.u32 %v3084_v30, %v2739_v31  ;;  %v3647_v45 = vor.u32 %v3040_v33, %v2553_v29 }
  0x5c   : > { %826 = vmatpush.bf16.msra.mxu1 %v2778_v6  ;;  %875 = vmatpush.bf16.msra.mxu2 %v2654_v7  ;;  %v2737_v42 = vld [vmem:[%s3562_s28 + $0xe8] sm:$0xf]  ;;  %v3086_v43 = vld [vmem:[%s3562_s28 + $0xf4] sm:$0xf0]  ;;  %v2870_v46 = vor.u32 %v3116_v34, %v2867_v35  ;;  %v3080_v48 = vld [vmem:[%s3562_s28 + $0xcc] sm:$0xf]  ;;  %v3652_v50 = vor.u32 %v3039_v38, %v2555_v39 }
  0x5d   : > { %924 = vmatpush.bf16.msra.mxu3 %v2782_v11  ;;  %v2865_v44 = vld [vmem:[%s3562_s28 + $0x1e8] sm:$0xf]  ;;  %v3118_v47 = vld [vmem:[%s3562_s28 + $0x1f4] sm:$0xf0]  ;;  %v2723_v49 = vld [vmem:[%s3562_s28 + $0xd8] sm:$0xf0]  ;;  %v2738_v53 = vor.u32 %v3086_v43, %v2737_v42 }
  0x5e   : > { %v3112_v51 = vld [vmem:[%s3562_s28 + $0x1cc] sm:$0xf]  ;;  %v2851_v52 = vld [vmem:[%s3562_s28 + $0x1d8] sm:$0xf0]  ;;  %v2866_v54 = vor.u32 %v3118_v47, %v2865_v44  ;;  %v2726_v55 = vor.u32 %v3080_v48, %v2723_v49  ;;  %v2721_v56 = vld [vmem:[%s3562_s28 + $0xc8] sm:$0xf] }
  0x5f   : > { %778 = vmatpush.bf16.msra.mxu0 %v2634_v17  ;;  %v3082_v57 = vld [vmem:[%s3562_s28 + $0xd4] sm:$0xf0]  ;;  %v2854_v58 = vor.u32 %v3112_v51, %v2851_v52  ;;  %v2849_v59 = vld [vmem:[%s3562_s28 + $0x1c8] sm:$0xf]  ;;  %v3076_v62 = vld [vmem:[%s3562_s28 + $0xac] sm:$0xf] }
  0x60   : > { %827 = vmatpush.bf16.msra.mxu1 %v2762_v20  ;;  %876 = vmatpush.bf16.msra.mxu2 %v2638_v21  ;;  %v3114_v60 = vld [vmem:[%s3562_s28 + $0x1d4] sm:$0xf0]  ;;  %v2722_v61 = vor.u32 %v3082_v57, %v2721_v56  ;;  %v2707_v63 = vld [vmem:[%s3562_s28 + $0xb8] sm:$0xf0]  ;;  %v3108_v0 = vld [vmem:[%s3562_s28 + $0x1ac] sm:$0xf] }
  0x61   : > { %925 = vmatpush.bf16.msra.mxu3 %v2766_v25  ;;  %v2850_v1 = vor.u32 %v3114_v60, %v2849_v59  ;;  %v2710_v2 = vor.u32 %v3076_v62, %v2707_v63  ;;  %v2835_v3 = vld [vmem:[%s3562_s28 + $0x1b8] sm:$0xf0]  ;;  %v2705_v4 = vld [vmem:[%s3562_s28 + $0xa8] sm:$0xf]  ;;  %v3078_v5 = vld [vmem:[%s3562_s28 + $0xb4] sm:$0xf0] }
  0x62   : > { %v2838_v6 = vor.u32 %v3108_v0, %v2835_v3  ;;  %v2833_v7 = vld [vmem:[%s3562_s28 + $0x1a8] sm:$0xf]  ;;  %v3110_v8 = vld [vmem:[%s3562_s28 + $0x1b4] sm:$0xf0]  ;;  %v2706_v9 = vor.u32 %v3078_v5, %v2705_v4  ;;  %v2561_v11 = vld [vmem:[%s3557_s13 + $0x10] sm:$0xf] }
  0x63   : > { %779 = vmatpush.bf16.msra.mxu0 %v2618_v32  ;;  %v2834_v10 = vor.u32 %v3110_v8, %v2833_v7  ;;  %v3042_v12 = vld [vmem:[%s3557_s13 + $0x14] sm:$0xf0]  ;;  %v3041_v13 = vld [vmem:[%s3557_s13 + $0x14] sm:$0xf]  ;;  %v2563_v14 = vld [vmem:[%s3557_s13 + $0x18] sm:$0xf0] }
  0x64   : > { %828 = vmatpush.bf16.msra.mxu1 %v2746_v36  ;;  %877 = vmatpush.bf16.msra.mxu2 %v2622_v37  ;;  %v3676_v15 = vor.u32 %v3042_v12, %v2561_v11  ;;  %v3678_v16 = vor.u32 %v3041_v13, %v2563_v14  ;;  %v3072_v17 = vld [vmem:[%s3562_s28 + $0x8c] sm:$0xf]  ;;  %v2691_v18 = vld [vmem:[%s3562_s28 + $0x98] sm:$0xf0]  ;;  %v2689_v22 = vld [vmem:[%s3562_s28 + $0x88] sm:$0xf] }
  0x65   : > { %926 = vmatpush.bf16.msra.mxu3 %v2750_v40  ;;  %v3104_v19 = vld [vmem:[%s3562_s28 + $0x18c] sm:$0xf]  ;;  %v2694_v20 = vor.u32 %v3072_v17, %v2691_v18  ;;  %v2819_v21 = vld [vmem:[%s3562_s28 + $0x198] sm:$0xf0]  ;;  %v3074_v23 = vld [vmem:[%s3562_s28 + $0x94] sm:$0xf0] }
  0x66   : > { %780 = vmatmul.bf16.vlgmr.msra.gmra.mxu0 %v3647_v45  ;;  %v2822_v24 = vor.u32 %v3104_v19, %v2819_v21  ;;  %v2690_v25 = vor.u32 %v3074_v23, %v2689_v22  ;;  %v2817_v26 = vld [vmem:[%s3562_s28 + $0x188] sm:$0xf]  ;;  %v3106_v27 = vld [vmem:[%s3562_s28 + $0x194] sm:$0xf0]  ;;  %v2569_v29 = vld [vmem:[%s3557_s13 + $0x20] sm:$0xf] }
  0x67   : > { %829 = vmatmul.bf16.vlgmr.msra.gmra.mxu1 %v3652_v50  ;;  %878 = vmatmul.bf16.vlgmr.msra.gmra.mxu2 %v3647_v45  ;;  %v2818_v28 = vor.u32 %v3106_v27, %v2817_v26  ;;  %v3044_v30 = vld [vmem:[%s3557_s13 + $0x24] sm:$0xf0]  ;;  %v3043_v31 = vld [vmem:[%s3557_s13 + $0x24] sm:$0xf]  ;;  %v2571_v32 = vld [vmem:[%s3557_s13 + $0x28] sm:$0xf0] }
  0x68   : > { %1066 = vmatpush.bf16.msrb.mxu2 %v2742_v41  ;;  %927 = vmatmul.bf16.vlgmr.msra.gmra.mxu3 %v3652_v50  ;;  %v3696_v33 = vor.u32 %v3044_v30, %v2569_v29  ;;  %v3698_v34 = vor.u32 %v3043_v31, %v2571_v32  ;;  %v3068_v35 = vld [vmem:[%s3562_s28 + $0x6c] sm:$0xf]  ;;  %v2675_v36 = vld [vmem:[%s3562_s28 + $0x78] sm:$0xf0]  ;;  %v2673_v40 = vld [vmem:[%s3562_s28 + $0x68] sm:$0xf] }
  0x69   : > { %1115 = vmatpush.bf16.msrb.mxu3 %v2870_v46  ;;  %968 = vmatpush.bf16.msrb.mxu0 %v2738_v53  ;;  %v3100_v37 = vld [vmem:[%s3562_s28 + $0x16c] sm:$0xf]  ;;  %v2678_v38 = vor.u32 %v3068_v35, %v2675_v36  ;;  %v2803_v39 = vld [vmem:[%s3562_s28 + $0x178] sm:$0xf0]  ;;  %v3070_v41 = vld [vmem:[%s3562_s28 + $0x74] sm:$0xf0] }
  0x6a   : > { %1017 = vmatpush.bf16.msrb.mxu1 %v2866_v54  ;;  %v2806_v42 = vor.u32 %v3100_v37, %v2803_v39  ;;  %v2674_v43 = vor.u32 %v3070_v41, %v2673_v40  ;;  %v2801_v44 = vld [vmem:[%s3562_s28 + $0x168] sm:$0xf]  ;;  %v3102_v46 = vld [vmem:[%s3562_s28 + $0x174] sm:$0xf0]  ;;  %v2577_v48 = vld [vmem:[%s3557_s13 + $0x30] sm:$0xf] }
  0x6b   : > { %v2802_v47 = vor.u32 %v3102_v46, %v2801_v44  ;;  %v3046_v49 = vld [vmem:[%s3557_s13 + $0x34] sm:$0xf0]  ;;  %v3045_v51 = vld [vmem:[%s3557_s13 + $0x34] sm:$0xf]  ;;  %v2579_v52 = vld [vmem:[%s3557_s13 + $0x38] sm:$0xf0] }
  0x6c   : > { %1067 = vmatpush.bf16.msrb.mxu2 %v2726_v55  ;;  %v3716_v53 = vor.u32 %v3046_v49, %v2577_v48  ;;  %v3718_v54 = vor.u32 %v3045_v51, %v2579_v52  ;;  %v3064_v55 = vld [vmem:[%s3562_s28 + $0x4c] sm:$0xf]  ;;  %v2659_v56 = vld [vmem:[%s3562_s28 + $0x58] sm:$0xf0]  ;;  %v2657_v60 = vld [vmem:[%s3562_s28 + $0x48] sm:$0xf] }
  0x6d   : > { %1116 = vmatpush.bf16.msrb.mxu3 %v2854_v58  ;;  %969 = vmatpush.bf16.msrb.mxu0 %v2722_v61  ;;  %v3096_v57 = vld [vmem:[%s3562_s28 + $0x14c] sm:$0xf]  ;;  %v2662_v58 = vor.u32 %v3064_v55, %v2659_v56  ;;  %v2787_v59 = vld [vmem:[%s3562_s28 + $0x158] sm:$0xf0]  ;;  %v3066_v61 = vld [vmem:[%s3562_s28 + $0x54] sm:$0xf0] }
  0x6e   : > { %1018 = vmatpush.bf16.msrb.mxu1 %v2850_v1  ;;  %v2790_v62 = vor.u32 %v3096_v57, %v2787_v59  ;;  %v2658_v63 = vor.u32 %v3066_v61, %v2657_v60  ;;  %v2785_v0 = vld [vmem:[%s3562_s28 + $0x148] sm:$0xf]  ;;  %v3098_v1 = vld [vmem:[%s3562_s28 + $0x154] sm:$0xf0]  ;;  %v2585_v3 = vld [vmem:[%s3557_s13 + $0x40] sm:$0xf] }
  0x6f   : > { %v3048_v4 = vld [vmem:[%s3557_s13 + $0x44] sm:$0xf0]  ;;  %v3047_v5 = vld [vmem:[%s3557_s13 + $0x44] sm:$0xf]  ;;  %v3092_v11 = vld [vmem:[%s3562_s28 + $0x12c] sm:$0xf] }
  0x70   : > { %1068 = vmatpush.bf16.msrb.mxu2 %v2710_v2  ;;  %v2786_v2 = vor.u32 %v3098_v1, %v2785_v0  ;;  %v3736_v7 = vor.u32 %v3048_v4, %v2585_v3  ;;  %v2771_v13 = vld [vmem:[%s3562_s28 + $0x138] sm:$0xf0]  ;;  %v2641_v14 = vld [vmem:[%s3562_s28 + $0x28] sm:$0xf]  ;;  %v3062_v17 = vld [vmem:[%s3562_s28 + $0x34] sm:$0xf0] }
  0x71   : > { %1117 = vmatpush.bf16.msrb.mxu3 %v2838_v6  ;;  %970 = vmatpush.bf16.msrb.mxu0 %v2706_v9  ;;  %v2587_v6 = vld [vmem:[%s3557_s13 + $0x48] sm:$0xf0]  ;;  %v2774_v18 = vor.u32 %v3092_v11, %v2771_v13  ;;  %v2642_v19 = vor.u32 %v3062_v17, %v2641_v14  ;;  %v3094_v21 = vld [vmem:[%s3562_s28 + $0x134] sm:$0xf0]  ;;  %v2593_v23 = vld [vmem:[%s3557_s13 + $0x50] sm:$0xf] }
  0x72   : > { %1019 = vmatpush.bf16.msrb.mxu1 %v2834_v10  ;;  %v3738_v8 = vor.u32 %v3047_v5, %v2587_v6  ;;  %v3060_v9 = vld [vmem:[%s3562_s28 + $0x2c] sm:$0xf]  ;;  %v2643_v10 = vld [vmem:[%s3562_s28 + $0x38] sm:$0xf0]  ;;  %v2625_v36 = vld [vmem:[%s3562_s28 + $0x8] sm:$0xf] }
  0x73   : > { %v2646_v12 = vor.u32 %v3060_v9, %v2643_v10  ;;  %v2595_v26 = vld [vmem:[%s3557_s13 + $0x58] sm:$0xf0]  ;;  %v3056_v29 = vld [vmem:[%s3562_s28 + $0xc] sm:$0xf]  ;;  %v3058_v37 = vld [vmem:[%s3562_s28 + $0x14] sm:$0xf0] }
  0x74   : > { %1069 = vmatpush.bf16.msrb.mxu2 %v2694_v20  ;;  %v2769_v20 = vld [vmem:[%s3562_s28 + $0x128] sm:$0xf]  ;;  %v2627_v30 = vld [vmem:[%s3562_s28 + $0x18] sm:$0xf0]  ;;  %v3088_v31 = vld [vmem:[%s3562_s28 + $0x10c] sm:$0xf]  ;;  %v2626_v39 = vor.u32 %v3058_v37, %v2625_v36 }
  0x75   : > { %1118 = vmatpush.bf16.msrb.mxu3 %v2822_v24  ;;  %971 = vmatpush.bf16.msrb.mxu0 %v2690_v25  ;;  %v2770_v22 = vor.u32 %v3094_v21, %v2769_v20  ;;  %v3050_v24 = vld [vmem:[%s3557_s13 + $0x54] sm:$0xf0]  ;;  %v3049_v25 = vld [vmem:[%s3557_s13 + $0x54] sm:$0xf]  ;;  %v2630_v32 = vor.u32 %v3056_v29, %v2627_v30  ;;  %v2755_v35 = vld [vmem:[%s3562_s28 + $0x118] sm:$0xf0] }
  0x76   : > { %785 = vmatmul.bf16.gmra.mxu0 %v3676_v15  ;;  %1020 = vmatpush.bf16.msrb.mxu1 %v2818_v28  ;;  %v3756_v27 = vor.u32 %v3050_v24, %v2593_v23  ;;  %v3758_v28 = vor.u32 %v3049_v25, %v2595_v26  ;;  %v2753_v40 = vld [vmem:[%s3562_s28 + $0x108] sm:$0xf]  ;;  %v3090_v41 = vld [vmem:[%s3562_s28 + $0x114] sm:$0xf0]  ;;  %v3051_v46 = vld [vmem:[%s3557_s13 + $0x64] sm:$0xf] }
  0x77   : > { %834 = vmatmul.bf16.gmra.mxu1 %v3678_v16  ;;  %883 = vmatmul.bf16.gmra.mxu2 %v3676_v15  ;;  %v3052_v44 = vld [vmem:[%s3557_s13 + $0x64] sm:$0xf0]  ;;  %v2609_v51 = vld [vmem:[%s3557_s13 + $0x70] sm:$0xf]  ;;  %v3054_v52 = vld [vmem:[%s3557_s13 + $0x74] sm:$0xf0] }
  0x78   : > { %932 = vmatmul.bf16.gmra.mxu3 %v3678_v16  ;;  %1070 = vmatpush.bf16.msrb.mxu2 %v2678_v38  ;;  %v2758_v38 = vor.u32 %v3088_v31, %v2755_v35  ;;  %v3053_v55 = vld [vmem:[%s3557_s13 + $0x74] sm:$0xf]  ;;  %v2611_v56 = vld [vmem:[%s3557_s13 + $0x78] sm:$0xf0]  ;;  %v3788_v57 = vor.u32 %v3054_v52, %v2609_v51  ;;  %v2961_v24 = vld [vmem:[%s3567_s24 + $0x70] sm:$0xf] }
  0x79   : > { %1119 = vmatpush.bf16.msrb.mxu3 %v2806_v42  ;;  %972 = vmatpush.bf16.msrb.mxu0 %v2674_v43  ;;  %v2754_v42 = vor.u32 %v3090_v41, %v2753_v40  ;;  %v2601_v43 = vld [vmem:[%s3557_s13 + $0x60] sm:$0xf]  ;;  %v2963_v11 = vld [vmem:[%s3567_s24 + $0x78] sm:$0xf0]  ;;  %v3149_v13 = vld [vmem:[%s3567_s24 + $0xf4] sm:$0xf] }
  0x7a   : > { %1021 = vmatpush.bf16.msrb.mxu1 %v2802_v47  ;;  %v2603_v47 = vld [vmem:[%s3557_s13 + $0x68] sm:$0xf0]  ;;  %v3776_v48 = vor.u32 %v3052_v44, %v2601_v43  ;;  %v3027_v14 = vld [vmem:[%s3567_s24 + $0xf8] sm:$0xf0]  ;;  %v3150_v26 = vld [vmem:[%s3567_s24 + $0xf4] sm:$0xf0] }
  0x7b   : > { %v3778_v49 = vor.u32 %v3051_v46, %v2603_v47  ;;  %v3030_v20 = vor.u32 %v3149_v13, %v3027_v14  ;;  %v3131_v41 = vld [vmem:[%s3567_s24 + $0x64] sm:$0xf]  ;;  %v3019_v46 = vld [vmem:[%s3567_s24 + $0xe8] sm:$0xf0]  ;;  %v2947_v14 = vld [vmem:[%s3567_s24 + $0x58] sm:$0xf0] }
  0x7c   : > { %1071 = vmatpush.bf16.msrb.mxu2 %v2662_v58  ;;  %v3790_v58 = vor.u32 %v3053_v55, %v2611_v56  ;;  %v3147_v44 = vld [vmem:[%s3567_s24 + $0xe4] sm:$0xf]  ;;  %p3031_p2 = scmp.ne.s32.totalorder %s3431_s18, 1 }
  0x7d   : > { %1120 = vmatpush.bf16.msrb.mxu3 %v2790_v62  ;;  %973 = vmatpush.bf16.msrb.mxu0 %v2658_v63  ;;  %v3022_v51 = vor.u32 %v3147_v44, %v3019_v46 }
  0x7e   : > { %1022 = vmatpush.bf16.msrb.mxu1 %v2786_v2 }
  0x80   : > { %1072 = vmatpush.bf16.msrb.mxu2 %v2646_v12 }
  0x81   : > { %1121 = vmatpush.bf16.msrb.mxu3 %v2774_v18  ;;  %974 = vmatpush.bf16.msrb.mxu0 %v2642_v19 }
  0x82   : > { %1023 = vmatpush.bf16.msrb.mxu1 %v2770_v22 }
  0x84   : > { %1073 = vmatpush.bf16.msrb.mxu2 %v2630_v32 }
  0x85   : > { %1122 = vmatpush.bf16.msrb.mxu3 %v2758_v38  ;;  %975 = vmatpush.bf16.msrb.mxu0 %v2626_v39 }
  0x86   : > { %790 = vmatmul.bf16.gmra.mxu0 %v3696_v33  ;;  %1024 = vmatpush.bf16.msrb.mxu1 %v2754_v42  ;;  %v2955_v42 = vld [vmem:[%s3567_s24 + $0x68] sm:$0xf0] }
  0x87   : > { %839 = vmatmul.bf16.gmra.mxu1 %v3698_v34  ;;  %888 = vmatmul.bf16.gmra.mxu2 %v3696_v33  ;;  %v2958_v47 = vor.u32 %v3131_v41, %v2955_v42 }
  0x88   : > { %937 = vmatmul.bf16.gmra.mxu3 %v3698_v34 }
  0x89   : > { %2223 = vmatpush.bf16.msra.mxu3 %v3030_v20  ;;  %v3011_v20 = vld [vmem:[%s3567_s24 + $0xd8] sm:$0xf0] }
  0x8d   : > { %2224 = vmatpush.bf16.msra.mxu3 %v3022_v51  ;;  %v2939_v51 = vld [vmem:[%s3567_s24 + $0x48] sm:$0xf0] }
  0x96   : > { %795 = vmatmul.bf16.gmra.mxu0 %v3716_v53 }
  0x97   : > { %844 = vmatmul.bf16.gmra.mxu1 %v3718_v54  ;;  %893 = vmatmul.bf16.gmra.mxu2 %v3716_v53 }
  0x98   : > { %942 = vmatmul.bf16.gmra.mxu3 %v3718_v54 }
  0xa6   : > { %800 = vmatmul.bf16.gmra.mxu0 %v3736_v7 }
  0xa7   : > { %849 = vmatmul.bf16.gmra.mxu1 %v3738_v8  ;;  %898 = vmatmul.bf16.gmra.mxu2 %v3736_v7 }
  0xa8   : > { %947 = vmatmul.bf16.gmra.mxu3 %v3738_v8 }
  0xb6   : > { %805 = vmatmul.bf16.gmra.mxu0 %v3756_v27 }
  0xb7   : > { %854 = vmatmul.bf16.gmra.mxu1 %v3758_v28  ;;  %903 = vmatmul.bf16.gmra.mxu2 %v3756_v27 }
  0xb8   : > { %952 = vmatmul.bf16.gmra.mxu3 %v3758_v28 }
  0xc6   : > { %810 = vmatmul.bf16.gmra.mxu0 %v3776_v48 }
  0xc7   : > { %859 = vmatmul.bf16.gmra.mxu1 %v3778_v49  ;;  %908 = vmatmul.bf16.gmra.mxu2 %v3776_v48 }
  0xc8   : > { %957 = vmatmul.bf16.gmra.mxu3 %v3778_v49 }
  0xd6   : > { %815 = vmatmul.bf16.gmra.mxu0 %v3788_v57 }
  0xd7   : > { %864 = vmatmul.bf16.gmra.mxu1 %v3790_v58  ;;  %913 = vmatmul.bf16.gmra.mxu2 %v3788_v57 }
  0xd8   : > { %962 = vmatmul.bf16.gmra.mxu3 %v3790_v58 }
  0xe3   : > { %v781_v59 = vpop.f32.mrf.mxu0 }
  0xe4   : > { %v830_v60 = vpop.f32.mrf.mxu1 }
  0xe5   : > { %v3796_v61 = vadd.f32 %v830_v60, %v781_v59  ;;  %v2953_v59 = vld [vmem:[%s3567_s24 + $0x60] sm:$0xf]  ;;  %v3132_v60 = vld [vmem:[%s3567_s24 + $0x64] sm:$0xf0] }
  0xe6   : > { %976 = vmatmul.bf16.vlgmr.msrb.gmra.mxu0 %v3647_v45 }
  0xe7   : > { %1025 = vmatmul.bf16.vlgmr.msrb.gmra.mxu1 %v3652_v50  ;;  %1074 = vmatmul.bf16.vlgmr.msrb.gmra.mxu2 %v3647_v45 }
  0xe8   : > { %1123 = vmatmul.bf16.vlgmr.msrb.gmra.mxu3 %v3652_v50  ;;  %v3133_v50 = vld [vmem:[%s3567_s24 + $0x74] sm:$0xf] }
  0xe9   : > { %v2966_v12 = vor.u32 %v3133_v50, %v2963_v11 }
  0xea   : > { %v879_v62 = vpop.f32.mrf.mxu2 }
  0xeb   : > { %v928_v63 = vpop.f32.mrf.mxu3  ;;  %v783_v0 = vpop.f32.mrf.mxu0  ;;  %2174 = vmatpush.bf16.msra.mxu2 %v2966_v12  ;;  %v3129_v12 = vld [vmem:[%s3567_s24 + $0x54] sm:$0xf] }
  0xec   : > { %v3802_v1 = vadd.f32 %v928_v63, %v879_v62  ;;  %v832_v2 = vpop.f32.mrf.mxu1  ;;  %v3017_v62 = vld [vmem:[%s3567_s24 + $0xe0] sm:$0xf] }
  0xed   : > { %v3804_v3 = vadd.f32 %v832_v2, %v783_v0  ;;  %v2954_v0 = vor.u32 %v3132_v60, %v2953_v59  ;;  %v3148_v2 = vld [vmem:[%s3567_s24 + $0xe4] sm:$0xf0] }
  0xee   : > { %v2872_v59 = vmul.f32 -1.442695, %v3802_v1 }
  0xef   : > { %2175 = vmatpush.bf16.msra.mxu2 %v2958_v47  ;;  %v3127_v47 = vld [vmem:[%s3567_s24 + $0x44] sm:$0xf] }
  0xf2   : > { %v881_v4 = vpop.f32.mrf.mxu2 }
  0xf3   : > { %v930_v5 = vpop.f32.mrf.mxu3  ;;  %v786_v6 = vpop.f32.mrf.mxu0 }
  0xf4   : > { %v3806_v9 = vadd.f32 %v930_v5, %v881_v4  ;;  %v835_v10 = vpop.f32.mrf.mxu1  ;;  %v3018_v4 = vor.u32 %v3148_v2, %v3017_v62  ;;  %v2873_v2 = vmul.f32 -1.442695, %v3804_v3 }
  0xf5   : > { %v3808_v45 = vadd.f32 %v835_v10, %v786_v6 }
  0xf6   : > { %981 = vmatmul.bf16.gmra.mxu0 %v3676_v15 }
  0xf7   : > { %1030 = vmatmul.bf16.gmra.mxu1 %v3678_v16  ;;  %1079 = vmatmul.bf16.gmra.mxu2 %v3676_v15  ;;  %v3134_v15 = vld [vmem:[%s3567_s24 + $0x74] sm:$0xf0] }
  0xf8   : > { %1128 = vmatmul.bf16.gmra.mxu3 %v3678_v16  ;;  %v2962_v25 = vor.u32 %v3134_v15, %v2961_v24  ;;  %v3025_v16 = vld [vmem:[%s3567_s24 + $0xf0] sm:$0xf] }
  0xf9   : > { %v3026_v32 = vor.u32 %v3150_v26, %v3025_v16 }
  0xfa   : > { %v884_v17 = vpop.f32.mrf.mxu2  ;;  %2076 = vmatpush.bf16.msra.mxu0 %v2962_v25 }
  0xfb   : > { %v933_v18 = vpop.f32.mrf.mxu3  ;;  %v788_v19 = vpop.f32.mrf.mxu0  ;;  %2125 = vmatpush.bf16.msra.mxu1 %v3026_v32 }
  0xfc   : > { %v3818_v21 = vadd.f32 %v933_v18, %v884_v17  ;;  %v837_v22 = vpop.f32.mrf.mxu1 }
  0xfd   : > { %v3820_v23 = vadd.f32 %v837_v22, %v788_v19  ;;  %v3145_v19 = vld [vmem:[%s3567_s24 + $0xd4] sm:$0xf]  ;;  %v2950_v22 = vor.u32 %v3129_v12, %v2947_v14 }
  0xfe   : > { %2077 = vmatpush.bf16.msra.mxu0 %v2954_v0  ;;  %v3128_v0 = vld [vmem:[%s3567_s24 + $0x44] sm:$0xf0] }
  0xff   : > { %2126 = vmatpush.bf16.msra.mxu1 %v3018_v4  ;;  %2176 = vmatpush.bf16.msra.mxu2 %v2950_v22  ;;  %v3001_v4 = vld [vmem:[%s3567_s24 + $0xc0] sm:$0xf] }
 0x102   : > { %v886_v29 = vpop.f32.mrf.mxu2 }
 0x103   : > { %v935_v30 = vpop.f32.mrf.mxu3  ;;  %v791_v31 = vpop.f32.mrf.mxu0 }
 0x104   : > { %v840_v35 = vpop.f32.mrf.mxu1  ;;  %v3826_v36 = vadd.f32 %v935_v30, %v886_v29  ;;  %v2945_v29 = vld [vmem:[%s3567_s24 + $0x50] sm:$0xf]  ;;  %v3130_v30 = vld [vmem:[%s3567_s24 + $0x54] sm:$0xf0] }
 0x105   : > { %v3829_v37 = vadd.f32 %v840_v35, %v791_v31 }
 0x106   : > { %986 = vmatmul.bf16.gmra.mxu0 %v3696_v33 }
 0x107   : > { %1035 = vmatmul.bf16.gmra.mxu1 %v3698_v34  ;;  %1084 = vmatmul.bf16.gmra.mxu2 %v3696_v33 }
 0x108   : > { %1133 = vmatmul.bf16.gmra.mxu3 %v3698_v34 }
 0x10a   : > { %v889_v38 = vpop.f32.mrf.mxu2 }
 0x10b   : > { %v938_v39 = vpop.f32.mrf.mxu3  ;;  %v793_v40 = vpop.f32.mrf.mxu0 }
 0x10c   : > { %v842_v43 = vpop.f32.mrf.mxu1  ;;  %v3838_v52 = vadd.f32 %v938_v39, %v889_v38  ;;  %v2946_v38 = vor.u32 %v3130_v30, %v2945_v29  ;;  %v3009_v39 = vld [vmem:[%s3567_s24 + $0xd0] sm:$0xf]  ;;  %v2995_v30 = vld [vmem:[%s3567_s24 + $0xb8] sm:$0xf0] }
 0x10d   : > { %v3840_v34 = vadd.f32 %v842_v43, %v793_v40  ;;  %v3146_v40 = vld [vmem:[%s3567_s24 + $0xd4] sm:$0xf0] }
 0x10e   : > { %5178 = vst [vmem:[#allocation8_spill] sm:$0xff] %v3838_v52  ;;  %2078 = vmatpush.bf16.msra.mxu0 %v2946_v38  ;;  %v3010_v41 = vor.u32 %v3146_v40, %v3009_v39  ;;  %v2875_v40 = vmul.f32 -1.442695, %v3808_v45 }
 0x110   : > { %2127 = vmatpush.bf16.msra.mxu1 %v3010_v41 }
 0x112   : > { %v891_v33 = vpop.f32.mrf.mxu2 }
 0x113   : > { %v940_v55 = vpop.f32.mrf.mxu3  ;;  %v796_v56 = vpop.f32.mrf.mxu0 }
 0x114   : > { %v845_v63 = vpop.f32.mrf.mxu1  ;;  %v3847_v5 = vadd.f32 %v940_v55, %v891_v33  ;;  %v3143_v33 = vld [vmem:[%s3567_s24 + $0xc4] sm:$0xf]  ;;  %v3003_v55 = vld [vmem:[%s3567_s24 + $0xc8] sm:$0xf0] }
 0x115   : > { %v3849_v6 = vadd.f32 %v845_v63, %v796_v56  ;;  %v2942_v56 = vor.u32 %v3127_v47, %v2939_v51  ;;  %v3006_v60 = vor.u32 %v3143_v33, %v3003_v55  ;;  %v2937_v63 = vld [vmem:[%s3567_s24 + $0x40] sm:$0xf]  ;;  %v2877_v51 = vmul.f32 -1.442695, %v3820_v23 }
 0x116   : > { %991 = vmatmul.bf16.gmra.mxu0 %v3716_v53  ;;  %5179 = vst [vmem:[#allocation9_spill] sm:$0xff] %v3847_v5  ;;  %v2938_v12 = vor.u32 %v3128_v0, %v2937_v63 }
 0x117   : > { %5180 = vst [vmem:[#allocation10_spill] sm:$0xff] %v3849_v6  ;;  %1040 = vmatmul.bf16.gmra.mxu1 %v3718_v54  ;;  %1089 = vmatmul.bf16.gmra.mxu2 %v3716_v53  ;;  %v3014_v53 = vor.u32 %v3145_v19, %v3011_v20 }
 0x118   : > { %1138 = vmatmul.bf16.gmra.mxu3 %v3718_v54  ;;  %2177 = vmatpush.bf16.msra.mxu2 %v2942_v56 }
 0x119   : > { %2225 = vmatpush.bf16.msra.mxu3 %v3014_v53  ;;  %2079 = vmatpush.bf16.msra.mxu0 %v2938_v12  ;;  %v3125_v53 = vld [vmem:[%s3567_s24 + $0x34] sm:$0xf] }
 0x11a   : > { %v894_v10 = vpop.f32.mrf.mxu2 }
 0x11b   : > { %v943_v50 = vpop.f32.mrf.mxu3  ;;  %v798_v11 = vpop.f32.mrf.mxu0 }
 0x11c   : > { %v847_v13 = vpop.f32.mrf.mxu1  ;;  %v3856_v17 = vadd.f32 %v943_v50, %v894_v10  ;;  %v3144_v10 = vld [vmem:[%s3567_s24 + $0xc4] sm:$0xf0] }
 0x11d   : > { %v3858_v18 = vadd.f32 %v847_v13, %v798_v11  ;;  %2226 = vmatpush.bf16.msra.mxu3 %v3006_v60  ;;  %v3002_v14 = vor.u32 %v3144_v10, %v3001_v4 }
 0x11e   : > { %5181 = vst [vmem:[#allocation11_spill] sm:$0xff] %v3856_v17 }
 0x11f   : > { %5182 = vst [vmem:[#allocation12_spill] sm:$0xff] %v3858_v18  ;;  %2128 = vmatpush.bf16.msra.mxu1 %v3002_v14 }
 0x122   : > { %v896_v24 = vpop.f32.mrf.mxu2 }
 0x123   : > { %v945_v54 = vpop.f32.mrf.mxu3  ;;  %v801_v15 = vpop.f32.mrf.mxu0 }
 0x124   : > { %v850_v25 = vpop.f32.mrf.mxu1  ;;  %v3862_v16 = vadd.f32 %v945_v54, %v896_v24  ;;  %v2931_v24 = vld [vmem:[%s3567_s24 + $0x38] sm:$0xf0]  ;;  %v3141_v54 = vld [vmem:[%s3567_s24 + $0xb4] sm:$0xf] }
 0x125   : > { %v3881_v46 = vadd.f32 %v850_v25, %v801_v15  ;;  %v2934_v29 = vor.u32 %v3125_v53, %v2931_v24  ;;  %v2929_v24 = vld [vmem:[%s3567_s24 + $0x30] sm:$0xf] }
 0x126   : > { %5183 = vst [vmem:[#allocation13_spill] sm:$0xff] %v3862_v16  ;;  %996 = vmatmul.bf16.gmra.mxu0 %v3736_v7 }
 0x127   : > { %1045 = vmatmul.bf16.gmra.mxu1 %v3738_v8  ;;  %1094 = vmatmul.bf16.gmra.mxu2 %v3736_v7  ;;  %v2871_v7 = vmul.f32 -1.442695, %v3796_v61 }
 0x128   : > { %1143 = vmatmul.bf16.gmra.mxu3 %v3738_v8  ;;  %2178 = vmatpush.bf16.msra.mxu2 %v2934_v29  ;;  %v2993_v29 = vld [vmem:[%s3567_s24 + $0xb0] sm:$0xf] }
 0x129   : > { %3225 = vpow2.f32 %v2871_v7  ;;  %v2876_v7 = vmul.f32 -1.442695, %v3818_v21 }
 0x12a   : > { %v899_v26 = vpop.f32.mrf.mxu2  ;;  %3227 = vpow2.f32 %v2872_v59 }
 0x12b   : > { %v948_v31 = vpop.f32.mrf.mxu3  ;;  %v3870_v32 = vpop.f32.mrf.mxu0  ;;  %3229 = vpow2.f32 %v2873_v2  ;;  %v2878_v2 = vmul.f32 -1.442695, %v3826_v36 }
 0x12c   : > { %v3872_v35 = vpop.f32.mrf.mxu1  ;;  %v3892_v62 = vadd.f32 %v948_v31, %v899_v26  ;;  %v2874_v26 = vmul.f32 -1.442695, %v3806_v9 }
 0x12e   : > { %5186 = vst [vmem:[#allocation16_spill] sm:$0xff] %v3892_v62  ;;  %v3140_v62 = vld [vmem:[%s3567_s24 + $0xa4] sm:$0xf0] }
 0x132   : > { %v3877_v8 = vpop.f32.mrf.mxu2 }
 0x133   : > { %5184 = vst [vmem:[#allocation14_spill] sm:$0xff] %v3877_v8  ;;  %v3879_v42 = vpop.f32.mrf.mxu3  ;;  %v806_v43 = vpop.f32.mrf.mxu0  ;;  %v2985_v8 = vld [vmem:[%s3567_s24 + $0xa0] sm:$0xf] }
 0x134   : > { %5185 = vst [vmem:[#allocation15_spill] sm:$0xff] %v3879_v42  ;;  %v855_v44 = vpop.f32.mrf.mxu1  ;;  %v2882_v42 = vmul.f32 -1.442695, %v3847_v5 }
 0x135   : > { %v3903_v19 = vadd.f32 %v855_v44, %v806_v43  ;;  %v2998_v43 = vor.u32 %v3141_v54, %v2995_v30  ;;  %v3142_v30 = vld [vmem:[%s3567_s24 + $0xb4] sm:$0xf0] }
 0x136   : > { %1001 = vmatmul.bf16.gmra.mxu0 %v3756_v27 }
 0x137   : > { %1050 = vmatmul.bf16.gmra.mxu1 %v3758_v28  ;;  %1099 = vmatmul.bf16.gmra.mxu2 %v3756_v27  ;;  %5189 = vst [vmem:[#allocation19_spill] sm:$0xff] %v3903_v19  ;;  %v2921_v19 = vld [vmem:[%s3567_s24 + $0x20] sm:$0xf] }
 0x138   : > { %1148 = vmatmul.bf16.gmra.mxu3 %v3758_v28  ;;  %v3226_v28 = vpop.eup %3225 }
 0x139   : > { %v3905_v20 = vadd.f32 1.0, %v3226_v28  ;;  %v3228_v25 = vpop.eup %3227  ;;  %2227 = vmatpush.bf16.msra.mxu3 %v2998_v43 }
 0x13a   : > { %v904_v50 = vpop.f32.mrf.mxu2  ;;  %v3230_v39 = vpop.eup %3229  ;;  %v3925_v44 = vadd.f32 1.0, %v3228_v25 }
 0x13b   : > { %v953_v27 = vpop.f32.mrf.mxu3  ;;  %v3899_v11 = vpop.f32.mrf.mxu0  ;;  %3231 = vrcp.f32 %v3905_v20  ;;  %v3928_v47 = vadd.f32 1.0, %v3230_v39  ;;  %v1301_v12 = vand.u32 2147483647, %v3905_v20  ;;  %vm1297_vm0 = vweird.f32 %v3905_v20 }
 0x13c   : > { %5187 = vst [vmem:[#allocation17_spill] sm:$0xff] %v3899_v11  ;;  %v3901_v13 = vpop.f32.mrf.mxu1  ;;  %v3907_v22 = vadd.f32 %v953_v27, %v904_v50  ;;  %3233 = vpow2.f32 %v2874_v26  ;;  %v3126_v26 = vld [vmem:[%s3567_s24 + $0x34] sm:$0xf0]  ;;  %vm1312_vm4 = vweird.f32 %v3925_v44 }
 0x13d   : > { %5188 = vst [vmem:[#allocation18_spill] sm:$0xff] %v3901_v13  ;;  %3235 = vpow2.f32 %v2875_v40  ;;  %vm3986_vm2 = vcmp.eq.f32.partialorder %v1301_v12, 8.507059e+37  ;;  %v1316_v12 = vand.u32 2147483647, %v3925_v44  ;;  %vm1327_vm5 = vweird.f32 %v3928_v47 }
 0x13e   : > { %5190 = vst [vmem:[#allocation20_spill] sm:$0xff] %v3907_v22  ;;  %3237 = vpow2.f32 %v2876_v7 }
 0x13f   : > { %3239 = vrcp.f32 %v3925_v44  ;;  %vm4047_vm8 = vcmp.eq.f32.partialorder %v1316_v12, 8.507059e+37 }
 0x140   : > { %3241 = vrcp.f32 %v3928_v47 }
 0x141   : > { %v3934_v33 = vpop.eup %3231  ;;  %3243 = vpow2.f32 %v2877_v51  ;;  %v2879_v51 = vmul.f32 -1.442695, %v3829_v37 }
 0x142   : > { %v3912_v15 = vpop.f32.mrf.mxu2  ;;  %v1293_v60 = vmul.f32 %v3934_v33, %v3905_v20  ;;  %3245 = vpow2.f32 %v2878_v2  ;;  %v2994_v2 = vor.u32 %v3142_v30, %v2993_v29  ;;  %vm1298_vm1 = vweird.f32 %v3934_v33 }
 0x143   : > { %5191 = vst [vmem:[#allocation21_spill] sm:$0xff] %v3912_v15  ;;  %v3917_v31 = vpop.f32.mrf.mxu3  ;;  %v3919_v38 = vpop.f32.mrf.mxu0  ;;  %vm4006_vm3 = vmor %vm1297_vm0, %vm1298_vm1 }
 0x144   : > { %5192 = vst [vmem:[#allocation22_spill] sm:$0xff] %v3917_v31  ;;  %v3922_v41 = vpop.f32.mrf.mxu1  ;;  %v1294_v10 = vsub.f32 1.0, %v1293_v60  ;;  %2129 = vmatpush.bf16.msra.mxu1 %v2994_v2 }
 0x146   : > { %1006 = vmatmul.bf16.gmra.mxu0 %v3776_v48  ;;  %v1295_v7 = vmul.f32 %v3934_v33, %v1294_v10 }
 0x147   : > { %1055 = vmatmul.bf16.gmra.mxu1 %v3778_v49  ;;  %1104 = vmatmul.bf16.gmra.mxu2 %v3776_v48 }
 0x148   : > { %1153 = vmatmul.bf16.gmra.mxu3 %v3778_v49  ;;  %v3234_v49 = vpop.eup %3233 }
 0x149   : > { %v3236_v63 = vpop.eup %3235  ;;  %v3951_v50 = vadd.f32 1.0, %v3234_v49 }
 0x14a   : > { %v3937_v55 = vpop.f32.mrf.mxu2  ;;  %v3238_v0 = vpop.eup %3237  ;;  %v3956_v14 = vadd.f32 1.0, %v3236_v63  ;;  %v1303_v63 = vand.u32 2147483648, %v3905_v20  ;;  %v2923_v20 = vld [vmem:[%s3567_s24 + $0x28] sm:$0xf0] }
 0x14b   : > { %v3940_v56 = vpop.f32.mrf.mxu3  ;;  %v3942_v59 = vpop.f32.mrf.mxu0  ;;  %v3958_v53 = vadd.f32 1.0, %v3238_v0  ;;  %3247 = vrcp.f32 %v3951_v50  ;;  %v2930_v0 = vor.u32 %v3126_v26, %v2929_v24  ;;  %v1331_v26 = vand.u32 2147483647, %v3928_v47 }
 0x14c   : > { %5193 = vst [vmem:[#allocation23_spill] sm:$0xff] %v3942_v59  ;;  %v3946_v48 = vpop.f32.mrf.mxu1  ;;  %v3949_v4 = vpop.eup %3239  ;;  %3249 = vrcp.f32 %v3956_v14  ;;  %v3139_v59 = vld [vmem:[%s3567_s24 + $0xa4] sm:$0xf]  ;;  %vm1342_vm12 = vweird.f32 %v3951_v50  ;;  %vm1357_vm13 = vweird.f32 %v3956_v14 }
 0x14d   : > { %5194 = vst [vmem:[#allocation24_spill] sm:$0xff] %v3946_v48  ;;  %v3953_v27 = vpop.eup %3241  ;;  %v1308_v25 = vmul.f32 %v3949_v4, %v3925_v44  ;;  %3251 = vrcp.f32 %v3958_v53  ;;  %2080 = vmatpush.bf16.msra.mxu0 %v2930_v0  ;;  %v3123_v0 = vld [vmem:[%s3567_s24 + $0x24] sm:$0xf]  ;;  %vm1313_vm6 = vweird.f32 %v3949_v4  ;;  %vm4051_vm9 = vcmp.eq.f32.partialorder %v1331_v26, 8.507059e+37 }
 0x14e   : > { %v3244_v28 = vpop.eup %3243  ;;  %v1323_v43 = vmul.f32 %v3953_v27, %v3928_v47  ;;  %3253 = vpow2.f32 %v2879_v51  ;;  %v2880_v51 = vmul.f32 -1.442695, %v3838_v52  ;;  %vm1328_vm7 = vweird.f32 %v3953_v27  ;;  %vm4085_vm10 = vmor %vm1312_vm4, %vm1313_vm6 }
 0x14f   : > { %v3980_v49 = vadd.f32 1.0, %v3244_v28  ;;  %v1296_v28 = vadd.f32 %v3934_v33, %v1295_v7  ;;  %v3246_v24 = vpop.eup %3245  ;;  %v1304_v7 = vor.u32 1.1754944e-38, %v1303_v63  ;;  %v2987_v63 = vld [vmem:[%s3567_s24 + $0xa8] sm:$0xf0]  ;;  %vm4098_vm11 = vmor %vm1327_vm5, %vm1328_vm7 }
 0x150   : > { %v1324_v48 = vsub.f32 1.0, %v1323_v43  ;;  %v1333_v43 = vand.u32 2147483648, %v3928_v47 }
 0x151   : > { %3255 = vrcp.f32 %v3980_v49  ;;  %v4000_v29 = vpop.eup %3247 }
 0x152   : > { %v3961_v54 = vpop.f32.mrf.mxu2  ;;  %v4029_v15 = vpop.eup %3249  ;;  %v1325_v11 = vmul.f32 %v3953_v27, %v1324_v48  ;;  %v1338_v30 = vmul.f32 %v4000_v29, %v3951_v50  ;;  %v1334_v10 = vor.u32 1.1754944e-38, %v1333_v43  ;;  %vm1343_vm14 = vweird.f32 %v4000_v29 }
 0x153   : > { %5195 = vst [vmem:[#allocation25_spill] sm:$0xff] %v3961_v54  ;;  %v3968_v39 = vpop.f32.mrf.mxu3  ;;  %v3970_v40 = vpop.f32.mrf.mxu0  ;;  %v1318_v54 = vand.u32 2147483648, %v3925_v44  ;;  %vm1358_vm0 = vweird.f32 %v4029_v15 }
 0x154   : > { %5196 = vst [vmem:[#allocation26_spill] sm:$0xff] %v3968_v39  ;;  %v3977_v60 = vpop.f32.mrf.mxu1  ;;  %v1309_v39 = vsub.f32 1.0, %v1308_v25  ;;  %v2881_v25 = vmul.f32 -1.442695, %v3840_v34  ;;  %vm4208_vm6 = vmor %vm1357_vm13, %vm1358_vm0 }
 0x155   : > { %v4034_v13 = vor.u32 1.1754944e-38, %v1318_v54 }
 0x156   : > { %1011 = vmatmul.bf16.gmra.mxu0 %v3788_v57  ;;  %3257 = vpow2.f32 %v2881_v25  ;;  %v3124_v25 = vld [vmem:[%s3567_s24 + $0x24] sm:$0xf0] }
 0x157   : > { %1060 = vmatmul.bf16.gmra.mxu1 %v3790_v58  ;;  %1109 = vmatmul.bf16.gmra.mxu2 %v3788_v57  ;;  %v1310_v57 = vmul.f32 %v3949_v4, %v1309_v39  ;;  %v1300_v39 = vsel %vm4006_vm3, %v3934_v33, %v1296_v28  ;;  %v1348_v28 = vand.u32 2147483648, %v3951_v50  ;;  %3259 = vpow2.f32 %v2880_v51  ;;  %vm4184_vm3 = vmor %vm1342_vm12, %vm1343_vm14 }
 0x158   : > { %1158 = vmatmul.bf16.gmra.mxu3 %v3790_v58  ;;  %v4020_v58 = vadd.f32 %v3922_v41, %v3919_v38  ;;  %v4037_v38 = vadd.f32 1.0, %v3246_v24  ;;  %v2926_v24 = vor.u32 %v3123_v0, %v2923_v20  ;;  %v1305_v12 = vsel %vm3986_vm2, %v1304_v7, %v1300_v39 }
 0x159   : > { %v1311_v26 = vadd.f32 %v3949_v4, %v1310_v57  ;;  %v1339_v7 = vsub.f32 1.0, %v1338_v30  ;;  %v2922_v51 = vor.u32 %v3124_v25, %v2921_v19  ;;  %v4079_v57 = vmul.f32 %v1305_v12, %v3796_v61 }
 0x15a   : > { %v4013_v2 = vpop.f32.mrf.mxu2  ;;  %5201 = vst [vmem:[#allocation27_spill] sm:$0xff] %v4020_v58  ;;  %v4041_v58 = vpop.eup %3251  ;;  %3261 = vrcp.f32 %v4037_v38  ;;  %2179 = vmatpush.bf16.msra.mxu2 %v2926_v24  ;;  %v1346_v20 = vand.u32 2147483647, %v3951_v50  ;;  %v4103_v44 = vor.u32 1.1754944e-38, %v1348_v28  ;;  %vm1372_vm2 = vweird.f32 %v3958_v53 }
 0x15b   : > { %v4025_v22 = vpop.f32.mrf.mxu3  ;;  %v4027_v31 = vpop.f32.mrf.mxu0  ;;  %3263 = vpow2.f32 %v2882_v42  ;;  %2081 = vmatpush.bf16.msra.mxu0 %v2922_v51  ;;  %v1315_v47 = vsel %vm4085_vm10, %v3949_v4, %v1311_v26  ;;  %v1340_v51 = vmul.f32 %v4000_v29, %v1339_v7  ;;  %v4126_v4 = vadd.f32 %v3977_v60, %v3970_v40 }
 0x15c   : > { %5202 = vst [vmem:[#allocation28_spill] sm:$0xff] %v4027_v31  ;;  %v4039_v41 = vpop.f32.mrf.mxu1  ;;  %v3254_v33 = vpop.eup %3253  ;;  %v4058_v31 = vadd.f32 %v3940_v56, %v3937_v55  ;;  %v1353_v55 = vmul.f32 %v4029_v15, %v3956_v14  ;;  %v1368_v56 = vmul.f32 %v4041_v58, %v3958_v53  ;;  %v1320_v7 = vsel %vm4047_vm8, %v4034_v13, %v1315_v47 }
 0x15d   : > { %5203 = vst [vmem:[#allocation29_spill] sm:$0xff] %v4039_v41  ;;  %v2990_v41 = vor.u32 %v3139_v59, %v2987_v63  ;;  %v4062_v52 = vpop.eup %3255  ;;  %v1326_v59 = vadd.f32 %v3953_v27, %v1325_v11  ;;  %v4076_v0 = vadd.f32 1.0, %v3254_v33  ;;  %v2986_v63 = vor.u32 %v3140_v62, %v2985_v8  ;;  %v3121_v8 = vld [vmem:[%s3567_s24 + $0x14] sm:$0xf]  ;;  %v2915_v62 = vld [vmem:[%s3567_s24 + $0x18] sm:$0xf0] }
 0x15e   : > { %5208 = vst [vmem:[#allocation30_spill] sm:$0xff] %v4058_v31  ;;  %v1383_v43 = vmul.f32 %v4062_v52, %v3980_v49  ;;  %v3258_v19 = vpop.eup %3257  ;;  %v1354_v24 = vsub.f32 1.0, %v1353_v55  ;;  %v1369_v25 = vsub.f32 1.0, %v1368_v56  ;;  %v3137_v55 = vld [vmem:[%s3567_s24 + $0x94] sm:$0xf]  ;;  %vm4144_vm15 = vcmp.eq.f32.partialorder %v1346_v20, 8.507059e+37 }
 0x15f   : > { %2228 = vmatpush.bf16.msra.mxu3 %v2990_v41  ;;  %v1363_v41 = vand.u32 2147483648, %v3956_v14  ;;  %v1330_v28 = vsel %vm4098_vm11, %v3953_v27, %v1326_v59  ;;  %2130 = vmatpush.bf16.msra.mxu1 %v2986_v63  ;;  %v3260_v12 = vpop.eup %3259  ;;  %3265 = vrcp.f32 %v4076_v0  ;;  %5215 = vst [vmem:[#allocation33_spill] sm:$0xff] %v4126_v4  ;;  %v4130_v27 = vadd.f32 1.0, %v3258_v19  ;;  %v2979_v56 = vld [vmem:[%s3567_s24 + $0x98] sm:$0xf0] }
 0x160   : > { %v4128_v26 = vpop.eup %3261  ;;  %v1384_v11 = vsub.f32 1.0, %v1383_v43  ;;  %v2918_v59 = vor.u32 %v3121_v8, %v2915_v62  ;;  %v4136_v63 = vadd.f32 %v4025_v22, %v4013_v2  ;;  %v1335_v40 = vsel %vm4051_vm9, %v1334_v10, %v1330_v28 }
 0x161   : > { %v1361_v43 = vand.u32 2147483647, %v3956_v14  ;;  %v1355_v19 = vmul.f32 %v4029_v15, %v1354_v24  ;;  %v1370_v22 = vmul.f32 %v4041_v58, %v1369_v25  ;;  %v1376_v2 = vand.u32 2147483647, %v3958_v53  ;;  %v3264_v13 = vpop.eup %3263 }
 0x162   : > { %v4092_v39 = vpop.f32.mrf.mxu2  ;;  %5216 = vst [vmem:[#allocation34_spill] sm:$0xff] %v4136_v63  ;;  %2180 = vmatpush.bf16.msra.mxu2 %v2918_v59  ;;  %v2982_v48 = vor.u32 %v3137_v55, %v2979_v56  ;;  %v1341_v54 = vadd.f32 %v4000_v29, %v1340_v51  ;;  %v1398_v10 = vmul.f32 %v4128_v26, %v4037_v38  ;;  %v4155_v20 = vadd.f32 1.0, %v3260_v12  ;;  %v3138_v63 = vld [vmem:[%s3567_s24 + $0x94] sm:$0xf0] }
 0x163   : > { %5211 = vst [vmem:[#allocation31_spill] sm:$0xff] %v4092_v39  ;;  %v4109_v30 = vpop.f32.mrf.mxu3  ;;  %v4111_v33 = vpop.f32.mrf.mxu0  ;;  %v4158_v61 = vmul.f32 %v1320_v7, %v3802_v1  ;;  %v1364_v8 = vor.u32 1.1754944e-38, %v1363_v41  ;;  %v1385_v62 = vmul.f32 %v4062_v52, %v1384_v11  ;;  %v4167_v24 = vmul.f32 %v1335_v40, %v3804_v3 }
 0x164   : > { %5214 = vst [vmem:[#allocation32_spill] sm:$0xff] %v4109_v30  ;;  %v4119_v42 = vpop.f32.mrf.mxu1  ;;  %v2883_v30 = vmul.f32 -1.442695, %v3849_v6  ;;  %2229 = vmatpush.bf16.msra.mxu3 %v2982_v48  ;;  %vm4170_vm1 = vcmp.eq.f32.partialorder %v1361_v43, 8.507059e+37  ;;  %v1378_v1 = vand.u32 2147483648, %v3958_v53  ;;  %v1356_v12 = vadd.f32 %v4029_v15, %v1355_v19 }
 0x165   : > { %v4164_v28 = vpop.eup %3265  ;;  %v1371_v51 = vadd.f32 %v4041_v58, %v1370_v22  ;;  %vm1373_vm4 = vweird.f32 %v4041_v58  ;;  %vm4191_vm5 = vcmp.eq.f32.partialorder %v1376_v2, 8.507059e+37  ;;  %v4195_v59 = vadd.f32 1.0, %v3264_v13  ;;  %v3136_v6 = vld [vmem:[%s3567_s24 + $0x84] sm:$0xf0] }
 0x166   : > { %3267 = vpow2.f32 %v2883_v30  ;;  %v1345_v50 = vsel %vm4184_vm3, %v4000_v29, %v1341_v54  ;;  %v1399_v56 = vsub.f32 1.0, %v1398_v10  ;;  %v2885_v7 = vmul.f32 -1.442695, %v3858_v18  ;;  %vm4219_vm8 = vmor %vm1372_vm2, %vm1373_vm4  ;;  %v2969_v18 = vld [vmem:[%s3567_s24 + $0x80] sm:$0xf] }
 0x167   : > { %3269 = vrcp.f32 %v4130_v27  ;;  %v1386_v43 = vadd.f32 %v4062_v52, %v1385_v62  ;;  %vm1388_vm7 = vweird.f32 %v4062_v52  ;;  %v1413_v29 = vmul.f32 %v4164_v28, %v4076_v0 }
 0x168   : > { %3271 = vrcp.f32 %v4155_v20  ;;  %v2884_v19 = vmul.f32 -1.442695, %v3856_v17  ;;  %v1379_v14 = vor.u32 1.1754944e-38, %v1378_v1  ;;  %vm1387_vm9 = vweird.f32 %v3980_v49  ;;  %v2913_v1 = vld [vmem:[%s3567_s24 + $0x10] sm:$0xf] }
 0x169   : > { %v1391_v48 = vand.u32 2147483647, %v3980_v49  ;;  %v1393_v13 = vand.u32 2147483648, %v3980_v49  ;;  %v1350_v10 = vsel %vm4144_vm15, %v4103_v44, %v1345_v50  ;;  %v1360_v53 = vsel %vm4208_vm6, %v4029_v15, %v1356_v12  ;;  %vm4238_vm10 = vmor %vm1387_vm9, %vm1388_vm7  ;;  %v3120_v17 = vld [vmem:[%s3567_s24 + $0x4] sm:$0xf0] }
 0x16a   : > { %v4162_v47 = vpop.f32.mrf.mxu2  ;;  %v1375_v62 = vsel %vm4219_vm8, %v4041_v58, %v1371_v51  ;;  %3273 = vrcp.f32 %v4195_v59  ;;  %v1400_v49 = vmul.f32 %v4128_v26, %v1399_v56  ;;  %v1406_v3 = vand.u32 2147483647, %v4037_v38 }
 0x16b   : > { %v4176_v41 = vpop.f32.mrf.mxu3  ;;  %v4178_v25 = vpop.f32.mrf.mxu0  ;;  %v1408_v44 = vand.u32 2147483648, %v4037_v38  ;;  %3275 = vpow2.f32 %v2885_v7  ;;  %v1390_v15 = vsel %vm4238_vm10, %v4062_v52, %v1386_v43  ;;  %v1414_v60 = vsub.f32 1.0, %v1413_v29 }
 0x16c   : > { %v4197_v55 = vpop.f32.mrf.mxu1  ;;  %v3268_v22 = vpop.eup %3267  ;;  %3277 = vpow2.f32 %v2884_v19  ;;  %vm1392_vm11 = vcmp.eq.f32.partialorder %v1391_v48, 8.507059e+37  ;;  %v1394_v50 = vor.u32 1.1754944e-38, %v1393_v13  ;;  %v2886_v40 = vmul.f32 -1.442695, %v3862_v16 }
 0x16d   : > { %v4226_v54 = vpop.eup %3269  ;;  %v4248_v12 = vadd.f32 1.0, %v3268_v22  ;;  %v4262_v52 = vmul.f32 %v1350_v10, %v3806_v9  ;;  %v1365_v43 = vsel %vm4170_vm1, %v1364_v8, %v1360_v53  ;;  %vm1402_vm12 = vweird.f32 %v4037_v38 }
 0x16e   : > { %v4252_v51 = vpop.eup %3271  ;;  %v1443_v56 = vmul.f32 %v4226_v54, %v4130_v27  ;;  %vm1403_vm13 = vweird.f32 %v4128_v26  ;;  %v1380_v19 = vsel %vm4191_vm5, %v1379_v14, %v1375_v62  ;;  %v1395_v22 = vsel %vm1392_vm11, %v1394_v50, %v1390_v15  ;;  %v2977_v50 = vld [vmem:[%s3567_s24 + $0x90] sm:$0xf] }
 0x16f   : > { %v1401_v48 = vadd.f32 %v4128_v26, %v1400_v49  ;;  %vm4273_vm14 = vcmp.eq.f32.partialorder %v1406_v3, 8.507059e+37  ;;  %v1409_v8 = vor.u32 1.1754944e-38, %v1408_v44  ;;  %v1415_v38 = vmul.f32 %v4164_v28, %v1414_v60  ;;  %vm4283_vm15 = vmor %vm1402_vm12, %vm1403_vm13  ;;  %v3122_v60 = vld [vmem:[%s3567_s24 + $0x14] sm:$0xf0] }
 0x170   : > { %v4277_v9 = vpop.eup %3273  ;;  %v1428_v30 = vmul.f32 %v4252_v51, %v4155_v20  ;;  %3279 = vrcp.f32 %v4248_v12  ;;  %v1421_v10 = vand.u32 2147483647, %v4076_v0  ;;  %v1423_v53 = vand.u32 2147483648, %v4076_v0 }
 0x171   : > { %v3276_v11 = vpop.eup %3275  ;;  %v1444_v62 = vsub.f32 1.0, %v1443_v56  ;;  %3281 = vpow2.f32 %v2886_v40  ;;  %v4291_v3 = vmul.f32 %v1365_v43, %v3808_v45  ;;  %v4294_v44 = vmul.f32 %v1380_v19, %v3818_v21 }
 0x172   : > { %v4250_v58 = vpop.f32.mrf.mxu2  ;;  %v3278_v49 = vpop.eup %3277  ;;  %v4297_v15 = vmul.f32 %v1395_v22, %v3820_v23  ;;  %vm1417_vm0 = vweird.f32 %v4076_v0  ;;  %v1405_v56 = vsel %vm4283_vm15, %v4128_v26, %v1401_v48  ;;  %vm1418_vm1 = vweird.f32 %v4164_v28 }
 0x173   : > { %v4257_v7 = vpop.f32.mrf.mxu3  ;;  %v4259_v2 = vpop.f32.mrf.mxu0  ;;  %v1438_v45 = vand.u32 2147483648, %v4155_v20  ;;  %v1451_v40 = vand.u32 2147483647, %v4130_v27  ;;  %v1416_v21 = vadd.f32 %v4164_v28, %v1415_v38  ;;  %v1429_v43 = vsub.f32 1.0, %v1428_v30  ;;  %vm4339_vm4 = vmor %vm1417_vm0, %vm1418_vm1 }
 0x174   : > { %v4268_v29 = vpop.f32.mrf.mxu1  ;;  %v1458_v23 = vmul.f32 %v4277_v9, %v4195_v59  ;;  %v4312_v19 = vadd.f32 1.0, %v3276_v11  ;;  %v1445_v4 = vmul.f32 %v4226_v54, %v1444_v62  ;;  %v4317_v14 = vadd.f32 1.0, %v3278_v49 }
 0x175   : > { %v2914_v26 = vor.u32 %v3122_v60, %v2913_v1  ;;  %v2978_v48 = vor.u32 %v3138_v63, %v2977_v50  ;;  %vm4325_vm2 = vcmp.eq.f32.partialorder %v1421_v10, 8.507059e+37  ;;  %v1424_v30 = vor.u32 1.1754944e-38, %v1423_v53  ;;  %v3119_v50 = vld [vmem:[%s3567_s24 + $0x4] sm:$0xf]  ;;  %v2905_v53 = vld [vmem:[%s3567_s24] sm:$0xf] }
 0x176   : > { %v4323_v16 = vpop.eup %3279  ;;  %vm1432_vm3 = vweird.f32 %v4155_v20  ;;  %v1453_v11 = vand.u32 2147483648, %v4130_v27  ;;  %v1410_v1 = vsel %vm4273_vm14, %v1409_v8, %v1405_v56  ;;  %v4344_v49 = vor.u32 1.1754944e-38, %v1438_v45  ;;  %v2907_v56 = vld [vmem:[%s3567_s24 + $0x8] sm:$0xf0] }
 0x177   : > { %v3282_v63 = vpop.eup %3281  ;;  %vm4346_vm5 = vcmp.eq.f32.partialorder %v1451_v40, 8.507059e+37  ;;  %2082 = vmatpush.bf16.msra.mxu0 %v2914_v26  ;;  %2131 = vmatpush.bf16.msra.mxu1 %v2978_v48  ;;  %v1420_v0 = vsel %vm4339_vm4, %v4164_v28, %v1416_v21  ;;  %v1430_v13 = vmul.f32 %v4252_v51, %v1429_v43  ;;  %v1468_v8 = vand.u32 2147483648, %v4195_v59  ;;  %v3135_v28 = vld [vmem:[%s3567_s24 + $0x84] sm:$0xf]  ;;  %v2971_v21 = vld [vmem:[%s3567_s24 + $0x88] sm:$0xf0] }
 0x178   : > { %5239 = vst [vmem:[#allocation35_spill] sm:$0xff] %v4344_v49  ;;  %3283 = vrcp.f32 %v4312_v19  ;;  %v1446_v45 = vadd.f32 %v4226_v54, %v1445_v4  ;;  %vm1448_vm6 = vweird.f32 %v4226_v54  ;;  %v1459_v40 = vsub.f32 1.0, %v1458_v23 }
 0x179   : > { %3285 = vrcp.f32 %v4317_v14  ;;  %v1454_v26 = vor.u32 1.1754944e-38, %v1453_v11  ;;  %v1466_v43 = vand.u32 2147483647, %v4195_v59  ;;  %v1473_v48 = vmul.f32 %v4323_v16, %v4248_v12 }
 0x17a   : > { %v4314_v22 = vpop.f32.mrf.mxu2  ;;  %v4366_v10 = vadd.f32 1.0, %v3282_v63  ;;  %v4370_v4 = vmul.f32 %v1410_v1, %v3826_v36  ;;  %vm1433_vm7 = vweird.f32 %v4252_v51  ;;  %vm1447_vm8 = vweird.f32 %v4130_v27 }
 0x17b   : > { %v4319_v39 = vpop.f32.mrf.mxu3  ;;  %v4321_v31 = vpop.f32.mrf.mxu0  ;;  %v2910_v23 = vor.u32 %v3119_v50, %v2907_v56  ;;  %v1425_v11 = vsel %vm4325_vm2, %v1424_v30, %v1420_v0  ;;  %v4380_v5 = vadd.f32 %v4252_v51, %v1430_v13  ;;  %vm4384_vm9 = vmor %vm1447_vm8, %vm1448_vm6  ;;  %vm1462_vm10 = vweird.f32 %v4195_v59 }
 0x17c   : > { %v4331_v62 = vpop.f32.mrf.mxu1  ;;  %v4389_v36 = vor.u32 1.1754944e-38, %v1468_v8  ;;  %v2974_v27 = vor.u32 %v3135_v28, %v2971_v21  ;;  %v1450_v38 = vsel %vm4384_vm9, %v4226_v54, %v1446_v45  ;;  %v1460_v30 = vmul.f32 %v4277_v9, %v1459_v40  ;;  %vm4410_vm11 = vmor %vm1432_vm3, %vm1433_vm7 }
 0x17d   : > { %v1027_v0 = vadd.f32 %v4119_v42, %v4111_v33  ;;  %2181 = vmatpush.bf16.msra.mxu2 %v2910_v23  ;;  %v1125_v13 = vadd.f32 %v4176_v41, %v4162_v47  ;;  %v1474_v8 = vsub.f32 1.0, %v1473_v48  ;;  %v1029_v28 = vadd.f32 %v4197_v55, %v4178_v25 }
 0x17e   : > { %v4399_v49 = vpop.eup %3283  ;;  %2230 = vmatpush.bf16.msra.mxu3 %v2974_v27  ;;  %v2906_v21 = vor.u32 %v3120_v17, %v2905_v53  ;;  %v2970_v54 = vor.u32 %v3136_v6, %v2969_v18  ;;  %v1780_v33 = vmul.f32 %v1425_v11, %v3829_v37  ;;  %v1483_v47 = vand.u32 2147483648, %v4248_v12  ;;  %v5255_v27 = vld [vmem:[#allocation15_spill] sm:$0xff] }
 0x17f   : > { %v4403_v40 = vpop.eup %3285  ;;  %3287 = vrcp.f32 %v4366_v10  ;;  %v1127_v6 = vadd.f32 %v4257_v7, %v4250_v58  ;;  %v1435_v37 = vsel %vm4410_vm11, %v4252_v51, %v4380_v5  ;;  %v1455_v17 = vsel %vm4346_vm5, %v1454_v26, %v1450_v38 }
 0x180   : > { %vm1463_vm12 = vweird.f32 %v4277_v9  ;;  %vm1477_vm13 = vweird.f32 %v4248_v12  ;;  %v1806_v18 = vmul.f32 %v4167_v24, %v1029_v28  ;;  %2083 = vmatpush.bf16.msra.mxu0 %v2906_v21  ;;  %2132 = vmatpush.bf16.msra.mxu1 %v2970_v54  ;;  %v1503_v41 = vmul.f32 %v4399_v49, %v4312_v19  ;;  %v5259_v24 = vld [vmem:[#allocation8_spill] sm:$0xff] }
 0x181   : > { %v1804_v25 = vmul.f32 %v4079_v57, %v1027_v0  ;;  %v1805_v55 = vmul.f32 %v4158_v61, %v1125_v13  ;;  %v1807_v5 = vmul.f32 %v4262_v52, %v1127_v6  ;;  %v5246_v58 = vand.u32 2147483647, %v4155_v20  ;;  %vm4465_vm1 = vmor %vm1462_vm10, %vm1463_vm12 }
 0x182   : > { %v1082_v1 = vpop.f32.mrf.mxu2  ;;  %v1461_v7 = vadd.f32 %v4277_v9, %v1460_v30  ;;  %vm4439_vm15 = vcmp.eq.f32.partialorder %v1466_v43, 8.507059e+37  ;;  %v1475_v53 = vmul.f32 %v4323_v16, %v1474_v8  ;;  %vm1478_vm0 = vweird.f32 %v4323_v16 }
 0x183   : > { %v1131_v50 = vpop.f32.mrf.mxu3  ;;  %v987_v56 = vpop.f32.mrf.mxu0  ;;  %vm4434_vm14 = vcmp.eq.f32.partialorder %v5246_v58, 8.507059e+37  ;;  %v1488_v57 = vmul.f32 %v4403_v40, %v4317_v14  ;;  %v4449_v20 = vadd.f32 %v3872_v35, %v3870_v32  ;;  %v1868_v61 = vpack.c.bf16 %v1806_v18, %v1804_v25  ;;  %v5253_v35 = vld [vmem:[#allocation16_spill] sm:$0xff]  ;;  %vm4500_vm2 = vmor %vm1477_vm13, %vm1478_vm0 }
 0x184   : > { %v1036_v45 = vpop.f32.mrf.mxu1  ;;  %v1869_v52 = vpack.c.bf16 %v1807_v5, %v1805_v55  ;;  %v1032_v60 = vadd.f32 %v4268_v29, %v4259_v2  ;;  %v1782_v26 = vmul.f32 %v1455_v17, %v3840_v34  ;;  %v2887_v43 = vmul.f32 -1.442695, %v3881_v46  ;;  %v5254_v29 = vld [vmem:[#allocation14_spill] sm:$0xff] }
 0x185   : > { %v1130_v48 = vadd.f32 %v4319_v39, %v4314_v22  ;;  %v1034_v23 = vadd.f32 %v4331_v62, %v4321_v31  ;;  %v4459_v63 = vpop.eup %3287  ;;  %v1504_v34 = vsub.f32 1.0, %v1503_v41  ;;  %v2888_v2 = vmul.f32 -1.442695, %v5253_v35  ;;  %2084 = vmatmul.bf16.vlgmr.msra.gmra.mxu0 %v1868_v61  ;;  %2182 = vmatmul.bf16.vlgmr.msra.gmra.mxu2 %v1868_v61 }
 0x186   : > { %v4472_v39 = vadd.f32 %v5255_v27, %v5254_v29  ;;  %v1132_v31 = vadd.f32 %v1131_v50, %v1082_v1  ;;  %v1465_v59 = vsel %vm4465_vm1, %v4277_v9, %v1461_v7  ;;  %v1476_v38 = vadd.f32 %v4323_v16, %v1475_v53  ;;  %2133 = vmatmul.bf16.vlgmr.msra.gmra.mxu1 %v1869_v52 }
 0x187   : > { %v1489_v30 = vsub.f32 1.0, %v1488_v57  ;;  %2231 = vmatmul.bf16.vlgmr.msra.gmra.mxu3 %v1869_v52  ;;  %v1037_v0 = vadd.f32 %v1036_v45, %v987_v56  ;;  %v2889_v8 = vmul.f32 -1.442695, %v4449_v20  ;;  %v1808_v28 = vmul.f32 %v4291_v3, %v1032_v60  ;;  %v5260_v57 = vld [vmem:[#allocation9_spill] sm:$0xff] }
 0x188   : > { %v1810_v21 = vmul.f32 %v4297_v15, %v1034_v23  ;;  %v1811_v1 = vmul.f32 %v4370_v4, %v1132_v31  ;;  %v1518_v50 = vmul.f32 %v4459_v63, %v4366_v10  ;;  %3289 = vpow2.f32 %v2887_v43  ;;  %v5256_v4 = vld [vmem:[#allocation35_spill] sm:$0xff] }
 0x189   : > { %v1809_v9 = vmul.f32 %v4294_v44, %v1130_v48  ;;  %v1505_v42 = vmul.f32 %v4399_v49, %v1504_v34  ;;  %3291 = vpow2.f32 %v2888_v2  ;;  %v2890_v56 = vmul.f32 -1.442695, %v4472_v39 }
 0x18a   : > { %v1085_v11 = vpop.f32.mrf.mxu2  ;;  %v1870_v45 = vpack.c.bf16 %v1810_v21, %v1808_v28  ;;  %v1481_v6 = vand.u32 2147483647, %v4248_v12  ;;  %v1812_v3 = vmul.f32 %v1780_v33, %v1037_v0  ;;  %v1440_v18 = vsel %vm4434_vm14, %v5256_v4, %v1435_v37  ;;  %v5267_v4 = vld [vmem:[#allocation12_spill] sm:$0xff] }
 0x18b   : > { %v1134_v22 = vpop.f32.mrf.mxu3  ;;  %v989_v62 = vpop.f32.mrf.mxu0  ;;  %v4488_v17 = vpack.c.bf16 %v1811_v1, %v1809_v9  ;;  %v1470_v44 = vsel %vm4439_vm15, %v4389_v36, %v1465_v59  ;;  %v1484_v33 = vor.u32 1.1754944e-38, %v1483_v47  ;;  %3293 = vpow2.f32 %v2889_v8  ;;  %v5264_v8 = vld [vmem:[#allocation19_spill] sm:$0xff] }
 0x18c   : > { %v1038_v13 = vpop.f32.mrf.mxu1  ;;  %v1480_v37 = vsel %vm4500_vm2, %v4323_v16, %v1476_v38  ;;  %v1519_v25 = vsub.f32 1.0, %v1518_v50  ;;  %v1135_v55 = vadd.f32 %v1134_v22, %v1085_v11  ;;  %v1490_v58 = vmul.f32 %v4403_v40, %v1489_v30  ;;  %v5263_v30 = vld [vmem:[#allocation10_spill] sm:$0xff] }
 0x18d   : > { %v1039_v54 = vadd.f32 %v1038_v13, %v989_v62  ;;  %v1506_v51 = vadd.f32 %v4399_v49, %v1505_v42  ;;  %vm1508_vm3 = vweird.f32 %v4399_v49  ;;  %3295 = vpow2.f32 %v2890_v56 }
 0x18e   : > { %v3290_v47 = vpop.eup %3289  ;;  %v1781_v53 = vmul.f32 %v1440_v18, %v5259_v24  ;;  %v1783_v61 = vmul.f32 %v1470_v44, %v5260_v57  ;;  %v1513_v16 = vand.u32 2147483648, %v4312_v19  ;;  %vm1482_vm4 = vcmp.eq.f32.partialorder %v1481_v6, 8.507059e+37  ;;  %v5271_v44 = vld [vmem:[#allocation18_spill] sm:$0xff] }
 0x18f   : > { %v1814_v15 = vmul.f32 %v1782_v26, %v1039_v54  ;;  %v3292_v26 = vpop.eup %3291  ;;  %vm1492_vm5 = vweird.f32 %v4317_v14  ;;  %vm1507_vm6 = vweird.f32 %v4312_v19  ;;  %v1511_v43 = vand.u32 2147483647, %v4312_v19 }
 0x190   : > { %v1485_v48 = vsel %vm1482_vm4, %v1484_v33, %v1480_v37  ;;  %vm4522_vm7 = vmor %vm1507_vm6, %vm1508_vm3  ;;  %v1520_v11 = vmul.f32 %v4459_v63, %v1519_v25  ;;  %v1813_v32 = vmul.f32 %v1781_v53, %v1135_v55  ;;  %v1491_v29 = vadd.f32 %v4403_v40, %v1490_v58  ;;  %v5272_v25 = vld [vmem:[#allocation21_spill] sm:$0xff]  ;;  %v5273_v55 = vld [vmem:[#allocation22_spill] sm:$0xff] }
 0x191   : > { %v4509_v36 = vpack.c.bf16 %v1814_v15, %v1812_v3  ;;  %v3294_v2 = vpop.eup %3293  ;;  %vm1493_vm8 = vweird.f32 %v4403_v40  ;;  %v1510_v19 = vsel %vm4522_vm7, %v4399_v49, %v1506_v51  ;;  %v4532_v27 = vadd.f32 1.0, %v3290_v47  ;;  %v5274_v47 = vld [vmem:[#allocation20_spill] sm:$0xff] }
 0x192   : > { %v1087_v5 = vpop.f32.mrf.mxu2  ;;  %v1496_v31 = vand.u32 2147483647, %v4317_v14  ;;  %v1514_v22 = vor.u32 1.1754944e-38, %v1513_v16  ;;  %v4535_v62 = vadd.f32 1.0, %v3292_v26  ;;  %v1784_v0 = vmul.f32 %v1485_v48, %v5263_v30  ;;  %vm4544_vm10 = vmor %vm1492_vm5, %vm1493_vm8 }
 0x193   : > { %v1136_v7 = vpop.f32.mrf.mxu3  ;;  %v992_v12 = vpop.f32.mrf.mxu0  ;;  %v1498_v13 = vand.u32 2147483648, %v4317_v14  ;;  %vm1512_vm9 = vcmp.eq.f32.partialorder %v1511_v43, 8.507059e+37  ;;  %v2891_v28 = vmul.f32 -1.442695, %v5264_v8  ;;  %v1521_v1 = vadd.f32 %v4459_v63, %v1520_v11  ;;  %v5275_v43 = vld [vmem:[#allocation11_spill] sm:$0xff] }
 0x194   : > { %v1137_v52 = vadd.f32 %v1136_v7, %v1087_v5  ;;  %v1041_v60 = vpop.f32.mrf.mxu1  ;;  %v3296_v38 = vpop.eup %3295  ;;  %v1515_v21 = vsel %vm1512_vm9, %v1514_v22, %v1510_v19  ;;  %vm1523_vm11 = vweird.f32 %v4459_v63  ;;  %v4550_v50 = vadd.f32 1.0, %v3294_v2 }
 0x195   : > { %v1495_v9 = vsel %vm4544_vm10, %v4403_v40, %v1491_v29  ;;  %v1528_v54 = vand.u32 2147483648, %v4366_v10  ;;  %3297 = vrcp.f32 %v4532_v27  ;;  %2089 = vmatmul.bf16.gmra.mxu0 %v1870_v45  ;;  %2187 = vmatmul.bf16.gmra.mxu2 %v1870_v45  ;;  %v1042_v14 = vadd.f32 %v1041_v60, %v992_v12 }
 0x196   : > { %v1815_v34 = vmul.f32 %v1783_v61, %v1137_v52  ;;  %vm1522_vm12 = vweird.f32 %v4366_v10  ;;  %v1526_v6 = vand.u32 2147483647, %v4366_v10  ;;  %3299 = vrcp.f32 %v4535_v62  ;;  %2138 = vmatmul.bf16.gmra.mxu1 %v4488_v17  ;;  %v5270_v10 = vld [vmem:[#allocation17_spill] sm:$0xff] }
 0x197   : > { %v4560_v3 = vadd.f32 1.0, %v3296_v38  ;;  %2236 = vmatmul.bf16.gmra.mxu3 %v4488_v17  ;;  %v1786_v18 = vmul.f32 %v1515_v21, %v5267_v4  ;;  %vm4567_vm13 = vmor %vm1522_vm12, %vm1523_vm11  ;;  %3301 = vpow2.f32 %v2891_v28  ;;  %v4573_v41 = vadd.f32 %v5271_v44, %v5270_v10 }
 0x198   : > { %v4537_v59 = vpack.c.bf16 %v1815_v34, %v1813_v32  ;;  %v1499_v37 = vor.u32 1.1754944e-38, %v1498_v13  ;;  %v1525_v17 = vsel %vm4567_vm13, %v4459_v63, %v1521_v1  ;;  %3303 = vrcp.f32 %v4550_v50  ;;  %v5276_v34 = vld [vmem:[#allocation13_spill] sm:$0xff] }
 0x199   : > { %v4581_v5 = vadd.f32 %v5273_v55, %v5272_v25  ;;  %vm1497_vm14 = vcmp.eq.f32.partialorder %v1496_v31, 8.507059e+37  ;;  %v1529_v58 = vor.u32 1.1754944e-38, %v1528_v54  ;;  %v1816_v51 = vmul.f32 %v1784_v0, %v1042_v14 }
 0x19a   : > { %v1090_v42 = vpop.f32.mrf.mxu2  ;;  %v1500_v12 = vsel %vm1497_vm14, %v1499_v37, %v1495_v9  ;;  %vm1527_vm15 = vcmp.eq.f32.partialorder %v1526_v6, 8.507059e+37  ;;  %3305 = vrcp.f32 %v4560_v3  ;;  %v2892_v24 = vmul.f32 -1.442695, %v5274_v47  ;;  %v5278_v37 = vld [vmem:[#allocation24_spill] sm:$0xff] }
 0x19b   : > { %v1139_v56 = vpop.f32.mrf.mxu3  ;;  %v994_v40 = vpop.f32.mrf.mxu0  ;;  %v1530_v57 = vsel %vm1527_vm15, %v1529_v58, %v1525_v17  ;;  %v2893_v63 = vmul.f32 -1.442695, %v4573_v41  ;;  %v2894_v52 = vmul.f32 -1.442695, %v4581_v5  ;;  %v1785_v48 = vmul.f32 %v1500_v12, %v5275_v43 }
 0x19c   : > { %v1043_v15 = vpop.f32.mrf.mxu1  ;;  %v4585_v53 = vpop.eup %3297  ;;  %v1140_v60 = vadd.f32 %v1139_v56, %v1090_v42  ;;  %v1787_v2 = vmul.f32 %v1530_v57, %v5276_v34  ;;  %3307 = vpow2.f32 %v2892_v24  ;;  %v1541_v56 = vand.u32 2147483647, %v4532_v27 }
 0x19d   : > { %v1044_v33 = vadd.f32 %v1043_v15, %v994_v40  ;;  %v4590_v16 = vpop.eup %3299  ;;  %v1533_v29 = vmul.f32 %v4585_v53, %v4532_v27  ;;  %3309 = vpow2.f32 %v2893_v63  ;;  %vm1537_vm0 = vweird.f32 %v4532_v27 }
 0x19e   : > { %v3302_v26 = vpop.eup %3301  ;;  %v1548_v31 = vmul.f32 %v4590_v16, %v4535_v62  ;;  %3311 = vpow2.f32 %v2894_v52  ;;  %v1817_v38 = vmul.f32 %v1785_v48, %v1140_v60  ;;  %v1543_v45 = vand.u32 2147483648, %v4532_v27  ;;  %v5283_v60 = vld [vmem:[#allocation27_spill] sm:$0xff] }
 0x19f   : > { %v1818_v7 = vmul.f32 %v1786_v18, %v1044_v33  ;;  %v4594_v32 = vpop.eup %3303  ;;  %v4609_v49 = vadd.f32 1.0, %v3302_v26  ;;  %v1534_v21 = vsub.f32 1.0, %v1533_v29  ;;  %vm1552_vm1 = vweird.f32 %v4535_v62  ;;  %v5277_v33 = vld [vmem:[#allocation23_spill] sm:$0xff] }
 0x1a0   : > { %v4601_v22 = vpop.eup %3305  ;;  %v1563_v28 = vmul.f32 %v4594_v32, %v4550_v50  ;;  %v1549_v9 = vsub.f32 1.0, %v1548_v31  ;;  %v4634_v17 = vadd.f32 %v5278_v37, %v5277_v33  ;;  %v1556_v25 = vand.u32 2147483647, %v4535_v62 }
 0x1a1   : > { %v4588_v61 = vpack.c.bf16 %v1818_v7, %v1816_v51  ;;  %v1578_v54 = vmul.f32 %v4601_v22, %v4560_v3  ;;  %3313 = vrcp.f32 %v4609_v49  ;;  %v1535_v18 = vmul.f32 %v4585_v53, %v1534_v21  ;;  %v5279_v51 = vld [vmem:[#allocation25_spill] sm:$0xff]  ;;  %v5280_v7 = vld [vmem:[#allocation26_spill] sm:$0xff] }
 0x1a2   : > { %v1092_v23 = vpop.f32.mrf.mxu2  ;;  %v3308_v14 = vpop.eup %3307  ;;  %v1564_v6 = vsub.f32 1.0, %v1563_v28  ;;  %v1550_v10 = vmul.f32 %v4590_v16, %v1549_v9  ;;  %v1558_v55 = vand.u32 2147483648, %v4535_v62  ;;  %v4642_v12 = vadd.f32 %v5280_v7, %v5279_v51  ;;  %v5286_v28 = vld [vmem:[#allocation30_spill] sm:$0xff] }
 0x1a3   : > { %v1141_v11 = vpop.f32.mrf.mxu3  ;;  %v4603_v0 = vpop.f32.mrf.mxu0  ;;  %v4630_v44 = vadd.f32 1.0, %v3308_v14  ;;  %vm4644_vm2 = vcmp.eq.f32.partialorder %v1541_v56, 8.507059e+37  ;;  %vm1567_vm3 = vweird.f32 %v4550_v50  ;;  %v1571_v57 = vand.u32 2147483647, %v4550_v50 }
 0x1a4   : > { %v1142_v19 = vadd.f32 %v1141_v11, %v1092_v23  ;;  %v4605_v13 = vpop.f32.mrf.mxu1  ;;  %v3310_v42 = vpop.eup %3309  ;;  %v1565_v24 = vmul.f32 %v4594_v32, %v1564_v6  ;;  %v1536_v52 = vadd.f32 %v4585_v53, %v1535_v18  ;;  %vm1538_vm4 = vweird.f32 %v4585_v53 }
 0x1a5   : > { %2094 = vmatmul.bf16.gmra.mxu0 %v4509_v36  ;;  %2192 = vmatmul.bf16.gmra.mxu2 %v4509_v36  ;;  %v3312_v4 = vpop.eup %3311  ;;  %v1579_v36 = vsub.f32 1.0, %v1578_v54  ;;  %v4638_v58 = vadd.f32 1.0, %v3310_v42  ;;  %vm1553_vm5 = vweird.f32 %v4590_v16  ;;  %v2895_v26 = vmul.f32 -1.442695, %v5283_v60  ;;  %vm4673_vm6 = vmor %vm1537_vm0, %vm1538_vm4 }
 0x1a6   : > { %v1819_v30 = vmul.f32 %v1787_v2, %v1142_v19  ;;  %2143 = vmatmul.bf16.gmra.mxu1 %v4537_v59  ;;  %v4651_v63 = vadd.f32 1.0, %v3312_v4  ;;  %v1551_v11 = vadd.f32 %v4590_v16, %v1550_v10  ;;  %3315 = vrcp.f32 %v4630_v44  ;;  %vm4689_vm8 = vmor %vm1552_vm1, %vm1553_vm5 }
 0x1a7   : > { %2241 = vmatmul.bf16.gmra.mxu3 %v4537_v59  ;;  %v4661_v23 = vpop.eup %3313  ;;  %v1580_v34 = vmul.f32 %v4601_v22, %v1579_v36  ;;  %v2897_v2 = vmul.f32 -1.442695, %v4634_v17  ;;  %v1573_v29 = vand.u32 2147483648, %v4550_v50  ;;  %v1586_v19 = vand.u32 2147483647, %v4560_v3 }
 0x1a8   : > { %v4611_v1 = vpack.c.bf16 %v1819_v30, %v1817_v38  ;;  %3317 = vrcp.f32 %v4638_v58  ;;  %v2898_v31 = vmul.f32 -1.442695, %v4642_v12  ;;  %v1566_v30 = vadd.f32 %v4594_v32, %v1565_v24 }
 0x1a9   : > { %vm1568_vm7 = vweird.f32 %v4594_v32  ;;  %3319 = vrcp.f32 %v4651_v63  ;;  %v2896_v21 = vmul.f32 -1.442695, %v5286_v28  ;;  %vm1583_vm9 = vweird.f32 %v4601_v22 }
 0x1aa   : > { %v4619_v40 = vpop.f32.mrf.mxu2  ;;  %v1588_v14 = vand.u32 2147483648, %v4560_v3  ;;  %v1593_v42 = vmul.f32 %v4661_v23, %v4609_v49  ;;  %3321 = vpow2.f32 %v2895_v26  ;;  %v1540_v56 = vsel %vm4673_vm6, %v4585_v53, %v1536_v52  ;;  %vm4708_vm11 = vmor %vm1567_vm3, %vm1568_vm7 }
 0x1ab   : > { %v4621_v15 = vpop.f32.mrf.mxu3  ;;  %v4657_v43 = vpop.f32.mrf.mxu0  ;;  %v1555_v62 = vsel %vm4689_vm8, %v4590_v16, %v1551_v11  ;;  %v1581_v6 = vadd.f32 %v4601_v22, %v1580_v34  ;;  %3323 = vpow2.f32 %v2897_v2  ;;  %v1544_v4 = vor.u32 1.1754944e-38, %v1543_v45 }
 0x1ac   : > { %v4659_v48 = vpop.f32.mrf.mxu1  ;;  %vm1557_vm10 = vcmp.eq.f32.partialorder %v1556_v25, 8.507059e+37  ;;  %v1559_v18 = vor.u32 1.1754944e-38, %v1558_v55  ;;  %3325 = vpow2.f32 %v2898_v31  ;;  %v4712_v53 = vpop.eup %3315  ;;  %v1570_v16 = vsel %vm4708_vm11, %v4594_v32, %v1566_v30 }
 0x1ad   : > { %vm1582_vm12 = vweird.f32 %v4560_v3  ;;  %v1603_v45 = vand.u32 2147483648, %v4609_v49  ;;  %3327 = vpow2.f32 %v2896_v21  ;;  %v1545_v50 = vsel %vm4644_vm2, %v1544_v4, %v1540_v56  ;;  %v5295_v56 = vld [vmem:[#allocation28_spill] sm:$0xff] }
 0x1ae   : > { %v4719_v36 = vpop.eup %3317  ;;  %v1560_v33 = vsel %vm1557_vm10, %v1559_v18, %v1555_v62  ;;  %v1574_v37 = vor.u32 1.1754944e-38, %v1573_v29  ;;  %vm4725_vm13 = vmor %vm1582_vm12, %vm1583_vm9  ;;  %v1594_v55 = vsub.f32 1.0, %v1593_v42  ;;  %vm1572_vm14 = vcmp.eq.f32.partialorder %v1571_v57, 8.507059e+37  ;;  %v5296_v62 = vld [vmem:[#allocation29_spill] sm:$0xff] }
 0x1af   : > { %v4729_v32 = vpop.eup %3319  ;;  %v1585_v3 = vsel %vm4725_vm13, %v4601_v22, %v1581_v6  ;;  %vm4734_vm15 = vcmp.eq.f32.partialorder %v1586_v19, 8.507059e+37  ;;  %v1589_v7 = vor.u32 1.1754944e-38, %v1588_v14  ;;  %vm1597_vm0 = vweird.f32 %v4609_v49 }
 0x1b0   : > { %v3322_v59 = vpop.eup %3321  ;;  %v1575_v24 = vsel %vm1572_vm14, %v1574_v37, %v1570_v16  ;;  %v1601_v52 = vand.u32 2147483647, %v4609_v49  ;;  %v1608_v26 = vmul.f32 %v4712_v53, %v4630_v44  ;;  %v1788_v22 = vmul.f32 %v1545_v50, %v3881_v46  ;;  %v5297_v16 = vld [vmem:[#allocation31_spill] sm:$0xff] }
 0x1b1   : > { %v3324_v34 = vpop.eup %3323  ;;  %v1789_v2 = vmul.f32 %v1560_v33, %v5253_v35  ;;  %v4748_v29 = vor.u32 1.1754944e-38, %v1603_v45  ;;  %v1623_v19 = vmul.f32 %v4719_v36, %v4638_v58  ;;  %v1590_v21 = vsel %vm4734_vm15, %v1589_v7, %v1585_v3  ;;  %v5298_v45 = vld [vmem:[#allocation32_spill] sm:$0xff] }
 0x1b2   : > { %v4681_v9 = vpop.f32.mrf.mxu2  ;;  %v3326_v30 = vpop.eup %3325  ;;  %v1595_v46 = vmul.f32 %v4661_v23, %v1594_v55  ;;  %vm1598_vm1 = vweird.f32 %v4661_v23  ;;  %v1638_v35 = vmul.f32 %v4729_v32, %v4651_v63  ;;  %v1790_v27 = vmul.f32 %v1575_v24, %v4449_v20 }
 0x1b3   : > { %v4683_v54 = vpop.f32.mrf.mxu3  ;;  %v4742_v11 = vpop.f32.mrf.mxu0  ;;  %v1616_v14 = vand.u32 2147483647, %v4630_v44  ;;  %v4768_v42 = vadd.f32 1.0, %v3322_v59  ;;  %v4772_v6 = vadd.f32 %v5296_v62, %v5295_v56  ;;  %v1609_v4 = vsub.f32 1.0, %v1608_v26  ;;  %vm4809_vm3 = vmor %vm1597_vm0, %vm1598_vm1 }
 0x1b4   : > { %v4744_v57 = vpop.f32.mrf.mxu1  ;;  %v1618_v18 = vand.u32 2147483648, %v4630_v44  ;;  %v4775_v10 = vadd.f32 1.0, %v3324_v34  ;;  %v4779_v50 = vadd.f32 %v5298_v45, %v5297_v16  ;;  %v1624_v20 = vsub.f32 1.0, %v1623_v19 }
 0x1b5   : > { %2099 = vmatmul.bf16.gmra.mxu0 %v4588_v61  ;;  %2197 = vmatmul.bf16.gmra.mxu2 %v4588_v61  ;;  %v3328_v61 = vpop.eup %3327  ;;  %v4782_v33 = vadd.f32 1.0, %v3326_v30  ;;  %v1049_v37 = vadd.f32 %v4659_v48, %v4657_v43  ;;  %v1596_v25 = vadd.f32 %v4661_v23, %v1595_v46  ;;  %vm1612_vm2 = vweird.f32 %v4630_v44 }
 0x1b6   : > { %2148 = vmatmul.bf16.gmra.mxu1 %v4611_v1  ;;  %v1639_v55 = vsub.f32 1.0, %v1638_v35  ;;  %v4788_v3 = vadd.f32 1.0, %v3328_v61  ;;  %v1147_v51 = vadd.f32 %v4683_v54, %v4681_v9  ;;  %v1631_v7 = vand.u32 2147483647, %v4638_v58  ;;  %v5299_v54 = vld [vmem:[#allocation33_spill] sm:$0xff] }
 0x1b7   : > { %2246 = vmatmul.bf16.gmra.mxu3 %v4611_v1  ;;  %v1791_v1 = vmul.f32 %v1590_v21, %v4472_v39  ;;  %3329 = vrcp.f32 %v4768_v42  ;;  %v2901_v39 = vmul.f32 -1.442695, %v4772_v6  ;;  %v1047_v59 = vadd.f32 %v4605_v13, %v4603_v0 }
 0x1b8   : > { %v1610_v43 = vmul.f32 %v4712_v53, %v1609_v4  ;;  %3331 = vrcp.f32 %v4775_v10  ;;  %v2902_v48 = vmul.f32 -1.442695, %v4779_v50  ;;  %v1145_v24 = vadd.f32 %v4621_v15, %v4619_v40  ;;  %v5302_v40 = vld [vmem:[#allocation34_spill] sm:$0xff] }
 0x1b9   : > { %v1625_v9 = vmul.f32 %v4719_v36, %v1624_v20  ;;  %3333 = vrcp.f32 %v4782_v33  ;;  %v2899_v26 = vmul.f32 -1.442695, %v5299_v54  ;;  %v1822_v34 = vmul.f32 %v1790_v27, %v1049_v37 }
 0x1ba   : > { %v4754_v31 = vpop.f32.mrf.mxu2  ;;  %v1640_v13 = vmul.f32 %v4729_v32, %v1639_v55  ;;  %3335 = vrcp.f32 %v4788_v3  ;;  %v2900_v15 = vmul.f32 -1.442695, %v5302_v40  ;;  %v1823_v19 = vmul.f32 %v1791_v1, %v1147_v51 }
 0x1bb   : > { %v4756_v38 = vpop.f32.mrf.mxu3  ;;  %v4816_v30 = vpop.f32.mrf.mxu0  ;;  %v1600_v46 = vsel %vm4809_vm3, %v4661_v23, %v1596_v25  ;;  %v1633_v35 = vand.u32 2147483648, %v4638_v58  ;;  %3337 = vpow2.f32 %v2901_v39  ;;  %v1820_v61 = vmul.f32 %v1788_v22, %v1047_v59 }
 0x1bc   : > { %v1053_v21 = vpop.f32.mrf.mxu1  ;;  %vm1613_vm4 = vweird.f32 %v4712_v53  ;;  %vm1628_vm5 = vweird.f32 %v4719_v36  ;;  %3339 = vpow2.f32 %v2902_v48  ;;  %v1821_v62 = vmul.f32 %v1789_v2, %v1145_v24 }
 0x1bd   : > { %v4826_v4 = vpop.eup %3329  ;;  %v1611_v16 = vadd.f32 %v4712_v53, %v1610_v43  ;;  %v1626_v45 = vadd.f32 %v4719_v36, %v1625_v9  ;;  %3341 = vpow2.f32 %v2899_v26  ;;  %v1876_v23 = vpack.c.bf16 %v1822_v34, %v1820_v61  ;;  %vm4842_vm8 = vmor %vm1612_vm2, %vm1613_vm4 }
 0x1be   : > { %v4830_v1 = vpop.eup %3331  ;;  %v1641_v22 = vadd.f32 %v4729_v32, %v1640_v13  ;;  %vm1643_vm6 = vweird.f32 %v4729_v32  ;;  %3343 = vpow2.f32 %v2900_v15  ;;  %v1877_v20 = vpack.c.bf16 %v1823_v19, %v1821_v62 }
 0x1bf   : > { %v4834_v37 = vpop.eup %3333  ;;  %vm1602_vm7 = vcmp.eq.f32.partialorder %v1601_v52, 8.507059e+37  ;;  %vm1627_vm9 = vweird.f32 %v4638_v58  ;;  %v1646_v25 = vand.u32 2147483647, %v4651_v63  ;;  %v1648_v55 = vand.u32 2147483648, %v4651_v63 }
 0x1c0   : > { %v4849_v51 = vpop.eup %3335  ;;  %v1605_v39 = vsel %vm1602_vm7, %v4748_v29, %v1600_v46  ;;  %vm4854_vm10 = vcmp.eq.f32.partialorder %v1616_v14, 8.507059e+37  ;;  %vm4860_vm11 = vmor %vm1627_vm9, %vm1628_vm5  ;;  %vm1642_vm12 = vweird.f32 %v4651_v63  ;;  %v1615_v59 = vsel %vm4842_vm8, %v4712_v53, %v1611_v16 }
 0x1c1   : > { %v3338_v58 = vpop.eup %3337  ;;  %v1619_v29 = vor.u32 1.1754944e-38, %v1618_v18  ;;  %v1630_v14 = vsel %vm4860_vm11, %v4719_v36, %v1626_v45  ;;  %vm4875_vm13 = vmor %vm1642_vm12, %vm1643_vm6  ;;  %v1683_v63 = vmul.f32 %v4830_v1, %v4775_v10  ;;  %vm1632_vm14 = vcmp.eq.f32.partialorder %v1631_v7, 8.507059e+37 }
 0x1c2   : > { %v4822_v27 = vpop.f32.mrf.mxu2  ;;  %v3340_v48 = vpop.eup %3339  ;;  %v1634_v53 = vor.u32 1.1754944e-38, %v1633_v35  ;;  %v1645_v44 = vsel %vm4875_vm13, %v4729_v32, %v1641_v22  ;;  %v1698_v36 = vmul.f32 %v4834_v37, %v4782_v33  ;;  %v1792_v24 = vmul.f32 %v1605_v39, %v5264_v8 }
 0x1c3   : > { %v1151_v56 = vpop.f32.mrf.mxu3  ;;  %v3342_v18 = vpop.eup %3341  ;;  %vm1647_vm15 = vcmp.eq.f32.partialorder %v1646_v25, 8.507059e+37  ;;  %v1649_v9 = vor.u32 1.1754944e-38, %v1648_v55  ;;  %v1653_v26 = vmul.f32 %v4826_v4, %v4768_v42  ;;  %v1620_v7 = vsel %vm4854_vm10, %v1619_v29, %v1615_v59 }
 0x1c4   : > { %v3344_v34 = vpop.eup %3343  ;;  %v1635_v0 = vsel %vm1632_vm14, %v1634_v53, %v1630_v14  ;;  %v1668_v32 = vmul.f32 %v4849_v51, %v4788_v3  ;;  %v4893_v13 = vadd.f32 1.0, %v3338_v58  ;;  %v4895_v15 = vpop.f32.mrf.mxu0  ;;  %v1684_v46 = vsub.f32 1.0, %v1683_v63 }
 0x1c5   : > { %2104 = vmatmul.bf16.gmra.mxu0 %v1876_v23  ;;  %2202 = vmatmul.bf16.gmra.mxu2 %v1876_v23  ;;  %v4897_v19 = vpop.f32.mrf.mxu1  ;;  %v1650_v8 = vsel %vm1647_vm15, %v1649_v9, %v1645_v44  ;;  %v4899_v35 = vadd.f32 1.0, %v3340_v48  ;;  %v1054_v61 = vadd.f32 %v1053_v21, %v4816_v30  ;;  %v1663_v45 = vand.u32 2147483648, %v4768_v42 }
 0x1c6   : > { %2153 = vmatmul.bf16.gmra.mxu1 %v1877_v20  ;;  %v1699_v23 = vsub.f32 1.0, %v1698_v36  ;;  %v4907_v22 = vadd.f32 1.0, %v3342_v18  ;;  %v1794_v2 = vmul.f32 %v1635_v0, %v4573_v41  ;;  %v1654_v25 = vsub.f32 1.0, %v1653_v26 }
 0x1c7   : > { %2251 = vmatmul.bf16.gmra.mxu3 %v1877_v20  ;;  %v1152_v20 = vadd.f32 %v1151_v56, %v4822_v27  ;;  %v4911_v55 = vadd.f32 1.0, %v3344_v34  ;;  %v1052_v39 = vadd.f32 %v4744_v57, %v4742_v11  ;;  %v1795_v30 = vmul.f32 %v1650_v8, %v4581_v5 }
 0x1c8   : > { %v1669_v21 = vsub.f32 1.0, %v1668_v32  ;;  %3345 = vrcp.f32 %v4893_v13  ;;  %v1150_v49 = vadd.f32 %v4756_v38, %v4754_v31  ;;  %v1661_v52 = vand.u32 2147483647, %v4768_v42 }
 0x1c9   : > { %v1685_v27 = vmul.f32 %v4830_v1, %v1684_v46  ;;  %3347 = vrcp.f32 %v4899_v35  ;;  %v1826_v41 = vmul.f32 %v1794_v2, %v1054_v61  ;;  %v1793_v56 = vmul.f32 %v1620_v7, %v5274_v47 }
 0x1ca   : > { %v4902_v62 = vpop.f32.mrf.mxu2  ;;  %v1700_v58 = vmul.f32 %v4834_v37, %v1699_v23  ;;  %3349 = vrcp.f32 %v4907_v22  ;;  %v1827_v5 = vmul.f32 %v1795_v30, %v1152_v20  ;;  %v1655_v11 = vmul.f32 %v4826_v4, %v1654_v25 }
 0x1cb   : > { %v4904_v16 = vpop.f32.mrf.mxu3  ;;  %3351 = vrcp.f32 %v4911_v55  ;;  %v1824_v57 = vmul.f32 %v1792_v24, %v1052_v39  ;;  %vm1657_vm0 = vweird.f32 %v4768_v42  ;;  %v1664_v31 = vor.u32 1.1754944e-38, %v1663_v45 }
 0x1cc   : > { %v1670_v38 = vmul.f32 %v4849_v51, %v1669_v21  ;;  %v1825_v59 = vmul.f32 %v1793_v56, %v1150_v49  ;;  %vm4929_vm1 = vcmp.eq.f32.partialorder %v1661_v52, 8.507059e+37  ;;  %v1686_v47 = vadd.f32 %v4830_v1, %v1685_v27  ;;  %v1009_v44 = vpop.f32.mrf.mxu0 }
 0x1cd   : > { %vm1687_vm2 = vweird.f32 %v4775_v10  ;;  %vm1688_vm3 = vweird.f32 %v4830_v1  ;;  %v1878_v14 = vpack.c.bf16 %v1826_v41, %v1824_v57  ;;  %v1693_v63 = vand.u32 2147483648, %v4775_v10  ;;  %v1058_v36 = vpop.f32.mrf.mxu1 }
 0x1ce   : > { %v4936_v43 = vpop.eup %3345  ;;  %v1701_v48 = vadd.f32 %v4834_v37, %v1700_v58  ;;  %vm1703_vm4 = vweird.f32 %v4834_v37  ;;  %v1879_v53 = vpack.c.bf16 %v1827_v5, %v1825_v59  ;;  %v1656_v24 = vadd.f32 %v4826_v4, %v1655_v11  ;;  %vm4955_vm7 = vmor %vm1687_vm2, %vm1688_vm3 }
 0x1cf   : > { %v4941_v18 = vpop.eup %3347  ;;  %vm1658_vm5 = vweird.f32 %v4826_v4  ;;  %v1691_v9 = vand.u32 2147483647, %v4775_v10  ;;  %v1708_v26 = vand.u32 2147483648, %v4782_v33  ;;  %v1671_v32 = vadd.f32 %v4849_v51, %v1670_v38  ;;  %v1841_v10 = vld [vmem:[#allocation2 + $0x68] sm:$0xff] }
 0x1d0   : > { %v4947_v0 = vpop.eup %3349  ;;  %vm1673_vm6 = vweird.f32 %v4849_v51  ;;  %vm1702_vm8 = vweird.f32 %v4782_v33  ;;  %v1706_v46 = vand.u32 2147483647, %v4782_v33  ;;  %vm1672_vm9 = vweird.f32 %v4788_v3  ;;  %vm4980_vm11 = vmor %vm1657_vm0, %vm1658_vm5 }
 0x1d1   : > { %v4961_v61 = vpop.eup %3351  ;;  %v1678_v45 = vand.u32 2147483648, %v4788_v3  ;;  %v1690_v23 = vsel %vm4955_vm7, %v4830_v1, %v1686_v47  ;;  %vm4970_vm10 = vmor %vm1702_vm8, %vm1703_vm4  ;;  %v1743_v20 = vmul.f32 %v4936_v43, %v4893_v13  ;;  %v1676_v1 = vand.u32 2147483647, %v4788_v3 }
 0x1d2   : > { %v1107_v34 = vpop.f32.mrf.mxu2  ;;  %v1694_v2 = vor.u32 1.1754944e-38, %v1693_v63  ;;  %v1705_v25 = vsel %vm4970_vm10, %v4834_v37, %v1701_v48  ;;  %v1758_v39 = vmul.f32 %v4941_v18, %v4899_v35  ;;  %v1660_v42 = vsel %vm4980_vm11, %v4826_v4, %v1656_v24  ;;  %vm4997_vm12 = vmor %vm1672_vm9, %vm1673_vm6 }
 0x1d3   : > { %v1156_v7 = vpop.f32.mrf.mxu3  ;;  %vm1692_vm13 = vcmp.eq.f32.partialorder %v1691_v9, 8.507059e+37  ;;  %v1709_v21 = vor.u32 1.1754944e-38, %v1708_v26  ;;  %v1713_v37 = vmul.f32 %v4947_v0, %v4907_v22  ;;  %v1675_v49 = vsel %vm4997_vm12, %v4849_v51, %v1671_v32 }
 0x1d4   : > { %v1695_v52 = vsel %vm1692_vm13, %v1694_v2, %v1690_v23  ;;  %vm1707_vm14 = vcmp.eq.f32.partialorder %v1706_v46, 8.507059e+37  ;;  %v1728_v4 = vmul.f32 %v4961_v61, %v4911_v55  ;;  %v1679_v27 = vor.u32 1.1754944e-38, %v1678_v45  ;;  %v5016_v48 = vpop.f32.mrf.mxu0 }
 0x1d5   : > { %2109 = vmatmul.bf16.gmra.mxu0 %v1878_v14  ;;  %2207 = vmatmul.bf16.gmra.mxu2 %v1878_v14  ;;  %v1710_v3 = vsel %vm1707_vm14, %v1709_v21, %v1705_v25  ;;  %v1744_v41 = vsub.f32 1.0, %v1743_v20  ;;  %v1059_v56 = vadd.f32 %v1058_v36, %v1009_v44  ;;  %v1665_v58 = vsel %vm4929_vm1, %v1664_v31, %v1660_v42  ;;  %v5018_v29 = vpop.f32.mrf.mxu1 }
 0x1d6   : > { %2158 = vmatmul.bf16.gmra.mxu1 %v1879_v53  ;;  %vm1677_vm15 = vcmp.eq.f32.partialorder %v1676_v1, 8.507059e+37  ;;  %v1759_v5 = vsub.f32 1.0, %v1758_v39  ;;  %v1157_v11 = vadd.f32 %v1156_v7, %v1107_v34  ;;  %v1798_v38 = vmul.f32 %v1695_v52, %v4634_v17 }
 0x1d7   : > { %2256 = vmatmul.bf16.gmra.mxu3 %v1879_v53  ;;  %v1680_v57 = vsel %vm1677_vm15, %v1679_v27, %v1675_v49  ;;  %v1714_v59 = vsub.f32 1.0, %v1713_v37  ;;  %v1057_v51 = vadd.f32 %v4897_v19, %v4895_v15  ;;  %v1799_v47 = vmul.f32 %v1710_v3, %v4642_v12 }
 0x1d8   : > { %v1729_v14 = vsub.f32 1.0, %v1728_v4  ;;  %v1155_v63 = vadd.f32 %v4904_v16, %v4902_v62  ;;  %v1796_v31 = vmul.f32 %v1665_v58, %v5283_v60  ;;  %v1745_v53 = vmul.f32 %v4936_v43, %v1744_v41 }
 0x1d9   : > { %v1830_v44 = vmul.f32 %v1798_v38, %v1059_v56  ;;  %v1797_v15 = vmul.f32 %v1680_v57, %v5286_v28  ;;  %v1760_v12 = vmul.f32 %v4941_v18, %v1759_v5  ;;  %v1831_v19 = vmul.f32 %v1799_v47, %v1157_v11 }
 0x1da   : > { %v5022_v17 = vpop.f32.mrf.mxu2  ;;  %v1715_v62 = vmul.f32 %v4947_v0, %v1714_v59  ;;  %v1828_v16 = vmul.f32 %v1796_v31, %v1057_v51  ;;  %vm1717_vm0 = vweird.f32 %v4907_v22  ;;  %v1723_v24 = vand.u32 2147483648, %v4907_v22 }
 0x1db   : > { %v5024_v36 = vpop.f32.mrf.mxu3  ;;  %v1730_v60 = vmul.f32 %v4961_v61, %v1729_v14  ;;  %v1829_v9 = vmul.f32 %v1797_v15, %v1155_v63  ;;  %vm1718_vm1 = vweird.f32 %v4947_v0  ;;  %v1746_v26 = vadd.f32 %v4936_v43, %v1745_v53 }
 0x1dc   : > { %vm1748_vm2 = vweird.f32 %v4936_v43  ;;  %v1880_v28 = vpack.c.bf16 %v1830_v44, %v1828_v16  ;;  %v1753_v34 = vand.u32 2147483648, %v4893_v13  ;;  %v1761_v7 = vadd.f32 %v4941_v18, %v1760_v12  ;;  %vm5063_vm9 = vmor %vm1717_vm0, %vm1718_vm1  ;;  %v1014_v42 = vpop.f32.mrf.mxu0  ;;  %v1838_v12 = vld [vmem:[#allocation2 + $0xd8] sm:$0xff] }
 0x1dd   : > { %vm1763_vm3 = vweird.f32 %v4941_v18  ;;  %v1881_v32 = vpack.c.bf16 %v1831_v19, %v1829_v9  ;;  %v1716_v8 = vadd.f32 %v4947_v0, %v1715_v62  ;;  %vm1747_vm4 = vweird.f32 %v4893_v13  ;;  %v1063_v30 = vpop.f32.mrf.mxu1  ;;  %v1839_v9 = vld [vmem:[#allocation2 + $0x18] sm:$0xff] }
 0x1de   : > { %v1751_v46 = vand.u32 2147483647, %v4893_v13  ;;  %v1768_v45 = vand.u32 2147483648, %v4899_v35  ;;  %v1731_v23 = vadd.f32 %v4961_v61, %v1730_v60  ;;  %vm1733_vm5 = vweird.f32 %v4961_v61  ;;  %vm5044_vm6 = vmor %vm1747_vm4, %vm1748_vm2 }
 0x1df   : > { %vm1762_vm7 = vweird.f32 %v4899_v35  ;;  %v1766_v20 = vand.u32 2147483647, %v4899_v35  ;;  %v1721_v33 = vand.u32 2147483647, %v4907_v22  ;;  %v1738_v1 = vand.u32 2147483648, %v4911_v55 }
 0x1e0   : > { %v1750_v13 = vsel %vm5044_vm6, %v4936_v43, %v1746_v26  ;;  %vm5055_vm8 = vmor %vm1762_vm7, %vm1763_vm3  ;;  %vm1732_vm10 = vweird.f32 %v4911_v55  ;;  %v1736_v25 = vand.u32 2147483647, %v4911_v55  ;;  %v1754_v39 = vor.u32 1.1754944e-38, %v1753_v34 }
 0x1e1   : > { %v1765_v43 = vsel %vm5055_vm8, %v4941_v18, %v1761_v7  ;;  %v1720_v22 = vsel %vm5063_vm9, %v4947_v0, %v1716_v8  ;;  %vm5077_vm11 = vmor %vm1732_vm10, %vm1733_vm5  ;;  %vm1752_vm12 = vcmp.eq.f32.partialorder %v1751_v46, 8.507059e+37  ;;  %v1769_v55 = vor.u32 1.1754944e-38, %v1768_v45  ;;  %v1840_v7 = vld [vmem:[#allocation2 + $0x50] sm:$0xff] }
 0x1e2   : > { %v1112_v37 = vpop.f32.mrf.mxu2  ;;  %v1724_v52 = vor.u32 1.1754944e-38, %v1723_v24  ;;  %v1735_v18 = vsel %vm5077_vm11, %v4961_v61, %v1731_v23  ;;  %v1755_v4 = vsel %vm1752_vm12, %v1754_v39, %v1750_v13  ;;  %vm1767_vm13 = vcmp.eq.f32.partialorder %v1766_v20, 8.507059e+37  ;;  %v1842_v13 = vld [vmem:[#allocation2 + $0x30] sm:$0xff] }
 0x1e3   : > { %v1161_v49 = vpop.f32.mrf.mxu3  ;;  %vm1722_vm14 = vcmp.eq.f32.partialorder %v1721_v33, 8.507059e+37  ;;  %v1739_v27 = vor.u32 1.1754944e-38, %v1738_v1  ;;  %v1770_v0 = vsel %vm1767_vm13, %v1769_v55, %v1765_v43  ;;  %v1064_v3 = vadd.f32 %v1063_v30, %v1014_v42  ;;  %v1843_v42 = vld [vmem:[#allocation2 + $0x48] sm:$0xff]  ;;  %v1844_v55 = vld [vmem:[#allocation2 + $0x80] sm:$0xff] }
 0x1e4   : > { %v1725_v41 = vsel %vm1722_vm14, %v1724_v52, %v1720_v22  ;;  %vm1737_vm15 = vcmp.eq.f32.partialorder %v1736_v25, 8.507059e+37  ;;  %v1162_v56 = vadd.f32 %v1161_v49, %v1112_v37  ;;  %v1802_v5 = vmul.f32 %v1755_v4, %v4772_v6 }
 0x1e5   : > { %2114 = vmatmul.bf16.gmra.mxu0 %v1880_v28  ;;  %2212 = vmatmul.bf16.gmra.mxu2 %v1880_v28  ;;  %v1740_v58 = vsel %vm1737_vm15, %v1739_v27, %v1735_v18  ;;  %v1062_v11 = vadd.f32 %v5018_v29, %v5016_v48  ;;  %v1803_v57 = vmul.f32 %v1770_v0, %v4779_v50  ;;  %v1836_v48 = vld [vmem:[#allocation2 + $0xb0] sm:$0xff]  ;;  %v1845_v27 = vld [vmem:[#allocation2 + $0x88] sm:$0xff] }
 0x1e6   : > { %2163 = vmatmul.bf16.gmra.mxu1 %v1881_v32  ;;  %v1160_v61 = vadd.f32 %v5024_v36, %v5022_v17  ;;  %v1800_v38 = vmul.f32 %v1725_v41, %v5299_v54  ;;  %v1834_v59 = vmul.f32 %v1802_v5, %v1064_v3  ;;  %v1801_v51 = vmul.f32 %v1740_v58, %v5302_v40  ;;  %v1837_v54 = vld [vmem:[#allocation2] sm:$0xff] }
 0x1e7   : > { %2261 = vmatmul.bf16.gmra.mxu3 %v1881_v32  ;;  %v1835_v47 = vmul.f32 %v1803_v57, %v1162_v56  ;;  %v1846_v56 = vld [vmem:[#allocation2 + $0xe8] sm:$0xff] }
 0x1e8   : > { %v1832_v14 = vmul.f32 %v1800_v38, %v1062_v11  ;;  %v1833_v63 = vmul.f32 %v1801_v51, %v1160_v61  ;;  %v1847_v38 = vld [vmem:[#allocation2 + $0xb8] sm:$0xff] }
 0x1ea   : > { %v1882_v31 = vpack.c.bf16 %v1834_v59, %v1832_v14  ;;  %v1883_v53 = vpack.c.bf16 %v1835_v47, %v1833_v63  ;;  %v1848_v14 = vld [vmem:[#allocation2 + $0x60] sm:$0xff] }
 0x1f5   : > { %2119 = vmatmul.bf16.gmra.mxu0 %v1882_v31  ;;  %2217 = vmatmul.bf16.gmra.mxu2 %v1882_v31 }
 0x1f6   : > { %2168 = vmatmul.bf16.gmra.mxu1 %v1883_v53 }
 0x1f7   : > { %2266 = vmatmul.bf16.gmra.mxu3 %v1883_v53 }
 0x202   : > { %v2085_v6 = vpop.f32.mrf.mxu0 }
 0x203   : > { %v2134_v50 = vpop.f32.mrf.mxu1 }
 0x204   : > { %v2135_v29 = vadd.f32 %v2134_v50, %v2085_v6  ;;  %v1849_v50 = vld [vmem:[#allocation2 + $0xf0] sm:$0xff] }
 0x206   : > { %v2272_v44 = vadd.f32 %v2135_v29, %v1836_v48 }
 0x208   : > { %2304 = vst [vmem:[#allocation2 + $0xb0] sm:$0xff] %v2272_v44  ;;  %v2183_v17 = vpop.f32.mrf.mxu2 }
 0x20a   : > { %v2232_v36 = vpop.f32.mrf.mxu3  ;;  %v2087_v15 = vpop.f32.mrf.mxu0 }
 0x20b   : > { %v2233_v40 = vadd.f32 %v2232_v36, %v2183_v17  ;;  %v2136_v19 = vpop.f32.mrf.mxu1 }
 0x20c   : > { %v2137_v16 = vadd.f32 %v2136_v19, %v2087_v15 }
 0x20d   : > { %v2273_v62 = vadd.f32 %v2233_v40, %v1837_v54  ;;  %v1850_v54 = vld [vmem:[#allocation2 + $0x8] sm:$0xff] }
 0x20e   : > { %v2274_v24 = vadd.f32 %v2137_v16, %v1838_v12 }
 0x20f   : > { %2305 = vst [vmem:[#allocation2] sm:$0xff] %v2273_v62  ;;  %v1851_v62 = vld [vmem:[#allocation2 + $0x78] sm:$0xff] }
 0x210   : > { %2306 = vst [vmem:[#allocation2 + $0xd8] sm:$0xff] %v2274_v24  ;;  %v2185_v60 = vpop.f32.mrf.mxu2 }
 0x212   : > { %v2234_v26 = vpop.f32.mrf.mxu3  ;;  %v2090_v28 = vpop.f32.mrf.mxu0 }
 0x213   : > { %v2235_v34 = vadd.f32 %v2234_v26, %v2185_v60  ;;  %v2139_v32 = vpop.f32.mrf.mxu1 }
 0x214   : > { %v2140_v46 = vadd.f32 %v2139_v32, %v2090_v28 }
 0x215   : > { %v2275_v8 = vadd.f32 %v2235_v34, %v1839_v9  ;;  %v1852_v9 = vld [vmem:[#allocation2 + $0x38] sm:$0xff] }
 0x216   : > { %v2276_v45 = vadd.f32 %v2140_v46, %v1840_v7 }
 0x217   : > { %2307 = vst [vmem:[#allocation2 + $0x18] sm:$0xff] %v2275_v8  ;;  %v1853_v8 = vld [vmem:[#allocation2 + $0x58] sm:$0xff] }
 0x218   : > { %2308 = vst [vmem:[#allocation2 + $0x50] sm:$0xff] %v2276_v45  ;;  %v2188_v23 = vpop.f32.mrf.mxu2 }
 0x21a   : > { %v2237_v20 = vpop.f32.mrf.mxu3  ;;  %v2092_v33 = vpop.f32.mrf.mxu0 }
 0x21b   : > { %v2238_v1 = vadd.f32 %v2237_v20, %v2188_v23  ;;  %v2141_v2 = vpop.f32.mrf.mxu1 }
 0x21c   : > { %v2142_v25 = vadd.f32 %v2141_v2, %v2092_v33 }
 0x21d   : > { %v2277_v35 = vadd.f32 %v2238_v1, %v1841_v10  ;;  %v1854_v10 = vld [vmem:[#allocation2 + $0x40] sm:$0xff] }
 0x21e   : > { %v2278_v39 = vadd.f32 %v2142_v25, %v1842_v13 }
 0x21f   : > { %2309 = vst [vmem:[#allocation2 + $0x68] sm:$0xff] %v2277_v35  ;;  %v1855_v35 = vld [vmem:[#allocation2 + $0xc8] sm:$0xff] }
 0x220   : > { %2310 = vst [vmem:[#allocation2 + $0x30] sm:$0xff] %v2278_v39  ;;  %v2190_v43 = vpop.f32.mrf.mxu2 }
 0x222   : > { %v2239_v30 = vpop.f32.mrf.mxu3  ;;  %v2095_v22 = vpop.f32.mrf.mxu0 }
 0x223   : > { %v2240_v21 = vadd.f32 %v2239_v30, %v2190_v43  ;;  %v2144_v37 = vpop.f32.mrf.mxu1 }
 0x224   : > { %v2145_v52 = vadd.f32 %v2144_v37, %v2095_v22 }
 0x225   : > { %v2279_v49 = vadd.f32 %v2240_v21, %v1843_v42  ;;  %v1856_v42 = vld [vmem:[#allocation2 + $0xe0] sm:$0xff] }
 0x226   : > { %v2280_v18 = vadd.f32 %v2145_v52, %v1844_v55 }
 0x227   : > { %2311 = vst [vmem:[#allocation2 + $0x48] sm:$0xff] %v2279_v49  ;;  %v1857_v49 = vld [vmem:[#allocation2 + $0x90] sm:$0xff] }
 0x228   : > { %2312 = vst [vmem:[#allocation2 + $0x80] sm:$0xff] %v2280_v18  ;;  %v2193_v4 = vpop.f32.mrf.mxu2 }
 0x22a   : > { %v2242_v0 = vpop.f32.mrf.mxu3  ;;  %v2097_v3 = vpop.f32.mrf.mxu0 }
 0x22b   : > { %v2243_v41 = vadd.f32 %v2242_v0, %v2193_v4  ;;  %v2146_v58 = vpop.f32.mrf.mxu1 }
 0x22c   : > { %v2147_v11 = vadd.f32 %v2146_v58, %v2097_v3 }
 0x22d   : > { %v2281_v5 = vadd.f32 %v2243_v41, %v1845_v27  ;;  %v1858_v27 = vld [vmem:[#allocation2 + $0x70] sm:$0xff] }
 0x22e   : > { %v2282_v57 = vadd.f32 %v2147_v11, %v1846_v56 }
 0x22f   : > { %2313 = vst [vmem:[#allocation2 + $0x88] sm:$0xff] %v2281_v5  ;;  %v1859_v5 = vld [vmem:[#allocation2 + $0xc0] sm:$0xff] }
 0x230   : > { %2314 = vst [vmem:[#allocation2 + $0xe8] sm:$0xff] %v2282_v57  ;;  %v2195_v61 = vpop.f32.mrf.mxu2 }
 0x232   : > { %v2244_v59 = vpop.f32.mrf.mxu3  ;;  %v2100_v51 = vpop.f32.mrf.mxu0 }
 0x233   : > { %v2245_v47 = vadd.f32 %v2244_v59, %v2195_v61  ;;  %v2149_v63 = vpop.f32.mrf.mxu1 }
 0x234   : > { %v2150_v53 = vadd.f32 %v2149_v63, %v2100_v51 }
 0x235   : > { %v2283_v31 = vadd.f32 %v2245_v47, %v1847_v38  ;;  %v1860_v38 = vld [vmem:[#allocation2 + $0xa8] sm:$0xff] }
 0x236   : > { %v2284_v6 = vadd.f32 %v2150_v53, %v1848_v14 }
 0x237   : > { %2315 = vst [vmem:[#allocation2 + $0xb8] sm:$0xff] %v2283_v31  ;;  %v1861_v31 = vld [vmem:[#allocation2 + $0xd0] sm:$0xff] }
 0x238   : > { %2316 = vst [vmem:[#allocation2 + $0x60] sm:$0xff] %v2284_v6  ;;  %v2198_v48 = vpop.f32.mrf.mxu2 }
 0x23a   : > { %v2247_v29 = vpop.f32.mrf.mxu3  ;;  %v2102_v44 = vpop.f32.mrf.mxu0 }
 0x23b   : > { %v2248_v17 = vadd.f32 %v2247_v29, %v2198_v48  ;;  %v2151_v36 = vpop.f32.mrf.mxu1 }
 0x23c   : > { %v2152_v40 = vadd.f32 %v2151_v36, %v2102_v44 }
 0x23d   : > { %v2285_v15 = vadd.f32 %v2248_v17, %v1849_v50  ;;  %v1862_v50 = vld [vmem:[#allocation2 + $0x10] sm:$0xff] }
 0x23e   : > { %v2286_v12 = vadd.f32 %v2152_v40, %v1850_v54 }
 0x23f   : > { %2317 = vst [vmem:[#allocation2 + $0xf0] sm:$0xff] %v2285_v15  ;;  %v1863_v15 = vld [vmem:[#allocation2 + $0x28] sm:$0xff] }
 0x240   : > { %2318 = vst [vmem:[#allocation2 + $0x8] sm:$0xff] %v2286_v12  ;;  %v2200_v19 = vpop.f32.mrf.mxu2 }
 0x242   : > { %v2249_v16 = vpop.f32.mrf.mxu3  ;;  %v2105_v24 = vpop.f32.mrf.mxu0 }
 0x243   : > { %v2250_v60 = vadd.f32 %v2249_v16, %v2200_v19  ;;  %v2154_v26 = vpop.f32.mrf.mxu1 }
 0x244   : > { %v2155_v34 = vadd.f32 %v2154_v26, %v2105_v24 }
 0x245   : > { %v2287_v28 = vadd.f32 %v2250_v60, %v1851_v62  ;;  %v1864_v62 = vld [vmem:[#allocation2 + $0xa0] sm:$0xff] }
 0x246   : > { %v2288_v7 = vadd.f32 %v2155_v34, %v1852_v9 }
 0x247   : > { %2319 = vst [vmem:[#allocation2 + $0x78] sm:$0xff] %v2287_v28  ;;  %v1865_v28 = vld [vmem:[#allocation2 + $0xf8] sm:$0xff] }
 0x248   : > { %2320 = vst [vmem:[#allocation2 + $0x38] sm:$0xff] %v2288_v7  ;;  %v2203_v32 = vpop.f32.mrf.mxu2 }
 0x24a   : > { %v2252_v46 = vpop.f32.mrf.mxu3  ;;  %v2107_v45 = vpop.f32.mrf.mxu0 }
 0x24b   : > { %v2253_v23 = vadd.f32 %v2252_v46, %v2203_v32  ;;  %v2156_v20 = vpop.f32.mrf.mxu1 }
 0x24c   : > { %v2157_v1 = vadd.f32 %v2156_v20, %v2107_v45 }
 0x24d   : > { %v2289_v33 = vadd.f32 %v2253_v23, %v1853_v8  ;;  %v1866_v8 = vld [vmem:[#allocation2 + $0x20] sm:$0xff] }
 0x24e   : > { %v2290_v13 = vadd.f32 %v2157_v1, %v1854_v10 }
 0x24f   : > { %2321 = vst [vmem:[#allocation2 + $0x58] sm:$0xff] %v2289_v33  ;;  %v1867_v33 = vld [vmem:[#allocation2 + $0x98] sm:$0xff] }
 0x250   : > { %2322 = vst [vmem:[#allocation2 + $0x40] sm:$0xff] %v2290_v13  ;;  %v2205_v2 = vpop.f32.mrf.mxu2 }
 0x252   : > { %v2254_v25 = vpop.f32.mrf.mxu3  ;;  %v2110_v39 = vpop.f32.mrf.mxu0 }
 0x253   : > { %v2255_v43 = vadd.f32 %v2254_v25, %v2205_v2  ;;  %v2159_v30 = vpop.f32.mrf.mxu1 }
 0x254   : > { %v2160_v21 = vadd.f32 %v2159_v30, %v2110_v39 }
 0x255   : > { %v2291_v22 = vadd.f32 %v2255_v43, %v1855_v35 }
 0x256   : > { %v2292_v55 = vadd.f32 %v2160_v21, %v1856_v42 }
 0x257   : > { %2323 = vst [vmem:[#allocation2 + $0xc8] sm:$0xff] %v2291_v22 }
 0x258   : > { %2324 = vst [vmem:[#allocation2 + $0xe0] sm:$0xff] %v2292_v55  ;;  %v2208_v37 = vpop.f32.mrf.mxu2 }
 0x25a   : > { %v2257_v52 = vpop.f32.mrf.mxu3  ;;  %v2112_v18 = vpop.f32.mrf.mxu0 }
 0x25b   : > { %v2258_v4 = vadd.f32 %v2257_v52, %v2208_v37  ;;  %v2161_v0 = vpop.f32.mrf.mxu1 }
 0x25c   : > { %v2162_v41 = vadd.f32 %v2161_v0, %v2112_v18 }
 0x25d   : > { %v2293_v3 = vadd.f32 %v2258_v4, %v1857_v49 }
 0x25e   : > { %v2294_v56 = vadd.f32 %v2162_v41, %v1858_v27 }
 0x25f   : > { %2325 = vst [vmem:[#allocation2 + $0x90] sm:$0xff] %v2293_v3 }
 0x260   : > { %2326 = vst [vmem:[#allocation2 + $0x70] sm:$0xff] %v2294_v56  ;;  %v2210_v58 = vpop.f32.mrf.mxu2 }
 0x262   : > { %v2259_v11 = vpop.f32.mrf.mxu3  ;;  %v2115_v57 = vpop.f32.mrf.mxu0 }
 0x263   : > { %v2260_v61 = vadd.f32 %v2259_v11, %v2210_v58  ;;  %v2164_v59 = vpop.f32.mrf.mxu1 }
 0x264   : > { %v2165_v47 = vadd.f32 %v2164_v59, %v2115_v57 }
 0x265   : > { %v2295_v51 = vadd.f32 %v2260_v61, %v1859_v5 }
 0x266   : > { %v2296_v14 = vadd.f32 %v2165_v47, %v1860_v38 }
 0x267   : > { %2327 = vst [vmem:[#allocation2 + $0xc0] sm:$0xff] %v2295_v51 }
 0x268   : > { %2328 = vst [vmem:[#allocation2 + $0xa8] sm:$0xff] %v2296_v14  ;;  %v2213_v63 = vpop.f32.mrf.mxu2 }
 0x26a   : > { %v2262_v53 = vpop.f32.mrf.mxu3  ;;  %v2117_v6 = vpop.f32.mrf.mxu0 }
 0x26b   : > { %v2263_v48 = vadd.f32 %v2262_v53, %v2213_v63  ;;  %v2166_v29 = vpop.f32.mrf.mxu1 }
 0x26c   : > { %v2167_v17 = vadd.f32 %v2166_v29, %v2117_v6 }
 0x26d   : > { %v2297_v44 = vadd.f32 %v2263_v48, %v1861_v31 }
 0x26e   : > { %v2298_v54 = vadd.f32 %v2167_v17, %v1862_v50 }
 0x26f   : > { %2329 = vst [vmem:[#allocation2 + $0xd0] sm:$0xff] %v2297_v44 }
 0x270   : > { %2330 = vst [vmem:[#allocation2 + $0x10] sm:$0xff] %v2298_v54  ;;  %v2215_v36 = vpop.f32.mrf.mxu2 }
 0x272   : > { %v2264_v40 = vpop.f32.mrf.mxu3  ;;  %v2120_v12 = vpop.f32.mrf.mxu0 }
 0x273   : > { %v2265_v19 = vadd.f32 %v2264_v40, %v2215_v36  ;;  %v2169_v16 = vpop.f32.mrf.mxu1 }
 0x274   : > { %v2170_v60 = vadd.f32 %v2169_v16, %v2120_v12 }
 0x275   : > { %v2299_v24 = vadd.f32 %v2265_v19, %v1863_v15 }
 0x276   : > { %v2300_v9 = vadd.f32 %v2170_v60, %v1864_v62 }
 0x277   : > { %2331 = vst [vmem:[#allocation2 + $0x28] sm:$0xff] %v2299_v24 }
 0x278   : > { %2332 = vst [vmem:[#allocation2 + $0xa0] sm:$0xff] %v2300_v9  ;;  %v2218_v26 = vpop.f32.mrf.mxu2 }
 0x27a   : > { %v2267_v34 = vpop.f32.mrf.mxu3  ;;  %v2122_v32 = vpop.f32.mrf.mxu0 }
 0x27b   : > { %v2268_v7 = vadd.f32 %v2267_v34, %v2218_v26  ;;  %v2171_v46 = vpop.f32.mrf.mxu1 }
 0x27c   : > { %v2172_v23 = vadd.f32 %v2171_v46, %v2122_v32 }
 0x27d   : > { %v2301_v45 = vadd.f32 %v2268_v7, %v1865_v28 }
 0x27e   : > { %v2302_v10 = vadd.f32 %v2172_v23, %v1866_v8 }
 0x27f   : > { %2333 = vst [vmem:[#allocation2 + $0xf8] sm:$0xff] %v2301_v45 }
 0x280   : > { %2334 = vst [vmem:[#allocation2 + $0x20] sm:$0xff] %v2302_v10  ;;  %v2220_v20 = vpop.f32.mrf.mxu2 }
 0x282   : > { %v2269_v1 = vpop.f32.mrf.mxu3 }
 0x283   : > { %v2270_v13 = vadd.f32 %v2269_v1, %v2220_v20  ;;  %2339 = sbr.rel (%p3031_p2) target bundleno = 667 (0x29b), region = 40 }
 0x285   : > { %v2303_v2 = vadd.f32 %v2270_v13, %v1867_v33 }
 0x287   : > { %2335 = vst [vmem:[#allocation2 + $0x98] sm:$0xff] %v2303_v2 }
 0x288   : > { %v2340_v35 = vld [vmem:[#allocation2 + $0xb0] sm:$0xff]  ;;  %v2341_v25 = vld [vmem:[#allocation2] sm:$0xff]  ;;  %v2342_v39 = vld [vmem:[#allocation2 + $0xd8] sm:$0xff] }
 0x289   : > { %v2372_v43 = vpack.c.bf16 %v2341_v25, %v2340_v35  ;;  %v2343_v42 = vld [vmem:[#allocation2 + $0x18] sm:$0xff]  ;;  %v2344_v30 = vld [vmem:[#allocation2 + $0x50] sm:$0xff]  ;;  %v2345_v22 = vld [vmem:[#allocation2 + $0x68] sm:$0xff] }
 0x28a   : > { %v2373_v21 = vpack.c.bf16 %v2343_v42, %v2342_v39  ;;  %v2374_v55 = vpack.c.bf16 %v2345_v22, %v2344_v30  ;;  %v2346_v37 = vld [vmem:[#allocation2 + $0x30] sm:$0xff]  ;;  %v2347_v49 = vld [vmem:[#allocation2 + $0x48] sm:$0xff]  ;;  %v2348_v52 = vld [vmem:[#allocation2 + $0x80] sm:$0xff] }
 0x28b   : > { %2388 = vst [vmem:[%s3569_s8] sm:$0xff] %v2372_v43  ;;  %v2375_v18 = vpack.c.bf16 %v2347_v49, %v2346_v37  ;;  %v2349_v4 = vld [vmem:[#allocation2 + $0x88] sm:$0xff]  ;;  %v2351_v0 = vld [vmem:[#allocation2 + $0xb8] sm:$0xff]  ;;  %v2352_v56 = vld [vmem:[#allocation2 + $0x60] sm:$0xff] }
 0x28c   : > { %v2350_v27 = vld [vmem:[#allocation2 + $0xe8] sm:$0xff]  ;;  %2389 = vst [vmem:[%s3569_s8 + $0x8] sm:$0xff] %v2373_v21  ;;  %v2376_v3 = vpack.c.bf16 %v2349_v4, %v2348_v52  ;;  %v2353_v58 = vld [vmem:[#allocation2 + $0xf0] sm:$0xff]  ;;  %v2355_v57 = vld [vmem:[#allocation2 + $0x78] sm:$0xff] }
 0x28d   : > { %v2377_v41 = vpack.c.bf16 %v2351_v0, %v2350_v27  ;;  %v2354_v5 = vld [vmem:[#allocation2 + $0x8] sm:$0xff]  ;;  %2390 = vst [vmem:[%s3569_s8 + $0x10] sm:$0xff] %v2374_v55  ;;  %v2378_v11 = vpack.c.bf16 %v2353_v58, %v2352_v56  ;;  %v2356_v61 = vld [vmem:[#allocation2 + $0x38] sm:$0xff]  ;;  %v2358_v51 = vld [vmem:[#allocation2 + $0x40] sm:$0xff] }
 0x28e   : > { %v2357_v38 = vld [vmem:[#allocation2 + $0x58] sm:$0xff]  ;;  %2391 = vst [vmem:[%s3569_s8 + $0x18] sm:$0xff] %v2375_v18  ;;  %v2379_v59 = vpack.c.bf16 %v2355_v57, %v2354_v5  ;;  %v2359_v47 = vld [vmem:[#allocation2 + $0xc8] sm:$0xff]  ;;  %v2360_v14 = vld [vmem:[#allocation2 + $0xe0] sm:$0xff] }
 0x28f   : > { %2392 = vst [vmem:[%s3569_s8 + $0x20] sm:$0xff] %v2376_v3  ;;  %v2380_v63 = vpack.c.bf16 %v2357_v38, %v2356_v61  ;;  %v2361_v31 = vld [vmem:[#allocation2 + $0x90] sm:$0xff]  ;;  %v2363_v6 = vld [vmem:[#allocation2 + $0xc0] sm:$0xff]  ;;  %v2381_v48 = vpack.c.bf16 %v2359_v47, %v2358_v51  ;;  %v2364_v50 = vld [vmem:[#allocation2 + $0xa8] sm:$0xff] }
 0x290   : > { %v2362_v53 = vld [vmem:[#allocation2 + $0x70] sm:$0xff]  ;;  %2393 = vst [vmem:[%s3569_s8 + $0x28] sm:$0xff] %v2377_v41  ;;  %v2382_v44 = vpack.c.bf16 %v2361_v31, %v2360_v14  ;;  %v2367_v54 = vld [vmem:[#allocation2 + $0x28] sm:$0xff]  ;;  %v2368_v15 = vld [vmem:[#allocation2 + $0xa0] sm:$0xff] }
 0x291   : > { %v2365_v29 = vld [vmem:[#allocation2 + $0xd0] sm:$0xff]  ;;  %2394 = vst [vmem:[%s3569_s8 + $0x30] sm:$0xff] %v2378_v11  ;;  %v2383_v36 = vpack.c.bf16 %v2363_v6, %v2362_v53  ;;  %v2369_v40 = vld [vmem:[#allocation2 + $0xf8] sm:$0xff]  ;;  %v2370_v19 = vld [vmem:[#allocation2 + $0x20] sm:$0xff] }
 0x292   : > { %v2366_v17 = vld [vmem:[#allocation2 + $0x10] sm:$0xff]  ;;  %2395 = vst [vmem:[%s3569_s8 + $0x38] sm:$0xff] %v2379_v59  ;;  %v2384_v12 = vpack.c.bf16 %v2365_v29, %v2364_v50  ;;  %v2371_v62 = vld [vmem:[#allocation2 + $0x98] sm:$0xff]  ;;  %v2386_v24 = vpack.c.bf16 %v2369_v40, %v2368_v15 }
 0x293   : > { %2396 = vst [vmem:[%s3569_s8 + $0x40] sm:$0xff] %v2380_v63  ;;  %v2385_v16 = vpack.c.bf16 %v2367_v54, %v2366_v17  ;;  %v2387_v60 = vpack.c.bf16 %v2371_v62, %v2370_v19 }
 0x294   : > { %2397 = vst [vmem:[%s3569_s8 + $0x48] sm:$0xff] %v2381_v48 }
 0x295   : > { %2398 = vst [vmem:[%s3569_s8 + $0x50] sm:$0xff] %v2382_v44 }
 0x296   : > { %2399 = vst [vmem:[%s3569_s8 + $0x58] sm:$0xff] %v2383_v36 }
 0x297   : > { %2400 = vst [vmem:[%s3569_s8 + $0x60] sm:$0xff] %v2384_v12 }
 0x298   : > { %2401 = vst [vmem:[%s3569_s8 + $0x68] sm:$0xff] %v2385_v16 }
 0x299   : > { %2402 = vst [vmem:[%s3569_s8 + $0x70] sm:$0xff] %v2386_v24 }
 0x29a   : > { %2403 = vst [vmem:[%s3569_s8 + $0x78] sm:$0xff] %v2387_v60 }
 0x29b PF: > { %s3033_s18 = smul.u32 896, %s3435_s19  ;;  %s2421_s24 = sshll.u32 %s3569_s8, 4  ;;  %s2422_s24 = int_to_ptr.vmem [resolvable:$true] %s2421_s24 }
 0x29c   : > { %s5329_s10 = sand.u32 1, %s3423_s16   ;;  %s3373_s22 = scalar_lea.hbm %s5158_s4, 1792 }
 0x29d   : > { %s2485_s6 = scalar_lea.hbm %s5158_s4, %s3033_s18  ;;  %s2405_s11 = scalar_lea.sflag [#allocation4], %s5329_s10 }
 0x29e   : > { %s2486_s7 = scalar_lea.hbm %s2485_s6, 768 }
 0x29f   : > { %s2423_s9 = sshll.u32 %s2486_s7, 4  ;;  %s2424_s9 = int_to_ptr.hbm [resolvable:$true] %s2423_s9 }
 0x2a0   : > { %s3367_s12 = sshra.s32 %s2424_s9, 4  ;;  %s3368_s12 = int_to_ptr.hbm [resolvable:$true] %s3367_s12 }
 0x2a1   : > { %s3369_s13 = scalar_lea.hbm %s3368_s12, 128  ;;  %p3374_p7 = scmp.lt.s32.totalorder %s3368_s12, %s5158_s4 }
 0x2a2   : > { %p3370_p4 = scmp.ne.s32.totalorder %s3368_s12, %s3369_s13  ;;  %p3375_p8 = scmp.lt.s32.totalorder %s3373_s22, %s3369_s13 }
 0x2a4   : > { %p3371_p5 = pnand %p3370_p4, %p3526_p3  ;;  %p3376_p10 = por %p3375_p8, %p3374_p7 }
 0x2a6   : > { %p3372_p6 = pneg %p3371_p5 }
 0x2a8   : > { %p3377_p11 = pnand %p3376_p10, %p3372_p6 }
 0x2aa   : > { %3380 = shalt.err (!%p3377_p11)
}
 0x2ab   : > { %s3450_s29 = smov 128   ;;  %s3451_s8 = smov 8  }
 0x2ac   : > { %3151 = dma.vmem_to_hbm [thread:$0]  (%p3526_p3), %s2422_s24, 2048, %s2424_s9, %s2405_s11, %s3450_s29, %s3450_s29, %s3451_s8  }
 0x2ad PF: > { %p3157_p12 = scmp.ge.s32.totalorder %s3447_s3, 2  ;;  %s2438_s18 = sand.u32 1, %s3419_s15  }
 0x2ae   : > { %s2439_s25 = scalar_lea.sflag [#allocation4], %s2438_s18 }
 0x2af   : > { %p3154_p13 = pnand %p3157_p12, %p3536_p9 }
 0x2b1   : > { %p3155_p0 = pneg %p3154_p13 }
 0x2b3   : > { %3414 = dma.done.wait (%p3155_p0), %s2439_s25, 2048  }
 0x2b4   : > { %3416 = vsyncadd (%p3155_p0), %s2439_s25, 4294965248  ;;  %s17_s3 = sadd.s32 1, %s3447_s3   ;;  %s5330_s26 = sld [smem:[#allocation6_spill]] }
 0x2b5   : > { %p14_p1 = scmp.ge.s32.totalorder %s17_s3, 6   ;;  %s5331_s24 = sld [smem:[#allocation7_spill]] }
 0x2b6   : > { %s5332_s15 = smov %s3423_s16  ;;  %s5333_s16 = smov %s3427_s17 }
 0x2b7   : > { %s5334_s17 = smov %s3544_s30  ;;  %s5335_s18 = smov %s3439_s20 }
 0x2b8   : > { %s5336_s19 = smov %s3443_s21  ;;  %16 = sbr.rel (!%p14_p1) target bundleno = 5 (0x5), region = 81 }
 0x2ba   : > { %s5337_s20 = smov %s5330_s26 }
 0x2bb   : > { %s5338_s21 = smov %s5331_s24 }
 0x2bd   :  { %2445 = vsyncpa [#allocation4], 1 }
 0x2be   :  { %2447 = vsyncpa [#allocation4 + $0x1], 1 }

// kernel: llama_decoder_layer.3
= control target key start
LH: loop header
LB: loop body
LE: loop exit
PB: predicated region body
PF: predicated region fallthrough
CT: control target
= control target key end

     0   :  { %s5100_s0 = inlined_call_operand.vmem [shape: f32[4,2], index: 0, kind: input, shape index: {}]   ;;  %s5101_s1 = inlined_call_operand.vmem [shape: bf16[2,7,128,256], index: 1, kind: input, shape index: {}, may-alias: {1,7}]   ;;  %s5102_s2 = inlined_call_operand.hbm [shape: f32[1,256], index: 2, kind: input, shape index: {}]   ;;  %s5103_s3 = inlined_call_operand.vmem [shape: bf16[2,256,384], index: 3, kind: input, shape index: {}]   ;;  %s5104_s4 = inlined_call_operand.vmem [shape: f32[128,128], index: 4, kind: input, shape index: {}]   ;;  %s5105_s5 = inlined_call_operand.vmem [shape: f32[128,128], index: 5, kind: input, shape index: {}]   ;;  %s5106_s6 = inlined_call_operand.vmem [shape: bf16[2,128,256], index: 6, kind: input, shape index: {}]   ;;  %s5107_s7 = inlined_call_operand.vmem [shape: bf16[2,7,128,256], index: 7, kind: output, shape index: {}, may-alias: {1,7}]  }
   0x1   :  { %5120 = sst [smem:[#allocation22_spill]] %s5100_s0 }
   0x2   :  { %5121 = sst [smem:[#allocation23_spill]] %s5102_s2 }
   0x3   :  { %12 = vsyncpa [#allocation5], 0 }
   0x4   :  { %13 = vsyncpa [#allocation4], 0  ;;  %s3482_s24 = smov 0   ;;  %s3484_s25 = smov 0  }
   0x5   :  { %s3486_s26 = smov 0   ;;  %s3488_s27 = smov 0  }
   0x6   :  { %s3490_s28 = smov 0  }
   0x7 LB: > { %s2767_s29 = sadd.s32 4294967295, %s3435_s28   ;;  %s28_s30 = sadd.s32 1, %s3427_s26  ;;  %s3435_s28 = sphi %s3490_s28, %s19_s28   ;;  %s3431_s27 = sphi %s3488_s27, %s5182_s27   ;;  %s3427_s26 = sphi %s3486_s26, %s5181_s26   ;;  %s3423_s25 = sphi %s3484_s25, %s5180_s25   ;;  %s3419_s24 = sphi %s3482_s24, %s5179_s24  }
   0x8   : > { %p29_p0 = scmp.ge.s32.totalorder %s28_s30, 2  ;;  %s31_s8 = sadd.s32 1, %s3431_s27 }
   0x9   : > { %p2769_p1 = scmp.ge.s32.totalorder %s3435_s28, 1  ;;  %p228_p2 = scmp.lt.s32.totalorder %s3435_s28, 5 }
   0xa   : > { %s5184_s30 = smov (%p29_p0, %s28_s30), 0  ;;  %s5186_s8 = smov (!%p29_p0, %s31_s8), %s3431_s27 }
   0xb   : > { %p3515_p3 = pnand %p2769_p1, %p228_p2  ;;  %p33_p4 = scmp.ge.s32.totalorder %s5186_s8, 2 }
   0xc   : > { %p3519_p5 = scmp.eq.s32.totalorder %s2767_s29, 0  ;;  %s5124_s0 = sld [smem:[#allocation22_spill]] }
   0xd   : > { %p3190_p6 = pneg %p3515_p3  ;;  %s5188_s8 = smov (%p33_p4, %s5186_s8), 0 }
   0xe   : > { %5125 = sst [smem:[#allocation9_spill]] %s5188_s8  ;;  %s3437_s17 = smov [#allocation3]  }
   0xf   : > { %p3191_p7 = pnand %p3519_p5, %p3190_p6  ;;  %s5126_s2 = sld [smem:[#allocation23_spill]] }
  0x10   : > { %s3438_s18 = smov [#allocation6]  }
  0x11   : > { %s252_s19 = sshll.u32 %s3438_s18, 4  ;;  %s253_s19 = int_to_ptr.vmem [resolvable:$true] %s252_s19 }
  0x12   : > { %s240_s13 = sshll.u32 %s5124_s0, 4  ;;  %295 = sbr.rel (%p3515_p3) target bundleno = 1408 (0x580), region = 48  ;;  %s241_s13 = int_to_ptr.vmem [resolvable:$true] %s240_s13 }
  0x13   : > { %3193 = dma.vmem_to_smem (!%p3191_p7), %s241_s13, 64, %s3437_s17, [#allocation5]  }
  0x15   : > { %s250_s16 = sshll.u32 %s5126_s2, 4  ;;  %s251_s16 = int_to_ptr.hbm [resolvable:$true] %s250_s16 }
  0x16   : > { %3196 = dma.hbm_to_vmem [thread:$0]  (!%p3191_p7), %s251_s16, 32, %s253_s19, [#allocation4]  }
  0x17   : > { %3410 = dma.done.wait (%p3519_p5), [#allocation5], 64  }
  0x18   : > { %3412 = vsyncadd (%p3519_p5), [#allocation5], 4294967232 }
  0x19   : > { %3414 = dma.done.wait (%p3519_p5), [#allocation4], 32  }
  0x1a   : > { %3416 = vsyncadd (%p3519_p5), [#allocation4], 4294967264 }
  0x1b   : > { %307 = sfence }
  0x1c   : > { %p349_p8 = scmp.lt.s32.totalorder %s3423_s25, 1  ;;  %p354_p9 = scmp.lt.s32.totalorder %s3419_s24, 1 }
  0x1d   : > { %s364_s20 = sadd.s32 4, %s3419_s24  ;;  %p2782_p11 = scmp.ne.s32.totalorder %s3419_s24, 0 }
  0x1e   : > { %s5190_s25 = smov (!%p349_p8, %s3423_s25), 1  ;;  %p367_p10 = scmp.lt.s32.totalorder %s364_s20, 6 }
  0x1f   : > { %s355_s21 = scalar_select %p354_p9, %s3419_s24, 1 }
  0x20   : > { %s3179_s22 = smul.u32 896, %s5190_s25  ;;  %s5192_s20 = smov (!%p367_p10, %s364_s20), 6 }
  0x21   : > { %s3180_s23 = smul.u32 384, %s355_s21  ;;  %s3092_s29 = sshll.u32 %s355_s21, 7 }
  0x22   : > { %s3553_s10 = scalar_lea.vmem %s5101_s1, %s3179_s22  ;;  %s3558_s14 = scalar_lea.vmem %s5106_s6, %s3092_s29 }
  0x23   : > { %s3563_s17 = scalar_lea.vmem %s5103_s3, %s3180_s23  ;;  %s3181_s18 = smul.u32 224, %s5190_s25 }
  0x24   : > { %s2780_s19 = sshll.u32 %s5192_s20, 5  ;;  %378 = sbr.rel (%p2782_p11) target bundleno = 64 (0x40), region = 60 }
  0x25   : > { %s371_s0 = sadd.s32 %s3181_s18, %s2780_s19 }
  0x26   : > { %s2781_s21 = sshll.u32 %s371_s0, 2 }
  0x27   : > { %s3568_s22 = scalar_lea.vmem %s5107_s7, %s2781_s21 }
  0x29   : > { %v379_v0 = vlaneseq  ;;  %v3439_v6 = vmov -3.4028235e+38  }
  0x2b   : > { %v380_v1 = vshrl.u32 %v379_v0, 7  ;;  %v397_v2 = vand.u32 127, %v379_v0 }
  0x2d   : > { %vm398_vm0 = vcmp.ge.s32.totalorder %v380_v1, %v397_v2  ;;  %v381_v3 = vadd.s32 8, %v380_v1  ;;  %v382_v4 = vadd.s32 16, %v380_v1  ;;  %v383_v5 = vadd.s32 24, %v380_v1 }
  0x2e   : > { %v414_v7 = vsel %vm398_vm0, 0.0, %v3439_v6  ;;  %v384_v8 = vadd.s32 32, %v380_v1  ;;  %v385_v9 = vadd.s32 40, %v380_v1  ;;  %v386_v10 = vadd.s32 48, %v380_v1 }
  0x2f   : > { %430 = vst [vmem:[#allocation2 + $0x30] sm:$0xff] %v414_v7  ;;  %vm399_vm1 = vcmp.ge.s32.totalorder %v381_v3, %v397_v2  ;;  %vm400_vm2 = vcmp.ge.s32.totalorder %v382_v4, %v397_v2  ;;  %vm401_vm3 = vcmp.ge.s32.totalorder %v383_v5, %v397_v2  ;;  %v387_v11 = vadd.s32 56, %v380_v1 }
  0x30   : > { %v415_v12 = vsel %vm399_vm1, 0.0, %v3439_v6  ;;  %v416_v13 = vsel %vm400_vm2, 0.0, %v3439_v6  ;;  %v417_v14 = vsel %vm401_vm3, 0.0, %v3439_v6  ;;  %vm402_vm4 = vcmp.ge.s32.totalorder %v384_v8, %v397_v2 }
  0x31   : > { %431 = vst [vmem:[#allocation2] sm:$0xff] %v415_v12  ;;  %v418_v15 = vsel %vm402_vm4, 0.0, %v3439_v6  ;;  %vm403_vm5 = vcmp.ge.s32.totalorder %v385_v9, %v397_v2  ;;  %vm404_vm6 = vcmp.ge.s32.totalorder %v386_v10, %v397_v2  ;;  %vm405_vm7 = vcmp.ge.s32.totalorder %v387_v11, %v397_v2 }
  0x32   : > { %432 = vst [vmem:[#allocation2 + $0x58] sm:$0xff] %v416_v13  ;;  %v419_v16 = vsel %vm403_vm5, 0.0, %v3439_v6  ;;  %v420_v17 = vsel %vm404_vm6, 0.0, %v3439_v6  ;;  %v421_v18 = vsel %vm405_vm7, 0.0, %v3439_v6  ;;  %v388_v19 = vadd.s32 64, %v380_v1 }
  0x33   : > { %433 = vst [vmem:[#allocation2 + $0x18] sm:$0xff] %v417_v14  ;;  %v389_v20 = vadd.s32 72, %v380_v1  ;;  %v390_v21 = vadd.s32 80, %v380_v1  ;;  %v391_v22 = vadd.s32 88, %v380_v1  ;;  %v392_v23 = vadd.s32 96, %v380_v1 }
  0x34   : > { %434 = vst [vmem:[#allocation2 + $0x50] sm:$0xff] %v418_v15  ;;  %vm406_vm8 = vcmp.ge.s32.totalorder %v388_v19, %v397_v2  ;;  %v393_v24 = vadd.s32 104, %v380_v1  ;;  %v394_v25 = vadd.s32 112, %v380_v1  ;;  %v395_v26 = vadd.s32 120, %v380_v1 }
  0x35   : > { %435 = vst [vmem:[#allocation2 + $0x68] sm:$0xff] %v419_v16  ;;  %v422_v27 = vsel %vm406_vm8, 0.0, %v3439_v6  ;;  %vm407_vm9 = vcmp.ge.s32.totalorder %v389_v20, %v397_v2  ;;  %vm408_vm10 = vcmp.ge.s32.totalorder %v390_v21, %v397_v2  ;;  %vm409_vm11 = vcmp.ge.s32.totalorder %v391_v22, %v397_v2 }
  0x36   : > { %436 = vst [vmem:[#allocation2 + $0x8] sm:$0xff] %v420_v17  ;;  %v423_v28 = vsel %vm407_vm9, 0.0, %v3439_v6  ;;  %vm410_vm12 = vcmp.ge.s32.totalorder %v392_v23, %v397_v2  ;;  %v424_v29 = vsel %vm408_vm10, 0.0, %v3439_v6  ;;  %vm411_vm13 = vcmp.ge.s32.totalorder %v393_v24, %v397_v2 }
  0x37   : > { %437 = vst [vmem:[#allocation2 + $0x48] sm:$0xff] %v421_v18  ;;  %v425_v30 = vsel %vm409_vm11, 0.0, %v3439_v6  ;;  %vm412_vm14 = vcmp.ge.s32.totalorder %v394_v25, %v397_v2  ;;  %v426_v31 = vsel %vm410_vm12, 0.0, %v3439_v6  ;;  %vm413_vm15 = vcmp.ge.s32.totalorder %v395_v26, %v397_v2 }
  0x38   : > { %438 = vst [vmem:[#allocation2 + $0x40] sm:$0xff] %v422_v27  ;;  %v427_v32 = vsel %vm411_vm13, 0.0, %v3439_v6  ;;  %v428_v33 = vsel %vm412_vm14, 0.0, %v3439_v6  ;;  %v429_v34 = vsel %vm413_vm15, 0.0, %v3439_v6 }
  0x39   : > { %439 = vst [vmem:[#allocation2 + $0x20] sm:$0xff] %v423_v28 }
  0x3a   : > { %440 = vst [vmem:[#allocation2 + $0x10] sm:$0xff] %v424_v29 }
  0x3b   : > { %441 = vst [vmem:[#allocation2 + $0x38] sm:$0xff] %v425_v30 }
  0x3c   : > { %442 = vst [vmem:[#allocation2 + $0x60] sm:$0xff] %v426_v31 }
  0x3d   : > { %443 = vst [vmem:[#allocation2 + $0x70] sm:$0xff] %v427_v32 }
  0x3e   : > { %444 = vst [vmem:[#allocation2 + $0x78] sm:$0xff] %v428_v33 }
  0x3f   : > { %445 = vst [vmem:[#allocation2 + $0x28] sm:$0xff] %v429_v34 }
  0x40 PF: > { %s3572_s0 = sld [smem:[#allocation3 + %s3419_s24]]  ;;  %v457_v35 = vld [vmem:[%s3553_s10 + $0x50] sm:$0xff]  ;;  %s560_s2 = sshra.s32 %s3419_s24, 7  ;;  %v455_v43 = vld [vmem:[%s3553_s10 + $0x40] sm:$0xff]  ;;  %v3635_v3 = vld [vmem:[%s3553_s10 + $0x58] sm:$0xff] }
  0x41   : > { %v3577_v36 = vld [vmem:[%s3553_s10 + $0xd0] sm:$0xff]  ;;  %v483_v38 = vunpack.c.l.bf16 %v457_v35  ;;  %v484_v39 = vunpack.c.h.bf16 %v457_v35  ;;  %s3582_s25 = sshll.u32 %s560_s2, 7  ;;  %s3585_s8 = sand.u32 127, %s3419_s24  ;;  %v3594_v44 = vld [vmem:[%s3553_s10 + $0xc0] sm:$0xff]  ;;  %v479_v52 = vunpack.c.l.bf16 %v455_v43  ;;  %v480_v53 = vunpack.c.h.bf16 %v455_v43  ;;  %v3644_v8 = vld [vmem:[%s3553_s10 + $0xd8] sm:$0xff] }
  0x42   : > { %v3580_v37 = vld [vmem:[%s3553_s10 + $0x150] sm:$0xff]  ;;  %v605_v40 = vunpack.c.l.bf16 %v3577_v36  ;;  %v606_v41 = vunpack.c.h.bf16 %v3577_v36  ;;  %s3094_s20 = sadd.s32 128, %s3582_s25  ;;  %s3096_s23 = sadd.s32 256, %s3582_s25  ;;  %v3603_v49 = vld [vmem:[%s3553_s10 + $0x140] sm:$0xff]  ;;  %v601_v54 = vunpack.c.l.bf16 %v3594_v44  ;;  %v602_v55 = vunpack.c.h.bf16 %v3594_v44  ;;  %v3647_v9 = vld [vmem:[%s3553_s10 + $0x158] sm:$0xff] }
  0x43   : > { %v3590_v42 = vld [vmem:[%s3553_s10 + $0x1d0] sm:$0xff]  ;;  %v723_v45 = vunpack.c.l.bf16 %v3580_v37  ;;  %v724_v46 = vunpack.c.h.bf16 %v3580_v37  ;;  %v3606_v50 = vld [vmem:[%s3553_s10 + $0x1c0] sm:$0xff]  ;;  %s566_s24 = sadd.s32 %s3094_s20, %s3585_s8  ;;  %s684_s29 = sadd.s32 %s3096_s23, %s3585_s8  ;;  %v719_v59 = vunpack.c.l.bf16 %v3603_v49  ;;  %v720_v60 = vunpack.c.h.bf16 %v3603_v49  ;;  %v3654_v14 = vld [vmem:[%s3553_s10 + $0x1d8] sm:$0xff] }
  0x44   : > { %v841_v47 = vunpack.c.l.bf16 %v3590_v42  ;;  %v842_v48 = vunpack.c.h.bf16 %v3590_v42  ;;  %v459_v51 = vld [vmem:[%s3553_s10 + $0x60] sm:$0xff]  ;;  %s3622_s9 = sld [smem:[#allocation3 + %s566_s24]]  ;;  %s3098_s11 = sadd.s32 384, %s3582_s25  ;;  %v837_v61 = vunpack.c.l.bf16 %v3606_v50  ;;  %v838_v62 = vunpack.c.h.bf16 %v3606_v50 }
  0x45   : > { %v3614_v56 = vld [vmem:[%s3553_s10 + $0xe0] sm:$0xff]  ;;  %s3629_s12 = sld [smem:[#allocation3 + %s684_s29]]  ;;  %s802_s13 = sadd.s32 %s3098_s11, %s3585_s8  ;;  %v487_v63 = vunpack.c.l.bf16 %v459_v51  ;;  %v488_v0 = vunpack.c.h.bf16 %v459_v51  ;;  %v485_v18 = vunpack.c.l.bf16 %v3635_v3  ;;  %v486_v19 = vunpack.c.h.bf16 %v3635_v3 }
  0x46   : > { %v3617_v57 = vld [vmem:[%s3553_s10 + $0x160] sm:$0xff]  ;;  %v609_v1 = vunpack.c.l.bf16 %v3614_v56  ;;  %v610_v2 = vunpack.c.h.bf16 %v3614_v56  ;;  %v3638_v4 = vstv %s3572_s0  ;;  %s803_s15 = sld [smem:[#allocation3 + %s802_s13]]  ;;  %v607_v20 = vunpack.c.l.bf16 %v3644_v8 }
  0x47   : > { %v3620_v58 = vld [vmem:[%s3553_s10 + $0x1e0] sm:$0xff]  ;;  %v727_v5 = vunpack.c.l.bf16 %v3617_v57  ;;  %v728_v6 = vunpack.c.h.bf16 %v3617_v57  ;;  %v516_v10 = vmul.f32 %v3638_v4, %v483_v38  ;;  %v517_v11 = vmul.f32 %v3638_v4, %v484_v39 }
  0x48   : > { %v845_v7 = vunpack.c.l.bf16 %v3620_v58  ;;  %v512_v12 = vmul.f32 %v3638_v4, %v479_v52  ;;  %v513_v13 = vmul.f32 %v3638_v4, %v480_v53  ;;  %v520_v15 = vmul.f32 %v3638_v4, %v487_v63 }
  0x49   : > { %v521_v16 = vmul.f32 %v3638_v4, %v488_v0  ;;  %v846_v17 = vunpack.c.h.bf16 %v3620_v58  ;;  %v608_v21 = vunpack.c.h.bf16 %v3644_v8  ;;  %v725_v22 = vunpack.c.l.bf16 %v3647_v9 }
  0x4a   : > { %v3665_v23 = vstv %s3622_s9  ;;  %v518_v24 = vmul.f32 %v3638_v4, %v485_v18  ;;  %v726_v25 = vunpack.c.h.bf16 %v3647_v9  ;;  %v843_v26 = vunpack.c.l.bf16 %v3654_v14  ;;  %v456_v9 = vld [vmem:[%s3553_s10 + $0x48] sm:$0xff] }
  0x4b   : > { %v638_v27 = vmul.f32 %v3665_v23, %v605_v40  ;;  %v639_v28 = vmul.f32 %v3665_v23, %v606_v41  ;;  %v3673_v29 = vstv %s3629_s12  ;;  %v634_v30 = vmul.f32 %v3665_v23, %v601_v54  ;;  %v2793_v18 = vld [vmem:[%s3553_s10 + $0xc8] sm:$0xff] }
  0x4c   : > { %v756_v31 = vmul.f32 %v3673_v29, %v723_v45  ;;  %v757_v32 = vmul.f32 %v3673_v29, %v724_v46  ;;  %v3678_v33 = vstv %s803_s15  ;;  %v635_v34 = vmul.f32 %v3665_v23, %v602_v55 }
  0x4d   : > { %v670_v35 = vadd.f32 %v638_v27, %v516_v10  ;;  %v671_v36 = vadd.f32 %v639_v28, %v517_v11  ;;  %v874_v37 = vmul.f32 %v3678_v33, %v841_v47  ;;  %v875_v38 = vmul.f32 %v3678_v33, %v842_v48 }
  0x4e   : > { %v666_v39 = vadd.f32 %v634_v30, %v512_v12  ;;  %v667_v40 = vadd.f32 %v635_v34, %v513_v13  ;;  %v752_v41 = vmul.f32 %v3673_v29, %v719_v59  ;;  %v753_v42 = vmul.f32 %v3673_v29, %v720_v60 }
  0x4f   : > { %v788_v43 = vadd.f32 %v756_v31, %v670_v35  ;;  %v789_v44 = vadd.f32 %v757_v32, %v671_v36  ;;  %v870_v45 = vmul.f32 %v3678_v33, %v837_v61  ;;  %v871_v46 = vmul.f32 %v3678_v33, %v838_v62  ;;  %v2827_v31 = vld [vmem:[%s3553_s10 + $0x1c8] sm:$0xff] }
  0x50   : > { %v784_v49 = vadd.f32 %v752_v41, %v666_v39  ;;  %v785_v50 = vadd.f32 %v753_v42, %v667_v40  ;;  %v642_v51 = vmul.f32 %v3665_v23, %v609_v1  ;;  %v643_v47 = vmul.f32 %v3665_v23, %v610_v2 }
  0x51   : > { %v3689_v52 = vadd.f32 %v874_v37, %v788_v43  ;;  %v3691_v48 = vadd.f32 %v875_v38, %v789_v44  ;;  %v760_v53 = vmul.f32 %v3673_v29, %v727_v5  ;;  %v761_v54 = vmul.f32 %v3673_v29, %v728_v6  ;;  %v460_v43 = vld [vmem:[%s3553_s10 + $0x68] sm:$0xff] }
  0x52   : > { %v3695_v55 = vadd.f32 %v870_v45, %v784_v49  ;;  %v3697_v56 = vadd.f32 %v871_v46, %v785_v50  ;;  %v674_v57 = vadd.f32 %v642_v51, %v520_v15  ;;  %v675_v58 = vadd.f32 %v643_v47, %v521_v16  ;;  %v2797_v50 = vld [vmem:[%s3553_s10 + $0xe8] sm:$0xff] }
  0x53   : > { %v938_v59 = vmul.f32 %v3689_v52, %v3689_v52  ;;  %v939_v60 = vmul.f32 %v3691_v48, %v3691_v48  ;;  %v878_v61 = vmul.f32 %v3678_v33, %v845_v7  ;;  %v879_v62 = vmul.f32 %v3678_v33, %v846_v17 }
  0x54   : > { %v934_v63 = vmul.f32 %v3695_v55, %v3695_v55  ;;  %v935_v0 = vmul.f32 %v3697_v56, %v3697_v56  ;;  %v792_v1 = vadd.f32 %v760_v53, %v674_v57  ;;  %v793_v2 = vadd.f32 %v761_v54, %v675_v58  ;;  %v2814_v57 = vld [vmem:[%s3553_s10 + $0x168] sm:$0xff] }
  0x55   : > { %v980_v3 = vadd.f32 %v939_v60, %v938_v59  ;;  %v519_v5 = vmul.f32 %v3638_v4, %v486_v19  ;;  %v640_v6 = vmul.f32 %v3665_v23, %v607_v20  ;;  %v641_v8 = vmul.f32 %v3665_v23, %v608_v21 }
  0x56   : > { %v974_v7 = vadd.f32 %v935_v0, %v934_v63  ;;  %v3713_v10 = vadd.f32 %v878_v61, %v792_v1  ;;  %v3715_v11 = vadd.f32 %v879_v62, %v793_v2  ;;  %v758_v12 = vmul.f32 %v3673_v29, %v725_v22  ;;  %v2810_v22 = vld [vmem:[%s3553_s10 + $0x148] sm:$0xff] }
  0x57   : > { %981 = vadd.xlane.f32.xlu1 %v980_v3  ;;  %v672_v13 = vadd.f32 %v640_v6, %v518_v24  ;;  %v673_v15 = vadd.f32 %v641_v8, %v519_v5  ;;  %v759_v16 = vmul.f32 %v3673_v29, %v726_v25  ;;  %v844_v17 = vunpack.c.h.bf16 %v3654_v14  ;;  %v2831_v2 = vld [vmem:[%s3553_s10 + $0x1e8] sm:$0xff] }
  0x58   : > { %975 = vadd.xlane.f32.xlu0 %v974_v7  ;;  %v942_v19 = vmul.f32 %v3713_v10, %v3713_v10  ;;  %v943_v20 = vmul.f32 %v3715_v11, %v3715_v11  ;;  %v876_v21 = vmul.f32 %v3678_v33, %v843_v26  ;;  %v481_v27 = vunpack.c.l.bf16 %v456_v9 }
  0x59   : > { %v790_v28 = vadd.f32 %v758_v12, %v672_v13  ;;  %v791_v30 = vadd.f32 %v759_v16, %v673_v15  ;;  %v877_v24 = vmul.f32 %v3678_v33, %v844_v17  ;;  %v482_v25 = vunpack.c.h.bf16 %v456_v9  ;;  %v461_v15 = vld [vmem:[%s3553_s10 + $0x70] sm:$0xff] }
  0x5a   : > { %v986_v14 = vadd.f32 %v943_v20, %v942_v19  ;;  %v514_v32 = vmul.f32 %v3638_v4, %v481_v27  ;;  %v603_v34 = vunpack.c.l.bf16 %v2793_v18  ;;  %v604_v35 = vunpack.c.h.bf16 %v2793_v18  ;;  %v2798_v20 = vld [vmem:[%s3553_s10 + $0xf0] sm:$0xff] }
  0x5b   : > { %v3730_v36 = vadd.f32 %v876_v21, %v790_v28  ;;  %v3732_v37 = vadd.f32 %v877_v24, %v791_v30  ;;  %v515_v26 = vmul.f32 %v3638_v4, %v482_v25  ;;  %v721_v38 = vunpack.c.l.bf16 %v2810_v22  ;;  %v2815_v30 = vld [vmem:[%s3553_s10 + $0x170] sm:$0xff] }
  0x5c   : > { %987 = vadd.xlane.f32.xlu2 %v986_v14  ;;  %v636_v39 = vmul.f32 %v3665_v23, %v603_v34  ;;  %v637_v40 = vmul.f32 %v3665_v23, %v604_v35  ;;  %v722_v41 = vunpack.c.h.bf16 %v2810_v22  ;;  %v839_v42 = vunpack.c.l.bf16 %v2827_v31 }
  0x5d   : > { %v940_v44 = vmul.f32 %v3730_v36, %v3730_v36  ;;  %v941_v45 = vmul.f32 %v3732_v37, %v3732_v37  ;;  %v754_v46 = vmul.f32 %v3673_v29, %v721_v38  ;;  %v840_v49 = vunpack.c.h.bf16 %v2827_v31  ;;  %v2832_v38 = vld [vmem:[%s3553_s10 + $0x1f0] sm:$0xff] }
  0x5e   : > { %v668_v51 = vadd.f32 %v636_v39, %v514_v32  ;;  %v669_v47 = vadd.f32 %v637_v40, %v515_v26  ;;  %v755_v53 = vmul.f32 %v3673_v29, %v722_v41  ;;  %v872_v54 = vmul.f32 %v3678_v33, %v839_v42 }
  0x5f   : > { %v983_v58 = vadd.f32 %v941_v45, %v940_v44  ;;  %v873_v59 = vmul.f32 %v3678_v33, %v840_v49  ;;  %v489_v60 = vunpack.c.l.bf16 %v460_v43  ;;  %v490_v61 = vunpack.c.h.bf16 %v460_v43  ;;  %v448_v49 = vld [vmem:[%s3553_s10 + $0x8] sm:$0xff] }
  0x60   : > { %v786_v62 = vadd.f32 %v754_v46, %v668_v51  ;;  %v787_v63 = vadd.f32 %v755_v53, %v669_v47  ;;  %v611_v0 = vunpack.c.l.bf16 %v2797_v50  ;;  %v612_v1 = vunpack.c.h.bf16 %v2797_v50 }
  0x61   : > { %984 = vadd.xlane.f32.xlu1 %v983_v58  ;;  %v522_v3 = vmul.f32 %v3638_v4, %v489_v60  ;;  %v523_v5 = vmul.f32 %v3638_v4, %v490_v61  ;;  %v729_v6 = vunpack.c.l.bf16 %v2814_v57  ;;  %v730_v8 = vunpack.c.h.bf16 %v2814_v57  ;;  %v2802_v61 = vld [vmem:[%s3553_s10 + $0x108] sm:$0xff] }
  0x62   : > { %v3751_v9 = vadd.f32 %v872_v54, %v786_v62  ;;  %v3753_v7 = vadd.f32 %v873_v59, %v787_v63  ;;  %v644_v12 = vmul.f32 %v3665_v23, %v611_v0  ;;  %v645_v13 = vmul.f32 %v3665_v23, %v612_v1  ;;  %v2785_v54 = vld [vmem:[%s3553_s10 + $0x88] sm:$0xff] }
  0x63   : > { %v762_v16 = vmul.f32 %v3673_v29, %v729_v6  ;;  %v763_v17 = vmul.f32 %v3673_v29, %v730_v8  ;;  %v847_v18 = vunpack.c.l.bf16 %v2831_v2  ;;  %v848_v19 = vunpack.c.h.bf16 %v2831_v2  ;;  %v2819_v8 = vld [vmem:[%s3553_s10 + $0x188] sm:$0xff] }
  0x64   : > { %v936_v21 = vmul.f32 %v3751_v9, %v3751_v9  ;;  %v937_v27 = vmul.f32 %v3753_v7, %v3753_v7  ;;  %v676_v22 = vadd.f32 %v644_v12, %v522_v3  ;;  %v677_v28 = vadd.f32 %v645_v13, %v523_v5 }
  0x65   : > { %v880_v24 = vmul.f32 %v3678_v33, %v847_v18  ;;  %v881_v25 = vmul.f32 %v3678_v33, %v848_v19  ;;  %v491_v31 = vunpack.c.l.bf16 %v461_v15  ;;  %v492_v14 = vunpack.c.h.bf16 %v461_v15 }
  0x66   : > { %v977_v32 = vadd.f32 %v937_v27, %v936_v21  ;;  %v794_v34 = vadd.f32 %v762_v16, %v676_v22  ;;  %v795_v35 = vadd.f32 %v763_v17, %v677_v28  ;;  %v613_v26 = vunpack.c.l.bf16 %v2798_v20  ;;  %v447_v21 = vld [vmem:[%s3553_s10] sm:$0xff] }
  0x67   : > { %v524_v39 = vmul.f32 %v3638_v4, %v491_v31  ;;  %v525_v40 = vmul.f32 %v3638_v4, %v492_v14  ;;  %v614_v41 = vunpack.c.h.bf16 %v2798_v20  ;;  %v731_v42 = vunpack.c.l.bf16 %v2815_v30 }
  0x68   : > { %978 = vadd.xlane.f32.xlu0 %v977_v32  ;;  %v3771_v43 = vadd.f32 %v880_v24, %v794_v34  ;;  %v3773_v44 = vadd.f32 %v881_v25, %v795_v35  ;;  %v646_v45 = vmul.f32 %v3665_v23, %v613_v26  ;;  %v732_v46 = vunpack.c.h.bf16 %v2815_v30  ;;  %v2784_v24 = vld [vmem:[%s3553_s10 + $0x80] sm:$0xff] }
  0x69   : > { %v647_v50 = vmul.f32 %v3665_v23, %v614_v41  ;;  %v764_v51 = vmul.f32 %v3673_v29, %v731_v42  ;;  %v849_v47 = vunpack.c.l.bf16 %v2832_v38  ;;  %v850_v53 = vunpack.c.h.bf16 %v2832_v38 }
  0x6a   : > { %v944_v57 = vmul.f32 %v3771_v43, %v3771_v43  ;;  %v945_v58 = vmul.f32 %v3773_v44, %v3773_v44  ;;  %v678_v59 = vadd.f32 %v646_v45, %v524_v39  ;;  %v765_v60 = vmul.f32 %v3673_v29, %v732_v46  ;;  %v2801_v39 = vld [vmem:[%s3553_s10 + $0x100] sm:$0xff] }
  0x6b   : > { %v679_v62 = vadd.f32 %v647_v50, %v525_v40  ;;  %v882_v63 = vmul.f32 %v3678_v33, %v849_v47  ;;  %v883_v0 = vmul.f32 %v3678_v33, %v850_v53  ;;  %v465_v1 = vunpack.c.l.bf16 %v448_v49  ;;  %v2818_v46 = vld [vmem:[%s3553_s10 + $0x180] sm:$0xff] }
  0x6c   : > { %v989_v2 = vadd.f32 %v945_v58, %v944_v57  ;;  %v796_v3 = vadd.f32 %v764_v51, %v678_v59  ;;  %v466_v5 = vunpack.c.h.bf16 %v448_v49  ;;  %v587_v6 = vunpack.c.l.bf16 %v2785_v54 }
  0x6d   : > { %v797_v12 = vadd.f32 %v765_v60, %v679_v62  ;;  %v498_v13 = vmul.f32 %v3638_v4, %v465_v1  ;;  %v588_v15 = vunpack.c.h.bf16 %v2785_v54  ;;  %v705_v16 = vunpack.c.l.bf16 %v2802_v61 }
  0x6e   : > { %990 = vadd.xlane.f32.xlu2 %v989_v2  ;;  %v3790_v17 = vadd.f32 %v882_v63, %v796_v3  ;;  %v499_v18 = vmul.f32 %v3638_v4, %v466_v5  ;;  %v620_v19 = vmul.f32 %v3665_v23, %v587_v6  ;;  %v706_v20 = vunpack.c.h.bf16 %v2802_v61  ;;  %v462_v63 = vld [vmem:[%s3553_s10 + $0x78] sm:$0xff] }
  0x6f   : > { %v3795_v27 = vadd.f32 %v883_v0, %v797_v12  ;;  %v621_v22 = vmul.f32 %v3665_v23, %v588_v15  ;;  %v738_v28 = vmul.f32 %v3673_v29, %v705_v16  ;;  %v823_v30 = vunpack.c.l.bf16 %v2819_v8  ;;  %v2799_v5 = vld [vmem:[%s3553_s10 + $0xf8] sm:$0xff] }
  0x70   : > { %v946_v25 = vmul.f32 %v3790_v17, %v3790_v17  ;;  %v652_v31 = vadd.f32 %v620_v19, %v498_v13  ;;  %v739_v14 = vmul.f32 %v3673_v29, %v706_v20  ;;  %v824_v32 = vunpack.c.h.bf16 %v2819_v8  ;;  %v2816_v15 = vld [vmem:[%s3553_s10 + $0x178] sm:$0xff] }
  0x71   : > { %v947_v34 = vmul.f32 %v3795_v27, %v3795_v27  ;;  %v653_v35 = vadd.f32 %v621_v22, %v499_v18  ;;  %v856_v26 = vmul.f32 %v3678_v33, %v823_v30  ;;  %v463_v38 = vunpack.c.l.bf16 %v447_v21 }
  0x72   : > { %v770_v40 = vadd.f32 %v738_v28, %v652_v31  ;;  %v857_v41 = vmul.f32 %v3678_v33, %v824_v32  ;;  %v464_v42 = vunpack.c.h.bf16 %v447_v21  ;;  %v585_v45 = vunpack.c.l.bf16 %v2784_v24 }
  0x73   : > { %v992_v49 = vadd.f32 %v947_v34, %v946_v25  ;;  %v771_v50 = vadd.f32 %v739_v14, %v653_v35  ;;  %v496_v51 = vmul.f32 %v3638_v4, %v463_v38  ;;  %v586_v47 = vunpack.c.h.bf16 %v2784_v24  ;;  %v2833_v24 = vld [vmem:[%s3553_s10 + $0x1f8] sm:$0xff] }
  0x74   : > { %v3810_v53 = vadd.f32 %v856_v26, %v770_v40  ;;  %v497_v54 = vmul.f32 %v3638_v4, %v464_v42  ;;  %v618_v57 = vmul.f32 %v3665_v23, %v585_v45  ;;  %v703_v58 = vunpack.c.l.bf16 %v2801_v39 }
  0x75   : > { %993 = vadd.xlane.f32.xlu0 %v992_v49  ;;  %v3814_v59 = vadd.f32 %v857_v41, %v771_v50  ;;  %v619_v60 = vmul.f32 %v3665_v23, %v586_v47  ;;  %v704_v61 = vunpack.c.h.bf16 %v2801_v39  ;;  %v821_v62 = vunpack.c.l.bf16 %v2818_v46  ;;  %v449_v39 = vld [vmem:[%s3553_s10 + $0x10] sm:$0xff] }
  0x76   : > { %v920_v0 = vmul.f32 %v3810_v53, %v3810_v53  ;;  %v650_v1 = vadd.f32 %v618_v57, %v496_v51  ;;  %v736_v2 = vmul.f32 %v3673_v29, %v703_v58  ;;  %v822_v3 = vunpack.c.h.bf16 %v2818_v46  ;;  %v2786_v46 = vld [vmem:[%s3553_s10 + $0x90] sm:$0xff] }
  0x77   : > { %v921_v6 = vmul.f32 %v3814_v59, %v3814_v59  ;;  %v651_v8 = vadd.f32 %v619_v60, %v497_v54  ;;  %v737_v12 = vmul.f32 %v3673_v29, %v704_v61  ;;  %v854_v13 = vmul.f32 %v3678_v33, %v821_v62  ;;  %v2803_v54 = vld [vmem:[%s3553_s10 + $0x110] sm:$0xff] }
  0x78   : > { %v768_v16 = vadd.f32 %v736_v2, %v650_v1  ;;  %v855_v18 = vmul.f32 %v3678_v33, %v822_v3  ;;  %v493_v19 = vunpack.c.l.bf16 %v462_v63  ;;  %v494_v20 = vunpack.c.h.bf16 %v462_v63  ;;  %v2820_v2 = vld [vmem:[%s3553_s10 + $0x190] sm:$0xff] }
  0x79   : > { %v953_v21 = vadd.f32 %v921_v6, %v920_v0  ;;  %v769_v22 = vadd.f32 %v737_v12, %v651_v8  ;;  %v615_v28 = vunpack.c.l.bf16 %v2799_v5  ;;  %v616_v30 = vunpack.c.h.bf16 %v2799_v5 }
  0x7a   : > { %v3829_v25 = vadd.f32 %v854_v13, %v768_v16  ;;  %v526_v31 = vmul.f32 %v3638_v4, %v493_v19  ;;  %v527_v14 = vmul.f32 %v3638_v4, %v494_v20  ;;  %v733_v32 = vunpack.c.l.bf16 %v2816_v15 }
  0x7b   : > { %v3833_v34 = vadd.f32 %v855_v18, %v769_v22  ;;  %v648_v35 = vmul.f32 %v3665_v23, %v615_v28  ;;  %v649_v26 = vmul.f32 %v3665_v23, %v616_v30  ;;  %v734_v38 = vunpack.c.h.bf16 %v2816_v15  ;;  %v450_v18 = vld [vmem:[%s3553_s10 + $0x18] sm:$0xff] }
  0x7c   : > { %v918_v40 = vmul.f32 %v3829_v25, %v3829_v25  ;;  %v766_v41 = vmul.f32 %v3673_v29, %v733_v32  ;;  %v851_v42 = vunpack.c.l.bf16 %v2833_v24  ;;  %v852_v45 = vunpack.c.h.bf16 %v2833_v24  ;;  %v2787_v28 = vld [vmem:[%s3553_s10 + $0x98] sm:$0xff] }
  0x7d   : > { %954 = vadd.xlane.f32.xlu0 %v953_v21  ;;  %v919_v49 = vmul.f32 %v3833_v34, %v3833_v34  ;;  %v680_v50 = vadd.f32 %v648_v35, %v526_v31  ;;  %v681_v51 = vadd.f32 %v649_v26, %v527_v14  ;;  %v767_v47 = vmul.f32 %v3673_v29, %v734_v38  ;;  %v2804_v32 = vld [vmem:[%s3553_s10 + $0x118] sm:$0xff] }
  0x7e   : > { %v884_v57 = vmul.f32 %v3678_v33, %v851_v42  ;;  %v885_v58 = vmul.f32 %v3678_v33, %v852_v45  ;;  %v467_v60 = vunpack.c.l.bf16 %v449_v39  ;;  %v468_v61 = vunpack.c.h.bf16 %v449_v39 }
  0x7f   : > { %v950_v62 = vadd.f32 %v919_v49, %v918_v40  ;;  %v798_v63 = vadd.f32 %v766_v41, %v680_v50  ;;  %v799_v0 = vadd.f32 %v767_v47, %v681_v51  ;;  %v589_v1 = vunpack.c.l.bf16 %v2786_v46 }
  0x80   : > { %v500_v3 = vmul.f32 %v3638_v4, %v467_v60  ;;  %v501_v5 = vmul.f32 %v3638_v4, %v468_v61  ;;  %v590_v6 = vunpack.c.h.bf16 %v2786_v46  ;;  %v707_v8 = vunpack.c.l.bf16 %v2803_v54  ;;  %v2821_v46 = vld [vmem:[%s3553_s10 + $0x198] sm:$0xff]  ;;  %v452_v61 = vld [vmem:[%s3553_s10 + $0x28] sm:$0xff] }
  0x81   : > { %951 = vadd.xlane.f32.xlu2 %v950_v62  ;;  %v3851_v12 = vadd.f32 %v884_v57, %v798_v63  ;;  %v3853_v13 = vadd.f32 %v885_v58, %v799_v0  ;;  %v622_v15 = vmul.f32 %v3665_v23, %v589_v1  ;;  %v708_v16 = vunpack.c.h.bf16 %v2803_v54 }
  0x82   : > { %v623_v19 = vmul.f32 %v3665_v23, %v590_v6  ;;  %v740_v20 = vmul.f32 %v3673_v29, %v707_v8  ;;  %v825_v21 = vunpack.c.l.bf16 %v2820_v2  ;;  %v826_v22 = vunpack.c.h.bf16 %v2820_v2  ;;  %v2789_v2 = vld [vmem:[%s3553_s10 + $0xa8] sm:$0xff] }
  0x83   : > { %v948_v30 = vmul.f32 %v3851_v12, %v3851_v12  ;;  %v949_v24 = vmul.f32 %v3853_v13, %v3853_v13  ;;  %v654_v31 = vadd.f32 %v622_v15, %v500_v3  ;;  %v741_v14 = vmul.f32 %v3673_v29, %v708_v16 }
  0x84   : > { %v655_v35 = vadd.f32 %v623_v19, %v501_v5  ;;  %v858_v26 = vmul.f32 %v3678_v33, %v825_v21  ;;  %v859_v38 = vmul.f32 %v3678_v33, %v826_v22  ;;  %v469_v39 = vunpack.c.l.bf16 %v450_v18 }
  0x85   : > { %v995_v40 = vadd.f32 %v949_v24, %v948_v30  ;;  %v772_v41 = vadd.f32 %v740_v20, %v654_v31  ;;  %v470_v42 = vunpack.c.h.bf16 %v450_v18  ;;  %v591_v45 = vunpack.c.l.bf16 %v2787_v28  ;;  %v2806_v20 = vld [vmem:[%s3553_s10 + $0x128] sm:$0xff] }
  0x86   : > { %v773_v49 = vadd.f32 %v741_v14, %v655_v35  ;;  %v502_v50 = vmul.f32 %v3638_v4, %v469_v39  ;;  %v592_v51 = vunpack.c.h.bf16 %v2787_v28  ;;  %v709_v47 = vunpack.c.l.bf16 %v2804_v32  ;;  %v2823_v24 = vld [vmem:[%s3553_s10 + $0x1a8] sm:$0xff] }
  0x87   : > { %996 = vadd.xlane.f32.xlu1 %v995_v40  ;;  %v3870_v54 = vadd.f32 %v858_v26, %v772_v41  ;;  %v503_v57 = vmul.f32 %v3638_v4, %v470_v42  ;;  %v624_v58 = vmul.f32 %v3665_v23, %v591_v45  ;;  %v710_v60 = vunpack.c.h.bf16 %v2804_v32 }
  0x88   : > { %v3875_v62 = vadd.f32 %v859_v38, %v773_v49  ;;  %v625_v63 = vmul.f32 %v3665_v23, %v592_v51  ;;  %v742_v0 = vmul.f32 %v3673_v29, %v709_v47  ;;  %v827_v1 = vunpack.c.l.bf16 %v2821_v46  ;;  %v451_v49 = vld [vmem:[%s3553_s10 + $0x20] sm:$0xff] }
  0x89   : > { %v922_v3 = vmul.f32 %v3870_v54, %v3870_v54  ;;  %v656_v5 = vadd.f32 %v624_v58, %v502_v50  ;;  %v743_v6 = vmul.f32 %v3673_v29, %v710_v60  ;;  %v828_v8 = vunpack.c.h.bf16 %v2821_v46  ;;  %v2788_v58 = vld [vmem:[%s3553_s10 + $0xa0] sm:$0xff] }
  0x8a   : > { %v923_v15 = vmul.f32 %v3875_v62, %v3875_v62  ;;  %v657_v16 = vadd.f32 %v625_v63, %v503_v57  ;;  %v860_v18 = vmul.f32 %v3678_v33, %v827_v1  ;;  %v473_v19 = vunpack.c.l.bf16 %v452_v61  ;;  %v2805_v1 = vld [vmem:[%s3553_s10 + $0x120] sm:$0xff] }
  0x8b   : > { %v774_v21 = vadd.f32 %v742_v0, %v656_v5  ;;  %v861_v22 = vmul.f32 %v3678_v33, %v828_v8  ;;  %v474_v28 = vunpack.c.h.bf16 %v452_v61  ;;  %v595_v30 = vunpack.c.l.bf16 %v2789_v2 }
  0x8c   : > { %v956_v31 = vadd.f32 %v923_v15, %v922_v3  ;;  %v775_v14 = vadd.f32 %v743_v6, %v657_v16  ;;  %v506_v32 = vmul.f32 %v3638_v4, %v473_v19  ;;  %v596_v35 = vunpack.c.h.bf16 %v2789_v2  ;;  %v2822_v19 = vld [vmem:[%s3553_s10 + $0x1a0] sm:$0xff] }
  0x8d   : > { %v3890_v26 = vadd.f32 %v860_v18, %v774_v21  ;;  %v507_v38 = vmul.f32 %v3638_v4, %v474_v28  ;;  %v628_v39 = vmul.f32 %v3665_v23, %v595_v30  ;;  %v713_v40 = vunpack.c.l.bf16 %v2806_v20 }
  0x8e   : > { %v3894_v41 = vadd.f32 %v861_v22, %v775_v14  ;;  %v629_v42 = vmul.f32 %v3665_v23, %v596_v35  ;;  %v714_v45 = vunpack.c.h.bf16 %v2806_v20  ;;  %v831_v46 = vunpack.c.l.bf16 %v2823_v24 }
  0x8f   : > { %957 = vadd.xlane.f32.xlu1 %v956_v31  ;;  %v924_v50 = vmul.f32 %v3890_v26, %v3890_v26  ;;  %v660_v51 = vadd.f32 %v628_v39, %v506_v32  ;;  %v746_v47 = vmul.f32 %v3673_v29, %v713_v40  ;;  %v832_v57 = vunpack.c.h.bf16 %v2823_v24  ;;  %v454_v32 = vld [vmem:[%s3553_s10 + $0x38] sm:$0xff] }
  0x90   : > { %v925_v60 = vmul.f32 %v3894_v41, %v3894_v41  ;;  %v661_v61 = vadd.f32 %v629_v42, %v507_v38  ;;  %v747_v63 = vmul.f32 %v3673_v29, %v714_v45  ;;  %v864_v0 = vmul.f32 %v3678_v33, %v831_v46  ;;  %v2791_v42 = vld [vmem:[%s3553_s10 + $0xb8] sm:$0xff] }
  0x91   : > { %v778_v2 = vadd.f32 %v746_v47, %v660_v51  ;;  %v865_v3 = vmul.f32 %v3678_v33, %v832_v57  ;;  %v471_v5 = vunpack.c.l.bf16 %v451_v49  ;;  %v472_v6 = vunpack.c.h.bf16 %v451_v49  ;;  %v2808_v51 = vld [vmem:[%s3553_s10 + $0x138] sm:$0xff] }
  0x92   : > { %v959_v8 = vadd.f32 %v925_v60, %v924_v50  ;;  %v779_v15 = vadd.f32 %v747_v63, %v661_v61  ;;  %v593_v16 = vunpack.c.l.bf16 %v2788_v58  ;;  %v594_v18 = vunpack.c.h.bf16 %v2788_v58 }
  0x93   : > { %v3909_v20 = vadd.f32 %v864_v0, %v778_v2  ;;  %v504_v21 = vmul.f32 %v3638_v4, %v471_v5  ;;  %v505_v22 = vmul.f32 %v3638_v4, %v472_v6  ;;  %v711_v28 = vunpack.c.l.bf16 %v2805_v1  ;;  %v2825_v2 = vld [vmem:[%s3553_s10 + $0x1b8] sm:$0xff] }
  0x94   : > { %960 = vadd.xlane.f32.xlu2 %v959_v8  ;;  %v3913_v30 = vadd.f32 %v865_v3, %v779_v15  ;;  %v626_v24 = vmul.f32 %v3665_v23, %v593_v16  ;;  %v627_v31 = vmul.f32 %v3665_v23, %v594_v18  ;;  %v712_v14 = vunpack.c.h.bf16 %v2805_v1 }
  0x95   : > { %v928_v35 = vmul.f32 %v3909_v20, %v3909_v20  ;;  %v744_v38 = vmul.f32 %v3673_v29, %v711_v28  ;;  %v829_v39 = vunpack.c.l.bf16 %v2822_v19  ;;  %v830_v40 = vunpack.c.h.bf16 %v2822_v19 }
  0x96   : > { %v929_v45 = vmul.f32 %v3913_v30, %v3913_v30  ;;  %v658_v46 = vadd.f32 %v626_v24, %v504_v21  ;;  %v659_v49 = vadd.f32 %v627_v31, %v505_v22  ;;  %v745_v50 = vmul.f32 %v3673_v29, %v712_v14  ;;  %v453_v21 = vld [vmem:[%s3553_s10 + $0x30] sm:$0xff] }
  0x97   : > { %v862_v47 = vmul.f32 %v3678_v33, %v829_v39  ;;  %v863_v57 = vmul.f32 %v3678_v33, %v830_v40  ;;  %v477_v58 = vunpack.c.l.bf16 %v454_v32  ;;  %v478_v60 = vunpack.c.h.bf16 %v454_v32  ;;  %v2790_v14 = vld [vmem:[%s3553_s10 + $0xb0] sm:$0xff] }
  0x98   : > { %v965_v61 = vadd.f32 %v929_v45, %v928_v35  ;;  %v776_v63 = vadd.f32 %v744_v38, %v658_v46  ;;  %v777_v0 = vadd.f32 %v745_v50, %v659_v49  ;;  %v599_v1 = vunpack.c.l.bf16 %v2791_v42  ;;  %v2807_v40 = vld [vmem:[%s3553_s10 + $0x130] sm:$0xff] }
  0x99   : > { %v510_v3 = vmul.f32 %v3638_v4, %v477_v58  ;;  %v511_v5 = vmul.f32 %v3638_v4, %v478_v60  ;;  %v600_v6 = vunpack.c.h.bf16 %v2791_v42  ;;  %v717_v8 = vunpack.c.l.bf16 %v2808_v51  ;;  %v2824_v58 = vld [vmem:[%s3553_s10 + $0x1b0] sm:$0xff]  ;;  %s3441_s10 = smov 64  }
  0x9a   : > { %966 = vadd.xlane.f32.xlu1 %v965_v61  ;;  %v3931_v15 = vadd.f32 %v862_v47, %v776_v63  ;;  %v3933_v16 = vadd.f32 %v863_v57, %v777_v0  ;;  %v632_v18 = vmul.f32 %v3665_v23, %v599_v1  ;;  %v718_v19 = vunpack.c.h.bf16 %v2808_v51 }
  0x9b   : > { %v633_v22 = vmul.f32 %v3665_v23, %v600_v6  ;;  %v750_v28 = vmul.f32 %v3673_v29, %v717_v8  ;;  %v835_v24 = vunpack.c.l.bf16 %v2825_v2  ;;  %v836_v31 = vunpack.c.h.bf16 %v2825_v2 }
  0x9c   : > { %v926_v32 = vmul.f32 %v3931_v15, %v3931_v15  ;;  %v927_v35 = vmul.f32 %v3933_v16, %v3933_v16  ;;  %v664_v38 = vadd.f32 %v632_v18, %v510_v3  ;;  %v751_v39 = vmul.f32 %v3673_v29, %v718_v19 }
  0x9d   : > { %v665_v42 = vadd.f32 %v633_v22, %v511_v5  ;;  %v868_v45 = vmul.f32 %v3678_v33, %v835_v24  ;;  %v869_v46 = vmul.f32 %v3678_v33, %v836_v31  ;;  %v475_v49 = vunpack.c.l.bf16 %v453_v21 }
  0x9e   : > { %v962_v50 = vadd.f32 %v927_v35, %v926_v32  ;;  %v782_v51 = vadd.f32 %v750_v28, %v664_v38  ;;  %v476_v47 = vunpack.c.h.bf16 %v453_v21  ;;  %v597_v57 = vunpack.c.l.bf16 %v2790_v14 }
  0x9f   : > { %v783_v60 = vadd.f32 %v751_v39, %v665_v42  ;;  %v508_v61 = vmul.f32 %v3638_v4, %v475_v49  ;;  %v598_v63 = vunpack.c.h.bf16 %v2790_v14  ;;  %v715_v0 = vunpack.c.l.bf16 %v2807_v40 }
  0xa0   : > { %963 = vadd.xlane.f32.xlu0 %v962_v50  ;;  %v3950_v1 = vadd.f32 %v868_v45, %v782_v51  ;;  %v509_v2 = vmul.f32 %v3638_v4, %v476_v47  ;;  %v630_v3 = vmul.f32 %v3665_v23, %v597_v57  ;;  %v716_v5 = vunpack.c.h.bf16 %v2807_v40  ;;  %v2920_v47 = vld [vmem:[%s3563_s17 + $0xa8] sm:$0xf]  ;;  %v3121_v57 = vld [vmem:[%s3563_s17 + $0xb0] sm:$0xf0] }
  0xa1   : > { %v3954_v6 = vadd.f32 %v869_v46, %v783_v60  ;;  %v631_v8 = vmul.f32 %v3665_v23, %v598_v63  ;;  %v748_v18 = vmul.f32 %v3673_v29, %v715_v0  ;;  %v833_v19 = vunpack.c.l.bf16 %v2824_v58 }
  0xa2   : > { %v932_v21 = vmul.f32 %v3950_v1, %v3950_v1  ;;  %v662_v22 = vadd.f32 %v630_v3, %v508_v61  ;;  %v749_v28 = vmul.f32 %v3673_v29, %v716_v5  ;;  %v834_v24 = vunpack.c.h.bf16 %v2824_v58  ;;  %v3016_v58 = vld [vmem:[%s3563_s17 + $0x168] sm:$0xf]  ;;  %v3145_v61 = vld [vmem:[%s3563_s17 + $0x170] sm:$0xf0]  ;;  %v3118_v3 = vld [vmem:[%s3563_s17 + $0x98] sm:$0xf0] }
  0xa3   : > { %v933_v4 = vmul.f32 %v3954_v6, %v3954_v6  ;;  %v663_v31 = vadd.f32 %v631_v8, %v509_v2  ;;  %v866_v14 = vmul.f32 %v3678_v33, %v833_v19  ;;  %v2921_v60 = vor.u32 %v3121_v57, %v2920_v47  ;;  %v2908_v2 = vld [vmem:[%s3563_s17 + $0x90] sm:$0xf]  ;;  %v3109_v47 = vld [vmem:[%s3563_s17 + $0x50] sm:$0xf0] }
  0xa4   : > { %v780_v32 = vadd.f32 %v748_v18, %v662_v22  ;;  %v867_v35 = vmul.f32 %v3678_v33, %v834_v24  ;;  %v3440_v33 = vmov 256.0   ;;  %v3017_v63 = vor.u32 %v3145_v61, %v3016_v58  ;;  %v3004_v5 = vld [vmem:[%s3563_s17 + $0x150] sm:$0xf]  ;;  %v3142_v18 = vld [vmem:[%s3563_s17 + $0x158] sm:$0xf0] }
  0xa5   : > { %v971_v23 = vadd.f32 %v933_v4, %v932_v21  ;;  %v781_v38 = vadd.f32 %v749_v28, %v663_v31  ;;  %3246 = vrcp.f32 %v3440_v33  ;;  %3163 = vmatpush.bf16.msra.mxu2 %v2921_v60  ;;  %1603 = vmatpush.bf16.msra.mxu0 %v2921_v60  ;;  %v2909_v8 = vor.u32 %v3118_v3, %v2908_v2  ;;  %v2896_v28 = vld [vmem:[%s3563_s17 + $0x78] sm:$0xf]  ;;  %v3115_v24 = vld [vmem:[%s3563_s17 + $0x80] sm:$0xf0]  ;;  %v2980_v33 = vld [vmem:[%s3563_s17 + $0x120] sm:$0xf] }
  0xa6   : > { %v3965_v39 = vadd.f32 %v866_v14, %v780_v32  ;;  %3171 = vmatpush.bf16.msra.mxu3 %v3017_v63  ;;  %1652 = vmatpush.bf16.msra.mxu1 %v3017_v63  ;;  %v3005_v19 = vor.u32 %v3142_v18, %v3004_v5  ;;  %v2992_v4 = vld [vmem:[%s3563_s17 + $0x138] sm:$0xf]  ;;  %v2897_v14 = vor.u32 %v3115_v24, %v2896_v28  ;;  %v3139_v32 = vld [vmem:[%s3563_s17 + $0x140] sm:$0xf0]  ;;  %v2968_v58 = vld [vmem:[%s3563_s17 + $0x108] sm:$0xf] }
  0xa7   : > { %v3967_v40 = vadd.f32 %v867_v35, %v781_v38  ;;  %v3133_v60 = vld [vmem:[%s3563_s17 + $0x110] sm:$0xf0]  ;;  %v2860_v18 = vld [vmem:[%s3563_s17 + $0x30] sm:$0xf] }
  0xa8   : > { %972 = vadd.xlane.f32.xlu0 %v971_v23  ;;  %v930_v29 = vmul.f32 %v3965_v39, %v3965_v39  ;;  %v2993_v23 = vor.u32 %v3139_v32, %v2992_v4  ;;  %v3130_v4 = vld [vmem:[%s3563_s17 + $0xf8] sm:$0xf0] }
  0xa9   : > { %v931_v42 = vmul.f32 %v3967_v40, %v3967_v40  ;;  %3164 = vmatpush.bf16.msra.mxu2 %v2909_v8  ;;  %1604 = vmatpush.bf16.msra.mxu0 %v2909_v8 }
  0xaa   : > { %3172 = vmatpush.bf16.msra.mxu3 %v3005_v19  ;;  %1653 = vmatpush.bf16.msra.mxu1 %v3005_v19  ;;  %v3106_v19 = vld [vmem:[%s3563_s17 + $0x38] sm:$0xf0] }
  0xab   : > { %v968_v45 = vadd.f32 %v931_v42, %v930_v29  ;;  %v3247_v46 = vpop.eup %3246  ;;  %v2884_v29 = vld [vmem:[%s3563_s17 + $0x60] sm:$0xf]  ;;  %v3112_v42 = vld [vmem:[%s3563_s17 + $0x68] sm:$0xf0]  ;;  %v2861_v24 = vor.u32 %v3106_v19, %v2860_v18 }
  0xac   : > { %v999_v49 = vmul.f32 256.0, %v3247_v46  ;;  %vm1003_vm0 = vweird.f32 %v3247_v46 }
  0xad   : > { %969 = vadd.xlane.f32.xlu2 %v968_v45  ;;  %3165 = vmatpush.bf16.msra.mxu2 %v2897_v14  ;;  %v2885_v45 = vor.u32 %v3112_v42, %v2884_v29 }
  0xae   : > { %v1000_v50 = vsub.f32 1.0, %v999_v49  ;;  %1605 = vmatpush.bf16.msra.mxu0 %v2897_v14  ;;  %3173 = vmatpush.bf16.msra.mxu3 %v2993_v23 }
  0xaf   : > { %1654 = vmatpush.bf16.msra.mxu1 %v2993_v23  ;;  %v3103_v23 = vld [vmem:[%s3563_s17 + $0x20] sm:$0xf0] }
  0xb0   : > { %v1001_v51 = vmul.f32 %v3247_v46, %v1000_v50 }
  0xb1   : > { %3166 = vmatpush.bf16.msra.mxu2 %v2885_v45 }
  0xb2   : > { %v1002_v0 = vadd.f32 %v3247_v46, %v1001_v51  ;;  %1606 = vmatpush.bf16.msra.mxu0 %v2885_v45  ;;  %v2872_v51 = vld [vmem:[%s3563_s17 + $0x48] sm:$0xf]  ;;  %v2944_v45 = vld [vmem:[%s3563_s17 + $0xd8] sm:$0xf] }
  0xb3   : > { %v2873_v57 = vor.u32 %v3109_v47, %v2872_v51  ;;  %v2836_v47 = vld [vmem:[%s3563_s17] sm:$0xf] }
  0xb4   : > { %v3981_v21 = vsel %vm1003_vm0, %v3247_v46, %v1002_v0  ;;  %v3136_v46 = vld [vmem:[%s3563_s17 + $0x128] sm:$0xf0]  ;;  %v2969_v0 = vor.u32 %v3133_v60, %v2968_v58  ;;  %v2932_v60 = vld [vmem:[%s3563_s17 + $0xc0] sm:$0xf] }
  0xb5   : > { %v2981_v49 = vor.u32 %v3136_v46, %v2980_v33  ;;  %3167 = vmatpush.bf16.msra.mxu2 %v2873_v57  ;;  %v3127_v33 = vld [vmem:[%s3563_s17 + $0xe0] sm:$0xf0] }
  0xb6   : > { %1607 = vmatpush.bf16.msra.mxu0 %v2873_v57  ;;  %v3100_v57 = vld [vmem:[%s3563_s17 + $0x8] sm:$0xf0] }
  0xb7   : > { %3174 = vmatpush.bf16.msra.mxu3 %v2981_v49  ;;  %1655 = vmatpush.bf16.msra.mxu1 %v2981_v49  ;;  %v2837_v58 = vor.u32 %v3100_v57, %v2836_v47 }
  0xb9   : > { %3168 = vmatpush.bf16.msra.mxu2 %v2861_v24 }
  0xba   : > { %1608 = vmatpush.bf16.msra.mxu0 %v2861_v24 }
  0xbb   : > { %3175 = vmatpush.bf16.msra.mxu3 %v2969_v0  ;;  %1656 = vmatpush.bf16.msra.mxu1 %v2969_v0 }
  0xca   : > { %v982_v22 = vpop.xlane.xlu1 %981 }
  0xcb   : > { %v976_v31 = vpop.xlane.xlu0 %975  ;;  %v1015_v50 = vmul.f32 %v3981_v21, %v982_v22  ;;  %v2956_v22 = vld [vmem:[%s3563_s17 + $0xf0] sm:$0xf] }
  0xcc   : > { %v1013_v35 = vmul.f32 %v3981_v21, %v976_v31  ;;  %v2957_v14 = vor.u32 %v3130_v4, %v2956_v22 }
  0xcd   : > { %v4000_v2 = vadd.f32 1e-06, %v1015_v50  ;;  %v2945_v50 = vor.u32 %v3127_v33, %v2944_v45 }
  0xce   : > { %v3988_v38 = vadd.f32 1e-06, %v1013_v35  ;;  %3176 = vmatpush.bf16.msra.mxu3 %v2957_v14  ;;  %v2848_v35 = vld [vmem:[%s3563_s17 + $0x18] sm:$0xf]  ;;  %1657 = vmatpush.bf16.msra.mxu1 %v2957_v14 }
  0xcf   : > { %v988_v61 = vpop.xlane.xlu2 %987  ;;  %v2849_v42 = vor.u32 %v3103_v23, %v2848_v35  ;;  %vm1143_vm4 = vweird.f32 %v4000_v2 }
  0xd0   : > { %3248 = vrsqrt.f32 %v3988_v38  ;;  %v1017_v3 = vmul.f32 %v3981_v21, %v988_v61  ;;  %v3124_v61 = vld [vmem:[%s3563_s17 + $0xc8] sm:$0xf0]  ;;  %vm1123_vm2 = vweird.f32 %v3988_v38 }
  0xd1   : > { %3250 = vrsqrt.f32 %v4000_v2  ;;  %3169 = vmatpush.bf16.msra.mxu2 %v2849_v42  ;;  %1609 = vmatpush.bf16.msra.mxu0 %v2849_v42  ;;  %v2933_v18 = vor.u32 %v3124_v61, %v2932_v60  ;;  %v1229_v60 = vld [vmem:[#allocation6] sm:$0x3] }
  0xd2   : > { %v4014_v32 = vadd.f32 1e-06, %v1017_v3  ;;  %3177 = vmatpush.bf16.msra.mxu3 %v2945_v50  ;;  %1658 = vmatpush.bf16.msra.mxu1 %v2945_v50 }
  0xd4   : > { %v985_v63 = vpop.xlane.xlu1 %984  ;;  %vm1163_vm5 = vweird.f32 %v4014_v32 }
  0xd5   : > { %v1016_v5 = vmul.f32 %v3981_v21, %v985_v63  ;;  %3170 = vmatpush.bf16.msra.mxu2 %v2837_v58  ;;  %1610 = vmatpush.bf16.msra.mxu0 %v2837_v58 }
  0xd6   : > { %v4004_v8 = vpop.eup %3248  ;;  %3178 = vmatpush.bf16.msra.mxu3 %v2933_v18  ;;  %1659 = vmatpush.bf16.msra.mxu1 %v2933_v18 }
  0xd7   : > { %v4009_v28 = vadd.f32 1e-06, %v1016_v5  ;;  %v1118_v31 = vmul.f32 %v4004_v8, %v3988_v38  ;;  %v4029_v63 = vpop.eup %3250  ;;  %vm1124_vm1 = vweird.f32 %v4004_v8 }
  0xd8   : > { %v1138_v24 = vmul.f32 %v4029_v63, %v4000_v2  ;;  %vm1125_vm3 = vmor %vm1123_vm2, %vm1124_vm1  ;;  %vm1144_vm7 = vweird.f32 %v4029_v63 }
  0xd9   : > { %3252 = vrsqrt.f32 %v4009_v28  ;;  %v1119_v46 = vmul.f32 %v4004_v8, %v1118_v31  ;;  %vm1153_vm10 = vweird.f32 %v4009_v28  ;;  %vm4082_vm13 = vmor %vm1143_vm4, %vm1144_vm7 }
  0xda   : > { %3254 = vrsqrt.f32 %v4014_v32 }
  0xdb   : > { %v979_v29 = vpop.xlane.xlu0 %978  ;;  %v1120_v0 = vmul.f32 0.5, %v1119_v46 }
  0xdc   : > { %v1014_v49 = vmul.f32 %v3981_v21, %v979_v29  ;;  %v1139_v29 = vmul.f32 %v4029_v63, %v1138_v24 }
  0xdd   : > { %v1121_v4 = vsub.f32 1.5, %v1120_v0 }
  0xde   : > { %v1030_v51 = vadd.f32 1e-06, %v1014_v49  ;;  %v1140_v57 = vmul.f32 0.5, %v1139_v29 }
  0xdf   : > { %v4031_v3 = vpop.eup %3252  ;;  %v1122_v45 = vmul.f32 %v4004_v8, %v1121_v4  ;;  %v4062_v4 = vperm.slane %v1229_v60, 0 }
  0xe0   : > { %3256 = vrsqrt.f32 %v1030_v51  ;;  %v4034_v22 = vpop.eup %3254  ;;  %v1148_v31 = vmul.f32 %v4031_v3, %v4009_v28  ;;  %vm1133_vm8 = vweird.f32 %v1030_v51  ;;  %vm1154_vm11 = vweird.f32 %v4031_v3 }
  0xe1   : > { %v991_v5 = vpop.xlane.xlu2 %990  ;;  %v1158_v23 = vmul.f32 %v4034_v22, %v4014_v32  ;;  %v1126_v0 = vsel %vm1125_vm3, %v4004_v8, %v1122_v45  ;;  %vm1164_vm12 = vweird.f32 %v4034_v22  ;;  %vm1155_vm14 = vmor %vm1153_vm10, %vm1154_vm11 }
  0xe2   : > { %v1018_v19 = vmul.f32 %v3981_v21, %v991_v5  ;;  %v1149_v33 = vmul.f32 %v4031_v3, %v1148_v31  ;;  %v1141_v31 = vsub.f32 1.5, %v1140_v57  ;;  %v1213_v8 = vmul.f32 %v1126_v0, %v3695_v55  ;;  %vm1165_vm15 = vmor %vm1163_vm5, %vm1164_vm12 }
  0xe3   : > { %v1159_v47 = vmul.f32 %v4034_v22, %v1158_v23  ;;  %v1214_v45 = vmul.f32 %v1126_v0, %v3697_v56 }
  0xe4   : > { %v4040_v14 = vadd.f32 1e-06, %v1018_v19  ;;  %v1150_v5 = vmul.f32 0.5, %v1149_v33  ;;  %v4067_v33 = vperm.slane %v1229_v60, 1  ;;  %v1142_v57 = vmul.f32 %v4029_v63, %v1141_v31 }
  0xe5   : > { %v1160_v38 = vmul.f32 0.5, %v1159_v47 }
  0xe6   : > { %v3257_v35 = vpop.eup %3256  ;;  %3258 = vrsqrt.f32 %v4040_v14  ;;  %v1151_v29 = vsub.f32 1.5, %v1150_v5  ;;  %v1252_v0 = vmul.f32 %v4067_v33, %v1214_v45  ;;  %v1146_v28 = vsel %vm4082_vm13, %v4029_v63, %v1142_v57 }
  0xe7   : > { %v1128_v42 = vmul.f32 %v3257_v35, %v1030_v51  ;;  %vm1134_vm6 = vweird.f32 %v3257_v35  ;;  %v1217_v63 = vmul.f32 %v1146_v28, %v3689_v52  ;;  %vm1173_vm0 = vweird.f32 %v4040_v14 }
  0xe8   : > { %v994_v46 = vpop.xlane.xlu0 %993  ;;  %vm1135_vm9 = vmor %vm1133_vm8, %vm1134_vm6  ;;  %v1152_v60 = vmul.f32 %v4031_v3, %v1151_v29 }
  0xe9   : > { %v1129_v49 = vmul.f32 %v3257_v35, %v1128_v42  ;;  %v1019_v50 = vmul.f32 %v3981_v21, %v994_v46 }
  0xea   : > { %v1156_v29 = vsel %vm1155_vm14, %v4031_v3, %v1152_v60 }
  0xeb   : > { %v1130_v58 = vmul.f32 0.5, %v1129_v49  ;;  %v4055_v18 = vadd.f32 1e-06, %v1019_v50  ;;  %v1161_v50 = vsub.f32 1.5, %v1160_v38  ;;  %v1219_v3 = vmul.f32 %v1156_v29, %v3730_v36 }
  0xec   : > { %v4052_v61 = vpop.eup %3258 }
  0xed   : > { %v1131_v19 = vsub.f32 1.5, %v1130_v58  ;;  %v1168_v24 = vmul.f32 %v4052_v61, %v4040_v14  ;;  %3260 = vrsqrt.f32 %v4055_v18  ;;  %v1251_v58 = vmul.f32 %v4062_v4, %v1213_v8 }
  0xee   : > { %v1162_v38 = vmul.f32 %v4034_v22, %v1161_v50  ;;  %vm1174_vm1 = vweird.f32 %v4052_v61  ;;  %v1257_v36 = vmul.f32 %v4062_v4, %v1219_v3  ;;  %vm1183_vm5 = vweird.f32 %v4055_v18 }
  0xef   : > { %v1132_v23 = vmul.f32 %v3257_v35, %v1131_v19  ;;  %v1169_v51 = vmul.f32 %v4052_v61, %v1168_v24  ;;  %vm1175_vm2 = vmor %vm1173_vm0, %vm1174_vm1 }
  0xf0   : > { %v955_v42 = vpop.xlane.xlu0 %954  ;;  %v1166_v32 = vsel %vm1165_vm15, %v4034_v22, %v1162_v38  ;;  %v1220_v22 = vmul.f32 %v1156_v29, %v3732_v37  ;;  %v2922_v29 = vld [vmem:[%s3563_s17 + $0xb4] sm:$0xf0] }
  0xf1   : > { %v1136_v46 = vsel %vm1135_vm9, %v3257_v35, %v1132_v23  ;;  %v1006_v49 = vmul.f32 %v3981_v21, %v955_v42  ;;  %v1170_v24 = vmul.f32 0.5, %v1169_v51  ;;  %v1218_v51 = vmul.f32 %v1146_v28, %v3691_v48  ;;  %v3120_v28 = vld [vmem:[%s3563_s17 + $0xac] sm:$0xf] }
  0xf2   : > { %v1215_v55 = vmul.f32 %v1136_v46, %v3751_v9  ;;  %v1216_v47 = vmul.f32 %v1136_v46, %v3753_v7  ;;  %v1255_v48 = vmul.f32 %v4062_v4, %v1217_v63 }
  0xf3   : > { %v1022_v56 = vadd.f32 1e-06, %v1006_v49  ;;  %v4095_v19 = vpop.eup %3260  ;;  %v1171_v45 = vsub.f32 1.5, %v1170_v24  ;;  %v1256_v14 = vmul.f32 %v4067_v33, %v1218_v51 }
  0xf4   : > { %v952_v9 = vpop.xlane.xlu2 %951  ;;  %v1253_v7 = vmul.f32 %v4062_v4, %v1215_v55  ;;  %v1254_v5 = vmul.f32 %v4067_v33, %v1216_v47  ;;  %v1178_v42 = vmul.f32 %v4095_v19, %v4055_v18  ;;  %vm1184_vm9 = vweird.f32 %v4095_v19 }
  0xf5   : > { %3262 = vrsqrt.f32 %v1022_v56  ;;  %v1005_v2 = vmul.f32 %v3981_v21, %v952_v9  ;;  %v1172_v35 = vmul.f32 %v4052_v61, %v1171_v45  ;;  %vm1053_vm3 = vweird.f32 %v1022_v56  ;;  %vm4200_vm11 = vmor %vm1183_vm5, %vm1184_vm9 }
  0xf6   : > { %v4098_v31 = vpack.c.bf16 %v1253_v7, %v1251_v58  ;;  %v4100_v23 = vpack.c.bf16 %v1254_v5, %v1252_v0  ;;  %v1179_v47 = vmul.f32 %v4095_v19, %v1178_v42  ;;  %v1221_v58 = vmul.f32 %v1166_v32, %v3713_v10 }
  0xf7   : > { %v4106_v8 = vadd.f32 1e-06, %v1005_v2  ;;  %v1258_v7 = vmul.f32 %v4067_v33, %v1220_v22  ;;  %v4143_v5 = vmul.f32 %v1166_v32, %v3715_v11  ;;  %v1176_v2 = vsel %vm1175_vm2, %v4052_v61, %v1172_v35  ;;  %v3144_v61 = vld [vmem:[%s3563_s17 + $0x16c] sm:$0xf] }
  0xf8   : > { %1631 = vmatmul.bf16.vlgmr.msra.gmra.mxu2 %v4098_v31  ;;  %1680 = vmatmul.bf16.vlgmr.msra.gmra.mxu3 %v4100_v23  ;;  %v1180_v37 = vmul.f32 0.5, %v1179_v47  ;;  %v4140_v0 = vmul.f32 %v4062_v4, %v1221_v58  ;;  %v4156_v11 = vpack.c.bf16 %v1257_v36, %v1255_v48  ;;  %v2925_v32 = vor.u32 %v3120_v28, %v2922_v29  ;;  %v3117_v36 = vld [vmem:[%s3563_s17 + $0x94] sm:$0xf] }
  0xf9   : > { %3264 = vrsqrt.f32 %v4106_v8  ;;  %vm1043_vm7 = vweird.f32 %v4106_v8  ;;  %v4165_v22 = vpack.c.bf16 %v1258_v7, %v1256_v14  ;;  %v1223_v58 = vmul.f32 %v1176_v2, %v3771_v43  ;;  %v3141_v7 = vld [vmem:[%s3563_s17 + $0x154] sm:$0xf] }
  0xfa   : > { %v997_v46 = vpop.xlane.xlu1 %996  ;;  %1701 = vmatpush.bf16.msrb.mxu2 %v2925_v32 }
  0xfb   : > { %v3263_v49 = vpop.eup %3262  ;;  %v1020_v50 = vmul.f32 %v3981_v21, %v997_v46  ;;  %v3018_v46 = vld [vmem:[%s3563_s17 + $0x174] sm:$0xf0] }
  0xfc   : > { %v1048_v55 = vmul.f32 %v3263_v49, %v1022_v56  ;;  %vm1054_vm4 = vweird.f32 %v3263_v49  ;;  %v3021_v3 = vor.u32 %v3144_v61, %v3018_v46  ;;  %v3114_v61 = vld [vmem:[%s3563_s17 + $0x7c] sm:$0xf] }
  0xfd   : > { %v4125_v57 = vadd.f32 1e-06, %v1020_v50  ;;  %vm4150_vm6 = vmor %vm1053_vm3, %vm1054_vm4 }
  0xfe   : > { %v1049_v52 = vmul.f32 %v3263_v49, %v1048_v55  ;;  %v1181_v55 = vsub.f32 1.5, %v1180_v37  ;;  %1750 = vmatpush.bf16.msrb.mxu3 %v3021_v3  ;;  %v1224_v37 = vmul.f32 %v1176_v2, %v3773_v44  ;;  %v3138_v3 = vld [vmem:[%s3563_s17 + $0x13c] sm:$0xf] }
  0xff   : > { %v4130_v60 = vpop.eup %3264  ;;  %3266 = vrsqrt.f32 %v4125_v57  ;;  %vm1193_vm12 = vweird.f32 %v4125_v57 }
 0x100   : > { %v1050_v9 = vmul.f32 0.5, %v1049_v52  ;;  %v1038_v10 = vmul.f32 %v4130_v60, %v4106_v8  ;;  %vm1044_vm8 = vweird.f32 %v4130_v60 }
 0x101   : > { %vm4179_vm10 = vmor %vm1043_vm7, %vm1044_vm8 }
 0x102   : > { %v1051_v56 = vsub.f32 1.5, %v1050_v9  ;;  %v1039_v38 = vmul.f32 %v4130_v60, %v1038_v10  ;;  %v958_v24 = vpop.xlane.xlu1 %957  ;;  %v2910_v9 = vld [vmem:[%s3563_s17 + $0x9c] sm:$0xf0] }
 0x103   : > { %v1007_v45 = vmul.f32 %v3981_v21, %v958_v24  ;;  %v2913_v44 = vor.u32 %v3117_v36, %v2910_v9 }
 0x104   : > { %v1052_v50 = vmul.f32 %v3263_v49, %v1051_v56  ;;  %v1040_v63 = vmul.f32 0.5, %v1039_v38  ;;  %v3006_v56 = vld [vmem:[%s3563_s17 + $0x15c] sm:$0xf0] }
 0x105   : > { %v4161_v51 = vpop.eup %3266  ;;  %v4163_v47 = vadd.f32 1e-06, %v1007_v45  ;;  %v3009_v2 = vor.u32 %v3141_v7, %v3006_v56  ;;  %1702 = vmatpush.bf16.msrb.mxu2 %v2913_v44  ;;  %v3135_v7 = vld [vmem:[%s3563_s17 + $0x124] sm:$0xf] }
 0x106   : > { %v1056_v35 = vsel %vm4150_vm6, %v3263_v49, %v1052_v50  ;;  %v1041_v52 = vsub.f32 1.5, %v1040_v63  ;;  %v1188_v48 = vmul.f32 %v4161_v51, %v4125_v57  ;;  %v2898_v63 = vld [vmem:[%s3563_s17 + $0x84] sm:$0xf0]  ;;  %vm1194_vm13 = vweird.f32 %v4161_v51 }
 0x107   : > { %3268 = vrsqrt.f32 %v4163_v47  ;;  %v961_v14 = vpop.xlane.xlu2 %960  ;;  %v1199_v49 = vmul.f32 %v1056_v35, %v3810_v53  ;;  %v1200_v10 = vmul.f32 %v1056_v35, %v3814_v59  ;;  %v1182_v53 = vmul.f32 %v4095_v19, %v1181_v55  ;;  %1751 = vmatpush.bf16.msrb.mxu3 %v3009_v2  ;;  %v2994_v55 = vld [vmem:[%s3563_s17 + $0x144] sm:$0xf0]  ;;  %vm4243_vm14 = vmor %vm1193_vm12, %vm1194_vm13 }
 0x108   : > { %v1042_v38 = vmul.f32 %v4130_v60, %v1041_v52  ;;  %v1189_v8 = vmul.f32 %v4161_v51, %v1188_v48  ;;  %v1008_v24 = vmul.f32 %v3981_v21, %v961_v14  ;;  %1636 = vmatmul.bf16.gmra.mxu2 %v4156_v11  ;;  %1685 = vmatmul.bf16.gmra.mxu3 %v4165_v22  ;;  %vm1063_vm15 = vweird.f32 %v4163_v47 }
 0x109   : > { %v1261_v59 = vmul.f32 %v4062_v4, %v1223_v58  ;;  %v1237_v32 = vmul.f32 %v4062_v4, %v1199_v49  ;;  %v1238_v18 = vmul.f32 %v4067_v33, %v1200_v10  ;;  %v2901_v58 = vor.u32 %v3114_v61, %v2898_v63  ;;  %v3111_v49 = vld [vmem:[%s3563_s17 + $0x64] sm:$0xf]  ;;  %v2886_v10 = vld [vmem:[%s3563_s17 + $0x6c] sm:$0xf0] }
 0x10a   : > { %v1046_v29 = vsel %vm4179_vm10, %v4130_v60, %v1042_v38  ;;  %v1190_v42 = vmul.f32 0.5, %v1189_v8  ;;  %v4207_v45 = vadd.f32 1e-06, %v1008_v24  ;;  %v2997_v48 = vor.u32 %v3138_v3, %v2994_v55  ;;  %v2982_v24 = vld [vmem:[%s3563_s17 + $0x12c] sm:$0xf0] }
 0x10b   : > { %v1197_v46 = vmul.f32 %v1046_v29, %v3829_v25  ;;  %v1198_v50 = vmul.f32 %v1046_v29, %v3833_v34  ;;  %v1186_v36 = vsel %vm4200_vm11, %v4095_v19, %v1182_v53  ;;  %1703 = vmatpush.bf16.msrb.mxu2 %v2901_v58  ;;  %v2889_v8 = vor.u32 %v3111_v49, %v2886_v10  ;;  %v2928_v63 = vld [vmem:[%s3563_s17 + $0xb0] sm:$0xf]  ;;  %v3105_v49 = vld [vmem:[%s3563_s17 + $0x34] sm:$0xf]  ;;  %v2862_v10 = vld [vmem:[%s3563_s17 + $0x3c] sm:$0xf0] }
 0x10c   : > { %v1191_v60 = vsub.f32 1.5, %v1190_v42  ;;  %3270 = vrsqrt.f32 %v4207_v45  ;;  %1752 = vmatpush.bf16.msrb.mxu3 %v2997_v48  ;;  %v1260_v2 = vmul.f32 %v4067_v33, %v4143_v5  ;;  %v2985_v28 = vor.u32 %v3135_v7, %v2982_v24  ;;  %v3108_v5 = vld [vmem:[%s3563_s17 + $0x4c] sm:$0xf]  ;;  %v3129_v19 = vld [vmem:[%s3563_s17 + $0xf4] sm:$0xf] }
 0x10d   : > { %v4219_v35 = vpop.eup %3268  ;;  %v1235_v25 = vmul.f32 %v4062_v4, %v1197_v46  ;;  %v1236_v34 = vmul.f32 %v4067_v33, %v1198_v50  ;;  %v967_v52 = vpop.xlane.xlu1 %966  ;;  %v4255_v57 = vpack.c.bf16 %v1261_v59, %v4140_v0  ;;  %v1262_v29 = vmul.f32 %v4067_v33, %v1224_v37  ;;  %v2874_v0 = vld [vmem:[%s3563_s17 + $0x54] sm:$0xf0]  ;;  %v3132_v50 = vld [vmem:[%s3563_s17 + $0x10c] sm:$0xf] }
 0x10e   : > { %v1192_v9 = vmul.f32 %v4161_v51, %v1191_v60  ;;  %v1058_v43 = vmul.f32 %v4219_v35, %v4163_v47  ;;  %v1010_v14 = vmul.f32 %v3981_v21, %v967_v52  ;;  %v1225_v42 = vmul.f32 %v1186_v36, %v3790_v17 }
 0x10f   : > { %v4234_v56 = vpack.c.bf16 %v1237_v32, %v1235_v25  ;;  %v4236_v38 = vpack.c.bf16 %v1238_v18, %v1236_v34  ;;  %vm1064_vm0 = vweird.f32 %v4219_v35  ;;  %1704 = vmatpush.bf16.msrb.mxu2 %v2889_v8  ;;  %v1226_v46 = vmul.f32 %v1186_v36, %v3795_v27  ;;  %v2970_v18 = vld [vmem:[%s3563_s17 + $0x114] sm:$0xf0]  ;;  %v3024_v25 = vld [vmem:[%s3563_s17 + $0x170] sm:$0xf] }
 0x110   : > { %v1059_v53 = vmul.f32 %v4219_v35, %v1058_v43  ;;  %v4248_v44 = vadd.f32 1e-06, %v1010_v14  ;;  %v1196_v37 = vsel %vm4243_vm14, %v4161_v51, %v1192_v9  ;;  %1753 = vmatpush.bf16.msrb.mxu3 %v2985_v28  ;;  %v2877_v60 = vor.u32 %v3108_v5, %v2874_v0  ;;  %v3122_v51 = vld [vmem:[%s3563_s17 + $0xb8] sm:$0xf0]  ;;  %vm4282_vm1 = vmor %vm1063_vm15, %vm1064_vm0  ;;  %v3012_v5 = vld [vmem:[%s3563_s17 + $0x158] sm:$0xf] }
 0x111   : > { %1611 = vmatmul.bf16.vlgmr.msra.gmra.mxu0 %v4234_v56  ;;  %1660 = vmatmul.bf16.vlgmr.msra.gmra.mxu1 %v4236_v38  ;;  %v2973_v58 = vor.u32 %v3132_v50, %v2970_v18  ;;  %v4287_v52 = vpack.c.bf16 %v1262_v29, %v1260_v2  ;;  %v4290_v48 = vmul.f32 %v4062_v4, %v1225_v42  ;;  %v3146_v9 = vld [vmem:[%s3563_s17 + $0x178] sm:$0xf0]  ;;  %vm1073_vm2 = vweird.f32 %v4207_v45  ;;  %v2916_v42 = vld [vmem:[%s3563_s17 + $0x98] sm:$0xf]  ;;  %v3143_v50 = vld [vmem:[%s3563_s17 + $0x160] sm:$0xf0] }
 0x112   : > { %v4259_v32 = vpop.eup %3270  ;;  %v1060_v61 = vmul.f32 0.5, %v1059_v53  ;;  %3272 = vrsqrt.f32 %v4248_v44  ;;  %v2929_v36 = vor.u32 %v3122_v51, %v2928_v63  ;;  %v3025_v14 = vor.u32 %v3146_v9, %v3024_v25  ;;  %v2958_v53 = vld [vmem:[%s3563_s17 + $0xfc] sm:$0xf0]  ;;  %v2850_v63 = vld [vmem:[%s3563_s17 + $0x24] sm:$0xf0] }
 0x113   : > { %v1068_v17 = vmul.f32 %v4259_v32, %v4207_v45  ;;  %v964_v59 = vpop.xlane.xlu0 %963  ;;  %vm1074_vm3 = vweird.f32 %v4259_v32  ;;  %v1227_v8 = vmul.f32 %v1196_v37, %v3851_v12  ;;  %1705 = vmatpush.bf16.msrb.mxu2 %v2877_v60  ;;  %v2865_v24 = vor.u32 %v3105_v49, %v2862_v10  ;;  %v2904_v51 = vld [vmem:[%s3563_s17 + $0x80] sm:$0xf]  ;;  %v3116_v25 = vld [vmem:[%s3563_s17 + $0x88] sm:$0xf0]  ;;  %v3099_v49 = vld [vmem:[%s3563_s17 + $0x4] sm:$0xf] }
 0x114   : > { %v1061_v3 = vsub.f32 1.5, %v1060_v61  ;;  %v1009_v55 = vmul.f32 %v3981_v21, %v964_v59  ;;  %1754 = vmatpush.bf16.msrb.mxu3 %v2973_v58  ;;  %v4312_v12 = vmul.f32 %v4067_v33, %v1226_v46  ;;  %v2961_v29 = vor.u32 %v3129_v19, %v2958_v53  ;;  %v3119_v61 = vld [vmem:[%s3563_s17 + $0xa0] sm:$0xf0]  ;;  %1799 = vmatpush.bf16.msrb.mxu0 %v2929_v36  ;;  %v3102_v46 = vld [vmem:[%s3563_s17 + $0x1c] sm:$0xf]  ;;  %vm4327_vm4 = vmor %vm1073_vm2, %vm1074_vm3 }
 0x115   : > { %v1069_v27 = vmul.f32 %v4259_v32, %v1068_v17  ;;  %v1228_v59 = vmul.f32 %v1196_v37, %v3853_v13  ;;  %1848 = vmatpush.bf16.msrb.mxu1 %v3025_v14  ;;  %vm1093_vm5 = vweird.f32 %v4248_v44  ;;  %v2917_v13 = vor.u32 %v3119_v61, %v2916_v42  ;;  %v3140_v14 = vld [vmem:[%s3563_s17 + $0x148] sm:$0xf0]  ;;  %v2838_v19 = vld [vmem:[%s3563_s17 + $0xc] sm:$0xf0]  ;;  %v3123_v53 = vld [vmem:[%s3563_s17 + $0xc4] sm:$0xf] }
 0x116   : > { %v1062_v43 = vmul.f32 %v4219_v35, %v1061_v3  ;;  %v4295_v47 = vadd.f32 1e-06, %v1009_v55  ;;  %v3013_v37 = vor.u32 %v3143_v50, %v3012_v5  ;;  %v3126_v3 = vld [vmem:[%s3563_s17 + $0xdc] sm:$0xf]  ;;  %v4339_v58 = vmul.f32 %v4062_v4, %v1227_v8  ;;  %v3113_v18 = vld [vmem:[%s3563_s17 + $0x70] sm:$0xf0] }
 0x117   : > { %v1070_v7 = vmul.f32 0.5, %v1069_v27  ;;  %1706 = vmatpush.bf16.msrb.mxu2 %v2865_v24  ;;  %v2853_v36 = vor.u32 %v3102_v46, %v2850_v63  ;;  %v2905_v8 = vor.u32 %v3116_v25, %v2904_v51  ;;  %v2841_v50 = vor.u32 %v3099_v49, %v2838_v19  ;;  %v3137_v63 = vld [vmem:[%s3563_s17 + $0x130] sm:$0xf0] }
 0x118   : > { %v4303_v2 = vpop.eup %3272  ;;  %v1066_v28 = vsel %vm4282_vm1, %v4219_v35, %v1062_v43  ;;  %3274 = vrsqrt.f32 %v4295_v47  ;;  %1641 = vmatmul.bf16.gmra.mxu2 %v4255_v57  ;;  %1690 = vmatmul.bf16.gmra.mxu3 %v4287_v52  ;;  %v3000_v43 = vld [vmem:[%s3563_s17 + $0x140] sm:$0xf]  ;;  %vm1083_vm8 = vweird.f32 %v4295_v47 }
 0x119   : > { %v1071_v0 = vsub.f32 1.5, %v1070_v7  ;;  %v1088_v35 = vmul.f32 %v4303_v2, %v4248_v44  ;;  %v1201_v17 = vmul.f32 %v1066_v28, %v3870_v54  ;;  %v1202_v54 = vmul.f32 %v1066_v28, %v3875_v62  ;;  %1755 = vmatpush.bf16.msrb.mxu3 %v2961_v29  ;;  %v2946_v62 = vld [vmem:[%s3563_s17 + $0xe4] sm:$0xf0]  ;;  %1800 = vmatpush.bf16.msrb.mxu0 %v2917_v13  ;;  %v2976_v44 = vld [vmem:[%s3563_s17 + $0x110] sm:$0xf] }
 0x11a   : > { %vm1094_vm6 = vweird.f32 %v4303_v2  ;;  %v2949_v9 = vor.u32 %v3126_v3, %v2946_v62  ;;  %1849 = vmatpush.bf16.msrb.mxu1 %v3013_v37  ;;  %v3001_v24 = vor.u32 %v3140_v14, %v3000_v43  ;;  %v2988_v13 = vld [vmem:[%s3563_s17 + $0x128] sm:$0xf]  ;;  %v1266_v37 = vmul.f32 %v4067_v33, %v1228_v59 }
 0x11b   : > { %v1072_v55 = vmul.f32 %v4259_v32, %v1071_v0  ;;  %v1089_v45 = vmul.f32 %v4303_v2, %v1088_v35  ;;  %v973_v60 = vpop.xlane.xlu0 %972  ;;  %v1239_v34 = vmul.f32 %v4062_v4, %v1201_v17  ;;  %v1240_v61 = vmul.f32 %v4067_v33, %v1202_v54  ;;  %v2892_v0 = vld [vmem:[%s3563_s17 + $0x68] sm:$0xf]  ;;  %1707 = vmatpush.bf16.msrb.mxu2 %v2853_v36  ;;  %vm4377_vm7 = vmor %vm1093_vm5, %vm1094_vm6  ;;  %v3110_v36 = vld [vmem:[%s3563_s17 + $0x58] sm:$0xf0] }
 0x11c   : > { %v1012_v27 = vmul.f32 %v3981_v21, %v973_v60  ;;  %v2893_v51 = vor.u32 %v3113_v18, %v2892_v0  ;;  %v2989_v25 = vor.u32 %v3137_v63, %v2988_v13  ;;  %v4412_v19 = vpack.c.bf16 %v1266_v37, %v4312_v12  ;;  %v3128_v18 = vld [vmem:[%s3563_s17 + $0xe8] sm:$0xf0] }
 0x11d   : > { %v1076_v10 = vsel %vm4327_vm4, %v4259_v32, %v1072_v55  ;;  %v1090_v7 = vmul.f32 0.5, %v1089_v45  ;;  %v2934_v32 = vld [vmem:[%s3563_s17 + $0xcc] sm:$0xf0]  ;;  %1756 = vmatpush.bf16.msrb.mxu3 %v2949_v9  ;;  %1801 = vmatpush.bf16.msrb.mxu0 %v2905_v8  ;;  %v3107_v8 = vld [vmem:[%s3563_s17 + $0x40] sm:$0xf0] }
 0x11e   : > { %v4354_v28 = vpop.eup %3274  ;;  %v1203_v29 = vmul.f32 %v1076_v10, %v3890_v26  ;;  %v1204_v42 = vmul.f32 %v1076_v10, %v3894_v41  ;;  %v4359_v5 = vadd.f32 1e-06, %v1012_v27  ;;  %v2937_v46 = vor.u32 %v3123_v53, %v2934_v32  ;;  %1850 = vmatpush.bf16.msrb.mxu1 %v3001_v24  ;;  %v2880_v27 = vld [vmem:[%s3563_s17 + $0x50] sm:$0xf]  ;;  %v2964_v53 = vld [vmem:[%s3563_s17 + $0xf8] sm:$0xf] }
 0x11f   : > { %v1091_v35 = vsub.f32 1.5, %v1090_v7  ;;  %v1078_v17 = vmul.f32 %v4354_v28, %v4295_v47  ;;  %vm1084_vm9 = vweird.f32 %v4354_v28  ;;  %1708 = vmatpush.bf16.msrb.mxu2 %v2841_v50  ;;  %v2881_v49 = vor.u32 %v3110_v36, %v2880_v27  ;;  %v2868_v7 = vld [vmem:[%s3563_s17 + $0x38] sm:$0xf] }
 0x120   : > { %v1241_v26 = vmul.f32 %v4062_v4, %v1203_v29  ;;  %v1242_v41 = vmul.f32 %v4067_v33, %v1204_v42  ;;  %3276 = vrsqrt.f32 %v4359_v5  ;;  %v970_v54 = vpop.xlane.xlu2 %969  ;;  %vm1085_vm10 = vmor %vm1083_vm8, %vm1084_vm9  ;;  %v3131_v29 = vld [vmem:[%s3563_s17 + $0x100] sm:$0xf0]  ;;  %vm1113_vm11 = vweird.f32 %v4359_v5 }
 0x121   : > { %v1092_v3 = vmul.f32 %v4303_v2, %v1091_v35  ;;  %v1079_v45 = vmul.f32 %v4354_v28, %v1078_v17  ;;  %v1011_v60 = vmul.f32 %v3981_v21, %v970_v54  ;;  %1757 = vmatpush.bf16.msrb.mxu3 %v2937_v46  ;;  %1802 = vmatpush.bf16.msrb.mxu0 %v2893_v51  ;;  %v2856_v35 = vld [vmem:[%s3563_s17 + $0x20] sm:$0xf]  ;;  %v3125_v51 = vld [vmem:[%s3563_s17 + $0xd0] sm:$0xf0] }
 0x122   : > { %v4383_v62 = vpack.c.bf16 %v1241_v26, %v1239_v34  ;;  %v4385_v59 = vpack.c.bf16 %v1242_v41, %v1240_v61  ;;  %v3134_v34 = vld [vmem:[%s3563_s17 + $0x118] sm:$0xf0]  ;;  %1851 = vmatpush.bf16.msrb.mxu1 %v2989_v25  ;;  %v2965_v0 = vor.u32 %v3131_v29, %v2964_v53  ;;  %v2952_v46 = vld [vmem:[%s3563_s17 + $0xe0] sm:$0xf] }
 0x123   : > { %v1080_v9 = vmul.f32 0.5, %v1079_v45  ;;  %v4392_v21 = vadd.f32 1e-06, %v1011_v60  ;;  %v1096_v43 = vsel %vm4377_vm7, %v4303_v2, %v1092_v3  ;;  %v2977_v10 = vor.u32 %v3134_v34, %v2976_v44  ;;  %v2844_v3 = vld [vmem:[%s3563_s17 + $0x8] sm:$0xf] }
 0x124   : > { %1616 = vmatmul.bf16.gmra.mxu0 %v4383_v62  ;;  %1665 = vmatmul.bf16.gmra.mxu1 %v4385_v59  ;;  %v4409_v2 = vpack.c.bf16 %v4339_v58, %v4290_v48  ;;  %v1207_v47 = vmul.f32 %v1096_v43, %v3909_v20  ;;  %v1208_v48 = vmul.f32 %v1096_v43, %v3913_v30  ;;  %v3104_v20 = vld [vmem:[%s3563_s17 + $0x28] sm:$0xf0]  ;;  %v3101_v45 = vld [vmem:[%s3563_s17 + $0x10] sm:$0xf0]  ;;  %v2940_v60 = vld [vmem:[%s3563_s17 + $0xc8] sm:$0xf] }
 0x125   : > { %v1081_v14 = vsub.f32 1.5, %v1080_v9  ;;  %3278 = vrsqrt.f32 %v4392_v21  ;;  %v2869_v58 = vor.u32 %v3107_v8, %v2868_v7  ;;  %1803 = vmatpush.bf16.msrb.mxu0 %v2881_v49  ;;  %v2857_v37 = vor.u32 %v3104_v20, %v2856_v35 }
 0x126   : > { %v3277_v24 = vpop.eup %3276  ;;  %1852 = vmatpush.bf16.msrb.mxu1 %v2977_v10  ;;  %v1245_v26 = vmul.f32 %v4062_v4, %v1207_v47  ;;  %v2953_v63 = vor.u32 %v3128_v18, %v2952_v46  ;;  %vm1103_vm13 = vweird.f32 %v4392_v21  ;;  %v2845_v9 = vor.u32 %v3101_v45, %v2844_v3 }
 0x127   : > { %v1082_v42 = vmul.f32 %v4354_v28, %v1081_v14  ;;  %v1108_v61 = vmul.f32 %v3277_v24, %v4359_v5  ;;  %vm1114_vm12 = vweird.f32 %v3277_v24  ;;  %v2941_v34 = vor.u32 %v3125_v51, %v2940_v60 }
 0x128   : > { %1646 = vmatmul.bf16.gmra.mxu2 %v4409_v2  ;;  %1695 = vmatmul.bf16.gmra.mxu3 %v4412_v19  ;;  %vm1115_vm15 = vmor %vm1113_vm11, %vm1114_vm12 }
 0x129   : > { %v1086_v12 = vsel %vm1085_vm10, %v4354_v28, %v1082_v42  ;;  %v1109_v32 = vmul.f32 %v3277_v24, %v1108_v61  ;;  %1804 = vmatpush.bf16.msrb.mxu0 %v2869_v58 }
 0x12a   : > { %v1205_v17 = vmul.f32 %v1086_v12, %v3931_v15  ;;  %v1206_v50 = vmul.f32 %v1086_v12, %v3933_v16  ;;  %v1246_v15 = vmul.f32 %v4067_v33, %v1208_v48  ;;  %1853 = vmatpush.bf16.msrb.mxu1 %v2965_v0 }
 0x12b   : > { %v3279_v13 = vpop.eup %3278  ;;  %v1110_v30 = vmul.f32 0.5, %v1109_v32 }
 0x12c   : > { %v1098_v28 = vmul.f32 %v3279_v13, %v4392_v21  ;;  %v1243_v41 = vmul.f32 %v4062_v4, %v1205_v17  ;;  %v1244_v54 = vmul.f32 %v4067_v33, %v1206_v50  ;;  %vm1104_vm14 = vweird.f32 %v3279_v13 }
 0x12d   : > { %v1111_v16 = vsub.f32 1.5, %v1110_v30  ;;  %1805 = vmatpush.bf16.msrb.mxu0 %v2857_v37  ;;  %vm1105_vm0 = vmor %vm1103_vm13, %vm1104_vm14 }
 0x12e   : > { %v1099_v55 = vmul.f32 %v3279_v13, %v1098_v28  ;;  %v1271_v36 = vpack.c.bf16 %v1245_v26, %v1243_v41  ;;  %v1272_v44 = vpack.c.bf16 %v1246_v15, %v1244_v54  ;;  %1854 = vmatpush.bf16.msrb.mxu1 %v2953_v63 }
 0x12f   : > { %v1112_v25 = vmul.f32 %v3277_v24, %v1111_v16 }
 0x130   : > { %v1100_v27 = vmul.f32 0.5, %v1099_v55 }
 0x131   : > { %v1116_v5 = vsel %vm1115_vm15, %v3277_v24, %v1112_v25  ;;  %1806 = vmatpush.bf16.msrb.mxu0 %v2845_v9 }
 0x132   : > { %v1101_v43 = vsub.f32 1.5, %v1100_v27  ;;  %1855 = vmatpush.bf16.msrb.mxu1 %v2941_v34  ;;  %v1211_v21 = vmul.f32 %v1116_v5, %v3950_v1  ;;  %v1212_v8 = vmul.f32 %v1116_v5, %v3954_v6 }
 0x134   : > { %v1102_v14 = vmul.f32 %v3279_v13, %v1101_v43  ;;  %1621 = vmatmul.bf16.gmra.mxu0 %v1271_v36  ;;  %1670 = vmatmul.bf16.gmra.mxu1 %v1272_v44  ;;  %v1249_v53 = vmul.f32 %v4062_v4, %v1211_v21  ;;  %v1250_v42 = vmul.f32 %v4067_v33, %v1212_v8 }
 0x136   : > { %v1106_v49 = vsel %vm1105_vm0, %v3279_v13, %v1102_v14 }
 0x137   : > { %v1209_v10 = vmul.f32 %v1106_v49, %v3965_v39  ;;  %v1210_v7 = vmul.f32 %v1106_v49, %v3967_v40 }
 0x138   : > { %1709 = vmatmul.bf16.vlgmr.msrb.gmra.mxu2 %v4234_v56  ;;  %1758 = vmatmul.bf16.vlgmr.msrb.gmra.mxu3 %v4236_v38 }
 0x139   : > { %v1247_v24 = vmul.f32 %v4062_v4, %v1209_v10  ;;  %v1248_v29 = vmul.f32 %v4067_v33, %v1210_v7 }
 0x13b   : > { %v1273_v61 = vpack.c.bf16 %v1249_v53, %v1247_v24  ;;  %v1274_v1 = vpack.c.bf16 %v1250_v42, %v1248_v29 }
 0x144   : > { %1626 = vmatmul.bf16.gmra.mxu0 %v1273_v61  ;;  %1675 = vmatmul.bf16.gmra.mxu1 %v1274_v1 }
 0x148   : > { %1714 = vmatmul.bf16.gmra.mxu2 %v4383_v62  ;;  %1763 = vmatmul.bf16.gmra.mxu3 %v4385_v59 }
 0x154   : > { %1807 = vmatmul.bf16.vlgmr.msrb.gmra.mxu0 %v4234_v56  ;;  %1856 = vmatmul.bf16.vlgmr.msrb.gmra.mxu1 %v4236_v38 }
 0x158   : > { %1719 = vmatmul.bf16.gmra.mxu2 %v1271_v36  ;;  %1768 = vmatmul.bf16.gmra.mxu3 %v1272_v44 }
 0x164   : > { %1812 = vmatmul.bf16.gmra.mxu0 %v4383_v62  ;;  %1861 = vmatmul.bf16.gmra.mxu1 %v4385_v59 }
 0x168   : > { %1724 = vmatmul.bf16.gmra.mxu2 %v1273_v61  ;;  %1773 = vmatmul.bf16.gmra.mxu3 %v1274_v1 }
 0x174   : > { %1817 = vmatmul.bf16.gmra.mxu0 %v1271_v36  ;;  %1866 = vmatmul.bf16.gmra.mxu1 %v1272_v44 }
 0x178   : > { %1729 = vmatmul.bf16.gmra.mxu2 %v4098_v31  ;;  %1778 = vmatmul.bf16.gmra.mxu3 %v4100_v23 }
 0x17b   : > { %v1632_v6 = vpop.f32.mrf.mxu2  ;;  %v1681_v39 = vpop.f32.mrf.mxu3 }
 0x17c   : > { %v4458_v40 = vadd.f32 %v1681_v39, %v1632_v6 }
 0x17e   : > { %5143 = vst [vmem:[#allocation10_spill] sm:$0xff] %v4458_v40 }
 0x183   : > { %v4460_v4 = vpop.f32.mrf.mxu2  ;;  %v4462_v33 = vpop.f32.mrf.mxu3 }
 0x184   : > { %1822 = vmatmul.bf16.gmra.mxu0 %v1273_v61  ;;  %1871 = vmatmul.bf16.gmra.mxu1 %v1274_v1 }
 0x188   : > { %1734 = vmatmul.bf16.gmra.mxu2 %v4156_v11  ;;  %1783 = vmatmul.bf16.gmra.mxu3 %v4165_v22 }
 0x18b   : > { %v1637_v56 = vpop.f32.mrf.mxu2  ;;  %v1686_v38 = vpop.f32.mrf.mxu3 }
 0x18c   : > { %v4466_v62 = vadd.f32 %v1686_v38, %v1637_v56 }
 0x18e   : > { %v1612_v59 = vpop.f32.mrf.mxu0  ;;  %v1661_v47 = vpop.f32.mrf.mxu1 }
 0x18f   : > { %v4468_v48 = vadd.f32 %v1661_v47, %v1612_v59 }
 0x193   : > { %v4470_v58 = vpop.f32.mrf.mxu2  ;;  %v4472_v12 = vpop.f32.mrf.mxu3 }
 0x194   : > { %5144 = vst [vmem:[#allocation11_spill] sm:$0xff] %v4470_v58  ;;  %1827 = vmatmul.bf16.gmra.mxu0 %v4098_v31  ;;  %1876 = vmatmul.bf16.gmra.mxu1 %v4100_v23 }
 0x195   : > { %5145 = vst [vmem:[#allocation12_spill] sm:$0xff] %v4472_v12 }
 0x196   : > { %v4476_v32 = vpop.f32.mrf.mxu0  ;;  %v4478_v0 = vpop.f32.mrf.mxu1 }
 0x198   : > { %1739 = vmatmul.bf16.gmra.mxu2 %v4255_v57  ;;  %1788 = vmatmul.bf16.gmra.mxu3 %v4287_v52 }
 0x19b   : > { %v1642_v35 = vpop.f32.mrf.mxu2  ;;  %v1691_v17 = vpop.f32.mrf.mxu3 }
 0x19c   : > { %v4482_v50 = vadd.f32 %v1691_v17, %v1642_v35 }
 0x19e   : > { %5146 = vst [vmem:[#allocation13_spill] sm:$0xff] %v4482_v50 }
 0x1a1   : > { %v1617_v20 = vpop.f32.mrf.mxu0  ;;  %v1666_v46 = vpop.f32.mrf.mxu1 }
 0x1a2   : > { %v4484_v18 = vadd.f32 %v1666_v46, %v1617_v20 }
 0x1a3   : > { %v4486_v13 = vpop.f32.mrf.mxu2  ;;  %v4488_v31 = vpop.f32.mrf.mxu3 }
 0x1a4   : > { %1832 = vmatmul.bf16.gmra.mxu0 %v4156_v11  ;;  %1881 = vmatmul.bf16.gmra.mxu1 %v4165_v22 }
 0x1a8   : > { %1744 = vmatmul.bf16.gmra.mxu2 %v4409_v2  ;;  %1793 = vmatmul.bf16.gmra.mxu3 %v4412_v19 }
 0x1a9   : > { %v4494_v23 = vpop.f32.mrf.mxu0  ;;  %v4496_v30 = vpop.f32.mrf.mxu1 }
 0x1ab   : > { %v1647_v26 = vpop.f32.mrf.mxu2  ;;  %v1696_v28 = vpop.f32.mrf.mxu3 }
 0x1ac   : > { %v4498_v41 = vadd.f32 %v1696_v28, %v1647_v26 }
 0x1ae   : > { %5147 = vst [vmem:[#allocation14_spill] sm:$0xff] %v4498_v41 }
 0x1b1   : > { %v1622_v54 = vpop.f32.mrf.mxu0  ;;  %v1671_v15 = vpop.f32.mrf.mxu1 }
 0x1b2   : > { %v4500_v16 = vadd.f32 %v1671_v15, %v1622_v54 }
 0x1b3   : > { %v4502_v37 = vpop.f32.mrf.mxu2  ;;  %v4504_v11 = vpop.f32.mrf.mxu3 }
 0x1b4   : > { %5148 = vst [vmem:[#allocation15_spill] sm:$0xff] %v4502_v37  ;;  %1837 = vmatmul.bf16.gmra.mxu0 %v4255_v57  ;;  %1886 = vmatmul.bf16.gmra.mxu1 %v4287_v52 }
 0x1b5   : > { %5149 = vst [vmem:[#allocation16_spill] sm:$0xff] %v4504_v11 }
 0x1b9   : > { %v4508_v22 = vpop.f32.mrf.mxu0  ;;  %v4510_v63 = vpop.f32.mrf.mxu1 }
 0x1ba   : > { %5150 = vst [vmem:[#allocation17_spill] sm:$0xff] %v4510_v63 }
 0x1bb   : > { %v1710_v3 = vpop.f32.mrf.mxu2  ;;  %v1759_v55 = vpop.f32.mrf.mxu3 }
 0x1bc   : > { %v4512_v45 = vadd.f32 %v1759_v55, %v1710_v3 }
 0x1c1   : > { %v1627_v60 = vpop.f32.mrf.mxu0  ;;  %v1676_v51 = vpop.f32.mrf.mxu1 }
 0x1c2   : > { %v4514_v25 = vadd.f32 %v1676_v51, %v1627_v60 }
 0x1c3   : > { %v4516_v27 = vpop.f32.mrf.mxu2  ;;  %v4518_v36 = vpop.f32.mrf.mxu3 }
 0x1c4   : > { %1842 = vmatmul.bf16.gmra.mxu0 %v4409_v2  ;;  %1891 = vmatmul.bf16.gmra.mxu1 %v4412_v19 }
 0x1c9   : > { %v4522_v57 = vpop.f32.mrf.mxu0  ;;  %v4524_v52 = vpop.f32.mrf.mxu1 }
 0x1cb   : > { %v1715_v44 = vpop.f32.mrf.mxu2  ;;  %v1764_v9 = vpop.f32.mrf.mxu3 }
 0x1cc   : > { %v4526_v34 = vadd.f32 %v1764_v9, %v1715_v44 }
 0x1d1   : > { %v1808_v43 = vpop.f32.mrf.mxu0  ;;  %v1857_v5 = vpop.f32.mrf.mxu1 }
 0x1d2   : > { %v4528_v14 = vadd.f32 %v1857_v5, %v1808_v43 }
 0x1d3   : > { %v4530_v49 = vpop.f32.mrf.mxu2  ;;  %v4532_v21 = vpop.f32.mrf.mxu3 }
 0x1d9   : > { %v4534_v10 = vpop.f32.mrf.mxu0  ;;  %v4536_v2 = vpop.f32.mrf.mxu1 }
 0x1db   : > { %v1720_v19 = vpop.f32.mrf.mxu2  ;;  %v1769_v7 = vpop.f32.mrf.mxu3 }
 0x1dc   : > { %v4538_v8 = vadd.f32 %v1769_v7, %v1720_v19 }
 0x1e1   : > { %v1813_v24 = vpop.f32.mrf.mxu0  ;;  %v1862_v53 = vpop.f32.mrf.mxu1 }
 0x1e2   : > { %v4540_v29 = vadd.f32 %v1862_v53, %v1813_v24 }
 0x1e3   : > { %v1722_v42 = vpop.f32.mrf.mxu2  ;;  %v1771_v61 = vpop.f32.mrf.mxu3 }
 0x1e9   : > { %v4542_v1 = vpop.f32.mrf.mxu0  ;;  %v4544_v6 = vpop.f32.mrf.mxu1 }
 0x1eb   : > { %v1725_v39 = vpop.f32.mrf.mxu2  ;;  %v1774_v56 = vpop.f32.mrf.mxu3 }
 0x1ec   : > { %v4546_v38 = vadd.f32 %v1774_v56, %v1725_v39 }
 0x1ee   : > { %5151 = vst [vmem:[#allocation18_spill] sm:$0xff] %v4546_v38 }
 0x1f1   : > { %v1818_v59 = vpop.f32.mrf.mxu0  ;;  %v1867_v47 = vpop.f32.mrf.mxu1 }
 0x1f2   : > { %v4548_v35 = vadd.f32 %v1867_v47, %v1818_v59 }
 0x1f3   : > { %v4550_v17 = vpop.f32.mrf.mxu2  ;;  %v4552_v20 = vpop.f32.mrf.mxu3 }
 0x1f9   : > { %v4554_v46 = vpop.f32.mrf.mxu0  ;;  %v4556_v26 = vpop.f32.mrf.mxu1 }
 0x1fb   : > { %v1730_v28 = vpop.f32.mrf.mxu2  ;;  %v1779_v54 = vpop.f32.mrf.mxu3 }
 0x1fc   : > { %v4558_v15 = vadd.f32 %v1779_v54, %v1730_v28 }
 0x201   : > { %v1823_v3 = vpop.f32.mrf.mxu0  ;;  %v1872_v55 = vpop.f32.mrf.mxu1 }
 0x202   : > { %v4560_v60 = vadd.f32 %v1872_v55, %v1823_v3 }
 0x203   : > { %v1732_v51 = vpop.f32.mrf.mxu2  ;;  %v1781_v44 = vpop.f32.mrf.mxu3 }
 0x209   : > { %v4562_v9 = vpop.f32.mrf.mxu0  ;;  %v4564_v43 = vpop.f32.mrf.mxu1 }
 0x20b   : > { %v1735_v5 = vpop.f32.mrf.mxu2  ;;  %v1784_v19 = vpop.f32.mrf.mxu3 }
 0x20c   : > { %v4584_v63 = vadd.f32 %v1784_v19, %v1735_v5  ;;  %v4606_v5 = vadd.f32 %v4478_v0, %v4476_v32  ;;  %v4620_v32 = vadd.f32 %v4552_v20, %v4550_v17 }
 0x211   : > { %v1828_v7 = vpop.f32.mrf.mxu0  ;;  %v1877_v24 = vpop.f32.mrf.mxu1 }
 0x212   : > { %v4566_v53 = vadd.f32 %v1877_v24, %v1828_v7 }
 0x213   : > { %v1737_v39 = vpop.f32.mrf.mxu2  ;;  %v1786_v56 = vpop.f32.mrf.mxu3 }
 0x214   : > { %v4572_v12 = vadd.f32 %v1786_v56, %v1737_v39  ;;  %v4582_v56 = vadd.f32 %v1771_v61, %v1722_v42 }
 0x216   : > { %5153 = vst [vmem:[#allocation20_spill] sm:$0xff] %v4572_v12 }
 0x219   : > { %v1830_v59 = vpop.f32.mrf.mxu0  ;;  %v1879_v47 = vpop.f32.mrf.mxu1 }
 0x21b   : > { %v1740_v28 = vpop.f32.mrf.mxu2  ;;  %v1789_v54 = vpop.f32.mrf.mxu3 }
 0x21c   : > { %v4568_v3 = vadd.f32 %v1789_v54, %v1740_v28 }
 0x21e   : > { %5152 = vst [vmem:[#allocation19_spill] sm:$0xff] %v4568_v3  ;;  %2049 = vrot.lane.b32.xlu0 %v4568_v3, %s3441_s10 }
 0x221   : > { %v1833_v55 = vpop.f32.mrf.mxu0  ;;  %v1882_v41 = vpop.f32.mrf.mxu1 }
 0x223   : > { %v1742_v11 = vpop.f32.mrf.mxu2  ;;  %v1791_v37 = vpop.f32.mrf.mxu3 }
 0x226   : > { %2047 = vrot.lane.b32.xlu0 %v4572_v12, %s3441_s10 }
 0x229   : > { %v1835_v7 = vpop.f32.mrf.mxu0  ;;  %v1884_v24 = vpop.f32.mrf.mxu1 }
 0x22b   : > { %v1745_v58 = vpop.f32.mrf.mxu2  ;;  %v1794_v50 = vpop.f32.mrf.mxu3 }
 0x22c   : > { %v4576_v40 = vadd.f32 %v1794_v50, %v1745_v58 }
 0x22e   : > { %5154 = vst [vmem:[#allocation21_spill] sm:$0xff] %v4576_v40  ;;  %2037 = vrot.lane.b32.xlu0 %v4546_v38, %s3441_s10  ;;  %2053 = vrot.lane.b32.xlu1 %v4576_v40, %s3441_s10  ;;  %v4594_v38 = vadd.f32 %v1781_v44, %v1732_v51  ;;  %v4596_v40 = vadd.f32 %v1791_v37, %v1742_v11 }
 0x231   : > { %v1838_v28 = vpop.f32.mrf.mxu0  ;;  %v1887_v54 = vpop.f32.mrf.mxu1 }
 0x232   : > { %v1888_v0 = vadd.f32 %v1887_v54, %v1838_v28  ;;  %v4724_v28 = vld [vmem:[%s5104_s4 + $0x68] sm:$0xff] }
 0x233   : > { %v1747_v3 = vpop.f32.mrf.mxu2  ;;  %v1796_v39 = vpop.f32.mrf.mxu3 }
 0x234   : > { %v4586_v12 = vadd.f32 %v1796_v39, %v1747_v3  ;;  %v4616_v39 = vadd.f32 %v4532_v21, %v4530_v49  ;;  %v4630_v49 = vadd.f32 %v4524_v52, %v4522_v57  ;;  %v1880_v21 = vadd.f32 %v1879_v47, %v1830_v59 }
 0x235   : > { %v1870_v57 = vadd.f32 %v4556_v26, %v4554_v46  ;;  %v4646_v59 = vadd.f32 %v4496_v30, %v4494_v23  ;;  %v4650_v47 = vadd.f32 %v4518_v36, %v4516_v27  ;;  %v1865_v46 = vadd.f32 %v4544_v6, %v4542_v1  ;;  %v5159_v6 = vld [vmem:[#allocation12_spill] sm:$0xff]  ;;  %v5163_v26 = vld [vmem:[#allocation14_spill] sm:$0xff] }
 0x236   : > { %2035 = vrot.lane.b32.xlu0 %v4582_v56, %s3441_s10  ;;  %2045 = vrot.lane.b32.xlu1 %v4584_v63, %s3441_s10  ;;  %v2310_v20 = vpack.c.bf16 %v1880_v21, %v4566_v53  ;;  %v4663_v30 = vadd.f32 %v4488_v31, %v4486_v13  ;;  %v1860_v27 = vadd.f32 %v4536_v2, %v4534_v10  ;;  %v5155_v31 = vld [vmem:[#allocation17_spill] sm:$0xff]  ;;  %v5156_v2 = vld [vmem:[#allocation10_spill] sm:$0xff] }
 0x237   : > { %2055 = vrot.lane.b32.xlu2 %v4586_v12, %s3441_s10  ;;  %v2308_v23 = vpack.c.bf16 %v1870_v57, %v4548_v35  ;;  %v2307_v36 = vpack.c.bf16 %v1865_v46, %v4540_v29  ;;  %v4677_v13 = vadd.f32 %v4462_v33, %v4460_v4  ;;  %v4681_v10 = vadd.f32 %v5155_v31, %v4508_v22  ;;  %v5158_v29 = vld [vmem:[#allocation11_spill] sm:$0xff]  ;;  %v5161_v35 = vld [vmem:[#allocation16_spill] sm:$0xff] }
 0x238   : > { %v2306_v1 = vpack.c.bf16 %v1860_v27, %v4528_v14  ;;  %v5157_v14 = vld [vmem:[#allocation13_spill] sm:$0xff]  ;;  %v4693_v4 = vadd.f32 %v5159_v6, %v5158_v29  ;;  %v5160_v33 = vld [vmem:[#allocation15_spill] sm:$0xff] }
 0x239   : > { %v1840_v58 = vpop.f32.mrf.mxu0  ;;  %v1889_v50 = vpop.f32.mrf.mxu1  ;;  %v4697_v22 = vadd.f32 %v5161_v35, %v5160_v33  ;;  %v4713_v53 = vld [vmem:[%s5105_s5 + $0x68] sm:$0xff]  ;;  %v4765_v31 = vld [vmem:[%s5105_s5 + $0x50] sm:$0xff]  ;;  %v4776_v6 = vld [vmem:[%s5104_s4 + $0x58] sm:$0xff] }
 0x23a   : > { %v1890_v19 = vadd.f32 %v1889_v50, %v1840_v58  ;;  %v1885_v58 = vadd.f32 %v1884_v24, %v1835_v7  ;;  %v4719_v24 = vld [vmem:[%s5104_s4 + $0x60] sm:$0xff] }
 0x23b   : > { %5162 = vst [vmem:[#allocation17_spill] sm:$0xff] %v4697_v22 }
 0x23c   : > { %v2312_v50 = vpack.c.bf16 %v1890_v19, %v1888_v0  ;;  %v4734_v19 = vld [vmem:[%s5105_s5 + $0x78] sm:$0xff]  ;;  %v4739_v0 = vld [vmem:[%s5105_s5 + $0x70] sm:$0xff] }
 0x23d   : > { %5165 = vst [vmem:[#allocation10_spill] sm:$0xff] %v4734_v19 }
 0x23e   : > { %2025 = vrot.lane.b32.xlu0 %v4512_v45, %s3441_s10  ;;  %2043 = vrot.lane.b32.xlu1 %v4594_v38, %s3441_s10  ;;  %5166 = vst [vmem:[#allocation13_spill] sm:$0xff] %v4739_v0 }
 0x23f   : > { %2051 = vrot.lane.b32.xlu2 %v4596_v40, %s3441_s10 }
 0x241   : > { %v1843_v42 = vpop.f32.mrf.mxu0  ;;  %v1892_v61 = vpop.f32.mrf.mxu1 }
 0x242   : > { %v1893_v51 = vadd.f32 %v1892_v61, %v1843_v42  ;;  %v1883_v42 = vadd.f32 %v1882_v41, %v1833_v55  ;;  %v1875_v41 = vadd.f32 %v4564_v43, %v4562_v9  ;;  %v4708_v43 = vld [vmem:[%s5105_s5 + $0x60] sm:$0xff]  ;;  %v5164_v61 = vld [vmem:[#allocation19_spill] sm:$0xff] }
 0x244   : > { %v2311_v17 = vpack.c.bf16 %v1885_v58, %v1883_v42  ;;  %v2309_v52 = vpack.c.bf16 %v1875_v41, %v4560_v60  ;;  %v4750_v42 = vld [vmem:[%s5104_s4 + $0x78] sm:$0xff] }
 0x245   : > { %5168 = vst [vmem:[#allocation12_spill] sm:$0xff] %v4750_v42  ;;  %v5169_v41 = vld [vmem:[#allocation21_spill] sm:$0xff]  ;;  %v2024_v57 = vmul.f32 %v4750_v42, %v4586_v12  ;;  %v4771_v12 = vld [vmem:[%s5104_s4 + $0x50] sm:$0xff] }
 0x246   : > { %1947 = vrot.lane.b32.xlu0 %v4606_v5, %s3441_s10  ;;  %2033 = vrot.lane.b32.xlu1 %v4538_v8, %s3441_s10 }
 0x247   : > { %2041 = vrot.lane.b32.xlu2 %v4558_v15, %s3441_s10 }
 0x249   : > { %v1845_v37 = vpop.f32.mrf.mxu0  ;;  %v1894_v11 = vpop.f32.mrf.mxu1 }
 0x24a   : > { %v1895_v44 = vadd.f32 %v1894_v11, %v1845_v37  ;;  %v2021_v37 = vmul.f32 %v4719_v24, %v5164_v61  ;;  %v2022_v11 = vmul.f32 %v4724_v28, %v4596_v40  ;;  %v4745_v40 = vld [vmem:[%s5104_s4 + $0x70] sm:$0xff] }
 0x24b   : > { %5167 = vst [vmem:[#allocation11_spill] sm:$0xff] %v4745_v40 }
 0x24c   : > { %v2313_v3 = vpack.c.bf16 %v1895_v44, %v1893_v51 }
 0x24e   : > { %2314 = vmatpush.bf16.msra.mxu3 %v2313_v3  ;;  %1953 = vrot.lane.b32.xlu0 %v4500_v16, %s3441_s10 }
 0x24f   : > { %2031 = vrot.lane.b32.xlu1 %v4616_v39, %s3441_s10  ;;  %2039 = vrot.lane.b32.xlu2 %v4620_v32, %s3441_s10 }
 0x252   : > { %2315 = vmatpush.bf16.msra.mxu3 %v2312_v50 }
 0x256   : > { %2316 = vmatpush.bf16.msra.mxu3 %v2311_v17  ;;  %1959 = vrot.lane.b32.xlu0 %v4630_v49, %s3441_s10 }
 0x257   : > { %1945 = vrot.lane.b32.xlu1 %v4468_v48, %s3441_s10  ;;  %2029 = vrot.lane.b32.xlu2 %v4526_v34, %s3441_s10 }
 0x25a   : > { %2317 = vmatpush.bf16.msra.mxu3 %v2310_v20  ;;  %v2023_v20 = vmul.f32 %v4745_v40, %v5169_v41  ;;  %v1915_v40 = vld [vmem:[%s5105_s5 + $0x10] sm:$0xff] }
 0x25e   : > { %2318 = vmatpush.bf16.msra.mxu3 %v2309_v52  ;;  %1965 = vrot.lane.b32.xlu0 %v4466_v62, %s3441_s10 }
 0x25f   : > { %1951 = vrot.lane.b32.xlu1 %v4646_v59, %s3441_s10  ;;  %2027 = vrot.lane.b32.xlu2 %v4650_v47, %s3441_s10 }
 0x262   : > { %2319 = vmatpush.bf16.msra.mxu3 %v2308_v23 }
 0x266   : > { %2320 = vmatpush.bf16.msra.mxu3 %v2307_v36  ;;  %1971 = vrot.lane.b32.xlu0 %v4663_v30, %s3441_s10  ;;  %v4760_v36 = vld [vmem:[%s5105_s5 + $0x58] sm:$0xff] }
 0x267   : > { %1949 = vrot.lane.b32.xlu2 %v4484_v18, %s3441_s10  ;;  %1957 = vrot.lane.b32.xlu1 %v4514_v25, %s3441_s10 }
 0x26a   : > { %2321 = vmatpush.bf16.msra.mxu3 %v2306_v1 }
 0x26f   : > { %1955 = vrot.lane.b32.xlu2 %v4681_v10, %s3441_s10  ;;  %1963 = vrot.lane.b32.xlu1 %v4677_v13, %s3441_s10 }
 0x277   : > { %1961 = vrot.lane.b32.xlu2 %v5156_v2, %s3441_s10  ;;  %1969 = vrot.lane.b32.xlu1 %v5157_v14, %s3441_s10 }
 0x27f   : > { %1967 = vrot.lane.b32.xlu2 %v4693_v4, %s3441_s10  ;;  %1975 = vrot.lane.b32.xlu1 %v4697_v22, %s3441_s10 }
 0x287   : > { %1973 = vrot.lane.b32.xlu2 %v5163_v26, %s3441_s10 }
 0x290   : > { %v2050_v60 = vpop.permute.xlu0 %2049 }
 0x291   : > { %v2056_v9 = vpop.permute.xlu2 %2055  ;;  %v2069_v55 = vmul.f32 %v2050_v60, %v4708_v43  ;;  %v2019_v60 = vmul.f32 %v4771_v12, %v4584_v63  ;;  %v4793_v63 = vld [vmem:[%s5105_s5 + $0x40] sm:$0xff] }
 0x292   : > { %v2072_v50 = vmul.f32 %v2056_v9, %v4734_v19  ;;  %v5170_v9 = vld [vmem:[#allocation20_spill] sm:$0xff] }
 0x293   : > { %v2085_v44 = vadd.f32 %v2069_v55, %v2021_v37  ;;  %v2020_v55 = vmul.f32 %v4776_v6, %v5170_v9  ;;  %v1904_v9 = vld [vmem:[%s5104_s4 + $0x38] sm:$0xff] }
 0x294   : > { %v2088_v23 = vadd.f32 %v2072_v50, %v2024_v57  ;;  %v4807_v57 = vld [vmem:[%s5104_s4 + $0x40] sm:$0xff] }
 0x298   : > { %v2048_v7 = vpop.permute.xlu0 %2047 }
 0x299   : > { %v2052_v54 = vpop.permute.xlu2 %2051  ;;  %v2068_v29 = vmul.f32 %v2048_v7, %v4760_v36 }
 0x29a   : > { %v2070_v51 = vmul.f32 %v2052_v54, %v4713_v53 }
 0x29b   : > { %v2084_v54 = vadd.f32 %v2068_v29, %v2020_v55  ;;  %v1920_v29 = vld [vmem:[%s5105_s5 + $0x38] sm:$0xff]  ;;  %v2016_v55 = vmul.f32 %v1904_v9, %v4620_v32  ;;  %v4837_v32 = vld [vmem:[%s5105_s5 + $0x28] sm:$0xff] }
 0x29c   : > { %v2086_v3 = vadd.f32 %v2070_v51, %v2022_v11 }
 0x29e   : > { %v2103_v58 = vpack.c.bf16 %v2086_v3, %v2085_v44  ;;  %v4788_v3 = vld [vmem:[%s5105_s5 + $0x48] sm:$0xff] }
 0x2a0   : > { %v2038_v21 = vpop.permute.xlu0 %2037  ;;  %v2054_v17 = vpop.permute.xlu1 %2053 }
 0x2a1   : > { %v2071_v52 = vmul.f32 %v2054_v17, %v4739_v0  ;;  %v2042_v46 = vpop.permute.xlu2 %2041 }
 0x2a3   : > { %v2087_v27 = vadd.f32 %v2071_v52, %v2023_v20  ;;  %v2065_v20 = vmul.f32 %v2042_v46, %v4793_v63  ;;  %v1919_v46 = vld [vmem:[%s5105_s5 + $0x30] sm:$0xff] }
 0x2a5   : > { %v2104_v1 = vpack.c.bf16 %v2088_v23, %v2087_v27  ;;  %v2017_v27 = vmul.f32 %v4807_v57, %v4558_v15 }
 0x2a7   : > { %2121 = vmatpush.bf16.xpose.msra.mxu2 %v2104_v1 }
 0x2a8   : > { %v2036_v33 = vpop.permute.xlu0 %2035  ;;  %v2046_v35 = vpop.permute.xlu1 %2045 }
 0x2a9   : > { %v2067_v7 = vmul.f32 %v2046_v35, %v4765_v31  ;;  %v2040_v37 = vpop.permute.xlu2 %2039 }
 0x2aa   : > { %v2064_v35 = vmul.f32 %v2040_v37, %v1920_v29 }
 0x2ab   : > { %v2083_v61 = vadd.f32 %v2067_v7, %v2019_v60  ;;  %v2063_v7 = vmul.f32 %v2038_v21, %v1919_v46 }
 0x2ad   : > { %v2102_v11 = vpack.c.bf16 %v2084_v54, %v2083_v61  ;;  %v1903_v54 = vld [vmem:[%s5104_s4 + $0x30] sm:$0xff] }
 0x2af   : > { %2122 = vmatpush.bf16.xpose.msra.mxu2 %v2103_v58  ;;  %v4799_v58 = vld [vmem:[%s5104_s4 + $0x48] sm:$0xff] }
 0x2b0   : > { %v4783_v51 = vpop.permute.xlu0 %2025  ;;  %v2044_v44 = vpop.permute.xlu1 %2043  ;;  %v2018_v41 = vmul.f32 %v4799_v58, %v4594_v38  ;;  %v2081_v38 = vadd.f32 %v2065_v20, %v2017_v27 }
 0x2b1   : > { %v2066_v50 = vmul.f32 %v2044_v44, %v4788_v3  ;;  %v2030_v17 = vpop.permute.xlu2 %2029 }
 0x2b3   : > { %v2082_v1 = vadd.f32 %v2066_v50, %v2018_v41  ;;  %v2080_v50 = vadd.f32 %v2064_v35, %v2016_v55  ;;  %v4832_v41 = vld [vmem:[%s5105_s5 + $0x20] sm:$0xff]  ;;  %v2062_v35 = vmul.f32 %v2036_v33, %v4837_v32 }
 0x2b5   : > { %v2101_v60 = vpack.c.bf16 %v2082_v1, %v2081_v38  ;;  %v4843_v1 = vld [vmem:[%s5104_s4 + $0x20] sm:$0xff] }
 0x2b6   : > { %v2013_v38 = vmul.f32 %v4843_v1, %v4538_v8  ;;  %v1916_v8 = vld [vmem:[%s5105_s5 + $0x18] sm:$0xff] }
 0x2b7   : > { %2123 = vmatpush.bf16.xpose.msra.mxu2 %v2102_v11  ;;  %v5171_v11 = vld [vmem:[#allocation18_spill] sm:$0xff] }
 0x2b8   : > { %v4809_v52 = vpop.permute.xlu0 %1947  ;;  %v2034_v23 = vpop.permute.xlu1 %2033  ;;  %v2015_v44 = vmul.f32 %v1903_v54, %v5171_v11 }
 0x2b9   : > { %v2028_v15 = vpop.permute.xlu2 %2027  ;;  %v2061_v21 = vmul.f32 %v2034_v23, %v4832_v41  ;;  %v1936_v23 = vmul.f32 %v1904_v9, %v4630_v49 }
 0x2ba   : > { %v2079_v20 = vadd.f32 %v2063_v7, %v2015_v44 }
 0x2bb   : > { %v2077_v11 = vadd.f32 %v2061_v21, %v2013_v38  ;;  %v1899_v21 = vld [vmem:[%s5104_s4 + $0x10] sm:$0xff] }
 0x2bc   : > { %v2100_v27 = vpack.c.bf16 %v2080_v50, %v2079_v20  ;;  %v2011_v38 = vmul.f32 %v1899_v21, %v4526_v34 }
 0x2bf   : > { %2124 = vmatpush.bf16.xpose.msra.mxu2 %v2101_v60  ;;  %v4851_v60 = vld [vmem:[%s5104_s4 + $0x28] sm:$0xff] }
 0x2c0   : > { %v4826_v61 = vpop.permute.xlu0 %1953  ;;  %v2014_v7 = vmul.f32 %v4851_v60, %v4582_v56  ;;  %v1900_v56 = vld [vmem:[%s5104_s4 + $0x18] sm:$0xff] }
 0x2c1   : > { %v2032_v37 = vpop.permute.xlu1 %2031  ;;  %v1950_v44 = vpop.permute.xlu2 %1949  ;;  %v2012_v9 = vmul.f32 %v1900_v56, %v4616_v39  ;;  %v1913_v39 = vld [vmem:[%s5105_s5] sm:$0xff] }
 0x2c2   : > { %v2078_v33 = vadd.f32 %v2062_v35, %v2014_v7  ;;  %v2060_v26 = vmul.f32 %v2032_v37, %v1916_v8  ;;  %v1914_v37 = vld [vmem:[%s5105_s5 + $0x8] sm:$0xff] }
 0x2c4   : > { %v2099_v49 = vpack.c.bf16 %v2078_v33, %v2077_v11  ;;  %v2076_v35 = vadd.f32 %v2060_v26, %v2012_v9  ;;  %v2057_v26 = vmul.f32 %v4783_v51, %v1913_v39  ;;  %v1897_v33 = vld [vmem:[%s5104_s4] sm:$0xff]  ;;  %v1978_v51 = vmul.f32 %v4809_v52, %v1914_v37 }
 0x2c7   : > { %2125 = vmatpush.bf16.xpose.msra.mxu2 %v2100_v27 }
 0x2c8   : > { %v1960_v55 = vpop.permute.xlu0 %1959 }
 0x2c9   : > { %v1946_v50 = vpop.permute.xlu1 %1945  ;;  %v1984_v20 = vmul.f32 %v1960_v55, %v1920_v29  ;;  %v2059_v29 = vmul.f32 %v2030_v17, %v1915_v40  ;;  %v1956_v7 = vpop.permute.xlu2 %1955  ;;  %v2058_v17 = vmul.f32 %v2028_v15, %v1914_v37  ;;  %v1935_v15 = vmul.f32 %v1903_v54, %v4514_v25 }
 0x2ca   : > { %v1937_v25 = vmul.f32 %v4807_v57, %v5156_v2  ;;  %v1938_v54 = vmul.f32 %v4799_v58, %v4677_v13  ;;  %v1934_v13 = vmul.f32 %v4851_v60, %v4681_v10  ;;  %v1933_v58 = vmul.f32 %v4843_v1, %v4500_v16 }
 0x2cb   : > { %v4859_v27 = vadd.f32 %v1984_v20, %v1936_v23  ;;  %v2075_v23 = vadd.f32 %v2059_v29, %v2011_v38  ;;  %v1898_v20 = vld [vmem:[%s5104_s4 + $0x8] sm:$0xff]  ;;  %v1940_v10 = vmul.f32 %v4776_v6, %v4693_v4 }
 0x2cc   : > { %v2010_v34 = vmul.f32 %v1898_v20, %v4650_v47  ;;  %v1929_v47 = vmul.f32 %v1897_v33, %v4468_v48  ;;  %v1930_v19 = vmul.f32 %v1898_v20, %v4606_v5  ;;  %v1932_v5 = vmul.f32 %v1900_v56, %v4646_v59  ;;  %v5172_v20 = vld [vmem:[#allocation10_spill] sm:$0xff] }
 0x2cd   : > { %v2098_v11 = vpack.c.bf16 %v2076_v35, %v2075_v23  ;;  %v1977_v23 = vmul.f32 %v1946_v50, %v1913_v39 }
 0x2ce   : > { %v2074_v9 = vadd.f32 %v2058_v17, %v2010_v34 }
 0x2cf   : > { %2126 = vmatpush.bf16.xpose.msra.mxu2 %v2099_v49  ;;  %v2009_v49 = vmul.f32 %v1897_v33, %v4512_v45  ;;  %v1993_v45 = vadd.f32 %v1977_v23, %v1929_v47  ;;  %v5173_v33 = vld [vmem:[#allocation13_spill] sm:$0xff] }
 0x2d1   : > { %v1952_v55 = vpop.permute.xlu1 %1951  ;;  %v2073_v35 = vadd.f32 %v2057_v26, %v2009_v49  ;;  %v1962_v22 = vpop.permute.xlu2 %1961 }
 0x2d2   : > { %v1985_v17 = vmul.f32 %v1962_v22, %v4793_v63  ;;  %v1931_v22 = vmul.f32 %v1899_v21, %v4484_v18 }
 0x2d3   : > { %v2097_v0 = vpack.c.bf16 %v2074_v9, %v2073_v35  ;;  %v5174_v9 = vld [vmem:[#allocation17_spill] sm:$0xff] }
 0x2d4   : > { %v2001_v52 = vadd.f32 %v1985_v17, %v1937_v25 }
 0x2d7   : > { %2127 = vmatpush.bf16.xpose.msra.mxu2 %v2098_v11 }
 0x2d9   : > { %v1958_v29 = vpop.permute.xlu1 %1957  ;;  %v1968_v18 = vpop.permute.xlu2 %1967 }
 0x2da   : > { %v1983_v38 = vmul.f32 %v1958_v29, %v1919_v46  ;;  %v1994_v46 = vadd.f32 %v1978_v51, %v1930_v19  ;;  %v1982_v19 = vmul.f32 %v1956_v7, %v4837_v32  ;;  %v2106_v51 = vld [vmem:[#allocation2] sm:$0xff] }
 0x2dc   : > { %v1999_v42 = vadd.f32 %v1983_v38, %v1935_v15  ;;  %v2089_v50 = vpack.c.bf16 %v1994_v46, %v1993_v45  ;;  %v1998_v57 = vadd.f32 %v1982_v19, %v1934_v13  ;;  %v5176_v15 = vld [vmem:[#allocation14_spill] sm:$0xff] }
 0x2dd   : > { %v2111_v19 = vld [vmem:[#allocation2 + $0x8] sm:$0xff] }
 0x2de   : > { %v2092_v11 = vpack.c.bf16 %v4859_v27, %v1999_v42  ;;  %v1980_v42 = vmul.f32 %v1952_v55, %v1916_v8  ;;  %v1979_v27 = vmul.f32 %v1950_v44, %v1915_v40  ;;  %v1966_v44 = vpop.permute.xlu0 %1965  ;;  %v1988_v8 = vmul.f32 %v1968_v18, %v4760_v36 }
 0x2df   : > { %2128 = vmatpush.bf16.xpose.msra.mxu2 %v2097_v0  ;;  %v1987_v32 = vmul.f32 %v1966_v44, %v4765_v31  ;;  %v1941_v55 = vmul.f32 %v4719_v24, %v5157_v14  ;;  %v1942_v31 = vmul.f32 %v4724_v28, %v4663_v30  ;;  %v5177_v14 = vld [vmem:[#allocation11_spill] sm:$0xff]  ;;  %v2113_v44 = vld [vmem:[#allocation2 + $0x40] sm:$0xff] }
 0x2e0   : > { %v1996_v63 = vadd.f32 %v1980_v42, %v1932_v5  ;;  %v1995_v39 = vadd.f32 %v1979_v27, %v1931_v22  ;;  %v1943_v24 = vmul.f32 %v5177_v14, %v5176_v15  ;;  %v2105_v30 = vld [vmem:[#allocation2 + $0x30] sm:$0xff]  ;;  %v2110_v22 = vld [vmem:[#allocation2 + $0x68] sm:$0xff] }
 0x2e1   : > { %v1964_v34 = vpop.permute.xlu1 %1963 }
 0x2e2   : > { %v1986_v48 = vmul.f32 %v1964_v34, %v4788_v3  ;;  %v2090_v2 = vpack.c.bf16 %v1996_v63, %v1995_v39  ;;  %v1981_v3 = vmul.f32 %v4826_v61, %v4832_v41  ;;  %v1939_v61 = vmul.f32 %v4771_v12, %v4466_v62  ;;  %v1974_v12 = vpop.permute.xlu2 %1973  ;;  %v2107_v34 = vld [vmem:[#allocation2 + $0x58] sm:$0xff] }
 0x2e3   : > { %v2004_v41 = vadd.f32 %v1988_v8, %v1940_v10  ;;  %v1991_v49 = vmul.f32 %v1974_v12, %v5173_v33 }
 0x2e4   : > { %v2002_v37 = vadd.f32 %v1986_v48, %v1938_v54  ;;  %v1997_v59 = vadd.f32 %v1981_v3, %v1933_v58  ;;  %v2003_v16 = vadd.f32 %v1987_v32, %v1939_v61  ;;  %v2108_v48 = vld [vmem:[#allocation2 + $0x18] sm:$0xff]  ;;  %v2114_v61 = vld [vmem:[#allocation2 + $0x20] sm:$0xff] }
 0x2e5   : > { %v2007_v38 = vadd.f32 %v1991_v49, %v1943_v24  ;;  %v2120_v24 = vld [vmem:[#allocation2 + $0x28] sm:$0xff] }
 0x2e6   : > { %2129 = vmatmul.bf16.vlgmr.msra.gmra.mxu2 %v2089_v50  ;;  %v2093_v0 = vpack.c.bf16 %v2002_v37, %v2001_v52  ;;  %v2091_v40 = vpack.c.bf16 %v1998_v57, %v1997_v59  ;;  %v2094_v1 = vpack.c.bf16 %v2004_v41, %v2003_v16  ;;  %v1972_v56 = vpop.permute.xlu0 %1971  ;;  %v2112_v57 = vld [vmem:[#allocation2 + $0x48] sm:$0xff] }
 0x2e7   : > { %v1990_v36 = vmul.f32 %v1972_v56, %v4713_v53 }
 0x2e9   : > { %v1970_v60 = vpop.permute.xlu1 %1969  ;;  %v2006_v6 = vadd.f32 %v1990_v36, %v1942_v31  ;;  %v2116_v36 = vld [vmem:[#allocation2 + $0x38] sm:$0xff] }
 0x2ea   : > { %v1989_v21 = vmul.f32 %v1970_v60, %v4708_v43  ;;  %v5175_v43 = vld [vmem:[#allocation12_spill] sm:$0xff] }
 0x2eb   : > { %v1944_v29 = vmul.f32 %v5175_v43, %v5174_v9  ;;  %v2115_v60 = vld [vmem:[#allocation2 + $0x10] sm:$0xff]  ;;  %v2119_v43 = vld [vmem:[#allocation2 + $0x78] sm:$0xff] }
 0x2ec   : > { %v2005_v4 = vadd.f32 %v1989_v21, %v1941_v55 }
 0x2ee   : > { %v2095_v7 = vpack.c.bf16 %v2006_v6, %v2005_v4 }
 0x2f1   : > { %v1976_v62 = vpop.permute.xlu1 %1975 }
 0x2f2   : > { %v1992_v26 = vmul.f32 %v1976_v62, %v5172_v20 }
 0x2f4   : > { %v2008_v53 = vadd.f32 %v1992_v26, %v1944_v29  ;;  %v2118_v26 = vld [vmem:[#allocation2 + $0x70] sm:$0xff] }
 0x2f6   : > { %2134 = vmatmul.bf16.gmra.mxu2 %v2090_v2  ;;  %v2096_v35 = vpack.c.bf16 %v2008_v53, %v2007_v38 }
 0x306   : > { %2139 = vmatmul.bf16.gmra.mxu2 %v2091_v40 }
 0x316   : > { %2144 = vmatmul.bf16.gmra.mxu2 %v2092_v11 }
 0x326   : > { %2149 = vmatmul.bf16.gmra.mxu2 %v2093_v0  ;;  %v2109_v0 = vld [vmem:[#allocation2 + $0x50] sm:$0xff] }
 0x336   : > { %2154 = vmatmul.bf16.gmra.mxu2 %v2094_v1 }
 0x346   : > { %2159 = vmatmul.bf16.gmra.mxu2 %v2095_v7  ;;  %v2117_v7 = vld [vmem:[#allocation2 + $0x60] sm:$0xff] }
 0x356   : > { %2164 = vmatmul.bf16.gmra.mxu2 %v2096_v35 }
 0x369   : > { %v2130_v28 = vpop.f32.mrf.mxu2 }
 0x36a   : > { %v4925_v23 = vadd.f32 %v2130_v28, %v2105_v30 }
 0x36c   : > { %v2170_v47 = vmax.f32 %v4925_v23, -3.4028235e+38 }
 0x36e   : > { %2186 = vmax.xlane.f32.xlu0 %v2170_v47 }
 0x371   : > { %v2132_v11 = vpop.f32.mrf.mxu2 }
 0x372   : > { %v4930_v45 = vadd.f32 %v2132_v11, %v2106_v51 }
 0x374   : > { %v2171_v17 = vmax.f32 %v4930_v45, -3.4028235e+38 }
 0x376   : > { %2188 = vmax.xlane.f32.xlu2 %v2171_v17 }
 0x379   : > { %v2135_v25 = vpop.f32.mrf.mxu2 }
 0x37a   : > { %v4935_v46 = vadd.f32 %v2135_v25, %v2107_v34 }
 0x37c   : > { %v2172_v54 = vmax.f32 %v4935_v46, -3.4028235e+38 }
 0x37e   : > { %2190 = vmax.xlane.f32.xlu1 %v2172_v54 }
 0x381   : > { %v2137_v50 = vpop.f32.mrf.mxu2 }
 0x382   : > { %v4940_v52 = vadd.f32 %v2137_v50, %v2108_v48 }
 0x384   : > { %v2173_v37 = vmax.f32 %v4940_v52, -3.4028235e+38 }
 0x386   : > { %2192 = vmax.xlane.f32.xlu0 %v2173_v37 }
 0x389   : > { %v2140_v42 = vpop.f32.mrf.mxu2 }
 0x38a   : > { %v4945_v5 = vadd.f32 %v2140_v42, %v2109_v0 }
 0x38c   : > { %v2174_v27 = vmax.f32 %v4945_v5, -3.4028235e+38 }
 0x38e   : > { %2194 = vmax.xlane.f32.xlu2 %v2174_v27 }
 0x391   : > { %v2142_v63 = vpop.f32.mrf.mxu2 }
 0x392   : > { %v4950_v39 = vadd.f32 %v2142_v63, %v2110_v22 }
 0x394   : > { %v2175_v2 = vmax.f32 %v4950_v39, -3.4028235e+38 }
 0x396   : > { %2196 = vmax.xlane.f32.xlu1 %v2175_v2 }
 0x399   : > { %v2145_v13 = vpop.f32.mrf.mxu2 }
 0x39a   : > { %v4955_v3 = vadd.f32 %v2145_v13, %v2111_v19 }
 0x39c   : > { %v2176_v58 = vmax.f32 %v4955_v3, -3.4028235e+38 }
 0x39e   : > { %2198 = vmax.xlane.f32.xlu0 %v2176_v58 }
 0x3a1   : > { %v2147_v59 = vpop.f32.mrf.mxu2 }
 0x3a2   : > { %v4960_v40 = vadd.f32 %v2147_v59, %v2112_v57 }
 0x3a4   : > { %v2177_v18 = vmax.f32 %v4960_v40, -3.4028235e+38  ;;  %v3161_v40 = vld [vmem:[%s3558_s14 + $0x74] sm:$0xf] }
 0x3a6   : > { %2200 = vmax.xlane.f32.xlu2 %v2177_v18 }
 0x3a9   : > { %v2150_v8 = vpop.f32.mrf.mxu2 }
 0x3aa   : > { %v4965_v32 = vadd.f32 %v2150_v8, %v2113_v44 }
 0x3ac   : > { %v2178_v10 = vmax.f32 %v4965_v32, -3.4028235e+38 }
 0x3ae   : > { %2202 = vmax.xlane.f32.xlu1 %v2178_v10 }
 0x3b1   : > { %v2152_v41 = vpop.f32.mrf.mxu2 }
 0x3b2   : > { %v4970_v16 = vadd.f32 %v2152_v41, %v2114_v61 }
 0x3b4   : > { %v2179_v1 = vmax.f32 %v4970_v16, -3.4028235e+38  ;;  %v3076_v16 = vld [vmem:[%s3558_s14 + $0x60] sm:$0xf] }
 0x3b6   : > { %2204 = vmax.xlane.f32.xlu0 %v2179_v1 }
 0x3b9   : > { %v2155_v56 = vpop.f32.mrf.mxu2 }
 0x3ba   : > { %v4975_v21 = vadd.f32 %v2155_v56, %v2115_v60 }
 0x3bc   : > { %v2180_v55 = vmax.f32 %v4975_v21, -3.4028235e+38 }
 0x3be   : > { %2206 = vmax.xlane.f32.xlu2 %v2180_v55 }
 0x3c1   : > { %v2157_v31 = vpop.f32.mrf.mxu2 }
 0x3c2   : > { %v4980_v4 = vadd.f32 %v2157_v31, %v2116_v36 }
 0x3c4   : > { %v2181_v6 = vmax.f32 %v4980_v4, -3.4028235e+38  ;;  %v3068_v4 = vld [vmem:[%s3558_s14 + $0x50] sm:$0xf] }
 0x3c6   : > { %2208 = vmax.xlane.f32.xlu1 %v2181_v6 }
 0x3c9   : > { %v2160_v62 = vpop.f32.mrf.mxu2 }
 0x3ca   : > { %v4985_v12 = vadd.f32 %v2160_v62, %v2117_v7  ;;  %v3084_v62 = vld [vmem:[%s3558_s14 + $0x70] sm:$0xf] }
 0x3cc   : > { %v2182_v20 = vmax.f32 %v4985_v12, -3.4028235e+38 }
 0x3ce   : > { %2210 = vmax.xlane.f32.xlu0 %v2182_v20 }
 0x3d1   : > { %v2162_v33 = vpop.f32.mrf.mxu2 }
 0x3d2   : > { %v4990_v49 = vadd.f32 %v2162_v33, %v2118_v26  ;;  %v3162_v26 = vld [vmem:[%s3558_s14 + $0x74] sm:$0xf0] }
 0x3d3   : > { %v3085_v33 = vor.u32 %v3162_v26, %v3084_v62 }
 0x3d4   : > { %v2183_v9 = vmax.f32 %v4990_v49, -3.4028235e+38  ;;  %v3052_v49 = vld [vmem:[%s3558_s14 + $0x30] sm:$0xf] }
 0x3d5   : > { %2499 = vmatpush.bf16.msra.mxu0 %v3085_v33  ;;  %v3046_v33 = vld [vmem:[%s3558_s14 + $0x28] sm:$0xf0] }
 0x3d6   : > { %2212 = vmax.xlane.f32.xlu2 %v2183_v9 }
 0x3d9   : > { %v2165_v29 = vpop.f32.mrf.mxu2 }
 0x3da   : > { %v4995_v15 = vadd.f32 %v2165_v29, %v2119_v43 }
 0x3dc   : > { %v2184_v14 = vmax.f32 %v4995_v15, -3.4028235e+38 }
 0x3de   : > { %2214 = vmax.xlane.f32.xlu1 %v2184_v14 }
 0x3e1   : > { %v2187_v53 = vpop.xlane.xlu0 %2186  ;;  %v2167_v38 = vpop.f32.mrf.mxu2 }
 0x3e2   : > { %v2218_v35 = vsub.f32 %v2170_v47, %v2187_v53  ;;  %v5002_v30 = vadd.f32 %v2167_v38, %v2120_v24 }
 0x3e4   : > { %v2234_v28 = vmul.f32 1.442695, %v2218_v35  ;;  %v2185_v51 = vmax.f32 %v5002_v30, -3.4028235e+38 }
 0x3e6   : > { %3280 = vpow2.f32 %v2234_v28  ;;  %2216 = vmax.xlane.f32.xlu0 %v2185_v51 }
 0x3e9   : > { %v2189_v11 = vpop.xlane.xlu2 %2188 }
 0x3ea   : > { %v2219_v34 = vsub.f32 %v2171_v17, %v2189_v11 }
 0x3ec   : > { %v3281_v25 = vpop.eup %3280  ;;  %v2236_v48 = vmul.f32 1.442695, %v2219_v34  ;;  %v3159_v34 = vld [vmem:[%s3558_s14 + $0x64] sm:$0xf] }
 0x3ed   : > { %2266 = vadd.xlane.f32.xlu2 %v3281_v25 }
 0x3ee   : > { %3282 = vpow2.f32 %v2236_v48  ;;  %v3078_v48 = vld [vmem:[%s3558_s14 + $0x68] sm:$0xf0] }
 0x3f1   : > { %v2191_v50 = vpop.xlane.xlu1 %2190 }
 0x3f2   : > { %v2220_v23 = vsub.f32 %v2172_v54, %v2191_v50 }
 0x3f4   : > { %v3283_v47 = vpop.eup %3282  ;;  %v2238_v0 = vmul.f32 1.442695, %v2220_v23  ;;  %v3081_v23 = vor.u32 %v3159_v34, %v3078_v48 }
 0x3f5   : > { %v2298_v42 = vpack.c.bf16 %v3283_v47, %v3281_v25  ;;  %2268 = vadd.xlane.f32.xlu1 %v3283_v47 }
 0x3f6   : > { %3284 = vpow2.f32 %v2238_v0 }
 0x3f7   : > { %2322 = vmatmul.bf16.vlgmr.msra.gmra.mxu3 %v2298_v42 }
 0x3f9   : > { %v2193_v22 = vpop.xlane.xlu0 %2192 }
 0x3fa   : > { %v2221_v63 = vsub.f32 %v2173_v37, %v2193_v22 }
 0x3fc   : > { %v3285_v45 = vpop.eup %3284  ;;  %v2240_v17 = vmul.f32 1.442695, %v2221_v63 }
 0x3fd   : > { %2270 = vadd.xlane.f32.xlu0 %v3285_v45 }
 0x3fe   : > { %3286 = vpow2.f32 %v2240_v17  ;;  %v3157_v17 = vld [vmem:[%s3558_s14 + $0x54] sm:$0xf] }
 0x401   : > { %v2195_v19 = vpop.xlane.xlu2 %2194 }
 0x402   : > { %v2222_v13 = vsub.f32 %v2174_v27, %v2195_v19 }
 0x404   : > { %v3287_v46 = vpop.eup %3286  ;;  %v2242_v54 = vmul.f32 1.442695, %v2222_v13  ;;  %v3070_v13 = vld [vmem:[%s3558_s14 + $0x58] sm:$0xf0] }
 0x405   : > { %2272 = vadd.xlane.f32.xlu2 %v3287_v46  ;;  %v2299_v57 = vpack.c.bf16 %v3287_v46, %v3285_v45 }
 0x406   : > { %3288 = vpow2.f32 %v2242_v54  ;;  %v3073_v54 = vor.u32 %v3157_v17, %v3070_v13 }
 0x407   : > { %2327 = vmatmul.bf16.gmra.mxu3 %v2299_v57 }
 0x409   : > { %v2197_v59 = vpop.xlane.xlu1 %2196 }
 0x40a   : > { %v2223_v44 = vsub.f32 %v2175_v2, %v2197_v59 }
 0x40c   : > { %v3289_v52 = vpop.eup %3288  ;;  %v2244_v37 = vmul.f32 1.442695, %v2223_v44  ;;  %v3060_v44 = vld [vmem:[%s3558_s14 + $0x40] sm:$0xf] }
 0x40d   : > { %2274 = vadd.xlane.f32.xlu1 %v3289_v52 }
 0x40e   : > { %3290 = vpow2.f32 %v2244_v37  ;;  %v3155_v37 = vld [vmem:[%s3558_s14 + $0x44] sm:$0xf] }
 0x411   : > { %v2199_v8 = vpop.xlane.xlu0 %2198 }
 0x412   : > { %v2224_v61 = vsub.f32 %v2176_v58, %v2199_v8 }
 0x414   : > { %v3291_v5 = vpop.eup %3290  ;;  %v2246_v27 = vmul.f32 1.442695, %v2224_v61 }
 0x415   : > { %2276 = vadd.xlane.f32.xlu0 %v3291_v5  ;;  %v2300_v41 = vpack.c.bf16 %v3291_v5, %v3289_v52  ;;  %v3156_v52 = vld [vmem:[%s3558_s14 + $0x44] sm:$0xf0]  ;;  %v3062_v5 = vld [vmem:[%s3558_s14 + $0x48] sm:$0xf0] }
 0x416   : > { %3292 = vpow2.f32 %v2246_v27  ;;  %v3061_v61 = vor.u32 %v3156_v52, %v3060_v44  ;;  %v3154_v27 = vld [vmem:[%s3558_s14 + $0x34] sm:$0xf0] }
 0x417   : > { %2332 = vmatmul.bf16.gmra.mxu3 %v2300_v41  ;;  %v3153_v41 = vld [vmem:[%s3558_s14 + $0x34] sm:$0xf] }
 0x419   : > { %v2201_v60 = vpop.xlane.xlu2 %2200 }
 0x41a   : > { %v2225_v39 = vsub.f32 %v2177_v18, %v2201_v60  ;;  %v3086_v18 = vld [vmem:[%s3558_s14 + $0x78] sm:$0xf0] }
 0x41b   : > { %v3089_v29 = vor.u32 %v3161_v40, %v3086_v18  ;;  %v3054_v60 = vld [vmem:[%s3558_s14 + $0x38] sm:$0xf0]  ;;  %v3036_v18 = vld [vmem:[%s3558_s14 + $0x10] sm:$0xf] }
 0x41c   : > { %v3293_v2 = vpop.eup %3292  ;;  %v2248_v56 = vmul.f32 1.442695, %v2225_v39  ;;  %v3057_v15 = vor.u32 %v3153_v41, %v3054_v60 }
 0x41d   : > { %2278 = vadd.xlane.f32.xlu2 %v3293_v2  ;;  %2548 = vmatpush.bf16.msra.mxu1 %v3089_v29  ;;  %v3150_v29 = vld [vmem:[%s3558_s14 + $0x14] sm:$0xf0] }
 0x41e   : > { %3294 = vpow2.f32 %v2248_v56  ;;  %v3053_v56 = vor.u32 %v3154_v27, %v3052_v49  ;;  %v3037_v30 = vor.u32 %v3150_v29, %v3036_v18 }
 0x421   : > { %v2203_v3 = vpop.xlane.xlu1 %2202  ;;  %2549 = vmatpush.bf16.msra.mxu1 %v3081_v23 }
 0x422   : > { %v2226_v58 = vsub.f32 %v2178_v10, %v2203_v3 }
 0x424   : > { %v3295_v36 = vpop.eup %3294  ;;  %v2250_v31 = vmul.f32 1.442695, %v2226_v58 }
 0x425   : > { %2280 = vadd.xlane.f32.xlu1 %v3295_v36  ;;  %v2301_v7 = vpack.c.bf16 %v3295_v36, %v3293_v2  ;;  %2550 = vmatpush.bf16.msra.mxu1 %v3073_v54  ;;  %v3044_v36 = vld [vmem:[%s3558_s14 + $0x20] sm:$0xf] }
 0x426   : > { %3296 = vpow2.f32 %v2250_v31  ;;  %v3152_v31 = vld [vmem:[%s3558_s14 + $0x24] sm:$0xf0] }
 0x427   : > { %2337 = vmatmul.bf16.gmra.mxu3 %v2301_v7  ;;  %v3151_v7 = vld [vmem:[%s3558_s14 + $0x24] sm:$0xf]  ;;  %v3045_v40 = vor.u32 %v3152_v31, %v3044_v36 }
 0x429   : > { %v2205_v43 = vpop.xlane.xlu0 %2204 }
 0x42a   : > { %v2227_v24 = vsub.f32 %v2179_v1, %v2205_v43  ;;  %v3160_v1 = vld [vmem:[%s3558_s14 + $0x64] sm:$0xf0]  ;;  %v3049_v43 = vor.u32 %v3151_v7, %v3046_v33 }
 0x42b   : > { %v3077_v25 = vor.u32 %v3160_v1, %v3076_v16  ;;  %v3030_v16 = vld [vmem:[%s3558_s14 + $0x8] sm:$0xf0] }
 0x42c   : > { %v3297_v32 = vpop.eup %3296  ;;  %v2252_v10 = vmul.f32 1.442695, %v2227_v24  ;;  %v3149_v24 = vld [vmem:[%s3558_s14 + $0x14] sm:$0xf] }
 0x42d   : > { %2282 = vadd.xlane.f32.xlu0 %v3297_v32  ;;  %2500 = vmatpush.bf16.msra.mxu0 %v3077_v25 }
 0x42e   : > { %3298 = vpow2.f32 %v2252_v10 }
 0x431   : > { %v2207_v53 = vpop.xlane.xlu2 %2206 }
 0x432   : > { %v2228_v38 = vsub.f32 %v2180_v55, %v2207_v53 }
 0x434   : > { %v3299_v35 = vpop.eup %3298  ;;  %v2254_v28 = vmul.f32 1.442695, %v2228_v38  ;;  %v3028_v38 = vld [vmem:[%s3558_s14] sm:$0xf] }
 0x435   : > { %2284 = vadd.xlane.f32.xlu2 %v3299_v35  ;;  %v2302_v11 = vpack.c.bf16 %v3299_v35, %v3297_v32  ;;  %v3038_v32 = vld [vmem:[%s3558_s14 + $0x18] sm:$0xf0]  ;;  %v3148_v35 = vld [vmem:[%s3558_s14 + $0x4] sm:$0xf0] }
 0x436   : > { %3300 = vpow2.f32 %v2254_v28  ;;  %v3147_v28 = vld [vmem:[%s3558_s14 + $0x4] sm:$0xf] }
 0x437   : > { %2342 = vmatmul.bf16.gmra.mxu3 %v2302_v11  ;;  %v3029_v11 = vor.u32 %v3148_v35, %v3028_v38  ;;  %v3033_v1 = vor.u32 %v3147_v28, %v3030_v16 }
 0x439   : > { %v2209_v50 = vpop.xlane.xlu1 %2208 }
 0x43a   : > { %v2229_v47 = vsub.f32 %v2181_v6, %v2209_v50  ;;  %v3158_v6 = vld [vmem:[%s3558_s14 + $0x54] sm:$0xf0] }
 0x43b   : > { %v3069_v19 = vor.u32 %v3158_v6, %v3068_v4 }
 0x43c   : > { %v3301_v21 = vpop.eup %3300  ;;  %v2256_v55 = vmul.f32 1.442695, %v2229_v47 }
 0x43d   : > { %2286 = vadd.xlane.f32.xlu1 %v3301_v21  ;;  %2501 = vmatpush.bf16.msra.mxu0 %v3069_v19 }
 0x43e   : > { %3302 = vpow2.f32 %v2256_v55 }
 0x441   : > { %v2211_v0 = vpop.xlane.xlu0 %2210  ;;  %2502 = vmatpush.bf16.msra.mxu0 %v3061_v61 }
 0x442   : > { %v2230_v42 = vsub.f32 %v2182_v20, %v2211_v0 }
 0x444   : > { %v3303_v22 = vpop.eup %3302  ;;  %v2258_v63 = vmul.f32 1.442695, %v2230_v42 }
 0x445   : > { %2288 = vadd.xlane.f32.xlu0 %v3303_v22  ;;  %v2303_v45 = vpack.c.bf16 %v3303_v22, %v3301_v21  ;;  %2503 = vmatpush.bf16.msra.mxu0 %v3053_v56 }
 0x446   : > { %3304 = vpow2.f32 %v2258_v63 }
 0x447   : > { %2347 = vmatmul.bf16.gmra.mxu3 %v2303_v45 }
 0x449   : > { %v2213_v46 = vpop.xlane.xlu2 %2212  ;;  %2504 = vmatpush.bf16.msra.mxu0 %v3045_v40 }
 0x44a   : > { %v2231_v12 = vsub.f32 %v2183_v9, %v2213_v46  ;;  %v3065_v9 = vor.u32 %v3155_v37, %v3062_v5 }
 0x44c   : > { %v3305_v20 = vpop.eup %3304  ;;  %v2260_v57 = vmul.f32 1.442695, %v2231_v12  ;;  %2551 = vmatpush.bf16.msra.mxu1 %v3065_v9 }
 0x44d   : > { %2290 = vadd.xlane.f32.xlu2 %v3305_v20  ;;  %2505 = vmatpush.bf16.msra.mxu0 %v3037_v30 }
 0x44e   : > { %3306 = vpow2.f32 %v2260_v57 }
 0x450   : > { %2552 = vmatpush.bf16.msra.mxu1 %v3057_v15 }
 0x451   : > { %v2215_v59 = vpop.xlane.xlu1 %2214  ;;  %2506 = vmatpush.bf16.msra.mxu0 %v3029_v11 }
 0x452   : > { %v2232_v8 = vsub.f32 %v2184_v14, %v2215_v59 }
 0x454   : > { %v3307_v39 = vpop.eup %3306  ;;  %v2262_v2 = vmul.f32 1.442695, %v2232_v8  ;;  %2553 = vmatpush.bf16.msra.mxu1 %v3049_v43 }
 0x455   : > { %2292 = vadd.xlane.f32.xlu1 %v3307_v39  ;;  %v2304_v3 = vpack.c.bf16 %v3307_v39, %v3305_v20 }
 0x456   : > { %3308 = vpow2.f32 %v2262_v2 }
 0x457   : > { %2352 = vmatmul.bf16.gmra.mxu3 %v2304_v3 }
 0x459   : > { %v2217_v14 = vpop.xlane.xlu0 %2216 }
 0x45a   : > { %v2233_v58 = vsub.f32 %v2185_v51, %v2217_v14  ;;  %v3041_v51 = vor.u32 %v3149_v24, %v3038_v32 }
 0x45c   : > { %v3309_v62 = vpop.eup %3308  ;;  %v2264_v26 = vmul.f32 1.442695, %v2233_v58  ;;  %2554 = vmatpush.bf16.msra.mxu1 %v3041_v51 }
 0x45d   : > { %2294 = vadd.xlane.f32.xlu0 %v3309_v62 }
 0x45e   : > { %3310 = vpow2.f32 %v2264_v26 }
 0x460   : > { %2555 = vmatpush.bf16.msra.mxu1 %v3033_v1  ;;  %v2267_v34 = vpop.xlane.xlu2 %2266 }
 0x461   : > { %3312 = vrcp.f32 %v2267_v34 }
 0x464   : > { %v3311_v10 = vpop.eup %3310 }
 0x465   : > { %2296 = vadd.xlane.f32.xlu2 %v3311_v10  ;;  %v2305_v53 = vpack.c.bf16 %v3311_v10, %v3309_v62 }
 0x467   : > { %2357 = vmatmul.bf16.gmra.mxu3 %v2305_v53  ;;  %v3313_v50 = vpop.eup %3312 }
 0x468   : > { %v2269_v25 = vpop.xlane.xlu1 %2268 }
 0x469   : > { %3314 = vrcp.f32 %v2269_v25 }
 0x46f   : > { %v3315_v23 = vpop.eup %3314 }
 0x470   : > { %v2271_v42 = vpop.xlane.xlu0 %2270 }
 0x471   : > { %3316 = vrcp.f32 %v2271_v42 }
 0x477   : > { %v3317_v45 = vpop.eup %3316 }
 0x478   : > { %v2273_v22 = vpop.xlane.xlu2 %2272 }
 0x479   : > { %3318 = vrcp.f32 %v2273_v22 }
 0x47a   : > { %v2323_v48 = vpop.f32.mrf.mxu3 }
 0x47b   : > { %v2379_v21 = vmul.f32 %v3313_v50, %v2323_v48 }
 0x47f   : > { %v3319_v4 = vpop.eup %3318 }
 0x480   : > { %v2275_v46 = vpop.xlane.xlu1 %2274 }
 0x481   : > { %3320 = vrcp.f32 %v2275_v46 }
 0x482   : > { %v2325_v47 = vpop.f32.mrf.mxu3 }
 0x483   : > { %v2380_v55 = vmul.f32 %v3315_v23, %v2325_v47 }
 0x485   : > { %v2395_v0 = vpack.c.bf16 %v2380_v55, %v2379_v21 }
 0x487   : > { %2507 = vmatmul.bf16.vlgmr.msra.gmra.mxu0 %v2395_v0  ;;  %2556 = vmatmul.bf16.vlgmr.msra.gmra.mxu1 %v2395_v0  ;;  %v3321_v20 = vpop.eup %3320 }
 0x488   : > { %v2277_v54 = vpop.xlane.xlu0 %2276 }
 0x489   : > { %3322 = vrcp.f32 %v2277_v54 }
 0x48a   : > { %v2328_v63 = vpop.f32.mrf.mxu3 }
 0x48b   : > { %v2381_v17 = vmul.f32 %v3317_v45, %v2328_v63 }
 0x48f   : > { %v3323_v57 = vpop.eup %3322 }
 0x490   : > { %v2279_v8 = vpop.xlane.xlu2 %2278 }
 0x491   : > { %3324 = vrcp.f32 %v2279_v8 }
 0x492   : > { %v2330_v6 = vpop.f32.mrf.mxu3 }
 0x493   : > { %v2382_v19 = vmul.f32 %v3319_v4, %v2330_v6 }
 0x495   : > { %v2396_v13 = vpack.c.bf16 %v2382_v19, %v2381_v17 }
 0x497   : > { %2512 = vmatmul.bf16.gmra.mxu0 %v2396_v13  ;;  %2561 = vmatmul.bf16.gmra.mxu1 %v2396_v13  ;;  %v3325_v49 = vpop.eup %3324 }
 0x498   : > { %v2281_v61 = vpop.xlane.xlu1 %2280 }
 0x499   : > { %3326 = vrcp.f32 %v2281_v61 }
 0x49a   : > { %v2333_v12 = vpop.f32.mrf.mxu3 }
 0x49b   : > { %v2383_v44 = vmul.f32 %v3321_v20, %v2333_v12 }
 0x49f   : > { %v3327_v27 = vpop.eup %3326 }
 0x4a0   : > { %v2283_v2 = vpop.xlane.xlu0 %2282 }
 0x4a1   : > { %3328 = vrcp.f32 %v2283_v2 }
 0x4a2   : > { %v2335_v59 = vpop.f32.mrf.mxu3 }
 0x4a3   : > { %v2384_v52 = vmul.f32 %v3323_v57, %v2335_v59 }
 0x4a5   : > { %v2397_v37 = vpack.c.bf16 %v2384_v52, %v2383_v44 }
 0x4a7   : > { %2517 = vmatmul.bf16.gmra.mxu0 %v2397_v37  ;;  %2566 = vmatmul.bf16.gmra.mxu1 %v2397_v37  ;;  %v3329_v15 = vpop.eup %3328 }
 0x4a8   : > { %v2285_v56 = vpop.xlane.xlu2 %2284 }
 0x4a9   : > { %3330 = vrcp.f32 %v2285_v56 }
 0x4aa   : > { %v2338_v5 = vpop.f32.mrf.mxu3 }
 0x4ab   : > { %v2385_v41 = vmul.f32 %v3325_v49, %v2338_v5 }
 0x4af   : > { %v3331_v14 = vpop.eup %3330 }
 0x4b0   : > { %v2287_v62 = vpop.xlane.xlu1 %2286 }
 0x4b1   : > { %3332 = vrcp.f32 %v2287_v62 }
 0x4b2   : > { %v2340_v9 = vpop.f32.mrf.mxu3 }
 0x4b3   : > { %v2386_v60 = vmul.f32 %v3327_v27, %v2340_v9 }
 0x4b5   : > { %v2398_v39 = vpack.c.bf16 %v2386_v60, %v2385_v41 }
 0x4b7   : > { %2522 = vmatmul.bf16.gmra.mxu0 %v2398_v39  ;;  %2571 = vmatmul.bf16.gmra.mxu1 %v2398_v39  ;;  %v3333_v33 = vpop.eup %3332 }
 0x4b8   : > { %v2289_v26 = vpop.xlane.xlu0 %2288 }
 0x4b9   : > { %3334 = vrcp.f32 %v2289_v26 }
 0x4ba   : > { %v2343_v3 = vpop.f32.mrf.mxu3 }
 0x4bb   : > { %v2387_v36 = vmul.f32 %v3329_v15, %v2343_v3 }
 0x4bf   : > { %v3335_v18 = vpop.eup %3334 }
 0x4c0   : > { %v2291_v30 = vpop.xlane.xlu2 %2290 }
 0x4c1   : > { %3336 = vrcp.f32 %v2291_v30 }
 0x4c2   : > { %v2345_v58 = vpop.f32.mrf.mxu3 }
 0x4c3   : > { %v2388_v31 = vmul.f32 %v3331_v14, %v2345_v58 }
 0x4c5   : > { %v2399_v7 = vpack.c.bf16 %v2388_v31, %v2387_v36 }
 0x4c7   : > { %2527 = vmatmul.bf16.gmra.mxu0 %v2399_v7  ;;  %2576 = vmatmul.bf16.gmra.mxu1 %v2399_v7  ;;  %v3337_v53 = vpop.eup %3336 }
 0x4c8   : > { %v2293_v51 = vpop.xlane.xlu1 %2292 }
 0x4c9   : > { %3338 = vrcp.f32 %v2293_v51 }
 0x4ca   : > { %v2348_v40 = vpop.f32.mrf.mxu3 }
 0x4cb   : > { %v2389_v29 = vmul.f32 %v3333_v33, %v2348_v40 }
 0x4cf   : > { %v3339_v38 = vpop.eup %3338 }
 0x4d0   : > { %v2295_v1 = vpop.xlane.xlu0 %2294 }
 0x4d1   : > { %3340 = vrcp.f32 %v2295_v1 }
 0x4d2   : > { %v2350_v43 = vpop.f32.mrf.mxu3 }
 0x4d3   : > { %v2390_v24 = vmul.f32 %v3335_v18, %v2350_v43 }
 0x4d5   : > { %v2400_v32 = vpack.c.bf16 %v2390_v24, %v2389_v29 }
 0x4d7   : > { %2532 = vmatmul.bf16.gmra.mxu0 %v2400_v32  ;;  %2581 = vmatmul.bf16.gmra.mxu1 %v2400_v32  ;;  %v3341_v48 = vpop.eup %3340 }
 0x4d8   : > { %v2297_v34 = vpop.xlane.xlu2 %2296 }
 0x4d9   : > { %3342 = vrcp.f32 %v2297_v34 }
 0x4da   : > { %v2353_v10 = vpop.f32.mrf.mxu3 }
 0x4db   : > { %v2391_v28 = vmul.f32 %v3337_v53, %v2353_v10 }
 0x4df   : > { %v3343_v50 = vpop.eup %3342 }
 0x4e2   : > { %v2355_v35 = vpop.f32.mrf.mxu3 }
 0x4e3   : > { %v2392_v11 = vmul.f32 %v3339_v38, %v2355_v35 }
 0x4e5   : > { %v2401_v16 = vpack.c.bf16 %v2392_v11, %v2391_v28 }
 0x4e7   : > { %2537 = vmatmul.bf16.gmra.mxu0 %v2401_v16  ;;  %2586 = vmatmul.bf16.gmra.mxu1 %v2401_v16 }
 0x4ea   : > { %v2358_v25 = vpop.f32.mrf.mxu3 }
 0x4eb   : > { %v2393_v47 = vmul.f32 %v3341_v48, %v2358_v25 }
 0x4f2   : > { %v2360_v23 = vpop.f32.mrf.mxu3 }
 0x4f3   : > { %v2394_v21 = vmul.f32 %v3343_v50, %v2360_v23 }
 0x4f5   : > { %v2402_v55 = vpack.c.bf16 %v2394_v21, %v2393_v47 }
 0x4f7   : > { %2542 = vmatmul.bf16.gmra.mxu0 %v2402_v55  ;;  %2591 = vmatmul.bf16.gmra.mxu1 %v2402_v55 }
 0x504   : > { %v2508_v0 = vpop.f32.mrf.mxu0  ;;  %v2557_v42 = vpop.f32.mrf.mxu1 }
 0x505   : > { %v2597_v22 = vpack.c.bf16 %v2557_v42, %v2508_v0 }
 0x507   : > { %2613 = vst [vmem:[%s3568_s22] sm:$0xff] %v2597_v22 }
 0x50c   : > { %v2510_v63 = vpop.f32.mrf.mxu0  ;;  %v2559_v45 = vpop.f32.mrf.mxu1 }
 0x50d   : > { %v2598_v4 = vpack.c.bf16 %v2559_v45, %v2510_v63 }
 0x50f   : > { %2614 = vst [vmem:[%s3568_s22 + $0x8] sm:$0xff] %v2598_v4 }
 0x514   : > { %v2513_v6 = vpop.f32.mrf.mxu0  ;;  %v2562_v17 = vpop.f32.mrf.mxu1 }
 0x515   : > { %v2599_v19 = vpack.c.bf16 %v2562_v17, %v2513_v6 }
 0x517   : > { %2615 = vst [vmem:[%s3568_s22 + $0x10] sm:$0xff] %v2599_v19 }
 0x51c   : > { %v2515_v13 = vpop.f32.mrf.mxu0  ;;  %v2564_v46 = vpop.f32.mrf.mxu1 }
 0x51d   : > { %v2600_v54 = vpack.c.bf16 %v2564_v46, %v2515_v13 }
 0x51f   : > { %2616 = vst [vmem:[%s3568_s22 + $0x18] sm:$0xff] %v2600_v54 }
 0x524   : > { %v2518_v12 = vpop.f32.mrf.mxu0  ;;  %v2567_v20 = vpop.f32.mrf.mxu1 }
 0x525   : > { %v2601_v57 = vpack.c.bf16 %v2567_v20, %v2518_v12 }
 0x527   : > { %2617 = vst [vmem:[%s3568_s22 + $0x20] sm:$0xff] %v2601_v57 }
 0x52c   : > { %v2520_v59 = vpop.f32.mrf.mxu0  ;;  %v2569_v44 = vpop.f32.mrf.mxu1 }
 0x52d   : > { %v2602_v52 = vpack.c.bf16 %v2569_v44, %v2520_v59 }
 0x52f   : > { %2618 = vst [vmem:[%s3568_s22 + $0x28] sm:$0xff] %v2602_v52 }
 0x534   : > { %v2523_v37 = vpop.f32.mrf.mxu0  ;;  %v2572_v8 = vpop.f32.mrf.mxu1 }
 0x535   : > { %v2603_v61 = vpack.c.bf16 %v2572_v8, %v2523_v37 }
 0x537   : > { %2619 = vst [vmem:[%s3568_s22 + $0x30] sm:$0xff] %v2603_v61 }
 0x53c   : > { %v2525_v5 = vpop.f32.mrf.mxu0  ;;  %v2574_v49 = vpop.f32.mrf.mxu1 }
 0x53d   : > { %v2604_v27 = vpack.c.bf16 %v2574_v49, %v2525_v5 }
 0x53f   : > { %2620 = vst [vmem:[%s3568_s22 + $0x38] sm:$0xff] %v2604_v27 }
 0x544   : > { %v2528_v9 = vpop.f32.mrf.mxu0  ;;  %v2577_v41 = vpop.f32.mrf.mxu1 }
 0x545   : > { %v2605_v60 = vpack.c.bf16 %v2577_v41, %v2528_v9 }
 0x547   : > { %2621 = vst [vmem:[%s3568_s22 + $0x40] sm:$0xff] %v2605_v60 }
 0x54c   : > { %v2530_v39 = vpop.f32.mrf.mxu0  ;;  %v2579_v2 = vpop.f32.mrf.mxu1 }
 0x54d   : > { %v2606_v56 = vpack.c.bf16 %v2579_v2, %v2530_v39 }
 0x54f   : > { %2622 = vst [vmem:[%s3568_s22 + $0x48] sm:$0xff] %v2606_v56 }
 0x554   : > { %v2533_v3 = vpop.f32.mrf.mxu0  ;;  %v2582_v15 = vpop.f32.mrf.mxu1 }
 0x555   : > { %v2607_v14 = vpack.c.bf16 %v2582_v15, %v2533_v3 }
 0x557   : > { %2623 = vst [vmem:[%s3568_s22 + $0x50] sm:$0xff] %v2607_v14 }
 0x55c   : > { %v2535_v58 = vpop.f32.mrf.mxu0  ;;  %v2584_v36 = vpop.f32.mrf.mxu1 }
 0x55d   : > { %v2608_v31 = vpack.c.bf16 %v2584_v36, %v2535_v58 }
 0x55f   : > { %2624 = vst [vmem:[%s3568_s22 + $0x58] sm:$0xff] %v2608_v31 }
 0x564   : > { %v2538_v7 = vpop.f32.mrf.mxu0  ;;  %v2587_v62 = vpop.f32.mrf.mxu1 }
 0x565   : > { %v2609_v26 = vpack.c.bf16 %v2587_v62, %v2538_v7 }
 0x567   : > { %2625 = vst [vmem:[%s3568_s22 + $0x60] sm:$0xff] %v2609_v26 }
 0x56c   : > { %v2540_v40 = vpop.f32.mrf.mxu0  ;;  %v2589_v33 = vpop.f32.mrf.mxu1 }
 0x56d   : > { %v2610_v18 = vpack.c.bf16 %v2589_v33, %v2540_v40 }
 0x56f   : > { %2626 = vst [vmem:[%s3568_s22 + $0x68] sm:$0xff] %v2610_v18 }
 0x574   : > { %v2543_v43 = vpop.f32.mrf.mxu0  ;;  %v2592_v29 = vpop.f32.mrf.mxu1 }
 0x575   : > { %v2611_v24 = vpack.c.bf16 %v2592_v29, %v2543_v43 }
 0x577   : > { %2627 = vst [vmem:[%s3568_s22 + $0x70] sm:$0xff] %v2611_v24 }
 0x57c   : > { %v2545_v32 = vpop.f32.mrf.mxu0  ;;  %v2594_v30 = vpop.f32.mrf.mxu1 }
 0x57d   : > { %v2612_v51 = vpack.c.bf16 %v2594_v30, %v2545_v32 }
 0x57f   : > { %2628 = vst [vmem:[%s3568_s22 + $0x78] sm:$0xff] %v2612_v51 }
 0x580 PF: > { %s19_s28 = sadd.s32 1, %s3435_s28   ;;  %s5178_s14 = sld [smem:[#allocation9_spill]] }
 0x581   : > { %p16_p12 = scmp.ge.s32.totalorder %s19_s28, 6   ;;  %s5179_s24 = smov %s3427_s26 }
 0x582   : > { %s5180_s25 = smov %s3431_s27  ;;  %s5181_s26 = smov %s5184_s30 }
 0x583   :  { %18 = sbr.rel (!%p16_p12) target bundleno = 7 (0x7), region = 101 }
 0x586   : > { %s5182_s27 = smov %s5178_s14 }
 0x588   :  { %2661 = vsyncpa [#allocation4], 1 }
 0x589   :  { %2663 = vsyncpa [#allocation4 + $0x1], 1 }
 0x58a   :  { %2664 = vsyncpa [#allocation5], 1 }
 0x58b   :  { %2666 = vsyncpa [#allocation5 + $0x1], 1 }

</bundles_post_ra>
